<compile_context>
chip_gen: v5e
topology: v5e:2x2
jax: 0.10.0
libtpu: 0.0.40
codegen_flags: <defaults>
</compile_context>

<pallas_src>
import functools
import math

import numpy as np
import jax
import jax.numpy as jnp
from jax import lax
from jax.experimental import pallas as pl
from jax.experimental.pallas import tpu as pltpu

_EPS = 1e-4


def _row_mask(Mw, W, Wp):
    """(Mw, 1) f32: 1.0 on valid wide-row columns, 0.0 on the 2 wrap columns."""
    row = lax.broadcasted_iota(jnp.int32, (Mw, 1), 0)
    return ((row % Wp) < W).astype(jnp.float32)


# --------- call 1: 3x3 conv (K-packed im2col) + partial BN1 sums ------------
def _conv1_kernel(xcols_ref, w1_ref, b1_ref, h1_ref, sums_ref, *, W, Wp):
    Mw = xcols_ref.shape[1]
    h = jnp.dot(xcols_ref[0], w1_ref[...],
                preferred_element_type=jnp.float32)           # (Mw, width) f32
    h = (h + b1_ref[...]) * _row_mask(Mw, W, Wp)              # pre-masked
    h1_ref[0] = h.astype(h1_ref.dtype)
    sums_ref[0, 0:1, :] = jnp.sum(h, axis=0, keepdims=True)
    sums_ref[0, 1:2, :] = jnp.sum(h * h, axis=0, keepdims=True)


# --------- call 2: BN1 + ReLU + 1x1 conv + partial BN2 sums -----------------
def _mid_kernel(h1_ref, w2_ref, b2_ref, bn1_ref, h2_ref, sums_ref, *, W, Wp):
    Mw = h1_ref.shape[1]
    h1 = h1_ref[0].astype(jnp.float32)
    a1 = jnp.maximum((h1 - bn1_ref[0:1, :]) * bn1_ref[1:2, :], 0.0)
    h2 = jnp.dot(a1.astype(jnp.bfloat16), w2_ref[...],
                 preferred_element_type=jnp.float32) + b2_ref[...]
    h2 = h2 * _row_mask(Mw, W, Wp)                            # pre-masked
    h2_ref[0] = h2.astype(h2_ref.dtype)
    sums_ref[0, 0:1, :] = jnp.sum(h2, axis=0, keepdims=True)
    sums_ref[0, 1:2, :] = jnp.sum(h2 * h2, axis=0, keepdims=True)


# --------- call 3: BN2 + ReLU + EdgePadding + 3x3 conv (N-packed) + head ----
def _out_kernel(h2_ref, w3p_ref, mb3_ref, bn2_ref, scale_ref, out_ref,
                zpad_ref, *, W, Wp, n_ch, n_out, lo, offs):
    Mw = h2_ref.shape[1]
    Np = zpad_ref.shape[0]
    nlanes = zpad_ref.shape[1]
    h2 = h2_ref[0].astype(jnp.float32)
    h2n = jnp.maximum((h2 - bn2_ref[0:1, :]) * bn2_ref[1:2, :], 0.0)
    h2n = h2n * _row_mask(Mw, W, Wp)       # wrap cols -> 0 (EdgePadding border)
    # one N-packed MXU matmul: z[m, t*n_out + c] = sum_k h2n[m, k] * w3[t, k, c]
    z = jnp.dot(h2n.astype(jnp.bfloat16), w3p_ref[...],
                preferred_element_type=jnp.float32)           # (Mw, 9*n_out)
    # place it in the zero-padded buffer (zero border == EdgePadding border)
    zpad_ref[0:lo, :] = jnp.zeros((lo, nlanes), jnp.float32)
    zpad_ref[lo + Mw:Np, :] = jnp.zeros((Np - lo - Mw, nlanes), jnp.float32)
    zpad_ref[lo:lo + Mw, :] = z
    # 9 cheap shifted adds finish the VALID 3x3 conv (edge bias + b3 + exp3
    # are already folded into mb3 / w3p by the wrapper)
    acc = mb3_ref[...]                                        # (Mw, n_out) f32
    for t, off in enumerate(offs):
        zt = zpad_ref[off:off + Mw, :]
        acc = acc + zt[:, t * n_out:(t + 1) * n_out]
    # split: first n_ch channels -> t ; last n_ch -> scale * tanh(.)
    ch = lax.broadcasted_iota(jnp.int32, (Mw, n_out), 1)
    out_ref[0] = jnp.where(ch < n_ch, acc, scale_ref[...] * jnp.tanh(acc))


def _border_mask(H, W):
    m = jnp.zeros((H + 2, W + 2), jnp.float32)
    m = m.at[:1, :].set(1.0).at[-1:, :].set(1.0)
    m = m.at[:, :1].set(1.0).at[:, -1:].set(1.0)
    return m


def _bn_combine(sums, n_el):
    """(B, 2, width) per-batch partial sums -> (2, width) [mean ; rsqrt(var+eps)]."""
    s = jnp.sum(sums, axis=0)
    mean = s[0] / n_el
    var = jnp.maximum(s[1] / n_el - mean * mean, 0.0)
    return jnp.stack([mean, lax.rsqrt(var + _EPS)], axis=0).astype(jnp.float32)


def _nbytes(shape, dtype):
    return math.prod(shape) * np.dtype(dtype).itemsize


def _vmem_limit(block_bytes, scratch_bytes=0):
    """Scoped-VMEM limit derived from the actual per-grid-step working set
    (double-buffered blocks + scratch + headroom) instead of a hardcoded cap."""
    est = 2 * block_bytes + scratch_bytes + (4 << 20)
    return int(min(100 << 20, max(16 << 20, est)))


def realnvp_conv_base_net(x_nchw, params):
    """RealNVPConvBaseNet forward.  NCHW in / NCHW out (t ++ scale*tanh(s))."""
    w1, b1, w2, b2, w3, b3, logs, scale = params
    B, Cin, H, W = x_nchw.shape
    width = w2.shape[0]
    n_out = w3.shape[-1]
    n_ch = n_out // 2
    Hp, Wp = H + 2, W + 2
    Mw = H * Wp                        # wide rows per batch (incl. 2 wrap cols)
    lo = Wp + 1                        # first interior row of the padded buffer
    Np = ((Hp * Wp + 2 + 7) // 8) * 8  # padded-z rows: covers largest tap offset
    offs = tuple(di * Wp + dj for di in range(3) for dj in range(3))
    K1 = 9 * Cin
    n_el = float(B * H * W)
    f32, bf16 = jnp.float32, jnp.bfloat16

    # ---------------- wrapper-side layout plumbing / parameter folding -------
    x = jnp.transpose(x_nchw, (0, 2, 3, 1)).astype(f32)                 # NHWC
    xflat = jnp.pad(x, ((0, 0), (1, 1), (1, 1), (0, 0))).reshape(B, Hp * Wp, Cin)
    xflat = jnp.pad(xflat, ((0, 0), (0, 2), (0, 0)))    # cover largest tap offset
    # im2col-lite: K-pack the 9 taps of conv1 -> (B, Mw, 9*Cin)
    xcols = jnp.concatenate([xflat[:, o:o + Mw, :] for o in offs],
                            axis=-1).astype(bf16)

    w1p = w1.reshape(K1, width).astype(bf16)            # tap-major, Cin-minor
    w2b = w2.astype(bf16)
    b1r = b1.reshape(1, width).astype(f32)
    b2r = b2.reshape(1, width).astype(f32)

    # conv3: N-pack the 9 taps; fold the constant edge-bias channel, b3 and the
    # LogExpScale factor exp(3*logs) into w3p / a spatial bias mb3.
    exp3 = jnp.exp(3.0 * logs.reshape(1, n_out)).astype(f32)
    w3_main = w3[:, :, :width, :].reshape(9, width, n_out)
    w3_edge = w3[:, :, width, :]                                        # (3,3,no)
    w3p = jnp.transpose(w3_main, (1, 0, 2)).reshape(width, 9 * n_out)
    w3p = (w3p * jnp.tile(exp3, (1, 9))).astype(bf16)
    bm = _border_mask(H, W)
    mbias = jnp.zeros((H, W, n_out), f32)
    for di in range(3):
        for dj in range(3):
            mbias = mbias + (bm[di:di + H, dj:dj + W, None]
                             * w3_edge[di, dj][None, None, :])
    mb3 = jnp.pad(mbias, ((0, 0), (0, 2), (0, 0))).reshape(Mw, n_out)
    mb3 = ((mb3 + b3[None, :]) * exp3).astype(f32)
    scale_arr = jnp.reshape(scale, (1, 1)).astype(f32)

    def batch_spec(shape):             # per-batch (1, ...) block
        return pl.BlockSpec((1,) + shape, lambda b: (b,) + (0,) * len(shape))

    def bcast_spec(shape):             # same block at every grid step
        return pl.BlockSpec(shape, lambda b: (0,) * len(shape))

    par = ("parallel",)                # batch steps independent -> megacore OK
    # TODO(synk): for very large H*W additionally tile the Mw axis (~512-row
    # tiles) inside each batch step to bound the per-step slab on v7x.

    # ---- call 1: conv1 (K-packed) + partial BN1 sums ------------------------
    blk1 = (_nbytes((Mw, K1), bf16) + _nbytes((K1, width), bf16)
            + _nbytes((1, width), f32) + _nbytes((Mw, width), bf16)
            + _nbytes((2, width), f32))
    h1, sums1 = pl.pallas_call(
        functools.partial(_conv1_kernel, W=W, Wp=Wp),
        grid=(B,),
        in_specs=[batch_spec((Mw, K1)),
                  bcast_spec((K1, width)),
                  bcast_spec((1, width))],
        out_specs=(batch_spec((Mw, width)), batch_spec((2, width))),
        out_shape=(jax.ShapeDtypeStruct((B, Mw, width), bf16),
                   jax.ShapeDtypeStruct((B, 2, width), f32)),
        compiler_params=pltpu.CompilerParams(
            dimension_semantics=par, vmem_limit_bytes=_vmem_limit(blk1)),
    )(xcols, w1p, b1r)

    bn1 = _bn_combine(sums1, n_el)

    # ---- call 2: BN1 + ReLU + 1x1 conv + partial BN2 sums -------------------
    blk2 = (2 * _nbytes((Mw, width), bf16) + _nbytes((width, width), bf16)
            + _nbytes((1, width), f32) + 2 * _nbytes((2, width), f32))
    h2, sums2 = pl.pallas_call(
        functools.partial(_mid_kernel, W=W, Wp=Wp),
        grid=(B,),
        in_specs=[batch_spec((Mw, width)),
                  bcast_spec((width, width)),
                  bcast_spec((1, width)),
                  bcast_spec((2, width))],
        out_specs=(batch_spec((Mw, width)), batch_spec((2, width))),
        out_shape=(jax.ShapeDtypeStruct((B, Mw, width), bf16),
                   jax.ShapeDtypeStruct((B, 2, width), f32)),
        input_output_aliases={0: 0},           # reuse h1's HBM buffer for h2
        compiler_params=pltpu.CompilerParams(
            dimension_semantics=par, vmem_limit_bytes=_vmem_limit(blk2)),
    )(h1, w2b, b2r, bn1)

    bn2 = _bn_combine(sums2, n_el)

    # ---- call 3: BN2 + ReLU + EdgePadding + conv3 (N-packed) + head ---------
    blk3 = (_nbytes((Mw, width), bf16) + _nbytes((width, 9 * n_out), bf16)
            + _nbytes((Mw, n_out), f32) + _nbytes((2, width), f32)
            + _nbytes((1, 1), f32) + _nbytes((Mw, n_out), f32))
    zpad_bytes = _nbytes((Np, 9 * n_out), f32)
    out_wide = pl.pallas_call(
        functools.partial(_out_kernel, W=W, Wp=Wp, n_ch=n_ch, n_out=n_out,
                          lo=lo, offs=offs),
        grid=(B,),
        in_specs=[batch_spec((Mw, width)),
                  bcast_spec((width, 9 * n_out)),
                  bcast_spec((Mw, n_out)),
                  bcast_spec((2, width)),
                  bcast_spec((1, 1))],
        out_specs=batch_spec((Mw, n_out)),
        out_shape=jax.ShapeDtypeStruct((B, Mw, n_out), f32),
        scratch_shapes=[pltpu.VMEM((Np, 9 * n_out), f32)],
        compiler_params=pltpu.CompilerParams(
            dimension_semantics=par,
            vmem_limit_bytes=_vmem_limit(blk3, zpad_bytes)),
    )(h2, w3p, mb3, bn2, scale_arr)

    # TODO(synk): emit (B, n_out, Mw) lane-dense directly from the kernel once
    # the in-kernel narrow (Mw, n_out) transpose is verified on all targets;
    # for now the final NCHW transpose runs in XLA on the small n_out output.
    out = out_wide.reshape(B, H, Wp, n_out)[:, :, :W, :]
    return jnp.transpose(out, (0, 3, 1, 2))                              # NCHW


def reference_forward(x_nchw, params):
    """Pure-JAX f32 reference mirroring the PyTorch forward (train-mode BN)."""
    w1, b1, w2, b2, w3, b3, logs, scale = params
    x = jnp.transpose(x_nchw, (0, 2, 3, 1)).astype(jnp.float32)
    B, H, W, _ = x.shape

    h = lax.conv_general_dilated(x, w1, (1, 1), ((1, 1), (1, 1)),
                                 dimension_numbers=("NHWC", "HWIO", "NHWC")) + b1
    h = (h - h.mean(axis=(0, 1, 2))) / jnp.sqrt(h.var(axis=(0, 1, 2)) + _EPS)
    h = jnp.maximum(h, 0.0)
    h = jnp.einsum("bhwc,cd->bhwd", h, w2) + b2
    h = (h - h.mean(axis=(0, 1, 2))) / jnp.sqrt(h.var(axis=(0, 1, 2)) + _EPS)
    h = jnp.maximum(h, 0.0)

    hp = jnp.pad(h, ((0, 0), (1, 1), (1, 1), (0, 0)))
    maskb = jnp.broadcast_to(_border_mask(H, W)[None, :, :, None],
                             (B, H + 2, W + 2, 1))
    hp = jnp.concatenate([hp, maskb], axis=-1)

    y = lax.conv_general_dilated(hp, w3, (1, 1), "VALID",
                                 dimension_numbers=("NHWC", "HWIO", "NHWC")) + b3
    y = y * jnp.exp(3.0 * logs)
    n_ch = y.shape[-1] // 2
    t = y[..., :n_ch]
    s = scale * jnp.tanh(y[..., n_ch:])
    out = jnp.concatenate([t, s], axis=-1)
    return jnp.transpose(out, (0, 3, 1, 2))


if __name__ == "__main__":
    key = jax.random.PRNGKey(0)
    # x_shape = (8, 16, 16) -> n_channels = 4, n_outputs = 2 * n_channels = 8
    B, Cin, H, W = 2, 4, 16, 16
    width = 32                      # PyTorch default is 512; small for the demo
    n_out = 2 * Cin

    ks = jax.random.split(key, 8)
    x = jax.random.normal(ks[0], (B, Cin, H, W), jnp.float32)
    w1 = jax.random.normal(ks[1], (3, 3, Cin, width), jnp.float32) * 0.1
    b1 = jax.random.normal(ks[2], (width,), jnp.float32) * 0.1
    w2 = jax.random.normal(ks[3], (width, width), jnp.float32) * 0.1
    b2 = jax.random.normal(ks[4], (width,), jnp.float32) * 0.1
    w3 = jax.random.normal(ks[5], (3, 3, width + 1, n_out), jnp.float32) * 0.1
    b3 = jax.random.normal(ks[6], (n_out,), jnp.float32) * 0.1
    logs = jax.random.normal(ks[7], (n_out,), jnp.float32) * 0.1   # LogExpScale
    scale = jnp.float32(1.0)                                       # torch.ones([])

    params = (w1, b1, w2, b2, w3, b3, logs, scale)

    fwd = jax.jit(realnvp_conv_base_net)
    out = jax.block_until_ready(fwd(x, params))
    assert out.shape == (B, n_out, H, W), out.shape

    ref = reference_forward(x, params)
    max_err = float(jnp.max(jnp.abs(out - ref)))
    # bf16 MXU operands (per the perf review) -> looser tolerance vs the f32
    # reference; BN statistics / normalization stay f32 inside the kernels.
    assert max_err < 1e-1, f"mismatch vs reference: {max_err}"

    print("KERNEL_OK")
</pallas_src>

<mosaic_0001>
module attributes {stable_mosaic.version = 11 : i64} {
  func.func @_conv1_kernel(%arg0: i32, %arg1: memref<1x288x36xbf16, #tpu.memory_space<vmem>>, %arg2: memref<36x32xbf16, #tpu.memory_space<vmem>>, %arg3: memref<1x32xf32, #tpu.memory_space<vmem>>, %arg4: memref<1x288x32xbf16, #tpu.memory_space<vmem>>, %arg5: memref<1x2x32xf32, #tpu.memory_space<vmem>>) attributes {dimension_semantics = [#tpu.dimension_semantics<parallel>], iteration_bounds = array<i64: 2>, scalar_prefetch = 0 : i64, scratch_operands = 0 : i64, tpu.core_type = #tpu.core_type<tc>, window_params = [{transform_indices = @transform_0, window_bounds = array<i64: 1, 288, 36>}, {pipeline_mode = #tpu.pipeline_mode<synchronous>, transform_indices = @transform_1, window_bounds = array<i64: 36, 32>}, {pipeline_mode = #tpu.pipeline_mode<synchronous>, transform_indices = @transform_2, window_bounds = array<i64: 1, 32>}, {transform_indices = @transform_3, window_bounds = array<i64: 1, 288, 32>}, {transform_indices = @transform_4, window_bounds = array<i64: 1, 2, 32>}]} {
    %c0 = arith.constant 0 : index
    %c0_0 = arith.constant 0 : index
    %c0_1 = arith.constant 0 : index
    %0 = vector.load %arg1[%c0, %c0_0, %c0_1] : memref<1x288x36xbf16, #tpu.memory_space<vmem>>, vector<1x288x36xbf16>
    %1 = vector.shape_cast %0 : vector<1x288x36xbf16> to vector<288x36xbf16>
    %c0_2 = arith.constant 0 : index
    %c0_3 = arith.constant 0 : index
    %2 = vector.load %arg2[%c0_2, %c0_3] : memref<36x32xbf16, #tpu.memory_space<vmem>>, vector<36x32xbf16>
    %cst = arith.constant dense<0.000000e+00> : vector<288x32xf32>
    %3 = tpu.matmul %1, %2, %cst {dimension_numbers = #tpu.dot_dimension_numbers<[1], [0], [0], [1], [0, 0, 1, 1], [], []>} : vector<288x36xbf16>, vector<36x32xbf16>, vector<288x32xf32> -> vector<288x32xf32>
    %c0_4 = arith.constant 0 : index
    %c0_5 = arith.constant 0 : index
    %4 = vector.load %arg3[%c0_4, %c0_5] : memref<1x32xf32, #tpu.memory_space<vmem>>, vector<1x32xf32>
    %5 = vector.broadcast %4 : vector<1x32xf32> to vector<288x32xf32>
    %6 = arith.addf %3, %5 : vector<288x32xf32>
    %7 = tpu.iota {dimensions = array<i32: 0>} : vector<288x1xi32>
    %c18_i32 = arith.constant 18 : i32
    %c0_i32 = arith.constant 0 : i32
    %8 = arith.cmpi eq, %c18_i32, %c0_i32 : i32
    %c1_i32 = arith.constant 1 : i32
    %9 = arith.select %8, %c1_i32, %c18_i32 : i32
    %10 = vector.broadcast %9 : i32 to vector<288x1xi32>
    %11 = arith.remsi %7, %10 : vector<288x1xi32>
    %c0_i32_6 = arith.constant 0 : i32
    %12 = vector.broadcast %c0_i32_6 : i32 to vector<288x1xi32>
    %13 = arith.cmpi ne, %11, %12 : vector<288x1xi32>
    %c0_i32_7 = arith.constant 0 : i32
    %14 = vector.broadcast %c0_i32_7 : i32 to vector<288x1xi32>
    %15 = arith.cmpi slt, %11, %14 : vector<288x1xi32>
    %c0_i32_8 = arith.constant 0 : i32
    %16 = arith.cmpi slt, %9, %c0_i32_8 : i32
    %17 = vector.broadcast %16 : i1 to vector<288x1xi1>
    %18 = vector.broadcast %17 : vector<288x1xi1> to vector<288x1xi1>
    %19 = arith.xori %15, %18 : vector<288x1xi1>
    %20 = arith.andi %19, %13 : vector<288x1xi1>
    %21 = vector.broadcast %9 : i32 to vector<288x1xi32>
    %22 = arith.addi %11, %21 : vector<288x1xi32>
    %23 = arith.select %20, %22, %11 : vector<288x1xi1>, vector<288x1xi32>
    %c16_i32 = arith.constant 16 : i32
    %24 = vector.broadcast %c16_i32 : i32 to vector<288x1xi32>
    %25 = arith.cmpi slt, %23, %24 : vector<288x1xi32>
    %26 = arith.extui %25 : vector<288x1xi1> to vector<288x1xi32>
    %27 = arith.sitofp %26 : vector<288x1xi32> to vector<288x1xf32>
    %28 = vector.broadcast %27 : vector<288x1xf32> to vector<288x32xf32>
    %29 = arith.mulf %6, %28 : vector<288x32xf32>
    %30 = arith.truncf %29 : vector<288x32xf32> to vector<288x32xbf16>
    %c0_9 = arith.constant 0 : index
    %c0_10 = arith.constant 0 : index
    %c0_11 = arith.constant 0 : index
    %31 = vector.load %arg4[%c0_9, %c0_10, %c0_11] : memref<1x288x32xbf16, #tpu.memory_space<vmem>>, vector<1x288x32xbf16>
    %32 = vector.shape_cast %31 : vector<1x288x32xbf16> to vector<288x32xbf16>
    %33 = vector.shape_cast %30 : vector<288x32xbf16> to vector<1x288x32xbf16>
    tpu.vector_store %arg4[%c0_9, %c0_10, %c0_11], %33 {strides = array<i32>} : memref<1x288x32xbf16, #tpu.memory_space<vmem>>, vector<1x288x32xbf16>,
    %cst_12 = arith.constant dense<0.000000e+00> : vector<32xf32>
    %34 = vector.multi_reduction <add>, %29, %cst_12 [0] : vector<288x32xf32> to vector<32xf32>
    %35 = vector.shape_cast %34 : vector<32xf32> to vector<1x32xf32>
    %c0_13 = arith.constant 0 : index
    %c0_14 = arith.constant 0 : index
    %c0_15 = arith.constant 0 : index
    %36 = vector.load %arg5[%c0_13, %c0_14, %c0_15] : memref<1x2x32xf32, #tpu.memory_space<vmem>>, vector<1x1x32xf32>
    %37 = vector.shape_cast %36 : vector<1x1x32xf32> to vector<1x32xf32>
    %38 = vector.shape_cast %35 : vector<1x32xf32> to vector<1x1x32xf32>
    tpu.vector_store %arg5[%c0_13, %c0_14, %c0_15], %38 {strides = array<i32>} : memref<1x2x32xf32, #tpu.memory_space<vmem>>, vector<1x1x32xf32>,
    %39 = arith.mulf %29, %29 : vector<288x32xf32>
    %cst_16 = arith.constant dense<0.000000e+00> : vector<32xf32>
    %40 = vector.multi_reduction <add>, %39, %cst_16 [0] : vector<288x32xf32> to vector<32xf32>
    %41 = vector.shape_cast %40 : vector<32xf32> to vector<1x32xf32>
    %c0_17 = arith.constant 0 : index
    %c1 = arith.constant 1 : index
    %c0_18 = arith.constant 0 : index
    %42 = vector.load %arg5[%c0_17, %c1, %c0_18] : memref<1x2x32xf32, #tpu.memory_space<vmem>>, vector<1x1x32xf32>
    %43 = vector.shape_cast %42 : vector<1x1x32xf32> to vector<1x32xf32>
    %44 = vector.shape_cast %41 : vector<1x32xf32> to vector<1x1x32xf32>
    tpu.vector_store %arg5[%c0_17, %c1, %c0_18], %44 {strides = array<i32>} : memref<1x2x32xf32, #tpu.memory_space<vmem>>, vector<1x1x32xf32>,
    return
  }
  func.func @transform_0(%arg0: i32) -> (i32, i32, i32) {
    %c0_i32 = arith.constant 0 : i32
    %c0_i32_0 = arith.constant 0 : i32
    %c0_i32_1 = arith.constant 0 : i32
    return %arg0, %c0_i32, %c0_i32_0 : i32, i32, i32
  }
  func.func @transform_1(%arg0: i32) -> (i32, i32) {
    %c0_i32 = arith.constant 0 : i32
    %c0_i32_0 = arith.constant 0 : i32
    %c0_i32_1 = arith.constant 0 : i32
    return %c0_i32, %c0_i32_0 : i32, i32
  }
  func.func @transform_2(%arg0: i32) -> (i32, i32) {
    %c0_i32 = arith.constant 0 : i32
    %c0_i32_0 = arith.constant 0 : i32
    %c0_i32_1 = arith.constant 0 : i32
    return %c0_i32, %c0_i32_0 : i32, i32
  }
  func.func @transform_3(%arg0: i32) -> (i32, i32, i32) {
    %c0_i32 = arith.constant 0 : i32
    %c0_i32_0 = arith.constant 0 : i32
    %c0_i32_1 = arith.constant 0 : i32
    return %arg0, %c0_i32, %c0_i32_0 : i32, i32, i32
  }
  func.func @transform_4(%arg0: i32) -> (i32, i32, i32) {
    %c0_i32 = arith.constant 0 : i32
    %c0_i32_0 = arith.constant 0 : i32
    %c0_i32_1 = arith.constant 0 : i32
    return %arg0, %c0_i32, %c0_i32_0 : i32, i32, i32
  }
}

module attributes {stable_mosaic.version = 11 : i64} {
  func.func @_mid_kernel(%arg0: i32, %arg1: memref<1x288x32xbf16, #tpu.memory_space<vmem>>, %arg2: memref<32x32xbf16, #tpu.memory_space<vmem>>, %arg3: memref<1x32xf32, #tpu.memory_space<vmem>>, %arg4: memref<2x32xf32, #tpu.memory_space<vmem>>, %arg5: memref<1x288x32xbf16, #tpu.memory_space<vmem>>, %arg6: memref<1x2x32xf32, #tpu.memory_space<vmem>>) attributes {dimension_semantics = [#tpu.dimension_semantics<parallel>], iteration_bounds = array<i64: 2>, scalar_prefetch = 0 : i64, scratch_operands = 0 : i64, tpu.core_type = #tpu.core_type<tc>, window_params = [{transform_indices = @transform_0, window_bounds = array<i64: 1, 288, 32>}, {pipeline_mode = #tpu.pipeline_mode<synchronous>, transform_indices = @transform_1, window_bounds = array<i64: 32, 32>}, {pipeline_mode = #tpu.pipeline_mode<synchronous>, transform_indices = @transform_2, window_bounds = array<i64: 1, 32>}, {pipeline_mode = #tpu.pipeline_mode<synchronous>, transform_indices = @transform_3, window_bounds = array<i64: 2, 32>}, {transform_indices = @transform_4, window_bounds = array<i64: 1, 288, 32>}, {transform_indices = @transform_5, window_bounds = array<i64: 1, 2, 32>}]} {
    %c0 = arith.constant 0 : index
    %c0_0 = arith.constant 0 : index
    %c0_1 = arith.constant 0 : index
    %0 = vector.load %arg1[%c0, %c0_0, %c0_1] : memref<1x288x32xbf16, #tpu.memory_space<vmem>>, vector<1x288x32xbf16>
    %1 = vector.shape_cast %0 : vector<1x288x32xbf16> to vector<288x32xbf16>
    %2 = arith.extf %1 : vector<288x32xbf16> to vector<288x32xf32>
    %c0_2 = arith.constant 0 : index
    %c0_3 = arith.constant 0 : index
    %3 = vector.load %arg4[%c0_2, %c0_3] : memref<2x32xf32, #tpu.memory_space<vmem>>, vector<1x32xf32>
    %4 = vector.broadcast %3 : vector<1x32xf32> to vector<288x32xf32>
    %5 = arith.subf %2, %4 : vector<288x32xf32>
    %c1 = arith.constant 1 : index
    %c0_4 = arith.constant 0 : index
    %6 = vector.load %arg4[%c1, %c0_4] : memref<2x32xf32, #tpu.memory_space<vmem>>, vector<1x32xf32>
    %7 = vector.broadcast %6 : vector<1x32xf32> to vector<288x32xf32>
    %8 = arith.mulf %5, %7 : vector<288x32xf32>
    %cst = arith.constant 0.000000e+00 : f32
    %9 = vector.broadcast %cst : f32 to vector<288x32xf32>
    %10 = arith.maximumf %8, %9 : vector<288x32xf32>
    %11 = arith.truncf %10 : vector<288x32xf32> to vector<288x32xbf16>
    %c0_5 = arith.constant 0 : index
    %c0_6 = arith.constant 0 : index
    %12 = vector.load %arg2[%c0_5, %c0_6] : memref<32x32xbf16, #tpu.memory_space<vmem>>, vector<32x32xbf16>
    %cst_7 = arith.constant dense<0.000000e+00> : vector<288x32xf32>
    %13 = tpu.matmul %11, %12, %cst_7 {dimension_numbers = #tpu.dot_dimension_numbers<[1], [0], [0], [1], [0, 0, 1, 1], [], []>} : vector<288x32xbf16>, vector<32x32xbf16>, vector<288x32xf32> -> vector<288x32xf32>
    %c0_8 = arith.constant 0 : index
    %c0_9 = arith.constant 0 : index
    %14 = vector.load %arg3[%c0_8, %c0_9] : memref<1x32xf32, #tpu.memory_space<vmem>>, vector<1x32xf32>
    %15 = vector.broadcast %14 : vector<1x32xf32> to vector<288x32xf32>
    %16 = arith.addf %13, %15 : vector<288x32xf32>
    %17 = tpu.iota {dimensions = array<i32: 0>} : vector<288x1xi32>
    %c18_i32 = arith.constant 18 : i32
    %c0_i32 = arith.constant 0 : i32
    %18 = arith.cmpi eq, %c18_i32, %c0_i32 : i32
    %c1_i32 = arith.constant 1 : i32
    %19 = arith.select %18, %c1_i32, %c18_i32 : i32
    %20 = vector.broadcast %19 : i32 to vector<288x1xi32>
    %21 = arith.remsi %17, %20 : vector<288x1xi32>
    %c0_i32_10 = arith.constant 0 : i32
    %22 = vector.broadcast %c0_i32_10 : i32 to vector<288x1xi32>
    %23 = arith.cmpi ne, %21, %22 : vector<288x1xi32>
    %c0_i32_11 = arith.constant 0 : i32
    %24 = vector.broadcast %c0_i32_11 : i32 to vector<288x1xi32>
    %25 = arith.cmpi slt, %21, %24 : vector<288x1xi32>
    %c0_i32_12 = arith.constant 0 : i32
    %26 = arith.cmpi slt, %19, %c0_i32_12 : i32
    %27 = vector.broadcast %26 : i1 to vector<288x1xi1>
    %28 = vector.broadcast %27 : vector<288x1xi1> to vector<288x1xi1>
    %29 = arith.xori %25, %28 : vector<288x1xi1>
    %30 = arith.andi %29, %23 : vector<288x1xi1>
    %31 = vector.broadcast %19 : i32 to vector<288x1xi32>
    %32 = arith.addi %21, %31 : vector<288x1xi32>
    %33 = arith.select %30, %32, %21 : vector<288x1xi1>, vector<288x1xi32>
    %c16_i32 = arith.constant 16 : i32
    %34 = vector.broadcast %c16_i32 : i32 to vector<288x1xi32>
    %35 = arith.cmpi slt, %33, %34 : vector<288x1xi32>
    %36 = arith.extui %35 : vector<288x1xi1> to vector<288x1xi32>
    %37 = arith.sitofp %36 : vector<288x1xi32> to vector<288x1xf32>
    %38 = vector.broadcast %37 : vector<288x1xf32> to vector<288x32xf32>
    %39 = arith.mulf %16, %38 : vector<288x32xf32>
    %40 = arith.truncf %39 : vector<288x32xf32> to vector<288x32xbf16>
    %c0_13 = arith.constant 0 : index
    %c0_14 = arith.constant 0 : index
    %c0_15 = arith.constant 0 : index
    %41 = vector.load %arg5[%c0_13, %c0_14, %c0_15] : memref<1x288x32xbf16, #tpu.memory_space<vmem>>, vector<1x288x32xbf16>
    %42 = vector.shape_cast %41 : vector<1x288x32xbf16> to vector<288x32xbf16>
    %43 = vector.shape_cast %40 : vector<288x32xbf16> to vector<1x288x32xbf16>
    tpu.vector_store %arg5[%c0_13, %c0_14, %c0_15], %43 {strides = array<i32>} : memref<1x288x32xbf16, #tpu.memory_space<vmem>>, vector<1x288x32xbf16>,
    %cst_16 = arith.constant dense<0.000000e+00> : vector<32xf32>
    %44 = vector.multi_reduction <add>, %39, %cst_16 [0] : vector<288x32xf32> to vector<32xf32>
    %45 = vector.shape_cast %44 : vector<32xf32> to vector<1x32xf32>
    %c0_17 = arith.constant 0 : index
    %c0_18 = arith.constant 0 : index
    %c0_19 = arith.constant 0 : index
    %46 = vector.load %arg6[%c0_17, %c0_18, %c0_19] : memref<1x2x32xf32, #tpu.memory_space<vmem>>, vector<1x1x32xf32>
    %47 = vector.shape_cast %46 : vector<1x1x32xf32> to vector<1x32xf32>
    %48 = vector.shape_cast %45 : vector<1x32xf32> to vector<1x1x32xf32>
    tpu.vector_store %arg6[%c0_17, %c0_18, %c0_19], %48 {strides = array<i32>} : memref<1x2x32xf32, #tpu.memory_space<vmem>>, vector<1x1x32xf32>,
    %49 = arith.mulf %39, %39 : vector<288x32xf32>
    %cst_20 = arith.constant dense<0.000000e+00> : vector<32xf32>
    %50 = vector.multi_reduction <add>, %49, %cst_20 [0] : vector<288x32xf32> to vector<32xf32>
    %51 = vector.shape_cast %50 : vector<32xf32> to vector<1x32xf32>
    %c0_21 = arith.constant 0 : index
    %c1_22 = arith.constant 1 : index
    %c0_23 = arith.constant 0 : index
    %52 = vector.load %arg6[%c0_21, %c1_22, %c0_23] : memref<1x2x32xf32, #tpu.memory_space<vmem>>, vector<1x1x32xf32>
    %53 = vector.shape_cast %52 : vector<1x1x32xf32> to vector<1x32xf32>
    %54 = vector.shape_cast %51 : vector<1x32xf32> to vector<1x1x32xf32>
    tpu.vector_store %arg6[%c0_21, %c1_22, %c0_23], %54 {strides = array<i32>} : memref<1x2x32xf32, #tpu.memory_space<vmem>>, vector<1x1x32xf32>,
    return
  }
  func.func @transform_0(%arg0: i32) -> (i32, i32, i32) {
    %c0_i32 = arith.constant 0 : i32
    %c0_i32_0 = arith.constant 0 : i32
    %c0_i32_1 = arith.constant 0 : i32
    return %arg0, %c0_i32, %c0_i32_0 : i32, i32, i32
  }
  func.func @transform_1(%arg0: i32) -> (i32, i32) {
    %c0_i32 = arith.constant 0 : i32
    %c0_i32_0 = arith.constant 0 : i32
    %c0_i32_1 = arith.constant 0 : i32
    return %c0_i32, %c0_i32_0 : i32, i32
  }
  func.func @transform_2(%arg0: i32) -> (i32, i32) {
    %c0_i32 = arith.constant 0 : i32
    %c0_i32_0 = arith.constant 0 : i32
    %c0_i32_1 = arith.constant 0 : i32
    return %c0_i32, %c0_i32_0 : i32, i32
  }
  func.func @transform_3(%arg0: i32) -> (i32, i32) {
    %c0_i32 = arith.constant 0 : i32
    %c0_i32_0 = arith.constant 0 : i32
    %c0_i32_1 = arith.constant 0 : i32
    return %c0_i32, %c0_i32_0 : i32, i32
  }
  func.func @transform_4(%arg0: i32) -> (i32, i32, i32) {
    %c0_i32 = arith.constant 0 : i32
    %c0_i32_0 = arith.constant 0 : i32
    %c0_i32_1 = arith.constant 0 : i32
    return %arg0, %c0_i32, %c0_i32_0 : i32, i32, i32
  }
  func.func @transform_5(%arg0: i32) -> (i32, i32, i32) {
    %c0_i32 = arith.constant 0 : i32
    %c0_i32_0 = arith.constant 0 : i32
    %c0_i32_1 = arith.constant 0 : i32
    return %arg0, %c0_i32, %c0_i32_0 : i32, i32, i32
  }
}

module attributes {stable_mosaic.version = 11 : i64} {
  func.func @_out_kernel(%arg0: i32, %arg1: memref<1x288x32xbf16, #tpu.memory_space<vmem>>, %arg2: memref<32x72xbf16, #tpu.memory_space<vmem>>, %arg3: memref<288x8xf32, #tpu.memory_space<vmem>>, %arg4: memref<2x32xf32, #tpu.memory_space<vmem>>, %arg5: memref<1x1xf32, #tpu.memory_space<vmem>>, %arg6: memref<1x288x8xf32, #tpu.memory_space<vmem>>, %arg7: memref<328x72xf32, #tpu.memory_space<vmem>>) attributes {dimension_semantics = [#tpu.dimension_semantics<parallel>], iteration_bounds = array<i64: 2>, scalar_prefetch = 0 : i64, scratch_operands = 1 : i64, tpu.core_type = #tpu.core_type<tc>, window_params = [{transform_indices = @transform_0, window_bounds = array<i64: 1, 288, 32>}, {pipeline_mode = #tpu.pipeline_mode<synchronous>, transform_indices = @transform_1, window_bounds = array<i64: 32, 72>}, {pipeline_mode = #tpu.pipeline_mode<synchronous>, transform_indices = @transform_2, window_bounds = array<i64: 288, 8>}, {pipeline_mode = #tpu.pipeline_mode<synchronous>, transform_indices = @transform_3, window_bounds = array<i64: 2, 32>}, {pipeline_mode = #tpu.pipeline_mode<synchronous>, transform_indices = @transform_4, window_bounds = array<i64: 1, 1>}, {transform_indices = @transform_5, window_bounds = array<i64: 1, 288, 8>}]} {
    %c0 = arith.constant 0 : index
    %c0_0 = arith.constant 0 : index
    %c0_1 = arith.constant 0 : index
    %0 = vector.load %arg1[%c0, %c0_0, %c0_1] : memref<1x288x32xbf16, #tpu.memory_space<vmem>>, vector<1x288x32xbf16>
    %1 = vector.shape_cast %0 : vector<1x288x32xbf16> to vector<288x32xbf16>
    %2 = arith.extf %1 : vector<288x32xbf16> to vector<288x32xf32>
    %c0_2 = arith.constant 0 : index
    %c0_3 = arith.constant 0 : index
    %3 = vector.load %arg4[%c0_2, %c0_3] : memref<2x32xf32, #tpu.memory_space<vmem>>, vector<1x32xf32>
    %4 = vector.broadcast %3 : vector<1x32xf32> to vector<288x32xf32>
    %5 = arith.subf %2, %4 : vector<288x32xf32>
    %c1 = arith.constant 1 : index
    %c0_4 = arith.constant 0 : index
    %6 = vector.load %arg4[%c1, %c0_4] : memref<2x32xf32, #tpu.memory_space<vmem>>, vector<1x32xf32>
    %7 = vector.broadcast %6 : vector<1x32xf32> to vector<288x32xf32>
    %8 = arith.mulf %5, %7 : vector<288x32xf32>
    %cst = arith.constant 0.000000e+00 : f32
    %9 = vector.broadcast %cst : f32 to vector<288x32xf32>
    %10 = arith.maximumf %8, %9 : vector<288x32xf32>
    %11 = tpu.iota {dimensions = array<i32: 0>} : vector<288x1xi32>
    %c18_i32 = arith.constant 18 : i32
    %c0_i32 = arith.constant 0 : i32
    %12 = arith.cmpi eq, %c18_i32, %c0_i32 : i32
    %c1_i32 = arith.constant 1 : i32
    %13 = arith.select %12, %c1_i32, %c18_i32 : i32
    %14 = vector.broadcast %13 : i32 to vector<288x1xi32>
    %15 = arith.remsi %11, %14 : vector<288x1xi32>
    %c0_i32_5 = arith.constant 0 : i32
    %16 = vector.broadcast %c0_i32_5 : i32 to vector<288x1xi32>
    %17 = arith.cmpi ne, %15, %16 : vector<288x1xi32>
    %c0_i32_6 = arith.constant 0 : i32
    %18 = vector.broadcast %c0_i32_6 : i32 to vector<288x1xi32>
    %19 = arith.cmpi slt, %15, %18 : vector<288x1xi32>
    %c0_i32_7 = arith.constant 0 : i32
    %20 = arith.cmpi slt, %13, %c0_i32_7 : i32
    %21 = vector.broadcast %20 : i1 to vector<288x1xi1>
    %22 = vector.broadcast %21 : vector<288x1xi1> to vector<288x1xi1>
    %23 = arith.xori %19, %22 : vector<288x1xi1>
    %24 = arith.andi %23, %17 : vector<288x1xi1>
    %25 = vector.broadcast %13 : i32 to vector<288x1xi32>
    %26 = arith.addi %15, %25 : vector<288x1xi32>
    %27 = arith.select %24, %26, %15 : vector<288x1xi1>, vector<288x1xi32>
    %c16_i32 = arith.constant 16 : i32
    %28 = vector.broadcast %c16_i32 : i32 to vector<288x1xi32>
    %29 = arith.cmpi slt, %27, %28 : vector<288x1xi32>
    %30 = arith.extui %29 : vector<288x1xi1> to vector<288x1xi32>
    %31 = arith.sitofp %30 : vector<288x1xi32> to vector<288x1xf32>
    %32 = vector.broadcast %31 : vector<288x1xf32> to vector<288x32xf32>
    %33 = arith.mulf %10, %32 : vector<288x32xf32>
    %34 = arith.truncf %33 : vector<288x32xf32> to vector<288x32xbf16>
    %c0_8 = arith.constant 0 : index
    %c0_9 = arith.constant 0 : index
    %35 = vector.load %arg2[%c0_8, %c0_9] : memref<32x72xbf16, #tpu.memory_space<vmem>>, vector<32x72xbf16>
    %cst_10 = arith.constant dense<0.000000e+00> : vector<288x72xf32>
    %36 = tpu.matmul %34, %35, %cst_10 {dimension_numbers = #tpu.dot_dimension_numbers<[1], [0], [0], [1], [0, 0, 1, 1], [], []>} : vector<288x32xbf16>, vector<32x72xbf16>, vector<288x72xf32> -> vector<288x72xf32>
    %cst_11 = arith.constant 0.000000e+00 : f32
    %37 = vector.broadcast %cst_11 : f32 to vector<19x72xf32>
    %c0_12 = arith.constant 0 : index
    %c0_13 = arith.constant 0 : index
    %38 = vector.load %arg7[%c0_12, %c0_13] : memref<328x72xf32, #tpu.memory_space<vmem>>, vector<19x72xf32>
    tpu.vector_store %arg7[%c0_12, %c0_13], %37 {strides = array<i32>} : memref<328x72xf32, #tpu.memory_space<vmem>>, vector<19x72xf32>,
    %cst_14 = arith.constant 0.000000e+00 : f32
    %39 = vector.broadcast %cst_14 : f32 to vector<21x72xf32>
    %c307 = arith.constant 307 : index
    %c0_15 = arith.constant 0 : index
    %40 = vector.load %arg7[%c307, %c0_15] : memref<328x72xf32, #tpu.memory_space<vmem>>, vector<21x72xf32>
    tpu.vector_store %arg7[%c307, %c0_15], %39 {strides = array<i32>} : memref<328x72xf32, #tpu.memory_space<vmem>>, vector<21x72xf32>,
    %c19 = arith.constant 19 : index
    %c0_16 = arith.constant 0 : index
    %41 = vector.load %arg7[%c19, %c0_16] : memref<328x72xf32, #tpu.memory_space<vmem>>, vector<288x72xf32>
    tpu.vector_store %arg7[%c19, %c0_16], %36 {strides = array<i32>} : memref<328x72xf32, #tpu.memory_space<vmem>>, vector<288x72xf32>,
    %c0_17 = arith.constant 0 : index
    %c0_18 = arith.constant 0 : index
    %42 = vector.load %arg3[%c0_17, %c0_18] : memref<288x8xf32, #tpu.memory_space<vmem>>, vector<288x8xf32>
    %c0_19 = arith.constant 0 : index
    %c0_20 = arith.constant 0 : index
    %43 = vector.load %arg7[%c0_19, %c0_20] : memref<328x72xf32, #tpu.memory_space<vmem>>, vector<288x72xf32>
    %44 = vector.extract_strided_slice %43 {offsets = [0, 0], sizes = [288, 8], strides = [1, 1]} : vector<288x72xf32> to vector<288x8xf32>
    %45 = arith.addf %42, %44 : vector<288x8xf32>
    %c1_21 = arith.constant 1 : index
    %c0_22 = arith.constant 0 : index
    %46 = vector.load %arg7[%c1_21, %c0_22] : memref<328x72xf32, #tpu.memory_space<vmem>>, vector<288x72xf32>
    %47 = vector.extract_strided_slice %46 {offsets = [0, 8], sizes = [288, 8], strides = [1, 1]} : vector<288x72xf32> to vector<288x8xf32>
    %48 = arith.addf %45, %47 : vector<288x8xf32>
    %c2 = arith.constant 2 : index
    %c0_23 = arith.constant 0 : index
    %49 = vector.load %arg7[%c2, %c0_23] : memref<328x72xf32, #tpu.memory_space<vmem>>, vector<288x72xf32>
    %50 = vector.extract_strided_slice %49 {offsets = [0, 16], sizes = [288, 8], strides = [1, 1]} : vector<288x72xf32> to vector<288x8xf32>
    %51 = arith.addf %48, %50 : vector<288x8xf32>
    %c18 = arith.constant 18 : index
    %c0_24 = arith.constant 0 : index
    %52 = vector.load %arg7[%c18, %c0_24] : memref<328x72xf32, #tpu.memory_space<vmem>>, vector<288x72xf32>
    %53 = vector.extract_strided_slice %52 {offsets = [0, 24], sizes = [288, 8], strides = [1, 1]} : vector<288x72xf32> to vector<288x8xf32>
    %54 = arith.addf %51, %53 : vector<288x8xf32>
    %c19_25 = arith.constant 19 : index
    %c0_26 = arith.constant 0 : index
    %55 = vector.load %arg7[%c19_25, %c0_26] : memref<328x72xf32, #tpu.memory_space<vmem>>, vector<288x72xf32>
    %56 = vector.extract_strided_slice %55 {offsets = [0, 32], sizes = [288, 8], strides = [1, 1]} : vector<288x72xf32> to vector<288x8xf32>
    %57 = arith.addf %54, %56 : vector<288x8xf32>
    %c20 = arith.constant 20 : index
    %c0_27 = arith.constant 0 : index
    %58 = vector.load %arg7[%c20, %c0_27] : memref<328x72xf32, #tpu.memory_space<vmem>>, vector<288x72xf32>
    %59 = vector.extract_strided_slice %58 {offsets = [0, 40], sizes = [288, 8], strides = [1, 1]} : vector<288x72xf32> to vector<288x8xf32>
    %60 = arith.addf %57, %59 : vector<288x8xf32>
    %c36 = arith.constant 36 : index
    %c0_28 = arith.constant 0 : index
    %61 = vector.load %arg7[%c36, %c0_28] : memref<328x72xf32, #tpu.memory_space<vmem>>, vector<288x72xf32>
    %62 = vector.extract_strided_slice %61 {offsets = [0, 48], sizes = [288, 8], strides = [1, 1]} : vector<288x72xf32> to vector<288x8xf32>
    %63 = arith.addf %60, %62 : vector<288x8xf32>
    %c37 = arith.constant 37 : index
    %c0_29 = arith.constant 0 : index
    %64 = vector.load %arg7[%c37, %c0_29] : memref<328x72xf32, #tpu.memory_space<vmem>>, vector<288x72xf32>
    %65 = vector.extract_strided_slice %64 {offsets = [0, 56], sizes = [288, 8], strides = [1, 1]} : vector<288x72xf32> to vector<288x8xf32>
    %66 = arith.addf %63, %65 : vector<288x8xf32>
    %c38 = arith.constant 38 : index
    %c0_30 = arith.constant 0 : index
    %67 = vector.load %arg7[%c38, %c0_30] : memref<328x72xf32, #tpu.memory_space<vmem>>, vector<288x72xf32>
    %68 = vector.extract_strided_slice %67 {offsets = [0, 64], sizes = [288, 8], strides = [1, 1]} : vector<288x72xf32> to vector<288x8xf32>
    %69 = arith.addf %66, %68 : vector<288x8xf32>
    %70 = tpu.iota {dimensions = array<i32: 1>} : vector<288x8xi32>
    %c4_i32 = arith.constant 4 : i32
    %71 = vector.broadcast %c4_i32 : i32 to vector<288x8xi32>
    %72 = arith.cmpi slt, %70, %71 : vector<288x8xi32>
    %c0_31 = arith.constant 0 : index
    %c0_32 = arith.constant 0 : index
    %73 = vector.load %arg5[%c0_31, %c0_32] : memref<1x1xf32, #tpu.memory_space<vmem>>, vector<1x1xf32>
    %74 = math.tanh %69 : vector<288x8xf32>
    %75 = vector.broadcast %73 : vector<1x1xf32> to vector<288x8xf32>
    %76 = arith.mulf %75, %74 : vector<288x8xf32>
    %77 = arith.select %72, %69, %76 : vector<288x8xi1>, vector<288x8xf32>
    %c0_33 = arith.constant 0 : index
    %c0_34 = arith.constant 0 : index
    %c0_35 = arith.constant 0 : index
    %78 = vector.load %arg6[%c0_33, %c0_34, %c0_35] : memref<1x288x8xf32, #tpu.memory_space<vmem>>, vector<1x288x8xf32>
    %79 = vector.shape_cast %78 : vector<1x288x8xf32> to vector<288x8xf32>
    %80 = vector.shape_cast %77 : vector<288x8xf32> to vector<1x288x8xf32>
    tpu.vector_store %arg6[%c0_33, %c0_34, %c0_35], %80 {strides = array<i32>} : memref<1x288x8xf32, #tpu.memory_space<vmem>>, vector<1x288x8xf32>,
    return
  }
  func.func @transform_0(%arg0: i32) -> (i32, i32, i32) {
    %c0_i32 = arith.constant 0 : i32
    %c0_i32_0 = arith.constant 0 : i32
    %c0_i32_1 = arith.constant 0 : i32
    return %arg0, %c0_i32, %c0_i32_0 : i32, i32, i32
  }
  func.func @transform_1(%arg0: i32) -> (i32, i32) {
    %c0_i32 = arith.constant 0 : i32
    %c0_i32_0 = arith.constant 0 : i32
    %c0_i32_1 = arith.constant 0 : i32
    return %c0_i32, %c0_i32_0 : i32, i32
  }
  func.func @transform_2(%arg0: i32) -> (i32, i32) {
    %c0_i32 = arith.constant 0 : i32
    %c0_i32_0 = arith.constant 0 : i32
    %c0_i32_1 = arith.constant 0 : i32
    return %c0_i32, %c0_i32_0 : i32, i32
  }
  func.func @transform_3(%arg0: i32) -> (i32, i32) {
    %c0_i32 = arith.constant 0 : i32
    %c0_i32_0 = arith.constant 0 : i32
    %c0_i32_1 = arith.constant 0 : i32
    return %c0_i32, %c0_i32_0 : i32, i32
  }
  func.func @transform_4(%arg0: i32) -> (i32, i32) {
    %c0_i32 = arith.constant 0 : i32
    %c0_i32_0 = arith.constant 0 : i32
    %c0_i32_1 = arith.constant 0 : i32
    return %c0_i32, %c0_i32_0 : i32, i32
  }
  func.func @transform_5(%arg0: i32) -> (i32, i32, i32) {
    %c0_i32 = arith.constant 0 : i32
    %c0_i32_0 = arith.constant 0 : i32
    %c0_i32_1 = arith.constant 0 : i32
    return %arg0, %c0_i32, %c0_i32_0 : i32, i32, i32
  }
}

</mosaic_0001>

<bundles_post_ra>
// kernel: realnvp_conv_base_net.3
= control target key start
LH: loop header
LB: loop body
LE: loop exit
PB: predicated region body
PF: predicated region fallthrough
CT: control target
= control target key end

     0   :  { %s2498_s15 = smov 0   ;;  %s3496_s0 = inlined_call_operand.vmem [shape: bf16[2,288,36], index: 0, kind: input, shape index: {}]   ;;  %s3497_s1 = inlined_call_operand.vmem [shape: bf16[36,32], index: 1, kind: input, shape index: {}]   ;;  %s3498_s2 = inlined_call_operand.vmem [shape: f32[1,32], index: 2, kind: input, shape index: {}]   ;;  %s3499_s3 = inlined_call_operand.vmem [shape: bf16[2,288,32], index: 3, kind: output, shape index: {0}]   ;;  %s3500_s4 = inlined_call_operand.vmem [shape: f32[2,2,32], index: 4, kind: output, shape index: {1}]  }
   0x1 LB: > { %s2276_s16 = sadd.s32 4294967295, %s2469_s15   ;;  %p2280_p0 = scmp.ge.s32.totalorder %s2469_s15, 1  ;;  %s2469_s15 = sphi %s2498_s15, %s15_s15  }
   0x2   : > { %p165_p1 = scmp.lt.s32.totalorder %s2469_s15, 3 }
   0x4   : > { %p166_p2 = pnand %p2280_p0, %p165_p1 }
   0x5   : > { %p195_p3 = scmp.lt.s32.totalorder (!%p166_p2), %s2276_s16, 1 }
   0x6   : > { %169 = sbr.rel (%p166_p2) target bundleno = 453 (0x1c5), region = 32 }
   0xb   : > { %v250_v0 = vld [vmem:[%s3497_s1 + $0x10] sm:$0x3]  ;;  %vm415_vm0 = vcmask 1041408   ;;  %s3524_s16 = smov (!%p195_p3, %s2276_s16), 1  ;;  %v2439_v4 = vld [vmem:[%s3497_s1 + $0x8] sm:$0xff]  ;;  %v2438_v5 = vld [vmem:[%s3497_s1] sm:$0xff]  ;;  %v518_v24 = vlaneseq }
   0xc   : > { %v354_v1 = vunpack.c.l.b16 %v250_v0  ;;  %s2449_s21 = smul.u32 144, %s3524_s16  ;;  %vm360_vm1 = vcmask 293888   ;;  %v2471_v34 = vmov 0   ;;  %s2283_s10 = sshll.u32 %s3524_s16, 1 }
   0xd   : > { %v2561_v25 = vshrl.u32 %v518_v24, 7  ;;  %s208_s13 = scalar_lea.vmem %s3500_s4, %s2283_s10 }
   0xe   : > { %v357_v2 = vpack.c.b16 %v354_v1, %v354_v1  ;;  %s2523_s26 = scalar_lea.vmem %s3496_s0, %s2449_s21  ;;  %s2708_s5 = scalar_lea.vmem %s3499_s3, %s2449_s21 }
   0xf   : > { %v2420_v6 = vld [vmem:[%s2523_s26] sm:$0xff]  ;;  %v2425_v7 = vld [vmem:[%s2523_s26 + $0x28] sm:$0xff]  ;;  %v2430_v8 = vld [vmem:[%s2523_s26 + $0x50] sm:$0xff]  ;;  %v558_v26 = vand.u32 65535, %v2561_v25  ;;  %v559_v27 = vshrl.u32 %v2561_v25, 16  ;;  %v2567_v37 = vadd.s32 8, %v2561_v25 }
  0x10   : > { %v417_v3 = vsel %vm415_vm0, %v357_v2, 0  ;;  %v2421_v9 = vld [vmem:[%s2523_s26 + $0x8] sm:$0xff]  ;;  %v2426_v10 = vld [vmem:[%s2523_s26 + $0x30] sm:$0xff]  ;;  %v2431_v11 = vld [vmem:[%s2523_s26 + $0x58] sm:$0xff]  ;;  %v2573_v52 = vadd.s32 16, %v2561_v25  ;;  %v2579_v61 = vadd.s32 80, %v2561_v25 }
  0x11   : > { %424 = vmatpush.bf16.msra.mxu0 %v417_v3  ;;  %2440 = vmatpush.bf16.msra.mxu1 %v417_v3  ;;  %v2422_v12 = vld [vmem:[%s2523_s26 + $0x10] sm:$0xff]  ;;  %v2427_v13 = vld [vmem:[%s2523_s26 + $0x38] sm:$0xff]  ;;  %v2432_v14 = vld [vmem:[%s2523_s26 + $0x60] sm:$0xff]  ;;  %v562_v28 = vmul.u32 58254, %v558_v26  ;;  %v561_v29 = vmul.u32 14564, %v558_v26  ;;  %v563_v30 = vmul.u32 14564, %v559_v27 }
  0x12   : > { %2441 = vmatpush.bf16.msra.mxu2 %v417_v3  ;;  %2442 = vmatpush.bf16.msra.mxu3 %v417_v3  ;;  %v2435_v15 = vld [vmem:[%s2523_s26 + $0x78] sm:$0xff]  ;;  %v2428_v17 = vld [vmem:[%s2523_s26 + $0x40] sm:$0xff]  ;;  %v2433_v18 = vld [vmem:[%s2523_s26 + $0x68] sm:$0xff]  ;;  %v564_v32 = vmul.u32 58254, %v559_v27  ;;  %v587_v39 = vand.u32 65535, %v2567_v37  ;;  %v588_v42 = vshrl.u32 %v2567_v37, 16 }
  0x13   : > { %v2423_v16 = vld [vmem:[%s2523_s26 + $0x18] sm:$0xff]  ;;  %v2436_v19 = vld [vmem:[%s2523_s26 + $0x80] sm:$0xff]  ;;  %v2429_v21 = vld [vmem:[%s2523_s26 + $0x48] sm:$0xff]  ;;  %v565_v31 = vshll.u32 %v562_v28, 16  ;;  %v567_v33 = vshll.u32 %v563_v30, 16  ;;  %v566_v40 = vshrl.u32 %v562_v28, 16 }
  0x14   : > { %v2424_v20 = vld [vmem:[%s2523_s26 + $0x20] sm:$0xff]  ;;  %v2434_v22 = vld [vmem:[%s2523_s26 + $0x70] sm:$0xff]  ;;  %v2437_v23 = vld [vmem:[%s2523_s26 + $0x88] sm:$0xff]  ;;  %v591_v44 = vmul.u32 58254, %v587_v39  ;;  %v568_v45 = vshrl.u32 %v563_v30, 16  ;;  %v590_v46 = vmul.u32 14564, %v587_v39 }
  0x15   : > { %425 = vmatpush.bf16.msra.mxu0 %v2439_v4  ;;  %2443 = vmatpush.bf16.msra.mxu1 %v2439_v4  ;;  %vm569_vm2 = vc.u32 %v561_v29, %v565_v31  ;;  %v571_v36 = vadd.s32 %v565_v31, %v561_v29  ;;  %v592_v47 = vmul.u32 14564, %v588_v42  ;;  %v593_v50 = vmul.u32 58254, %v588_v42 }
  0x16   : > { %2444 = vmatpush.bf16.msra.mxu2 %v2439_v4  ;;  %2445 = vmatpush.bf16.msra.mxu3 %v2439_v4  ;;  %v570_v35 = vsel %vm569_vm2, 1, %v2471_v34  ;;  %v594_v49 = vshll.u32 %v591_v44, 16  ;;  %v616_v56 = vand.u32 65535, %v2573_v52  ;;  %v595_v59 = vshrl.u32 %v591_v44, 16 }
  0x17   : > { %v572_v38 = vadd.s32 %v570_v35, %v564_v32  ;;  %vm573_vm3 = vc.u32 %v571_v36, %v567_v33  ;;  %v596_v51 = vshll.u32 %v592_v47, 16  ;;  %v617_v62 = vshrl.u32 %v2573_v52, 16 }
  0x18   : > { %v574_v41 = vsel %vm573_vm3, 1, %v2471_v34  ;;  %vm598_vm4 = vc.u32 %v590_v46, %v594_v49  ;;  %v600_v54 = vadd.s32 %v594_v49, %v590_v46  ;;  %v620_v1 = vmul.u32 58254, %v616_v56 }
  0x19   : > { %426 = vmatpush.bf16.msra.mxu0 %v2438_v5  ;;  %2446 = vmatpush.bf16.msra.mxu1 %v2438_v5  ;;  %v576_v43 = vadd.s32 %v574_v41, %v572_v38  ;;  %v599_v55 = vsel %vm598_vm4, 1, %v2471_v34  ;;  %v597_v2 = vshrl.u32 %v592_v47, 16  ;;  %v848_v3 = vand.u32 65535, %v2579_v61 }
  0x1a   : > { %2447 = vmatpush.bf16.msra.mxu2 %v2438_v5  ;;  %2448 = vmatpush.bf16.msra.mxu3 %v2438_v5  ;;  %v601_v58 = vadd.s32 %v599_v55, %v593_v50  ;;  %vm602_vm5 = vc.u32 %v600_v54, %v596_v51  ;;  %v619_v4 = vmul.u32 14564, %v616_v56  ;;  %v624_v41 = vshrl.u32 %v620_v1, 16 }
  0x1b   : > { %v577_v48 = vadd.s32 %v576_v43, %v566_v40  ;;  %v603_v60 = vsel %vm602_vm5, 1, %v2471_v34 }
  0x1c   : > { %2364 = vmatmul.msk.bf16.vlgmr.msra.gmra.mxu0 %vm360_vm1, %v2420_v6  ;;  %2369 = vmatmul.msk.bf16.vlgmr.msra.gmra.mxu1 %vm360_vm1, %v2425_v7  ;;  %v605_v0 = vadd.s32 %v603_v60, %v601_v58  ;;  %v623_v7 = vshll.u32 %v620_v1, 16  ;;  %v2618_v1 = vadd.s32 96, %v2561_v25 }
  0x1d   : > { %2374 = vmatmul.msk.bf16.vlgmr.msra.gmra.mxu2 %vm360_vm1, %v2430_v8  ;;  %2379 = vmatmul.msk.bf16.vlgmr.msra.gmra.mxu3 %vm360_vm1, %v2435_v15  ;;  %v578_v53 = vadd.s32 %v577_v48, %v568_v45  ;;  %v849_v8 = vshrl.u32 %v2579_v61, 16 }
  0x1e   : > { %v606_v6 = vadd.s32 %v605_v0, %v595_v59  ;;  %vm627_vm8 = vc.u32 %v619_v4, %v623_v7  ;;  %v629_v31 = vadd.s32 %v623_v7, %v619_v4 }
  0x1f   : > { %v579_v57 = vshrl.u32 %v578_v53, 4  ;;  %v853_v15 = vmul.u32 14564, %v849_v8  ;;  %v628_v26 = vsel %vm627_vm8, 1, %v2471_v34  ;;  %v2472_v53 = vmov 0.0  }
  0x21   : > { %v580_v63 = vmul.u32 18, %v579_v57  ;;  %v858_v42 = vshrl.u32 %v853_v15, 16 }
  0x23   : > { %v581_v5 = vsub.s32 %v2561_v25, %v580_v63 }
  0x25   : > { %vm1599_vm6 = vcmp.ne.s32.totalorder %v581_v5, 0  ;;  %vm1635_vm7 = vcmp.lt.s32.totalorder %v581_v5, 0 }
  0x26   : > { %vm2588_vm9 = vmand %vm1635_vm7, %vm1599_vm6 }
  0x2c   : > { %2365 = vmatmul.msk.bf16.gmra.mxu0 %vm360_vm1, %v2421_v9  ;;  %2370 = vmatmul.msk.bf16.gmra.mxu1 %vm360_vm1, %v2426_v10  ;;  %v852_v9 = vmul.u32 58254, %v848_v3  ;;  %v621_v10 = vmul.u32 14564, %v617_v62 }
  0x2d   : > { %2375 = vmatmul.msk.bf16.gmra.mxu2 %vm360_vm1, %v2431_v11  ;;  %2380 = vmatmul.msk.bf16.gmra.mxu3 %vm360_vm1, %v2436_v19  ;;  %v2586_v11 = vadd.s32 88, %v2561_v25  ;;  %v854_v19 = vmul.u32 58254, %v849_v8 }
  0x2e   : > { %v625_v29 = vshll.u32 %v621_v10, 16  ;;  %v856_v32 = vshrl.u32 %v852_v9, 16  ;;  %v626_v48 = vshrl.u32 %v621_v10, 16 }
  0x2f   : > { %v877_v30 = vand.u32 65535, %v2586_v11  ;;  %v878_v36 = vshrl.u32 %v2586_v11, 16 }
  0x30   : > { %vm631_vm13 = vc.u32 %v629_v31, %v625_v29 }
  0x31   : > { %v880_v43 = vmul.u32 14564, %v877_v30  ;;  %v881_v44 = vmul.u32 58254, %v877_v30  ;;  %v632_v46 = vsel %vm631_vm13, 1, %v2471_v34  ;;  %v882_v47 = vmul.u32 14564, %v878_v36 }
  0x32   : > { %v883_v50 = vmul.u32 58254, %v878_v36 }
  0x33   : > { %v884_v51 = vshll.u32 %v881_v44, 16  ;;  %v886_v55 = vshll.u32 %v882_v47, 16  ;;  %v885_v59 = vshrl.u32 %v881_v44, 16  ;;  %v887_v7 = vshrl.u32 %v882_v47, 16 }
  0x35   : > { %vm888_vm15 = vc.u32 %v880_v43, %v884_v51  ;;  %v890_v57 = vadd.s32 %v884_v51, %v880_v43 }
  0x36   : > { %v889_v60 = vsel %vm888_vm15, 1, %v2471_v34 }
  0x37   : > { %v891_v0 = vadd.s32 %v889_v60, %v883_v50  ;;  %vm892_vm0 = vc.u32 %v890_v57, %v886_v55  ;;  %v2664_v55 = vld [vmem:[%s3498_s2] ss:$0 sm:$0xff] }
  0x3c   : > { %2366 = vmatmul.msk.bf16.gmra.mxu0 %vm360_vm1, %v2422_v12  ;;  %2371 = vmatmul.msk.bf16.gmra.mxu1 %vm360_vm1, %v2427_v13  ;;  %v1707_v12 = vadd.s32 18, %v581_v5  ;;  %v607_v13 = vadd.s32 %v606_v6, %v597_v2 }
  0x3d   : > { %2376 = vmatmul.msk.bf16.gmra.mxu2 %vm360_vm1, %v2432_v14  ;;  %2381 = vmatmul.msk.bf16.gmra.mxu3 %vm360_vm1, %v2437_v23  ;;  %v851_v14 = vmul.u32 14564, %v848_v3  ;;  %v893_v3 = vsel %vm892_vm0, 1, %v2471_v34 }
  0x3e   : > { %v1743_v27 = vsel %vm2588_vm9, %v1707_v12, %v581_v5  ;;  %v895_v8 = vadd.s32 %v893_v3, %v891_v0 }
  0x3f   : > { %vm2599_vm12 = vcmp.lt.s32.totalorder %v1743_v27, 16 }
  0x4c   : > { %2367 = vmatmul.msk.bf16.gmra.mxu0 %vm360_vm1, %v2423_v16  ;;  %2372 = vmatmul.msk.bf16.gmra.mxu1 %vm360_vm1, %v2428_v17  ;;  %v855_v16 = vshll.u32 %v852_v9, 16  ;;  %v906_v17 = vand.u32 65535, %v2618_v1 }
  0x4d   : > { %2377 = vmatmul.msk.bf16.gmra.mxu2 %vm360_vm1, %v2433_v18  ;;  %v608_v18 = vshrl.u32 %v607_v13, 4 }
  0x4e   : > { %vm859_vm10 = vc.u32 %v851_v14, %v855_v16  ;;  %v861_v24 = vadd.s32 %v855_v16, %v851_v14  ;;  %v896_v16 = vadd.s32 %v895_v8, %v885_v59  ;;  %v909_v31 = vmul.u32 14564, %v906_v17 }
  0x4f   : > { %v860_v23 = vsel %vm859_vm10, 1, %v2471_v34 }
  0x50   : > { %v862_v28 = vadd.s32 %v860_v23, %v854_v19 }
  0x5c   : > { %2368 = vmatmul.msk.bf16.gmra.mxu0 %vm360_vm1, %v2424_v20  ;;  %2373 = vmatmul.msk.bf16.gmra.mxu1 %vm360_vm1, %v2429_v21  ;;  %v857_v20 = vshll.u32 %v853_v15, 16  ;;  %v622_v21 = vmul.u32 58254, %v617_v62  ;;  %v2615_v62 = vadd.s32 24, %v2561_v25 }
  0x5d   : > { %2378 = vmatmul.msk.bf16.gmra.mxu2 %vm360_vm1, %v2434_v22  ;;  %v609_v22 = vmul.u32 18, %v608_v18 }
  0x5e   : > { %vm863_vm11 = vc.u32 %v861_v24, %v857_v20  ;;  %v630_v35 = vadd.s32 %v628_v26, %v622_v21  ;;  %v645_v4 = vand.u32 65535, %v2615_v62  ;;  %v646_v5 = vshrl.u32 %v2615_v62, 16 }
  0x5f   : > { %v864_v33 = vsel %vm863_vm11, 1, %v2471_v34  ;;  %v2604_v39 = vsub.s32 %v2567_v37, %v609_v22  ;;  %v2610_v37 = vsel %vm2599_vm12, 1.0, %v2472_v53  ;;  %v897_v21 = vadd.s32 %v896_v16, %v887_v7 }
  0x60   : > { %v866_v40 = vadd.s32 %v864_v33, %v862_v28  ;;  %v634_v49 = vadd.s32 %v632_v46, %v630_v35  ;;  %v648_v10 = vmul.u32 14564, %v645_v4  ;;  %v649_v12 = vmul.u32 58254, %v645_v4 }
  0x61   : > { %vm1600_vm14 = vcmp.ne.s32.totalorder %v2604_v39, 0  ;;  %vm1636_vm1 = vcmp.lt.s32.totalorder %v2604_v39, 0  ;;  %v650_v13 = vmul.u32 14564, %v646_v5  ;;  %v2626_v14 = vadd.s32 18, %v2604_v39 }
  0x62   : > { %v867_v45 = vadd.s32 %v866_v40, %v856_v32  ;;  %v635_v56 = vadd.s32 %v634_v49, %v624_v41  ;;  %vm2631_vm2 = vmand %vm1636_vm1, %vm1600_vm14  ;;  %v651_v22 = vmul.u32 58254, %v646_v5  ;;  %v907_v24 = vshrl.u32 %v2618_v1, 16 }
  0x63   : > { %v654_v23 = vshll.u32 %v650_v13, 16  ;;  %v1744_v29 = vsel %vm2631_vm2, %v2626_v14, %v2604_v39  ;;  %v653_v30 = vshrl.u32 %v649_v12, 16  ;;  %v2650_v32 = vadd.s32 32, %v2561_v25 }
  0x64   : > { %v868_v54 = vadd.s32 %v867_v45, %v858_v42  ;;  %v636_v63 = vadd.s32 %v635_v56, %v626_v48  ;;  %v898_v33 = vshrl.u32 %v897_v21, 4  ;;  %v655_v35 = vshrl.u32 %v650_v13, 16 }
  0x65   : > { %v910_v40 = vmul.u32 58254, %v906_v17  ;;  %v911_v41 = vmul.u32 14564, %v907_v24  ;;  %v912_v44 = vmul.u32 58254, %v907_v24  ;;  %v674_v49 = vand.u32 65535, %v2650_v32 }
  0x66   : > { %v869_v58 = vshrl.u32 %v868_v54, 4  ;;  %v637_v6 = vshrl.u32 %v636_v63, 4  ;;  %v899_v39 = vmul.u32 18, %v898_v33  ;;  %vm1959_vm11 = vcmask 257024  }
  0x67   : > { %v913_v45 = vshll.u32 %v910_v40, 16  ;;  %v915_v48 = vshll.u32 %v911_v41, 16  ;;  %v675_v54 = vshrl.u32 %v2650_v32, 16  ;;  %v914_v59 = vshrl.u32 %v910_v40, 16 }
  0x68   : > { %v870_v2 = vmul.u32 18, %v869_v58  ;;  %v638_v15 = vmul.u32 18, %v637_v6  ;;  %v900_v47 = vsub.s32 %v2586_v11, %v899_v39  ;;  %v677_v3 = vmul.u32 14564, %v674_v49 }
  0x69   : > { %vm917_vm12 = vc.u32 %v909_v31, %v913_v45  ;;  %v919_v51 = vadd.s32 %v913_v45, %v909_v31  ;;  %v2682_v4 = vmul.u32 58254, %v674_v49  ;;  %v916_v8 = vshrl.u32 %v911_v41, 16 }
  0x6a   : > { %v871_v9 = vsub.s32 %v2579_v61, %v870_v2  ;;  %v652_v61 = vshll.u32 %v649_v12, 16  ;;  %v2643_v27 = vsub.s32 %v2573_v52, %v638_v15  ;;  %vm1610_vm13 = vcmp.ne.s32.totalorder %v900_v47, 0 }
  0x6b   : > { %vm1646_vm14 = vcmp.lt.s32.totalorder %v900_v47, 0  ;;  %v1718_v56 = vadd.s32 18, %v900_v47  ;;  %v918_v57 = vsel %vm917_vm12, 1, %v2471_v34  ;;  %vm921_vm0 = vc.u32 %v919_v51, %v915_v48 }
  0x6c   : > { %vm1609_vm3 = vcmp.ne.s32.totalorder %v871_v9, 0  ;;  %vm1645_vm4 = vcmp.lt.s32.totalorder %v871_v9, 0  ;;  %v1717_v19 = vadd.s32 18, %v871_v9  ;;  %vm656_vm6 = vc.u32 %v648_v10, %v652_v61  ;;  %vm2667_vm15 = vmand %vm1646_vm14, %vm1610_vm13 }
  0x6d   : > { %vm2635_vm5 = vmand %vm1645_vm4, %vm1609_vm3  ;;  %v658_v28 = vadd.s32 %v652_v61, %v648_v10  ;;  %v657_v36 = vsel %vm656_vm6, 1, %v2471_v34  ;;  %vm1601_vm9 = vcmp.ne.s32.totalorder %v2643_v27, 0  ;;  %vm1637_vm10 = vcmp.lt.s32.totalorder %v2643_v27, 0 }
  0x6e   : > { %v1753_v26 = vsel %vm2635_vm5, %v1717_v19, %v871_v9  ;;  %v659_v52 = vadd.s32 %v657_v36, %v651_v22  ;;  %v1709_v42 = vadd.s32 18, %v2643_v27  ;;  %v920_v60 = vadd.s32 %v918_v57, %v912_v44  ;;  %vm2675_vm1 = vmand %vm1637_vm10, %vm1601_vm9 }
  0x6f   : > { %vm660_vm7 = vc.u32 %v658_v28, %v654_v23  ;;  %vm1789_vm8 = vcmp.lt.s32.totalorder %v1753_v26, 16  ;;  %v1754_v0 = vsel %vm2667_vm15, %v1718_v56, %v900_v47  ;;  %v922_v2 = vsel %vm921_vm0, 1, %v2471_v34 }
  0x70   : > { %v661_v38 = vsel %vm660_vm7, 1, %v2471_v34  ;;  %v2392_v46 = vsel %vm1789_vm8, 1.0, %v2472_v53  ;;  %v924_v9 = vadd.s32 %v922_v2, %v920_v60  ;;  %v2684_v10 = vmul.u32 14564, %v675_v54 }
  0x71   : > { %v663_v43 = vadd.s32 %v661_v38, %v659_v52  ;;  %vm2687_vm2 = vcmp.lt.s32.totalorder %v1744_v29, 16  ;;  %v681_v15 = vshll.u32 %v2682_v4, 16  ;;  %v1745_v16 = vsel %vm2675_vm1, %v1709_v42, %v2643_v27 }
  0x72   : > { %vm2696_vm3 = vcmp.lt.s32.totalorder %v1754_v0, 16  ;;  %v925_v19 = vadd.s32 %v924_v9, %v914_v59  ;;  %v680_v21 = vmul.u32 58254, %v675_v54  ;;  %v683_v24 = vshll.u32 %v2684_v10, 16 }
  0x73   : > { %v664_v50 = vadd.s32 %v663_v43, %v653_v30  ;;  %vm685_vm4 = vc.u32 %v677_v3, %v681_v15  ;;  %v687_v26 = vadd.s32 %v681_v15, %v677_v3  ;;  %vm1996_vm5 = vcmask 261120  }
  0x74   : > { %v926_v23 = vadd.s32 %v925_v19, %v916_v8  ;;  %v686_v28 = vsel %vm685_vm4, 1, %v2471_v34  ;;  %v2383_v29 = vsel %vm2687_vm2, 1.0, %v2472_v53  ;;  %vm2724_vm8 = vcmp.lt.s32.totalorder %v1745_v16, 16 }
  0x75   : > { %v665_v58 = vadd.s32 %v664_v50, %v655_v35  ;;  %v2393_v31 = vsel %vm2696_vm3, 1.0, %v2472_v53  ;;  %v688_v38 = vadd.s32 %v686_v28, %v680_v21  ;;  %vm689_vm9 = vc.u32 %v687_v26, %v683_v24 }
  0x76   : > { %v927_v33 = vshrl.u32 %v926_v23, 4  ;;  %v2735_v40 = vadd.s32 160, %v2561_v25  ;;  %v682_v44 = vshrl.u32 %v2682_v4, 16  ;;  %v684_v45 = vshrl.u32 %v2684_v10, 16 }
  0x77   : > { %v666_v7 = vshrl.u32 %v665_v58, 4  ;;  %v2384_v9 = vsel %vm2724_vm8, 1.0, %v2472_v53 }
  0x78   : > { %v928_v43 = vmul.u32 18, %v927_v33  ;;  %v1138_v47 = vand.u32 65535, %v2735_v40  ;;  %v1139_v48 = vshrl.u32 %v2735_v40, 16 }
  0x79   : > { %v667_v18 = vmul.u32 18, %v666_v7 }
  0x7a   : > { %v929_v54 = vsub.s32 %v2618_v1, %v928_v43  ;;  %v2760_v58 = vmul.u32 58254, %v1138_v47  ;;  %v1141_v1 = vmul.u32 14564, %v1138_v47  ;;  %v2765_v3 = vmul.u32 14564, %v1139_v48 }
  0x7b   : > { %v2711_v22 = vsub.s32 %v2615_v62, %v667_v18  ;;  %v1144_v18 = vmul.u32 58254, %v1139_v48 }
  0x7c   : > { %vm1611_vm12 = vcmp.ne.s32.totalorder %v929_v54, 0  ;;  %vm1647_vm13 = vcmp.lt.s32.totalorder %v929_v54, 0  ;;  %v1147_v19 = vshll.u32 %v2765_v3, 16 }
  0x7d   : > { %vm1602_vm6 = vcmp.ne.s32.totalorder %v2711_v22, 0  ;;  %vm1638_vm7 = vcmp.lt.s32.totalorder %v2711_v22, 0  ;;  %v1710_v52 = vadd.s32 18, %v2711_v22  ;;  %vm1683_vm14 = vmand %vm1647_vm13, %vm1611_vm12 }
  0x7e   : > { %vm2743_vm10 = vmand %vm1638_vm7, %vm1602_vm6 }
  0x7f   : > { %v1746_v57 = vsel %vm2743_vm10, %v1710_v52, %v2711_v22 }
  0x80   : > { %vm2778_vm15 = vcmp.lt.s32.totalorder %v1746_v57, 16 }
  0x99   : > { %v428_v5 = vpop.f32.mrf.mxu0  ;;  %v453_v6 = vpop.f32.mrf.mxu1 }
  0x9a   : > { %v429_v12 = vadd.f32 %v2664_v55, %v428_v5  ;;  %v454_v14 = vadd.f32 %v2664_v55, %v453_v6  ;;  %v1719_v5 = vadd.s32 18, %v929_v54 }
  0x9c   : > { %v1887_v61 = vmul.f32 %v2610_v37, %v429_v12  ;;  %v2701_v20 = vmul.f32 %v2392_v46, %v454_v14  ;;  %v690_v46 = vsel %vm689_vm9, 1, %v2471_v34  ;;  %v1145_v12 = vshll.u32 %v2760_v58, 16 }
  0x9d   : > { %v692_v11 = vadd.s32 %v690_v46, %v688_v38  ;;  %v1755_v15 = vsel %vm1683_vm14, %v1719_v5, %v929_v54  ;;  %v2809_v54 = vadd.s32 40, %v2561_v25 }
  0x9e   : > { %v1923_v37 = vpack.c.bf16 %v1887_v61, %v1887_v61  ;;  %v1933_v27 = vpack.c.bf16 %v2701_v20, %v2701_v20  ;;  %v2076_v62 = vmul.f32 %v1887_v61, %v1887_v61  ;;  %v1997_v49 = vsel %vm1996_vm5, %v1887_v61, 0.0 }
  0x9f   : > { %v693_v6 = vadd.s32 %v692_v11, %v682_v44  ;;  %vm1791_vm0 = vcmp.lt.s32.totalorder %v1755_v15, 16  ;;  %vm1149_vm1 = vc.u32 %v1141_v1, %v1145_v12  ;;  %v1151_v26 = vadd.s32 %v1145_v12, %v1141_v1 }
  0xa0   : > { %1960 = vst.msk [vmem:[%s2708_s5] sm:$0xf] %vm1959_vm11, %v1923_v37  ;;  %v2112_v56 = vsel %vm1996_vm5, %v2076_v62, 0.0  ;;  %v2394_v21 = vsel %vm1791_vm0, 1.0, %v2472_v53  ;;  %v1150_v24 = vsel %vm1149_vm1, 1, %v2471_v34  ;;  %v2788_v37 = vadd.s32 104, %v2561_v25 }
  0xa1   : > { %v430_v35 = vpop.f32.mrf.mxu0  ;;  %1970 = vst.msk [vmem:[%s2708_s5 + $0x28] sm:$0xf] %vm1959_vm11, %v1933_v27  ;;  %v455_v36 = vpop.f32.mrf.mxu1  ;;  %v694_v16 = vadd.s32 %v693_v6, %v684_v45  ;;  %v1152_v52 = vadd.s32 %v1150_v24, %v1144_v18  ;;  %vm1153_vm2 = vc.u32 %v1151_v26, %v1147_v19 }
  0xa2   : > { %v431_v39 = vadd.f32 %v2664_v55, %v430_v35  ;;  %v456_v41 = vadd.f32 %v2664_v55, %v455_v36  ;;  %v1154_v42 = vsel %vm1153_vm2, 1, %v2471_v34  ;;  %v935_v43 = vand.u32 65535, %v2788_v37 }
  0xa3   : > { %v695_v22 = vshrl.u32 %v694_v16, 4  ;;  %v1156_v46 = vadd.s32 %v1154_v42, %v1152_v52  ;;  %v936_v47 = vshrl.u32 %v2788_v37, 16  ;;  %v704_v16 = vshrl.u32 %v2809_v54, 16 }
  0xa4   : > { %v1888_v50 = vmul.f32 %v2383_v29, %v431_v39  ;;  %v2753_v51 = vmul.f32 %v2393_v31, %v456_v41  ;;  %v2385_v31 = vsel %vm2778_vm15, 1.0, %v2472_v53  ;;  %v1146_v41 = vshrl.u32 %v2760_v58, 16 }
  0xa5   : > { %v696_v62 = vmul.u32 18, %v695_v22  ;;  %v938_v57 = vmul.u32 14564, %v935_v43  ;;  %v940_v11 = vmul.u32 14564, %v936_v47  ;;  %v708_v24 = vmul.u32 14564, %v704_v16 }
  0xa6   : > { %v1924_v59 = vpack.c.bf16 %v1888_v50, %v1888_v50  ;;  %v1998_v60 = vsel %vm1996_vm5, %v1888_v50, 0.0  ;;  %v2077_v63 = vmul.f32 %v1888_v50, %v1888_v50  ;;  %v1934_v0 = vpack.c.bf16 %v2753_v51, %v2753_v51 }
  0xa7   : > { %v1999_v2 = vadd.f32 %v1998_v60, %v1997_v49  ;;  %v697_v36 = vsub.s32 %v2650_v32, %v696_v62  ;;  %v1148_v32 = vshrl.u32 %v2765_v3, 16  ;;  %v939_v50 = vmul.u32 58254, %v935_v43 }
  0xa8   : > { %1961 = vst.msk [vmem:[%s2708_s5 + $0x4] sm:$0xf] %vm1959_vm11, %v1924_v59  ;;  %v2113_v4 = vsel %vm1996_vm5, %v2077_v63, 0.0  ;;  %v941_v63 = vmul.u32 58254, %v936_v47  ;;  %v944_v6 = vshll.u32 %v940_v11, 16 }
  0xa9   : > { %v2114_v7 = vadd.f32 %v2113_v4, %v2112_v56  ;;  %v433_v8 = vpop.f32.mrf.mxu0  ;;  %1971 = vst.msk [vmem:[%s2708_s5 + $0x2c] sm:$0xf] %vm1959_vm11, %v1934_v0  ;;  %v458_v10 = vpop.f32.mrf.mxu1  ;;  %vm1603_vm3 = vcmp.ne.s32.totalorder %v697_v36, 0  ;;  %vm1639_vm4 = vcmp.lt.s32.totalorder %v697_v36, 0  ;;  %v1711_v45 = vadd.s32 18, %v697_v36 }
  0xaa   : > { %v434_v13 = vadd.f32 %v2664_v55, %v433_v8  ;;  %v459_v14 = vadd.f32 %v2664_v55, %v458_v10  ;;  %vm1675_vm6 = vmand %vm1639_vm4, %vm1603_vm3  ;;  %v1157_v56 = vadd.s32 %v1156_v46, %v1146_v41  ;;  %v942_v3 = vshll.u32 %v939_v50, 16 }
  0xab   : > { %v1747_v49 = vsel %vm1675_vm6, %v1711_v45, %v697_v36  ;;  %v943_v5 = vshrl.u32 %v939_v50, 16  ;;  %v478_v36 = vpop.f32.mrf.mxu2  ;;  %v2086_v45 = vmul.f32 %v2701_v20, %v2701_v20 }
  0xac   : > { %v1889_v61 = vmul.f32 %v2384_v9, %v434_v13  ;;  %v2784_v23 = vmul.f32 %v2394_v21, %v459_v14  ;;  %vm1783_vm7 = vcmp.lt.s32.totalorder %v1747_v49, 16  ;;  %v1158_v1 = vadd.s32 %v1157_v56, %v1148_v32 }
  0xad   : > { %vm946_vm8 = vc.u32 %v938_v57, %v942_v3  ;;  %v948_v12 = vadd.s32 %v942_v3, %v938_v57  ;;  %v945_v14 = vshrl.u32 %v940_v11, 16  ;;  %v2836_v49 = vadd.s32 168, %v2561_v25 }
  0xae   : > { %v1925_v27 = vpack.c.bf16 %v1889_v61, %v1889_v61  ;;  %v2000_v28 = vsel %vm1996_vm5, %v1889_v61, 0.0  ;;  %v2078_v29 = vmul.f32 %v1889_v61, %v1889_v61  ;;  %v1935_v33 = vpack.c.bf16 %v2784_v23, %v2784_v23 }
  0xaf   : > { %v2001_v30 = vadd.f32 %v2000_v28, %v1999_v2  ;;  %v2386_v2 = vsel %vm1783_vm7, 1.0, %v2472_v53  ;;  %v1159_v10 = vshrl.u32 %v1158_v1, 4  ;;  %v947_v15 = vsel %vm946_vm8, 1, %v2471_v34 }
  0xb0   : > { %1962 = vst.msk [vmem:[%s2708_s5 + $0x8] sm:$0xf] %vm1959_vm11, %v1925_v27  ;;  %v2115_v35 = vsel %vm1996_vm5, %v2078_v29, 0.0  ;;  %v949_v18 = vadd.s32 %v947_v15, %v941_v63  ;;  %vm950_vm9 = vc.u32 %v948_v12, %v944_v6  ;;  %v709_v28 = vmul.u32 58254, %v704_v16 }
  0xb1   : > { %v2116_v38 = vadd.f32 %v2115_v35, %v2114_v7  ;;  %v435_v39 = vpop.f32.mrf.mxu0  ;;  %1972 = vst.msk [vmem:[%s2708_s5 + $0x30] sm:$0xf] %vm1959_vm11, %v1935_v33  ;;  %v703_v7 = vand.u32 65535, %v2809_v54  ;;  %v1160_v17 = vmul.u32 18, %v1159_v10  ;;  %v951_v21 = vsel %vm950_vm9, 1, %v2471_v34 }
  0xb2   : > { %v436_v44 = vadd.f32 %v2664_v55, %v435_v39  ;;  %v953_v27 = vadd.s32 %v951_v21, %v949_v18  ;;  %v712_v33 = vshll.u32 %v708_v24, 16  ;;  %v2842_v11 = vadd.s32 112, %v2561_v25 }
  0xb3   : > { %v707_v19 = vmul.u32 58254, %v703_v7  ;;  %v706_v22 = vmul.u32 14564, %v703_v7  ;;  %v1161_v26 = vsub.s32 %v2735_v40, %v1160_v17  ;;  %v479_v40 = vadd.f32 %v2664_v55, %v478_v36 }
  0xb4   : > { %v1890_v48 = vmul.f32 %v2385_v31, %v436_v44  ;;  %v954_v39 = vadd.s32 %v953_v27, %v943_v5  ;;  %v1168_v63 = vshrl.u32 %v2836_v49, 16  ;;  %v964_v12 = vand.u32 65535, %v2842_v11 }
  0xb5   : > { %v710_v29 = vshll.u32 %v707_v19, 16  ;;  %vm1619_vm10 = vcmp.ne.s32.totalorder %v1161_v26, 0  ;;  %vm1655_vm12 = vcmp.lt.s32.totalorder %v1161_v26, 0  ;;  %v1727_v52 = vadd.s32 18, %v1161_v26 }
  0xb6   : > { %v1926_v58 = vpack.c.bf16 %v1890_v48, %v1890_v48  ;;  %v2002_v59 = vsel %vm1996_vm5, %v1890_v48, 0.0  ;;  %v2079_v60 = vmul.f32 %v1890_v48, %v1890_v48  ;;  %vm1691_vm13 = vmand %vm1655_vm12, %vm1619_vm10  ;;  %v955_v32 = vadd.s32 %v954_v39, %v945_v14 }
  0xb7   : > { %v2003_v0 = vadd.f32 %v2002_v59, %v2001_v30  ;;  %vm714_vm14 = vc.u32 %v706_v22, %v710_v29  ;;  %v1763_v42 = vsel %vm1691_vm13, %v1727_v52, %v1161_v26  ;;  %v716_v44 = vadd.s32 %v710_v29, %v706_v22 }
  0xb8   : > { %1963 = vst.msk [vmem:[%s2708_s5 + $0xc] sm:$0xf] %vm1959_vm11, %v1926_v58  ;;  %v2117_v4 = vsel %vm1996_vm5, %v2079_v60, 0.0  ;;  %v715_v43 = vsel %vm714_vm14, 1, %v2471_v34  ;;  %vm1799_vm15 = vcmp.lt.s32.totalorder %v1763_v42, 16  ;;  %v711_v48 = vshrl.u32 %v707_v19, 16 }
  0xb9   : > { %v2118_v8 = vadd.f32 %v2117_v4, %v2116_v38  ;;  %v438_v9 = vpop.f32.mrf.mxu0  ;;  %v717_v46 = vadd.s32 %v715_v43, %v709_v28  ;;  %v2402_v47 = vsel %vm1799_vm15, 1.0, %v2472_v53  ;;  %vm718_vm0 = vc.u32 %v716_v44, %v712_v33  ;;  %v460_v4 = vpop.f32.mrf.mxu1 }
  0xba   : > { %v439_v13 = vadd.f32 %v2664_v55, %v438_v9  ;;  %v2838_v50 = vmul.f32 %v2402_v47, %v479_v40  ;;  %v956_v56 = vshrl.u32 %v955_v32, 4  ;;  %v719_v57 = vsel %vm718_vm0, 1, %v2471_v34 }
  0xbb   : > { %v713_v58 = vshrl.u32 %v708_v24, 16  ;;  %v721_v59 = vadd.s32 %v719_v57, %v717_v46  ;;  %v1167_v60 = vand.u32 65535, %v2836_v49  ;;  %v2857_v9 = vsel %vm1996_vm5, %v2753_v51, 0.0 }
  0xbc   : > { %v1891_v61 = vmul.f32 %v2386_v2, %v439_v13  ;;  %v2851_v2 = vsel %vm1996_vm5, %v2086_v45, 0.0  ;;  %v1943_v1 = vpack.c.bf16 %v2838_v50, %v2838_v50  ;;  %v957_v3 = vmul.u32 18, %v956_v56 }
  0xbd   : > { %v722_v5 = vadd.s32 %v721_v59, %v711_v48  ;;  %v1170_v6 = vmul.u32 14564, %v1167_v60  ;;  %v1171_v7 = vmul.u32 58254, %v1167_v60  ;;  %v1173_v14 = vmul.u32 58254, %v1168_v63 }
  0xbe   : > { %v1927_v62 = vpack.c.bf16 %v1891_v61, %v1891_v61  ;;  %v2004_v30 = vsel %vm1996_vm5, %v1891_v61, 0.0  ;;  %v2080_v31 = vmul.f32 %v1891_v61, %v1891_v61  ;;  %1980 = vst.msk [vmem:[%s2708_s5 + $0x50] sm:$0xf] %vm1959_vm11, %v1943_v1  ;;  %v958_v10 = vsub.s32 %v2788_v37, %v957_v3 }
  0xbf   : > { %v2823_v35 = vadd.f32 %v2004_v30, %v2003_v0  ;;  %v2848_v0 = vsel %vm1996_vm5, %v2701_v20, 0.0  ;;  %v2087_v20 = vmul.f32 %v2753_v51, %v2753_v51  ;;  %v723_v13 = vadd.s32 %v722_v5, %v713_v58 }
  0xc0   : > { %1964 = vst.msk [vmem:[%s2708_s5 + $0x10] sm:$0xf] %vm1959_vm11, %v1927_v62  ;;  %v2119_v38 = vsel %vm1996_vm5, %v2080_v31, 0.0  ;;  %v1174_v15 = vshll.u32 %v1171_v7, 16  ;;  %v461_v17 = vadd.f32 %v2664_v55, %v460_v4  ;;  %vm1612_vm1 = vcmp.ne.s32.totalorder %v958_v10, 0 }
  0xc1   : > { %v2829_v41 = vadd.f32 %v2119_v38, %v2118_v8  ;;  %v1172_v8 = vmul.u32 14564, %v1168_v63  ;;  %vm1648_vm2 = vcmp.lt.s32.totalorder %v958_v10, 0  ;;  %v1720_v18 = vadd.s32 18, %v958_v10  ;;  %v440_v39 = vpop.f32.mrf.mxu0  ;;  %v480_v63 = vpop.f32.mrf.mxu2 }
  0xc2   : > { %vm1684_vm3 = vmand %vm1648_vm2, %vm1612_vm1  ;;  %v724_v19 = vshrl.u32 %v723_v13, 4  ;;  %vm1178_vm4 = vc.u32 %v1170_v6, %v1174_v15  ;;  %v1180_v61 = vadd.s32 %v1174_v15, %v1170_v6  ;;  %v965_v51 = vshrl.u32 %v2842_v11, 16 }
  0xc3   : > { %v1176_v16 = vshll.u32 %v1172_v8, 16  ;;  %v1756_v21 = vsel %vm1684_vm3, %v1720_v18, %v958_v10  ;;  %v1175_v22 = vshrl.u32 %v1171_v7, 16  ;;  %v1179_v37 = vsel %vm1178_vm4, 1, %v2471_v34 }
  0xc4   : > { %v968_v24 = vmul.u32 58254, %v964_v12  ;;  %vm1792_vm6 = vcmp.lt.s32.totalorder %v1756_v21, 16  ;;  %v725_v26 = vmul.u32 18, %v724_v19  ;;  %v1181_v27 = vadd.s32 %v1179_v37, %v1173_v14 }
  0xc5   : > { %vm1182_vm7 = vc.u32 %v1180_v61, %v1176_v16  ;;  %v2395_v28 = vsel %vm1792_vm6, 1.0, %v2472_v53  ;;  %v967_v62 = vmul.u32 14564, %v964_v12  ;;  %v969_v30 = vmul.u32 14564, %v965_v51 }
  0xc6   : > { %v1183_v29 = vsel %vm1182_vm7, 1, %v2471_v34  ;;  %v2870_v31 = vmul.f32 %v2395_v28, %v461_v17  ;;  %v726_v33 = vsub.s32 %v2809_v54, %v725_v26  ;;  %v971_v52 = vshll.u32 %v968_v24, 16 }
  0xc7   : > { %v1185_v36 = vadd.s32 %v1183_v29, %v1181_v27  ;;  %v2874_v38 = vsel %vm1996_vm5, %v2087_v20, 0.0  ;;  %v2878_v40 = vsel %vm1996_vm5, %v2784_v23, 0.0  ;;  %v1177_v42 = vshrl.u32 %v1172_v8, 16 }
  0xc8   : > { %v970_v43 = vmul.u32 58254, %v965_v51  ;;  %v2882_v44 = vmul.f32 %v2784_v23, %v2784_v23  ;;  %v1936_v54 = vpack.c.bf16 %v2870_v31, %v2870_v31  ;;  %vm1604_vm8 = vcmp.ne.s32.totalorder %v726_v33, 0 }
  0xc9   : > { %v973_v45 = vshll.u32 %v969_v30, 16  ;;  %vm1640_vm9 = vcmp.lt.s32.totalorder %v726_v33, 0  ;;  %v1712_v32 = vadd.s32 18, %v726_v33  ;;  %v1186_v46 = vadd.s32 %v1185_v36, %v1175_v22 }
  0xca   : > { %vm975_vm10 = vc.u32 %v967_v62, %v971_v52  ;;  %1973 = vst.msk [vmem:[%s2708_s5 + $0x34] sm:$0xf] %vm1959_vm11, %v1936_v54  ;;  %v441_v47 = vadd.f32 %v2664_v55, %v440_v39  ;;  %vm1676_vm12 = vmand %vm1640_vm9, %vm1604_vm8  ;;  %v977_v56 = vadd.s32 %v971_v52, %v967_v62  ;;  %v2891_v23 = vadd.s32 48, %v2561_v25 }
  0xcb   : > { %v976_v48 = vsel %vm975_vm10, 1, %v2471_v34  ;;  %v1748_v57 = vsel %vm1676_vm12, %v1712_v32, %v726_v33  ;;  %v1187_v58 = vadd.s32 %v1186_v46, %v1177_v42  ;;  %v972_v59 = vshrl.u32 %v968_v24, 16 }
  0xcc   : > { %v978_v60 = vadd.s32 %v976_v48, %v970_v43  ;;  %vm1784_vm13 = vcmp.lt.s32.totalorder %v1748_v57, 16  ;;  %vm979_vm14 = vc.u32 %v977_v56, %v973_v45  ;;  %v732_v1 = vand.u32 65535, %v2891_v23 }
  0xcd   : > { %v733_v3 = vshrl.u32 %v2891_v23, 16  ;;  %v2387_v4 = vsel %vm1784_vm13, 1.0, %v2472_v53  ;;  %v1188_v5 = vshrl.u32 %v1187_v58, 4  ;;  %v980_v6 = vsel %vm979_vm14, 1, %v2471_v34 }
  0xce   : > { %v2898_v7 = vadd.s32 176, %v2561_v25  ;;  %v1892_v8 = vmul.f32 %v2387_v4, %v441_v47  ;;  %v974_v20 = vshrl.u32 %v969_v30, 16  ;;  %v982_v10 = vadd.s32 %v980_v6, %v978_v60  ;;  %v463_v47 = vpop.f32.mrf.mxu1 }
  0xcf   : > { %v736_v12 = vmul.u32 58254, %v732_v1  ;;  %v481_v13 = vadd.f32 %v2664_v55, %v480_v63  ;;  %v1189_v14 = vmul.u32 18, %v1188_v5  ;;  %v735_v15 = vmul.u32 14564, %v732_v1 }
  0xd0   : > { %v737_v16 = vmul.u32 14564, %v733_v3  ;;  %v1928_v17 = vpack.c.bf16 %v1892_v8, %v1892_v8  ;;  %v2006_v18 = vsel %vm1996_vm5, %v1892_v8, 0.0  ;;  %v2081_v19 = vmul.f32 %v1892_v8, %v1892_v8 }
  0xd1   : > { %v983_v61 = vadd.s32 %v982_v10, %v972_v59  ;;  %v2903_v51 = vadd.f32 %v2006_v18, %v2823_v35  ;;  %v1190_v21 = vsub.s32 %v2836_v49, %v1189_v14  ;;  %v739_v22 = vshll.u32 %v736_v12, 16 }
  0xd2   : > { %v1196_v37 = vand.u32 65535, %v2898_v7  ;;  %1965 = vst.msk [vmem:[%s2708_s5 + $0x14] sm:$0xf] %vm1959_vm11, %v1928_v17  ;;  %v2121_v24 = vsel %vm1996_vm5, %v2081_v19, 0.0  ;;  %v738_v27 = vmul.u32 58254, %v733_v3  ;;  %v741_v28 = vshll.u32 %v737_v16, 16  ;;  %v443_v17 = vpop.f32.mrf.mxu0 }
  0xd3   : > { %v984_v26 = vadd.s32 %v983_v61, %v974_v20  ;;  %v2911_v29 = vadd.f32 %v2121_v24, %v2829_v41  ;;  %vm1620_vm15 = vcmp.ne.s32.totalorder %v1190_v21, 0  ;;  %vm1656_vm0 = vcmp.lt.s32.totalorder %v1190_v21, 0 }
  0xd4   : > { %v1728_v62 = vadd.s32 18, %v1190_v21  ;;  %vm1692_vm1 = vmand %vm1656_vm0, %vm1620_vm15  ;;  %vm743_vm2 = vc.u32 %v735_v15, %v739_v22  ;;  %v745_v49 = vadd.s32 %v739_v22, %v735_v15  ;;  %v1197_v30 = vshrl.u32 %v2898_v7, 16 }
  0xd5   : > { %v985_v35 = vshrl.u32 %v984_v26, 4  ;;  %v740_v36 = vshrl.u32 %v736_v12, 16  ;;  %v744_v52 = vsel %vm743_vm2, 1, %v2471_v34  ;;  %v1200_v39 = vmul.u32 58254, %v1196_v37 }
  0xd6   : > { %v1764_v33 = vsel %vm1692_vm1, %v1728_v62, %v1190_v21  ;;  %v746_v43 = vadd.s32 %v744_v52, %v738_v27  ;;  %vm747_vm4 = vc.u32 %v745_v49, %v741_v28  ;;  %v1199_v45 = vmul.u32 14564, %v1196_v37  ;;  %v483_v52 = vpop.f32.mrf.mxu2 }
  0xd7   : > { %vm1800_vm3 = vcmp.lt.s32.totalorder %v1764_v33, 16  ;;  %v986_v42 = vmul.u32 18, %v985_v35  ;;  %v748_v54 = vsel %vm747_vm4, 1, %v2471_v34  ;;  %v1201_v32 = vmul.u32 14564, %v1197_v30 }
  0xd8   : > { %v2403_v41 = vsel %vm1800_vm3, 1.0, %v2472_v53  ;;  %v750_v56 = vadd.s32 %v748_v54, %v746_v43  ;;  %v1203_v57 = vshll.u32 %v1200_v39, 16  ;;  %v2922_v58 = vsel %vm1996_vm5, %v2882_v44, 0.0 }
  0xd9   : > { %v2917_v46 = vmul.f32 %v2403_v41, %v481_v13  ;;  %v987_v48 = vsub.s32 %v2842_v11, %v986_v42  ;;  %v464_v59 = vadd.f32 %v2664_v55, %v463_v47  ;;  %v742_v60 = vshrl.u32 %v737_v16, 16 }
  0xda   : > { %v1202_v63 = vmul.u32 58254, %v1197_v30  ;;  %v2927_v1 = vsel %vm1996_vm5, %v2838_v50, 0.0  ;;  %v1205_v11 = vshll.u32 %v1201_v32, 16  ;;  %v751_v5 = vadd.s32 %v750_v56, %v740_v36 }
  0xdb   : > { %v1944_v3 = vpack.c.bf16 %v2917_v46, %v2917_v46  ;;  %vm1613_vm6 = vcmp.ne.s32.totalorder %v987_v48, 0  ;;  %vm1649_vm7 = vcmp.lt.s32.totalorder %v987_v48, 0  ;;  %v1721_v4 = vadd.s32 18, %v987_v48 }
  0xdc   : > { %vm1207_vm8 = vc.u32 %v1199_v45, %v1203_v57  ;;  %v2096_v44 = vmul.f32 %v2838_v50, %v2838_v50  ;;  %vm1685_vm9 = vmand %vm1649_vm7, %vm1613_vm6  ;;  %v1209_v8 = vadd.s32 %v1203_v57, %v1199_v45  ;;  %v2937_v20 = vadd.s32 120, %v2561_v25 }
  0xdd   : > { %1981 = vst.msk [vmem:[%s2708_s5 + $0x54] sm:$0xf] %vm1959_vm11, %v1944_v3  ;;  %v1208_v6 = vsel %vm1207_vm8, 1, %v2471_v34  ;;  %v1757_v10 = vsel %vm1685_vm9, %v1721_v4, %v987_v48  ;;  %v752_v12 = vadd.s32 %v751_v5, %v742_v60  ;;  %v1204_v13 = vshrl.u32 %v1200_v39, 16 }
  0xde   : > { %v1210_v14 = vadd.s32 %v1208_v6, %v1202_v63  ;;  %vm1793_vm10 = vcmp.lt.s32.totalorder %v1757_v10, 16  ;;  %vm1211_vm12 = vc.u32 %v1209_v8, %v1205_v11  ;;  %v993_v15 = vand.u32 65535, %v2937_v20 }
  0xdf   : > { %v994_v16 = vshrl.u32 %v2937_v20, 16  ;;  %v2396_v50 = vsel %vm1793_vm10, 1.0, %v2472_v53  ;;  %v753_v18 = vshrl.u32 %v752_v12, 4  ;;  %v1212_v19 = vsel %vm1211_vm12, 1, %v2471_v34 }
  0xe0   : > { %v2944_v61 = vadd.s32 56, %v2561_v25  ;;  %v2946_v21 = vmul.f32 %v2396_v50, %v464_v59  ;;  %v1206_v22 = vshrl.u32 %v1201_v32, 16  ;;  %v1214_v37 = vadd.s32 %v1212_v19, %v1210_v14 }
  0xe1   : > { %v997_v24 = vmul.u32 58254, %v993_v15  ;;  %v2949_v26 = vsel %vm1996_vm5, %v2096_v44, 0.0  ;;  %v754_v27 = vmul.u32 18, %v753_v18  ;;  %v996_v28 = vmul.u32 14564, %v993_v15 }
  0xe2   : > { %v998_v62 = vmul.u32 14564, %v994_v16  ;;  %v2953_v35 = vmul.f32 %v2870_v31, %v2870_v31  ;;  %v1937_v49 = vpack.c.bf16 %v2946_v21, %v2946_v21  ;;  %v444_v30 = vadd.f32 %v2664_v55, %v443_v17 }
  0xe3   : > { %v1215_v33 = vadd.s32 %v1214_v37, %v1204_v13  ;;  %v755_v36 = vsub.s32 %v2891_v23, %v754_v27  ;;  %v999_v39 = vmul.u32 58254, %v994_v16  ;;  %v1000_v42 = vshll.u32 %v997_v24, 16 }
  0xe4   : > { %v761_v43 = vand.u32 65535, %v2944_v61  ;;  %1974 = vst.msk [vmem:[%s2708_s5 + $0x38] sm:$0xf] %vm1959_vm11, %v1937_v49  ;;  %v484_v41 = vadd.f32 %v2664_v55, %v483_v52  ;;  %v1002_v45 = vshll.u32 %v998_v62, 16  ;;  %v762_v32 = vshrl.u32 %v2944_v61, 16 }
  0xe5   : > { %v1216_v54 = vadd.s32 %v1215_v33, %v1206_v22  ;;  %vm1605_vm13 = vcmp.ne.s32.totalorder %v755_v36, 0  ;;  %vm1641_vm14 = vcmp.lt.s32.totalorder %v755_v36, 0  ;;  %v1713_v47 = vadd.s32 18, %v755_v36 }
  0xe6   : > { %vm1004_vm15 = vc.u32 %v996_v28, %v1000_v42  ;;  %vm1677_vm0 = vmand %vm1641_vm14, %vm1605_vm13  ;;  %v1006_v56 = vadd.s32 %v1000_v42, %v996_v28  ;;  %v764_v57 = vmul.u32 14564, %v761_v43  ;;  %v765_v63 = vmul.u32 58254, %v761_v43  ;;  %v465_v42 = vpop.f32.mrf.mxu1 }
  0xe7   : > { %v1217_v48 = vshrl.u32 %v1216_v54, 4  ;;  %v1005_v23 = vsel %vm1004_vm15, 1, %v2471_v34  ;;  %v1749_v59 = vsel %vm1677_vm0, %v1713_v47, %v755_v36  ;;  %v766_v3 = vmul.u32 14564, %v762_v32 }
  0xe8   : > { %v1007_v60 = vadd.s32 %v1005_v23, %v999_v39  ;;  %vm1785_vm1 = vcmp.lt.s32.totalorder %v1749_v59, 16  ;;  %v1001_v4 = vshrl.u32 %v997_v24, 16  ;;  %vm1008_vm2 = vc.u32 %v1006_v56, %v1002_v45 }
  0xe9   : > { %v1218_v11 = vmul.u32 18, %v1217_v48  ;;  %v2388_v5 = vsel %vm1785_vm1, 1.0, %v2472_v53  ;;  %v1003_v44 = vshrl.u32 %v998_v62, 16  ;;  %v1009_v6 = vsel %vm1008_vm2, 1, %v2471_v34 }
  0xea   : > { %v768_v8 = vshll.u32 %v765_v63, 16  ;;  %v1893_v10 = vmul.f32 %v2388_v5, %v444_v30  ;;  %v1011_v13 = vadd.s32 %v1009_v6, %v1007_v60  ;;  %v770_v14 = vshll.u32 %v766_v3, 16 }
  0xeb   : > { %v1219_v12 = vsub.s32 %v2898_v7, %v1218_v11  ;;  %v767_v15 = vmul.u32 58254, %v762_v32  ;;  %v769_v16 = vshrl.u32 %v765_v63, 16  ;;  %v2977_v28 = vadd.s32 184, %v2561_v25 }
  0xec   : > { %vm772_vm3 = vc.u32 %v764_v57, %v768_v8  ;;  %v774_v50 = vadd.s32 %v768_v8, %v764_v57  ;;  %v1929_v17 = vpack.c.bf16 %v1893_v10, %v1893_v10  ;;  %v2008_v18 = vsel %vm1996_vm5, %v1893_v10, 0.0 }
  0xed   : > { %v2082_v19 = vmul.f32 %v1893_v10, %v1893_v10  ;;  %vm1621_vm4 = vcmp.ne.s32.totalorder %v1219_v12, 0  ;;  %v2970_v22 = vadd.f32 %v2008_v18, %v2903_v51  ;;  %vm1657_vm6 = vcmp.lt.s32.totalorder %v1219_v12, 0 }
  0xee   : > { %v1729_v37 = vadd.s32 18, %v1219_v12  ;;  %v1012_v24 = vadd.s32 %v1011_v13, %v1001_v4  ;;  %1966 = vst.msk [vmem:[%s2708_s5 + $0x18] sm:$0xf] %vm1959_vm11, %v1929_v17  ;;  %vm1693_vm7 = vmand %vm1657_vm6, %vm1621_vm4  ;;  %v773_v27 = vsel %vm772_vm3, 1, %v2471_v34  ;;  %vm776_vm8 = vc.u32 %v774_v50, %v770_v14 }
  0xef   : > { %v2123_v7 = vsel %vm1996_vm5, %v2082_v19, 0.0  ;;  %v775_v30 = vadd.s32 %v773_v27, %v767_v15  ;;  %v777_v33 = vsel %vm776_vm8, 1, %v2471_v34  ;;  %v1225_v36 = vand.u32 65535, %v2977_v28 }
  0xf0   : > { %v2980_v62 = vadd.f32 %v2123_v7, %v2911_v29  ;;  %v1765_v49 = vsel %vm1693_vm7, %v1729_v37, %v1219_v12  ;;  %v1013_v51 = vadd.s32 %v1012_v24, %v1003_v44  ;;  %v1226_v52 = vshrl.u32 %v2977_v28, 16  ;;  %v445_v24 = vpop.f32.mrf.mxu0 }
  0xf1   : > { %vm1801_vm9 = vcmp.lt.s32.totalorder %v1765_v49, 16  ;;  %v771_v54 = vshrl.u32 %v766_v3, 16  ;;  %v779_v45 = vadd.s32 %v777_v33, %v775_v30  ;;  %v1228_v29 = vmul.u32 14564, %v1225_v36 }
  0xf2   : > { %v2404_v39 = vsel %vm1801_vm9, 1.0, %v2472_v53  ;;  %v1014_v43 = vshrl.u32 %v1013_v51, 4  ;;  %v1229_v47 = vmul.u32 58254, %v1225_v36  ;;  %v1230_v48 = vmul.u32 14564, %v1226_v52 }
  0xf3   : > { %v2986_v32 = vmul.f32 %v2404_v39, %v484_v41  ;;  %v2990_v23 = vsel %vm1996_vm5, %v2870_v31, 0.0  ;;  %v2994_v56 = vsel %vm1996_vm5, %v2953_v35, 0.0  ;;  %v780_v59 = vadd.s32 %v779_v45, %v769_v16 }
  0xf4   : > { %v1015_v57 = vmul.u32 18, %v1014_v43  ;;  %v466_v41 = vadd.f32 %v2664_v55, %v465_v42  ;;  %v1232_v63 = vshll.u32 %v1229_v47, 16  ;;  %v3000_v3 = vadd.s32 128, %v2561_v25 }
  0xf5   : > { %v1945_v60 = vpack.c.bf16 %v2986_v32, %v2986_v32  ;;  %v781_v4 = vadd.s32 %v780_v59, %v771_v54  ;;  %v1231_v31 = vmul.u32 58254, %v1226_v52  ;;  %v1234_v5 = vshll.u32 %v1230_v48, 16 }
  0xf6   : > { %v1016_v11 = vsub.s32 %v2937_v20, %v1015_v57  ;;  %v2097_v35 = vmul.f32 %v2917_v46, %v2917_v46  ;;  %v1233_v44 = vshrl.u32 %v1229_v47, 16  ;;  %vm1236_vm10 = vc.u32 %v1228_v29, %v1232_v63 }
  0xf7   : > { %1982 = vst.msk [vmem:[%s2708_s5 + $0x58] sm:$0xf] %vm1959_vm11, %v1945_v60  ;;  %v1238_v6 = vadd.s32 %v1232_v63, %v1228_v29  ;;  %v782_v10 = vshrl.u32 %v781_v4, 4  ;;  %v1237_v12 = vsel %vm1236_vm10, 1, %v2471_v34  ;;  %v1022_v20 = vand.u32 65535, %v3000_v3 }
  0xf8   : > { %vm1614_vm12 = vcmp.ne.s32.totalorder %v1016_v11, 0  ;;  %vm1650_vm13 = vcmp.lt.s32.totalorder %v1016_v11, 0  ;;  %v1722_v8 = vadd.s32 18, %v1016_v11  ;;  %v1023_v13 = vshrl.u32 %v3000_v3, 16 }
  0xf9   : > { %vm1686_vm14 = vmand %vm1650_vm13, %vm1614_vm12  ;;  %vm1240_vm15 = vc.u32 %v1238_v6, %v1234_v5  ;;  %v783_v15 = vmul.u32 18, %v782_v10  ;;  %v1239_v16 = vadd.s32 %v1237_v12, %v1231_v31  ;;  %v1235_v17 = vshrl.u32 %v1230_v48, 16  ;;  %v485_v31 = vpop.f32.mrf.mxu2 }
  0xfa   : > { %v1758_v14 = vsel %vm1686_vm14, %v1722_v8, %v1016_v11  ;;  %v1241_v50 = vsel %vm1240_vm15, 1, %v2471_v34  ;;  %v1026_v18 = vmul.u32 58254, %v1022_v20  ;;  %v1027_v19 = vmul.u32 14564, %v1023_v13 }
  0xfb   : > { %vm1794_vm0 = vcmp.lt.s32.totalorder %v1758_v14, 16  ;;  %v784_v7 = vsub.s32 %v2944_v61, %v783_v15  ;;  %v1243_v27 = vadd.s32 %v1241_v50, %v1239_v16  ;;  %v1025_v49 = vmul.u32 14564, %v1022_v20  ;;  %v3055_v50 = vld [vmem:[%s3498_s2] ss:$0 sm:$0xff] }
  0xfc   : > { %v2397_v37 = vsel %vm1794_vm0, 1.0, %v2472_v53  ;;  %v1028_v30 = vmul.u32 58254, %v1023_v13  ;;  %v1029_v33 = vshll.u32 %v1026_v18, 16  ;;  %v1031_v36 = vshll.u32 %v1027_v19, 16 }
  0xfd   : > { %v3013_v51 = vmul.f32 %v2397_v37, %v466_v41  ;;  %vm1606_vm1 = vcmp.ne.s32.totalorder %v784_v7, 0  ;;  %vm1642_vm2 = vcmp.lt.s32.totalorder %v784_v7, 0  ;;  %v1714_v52 = vadd.s32 18, %v784_v7 }
  0xfe   : > { %v1244_v39 = vadd.s32 %v1243_v27, %v1233_v44  ;;  %v3017_v42 = vsel %vm1996_vm5, %v2917_v46, 0.0  ;;  %v3020_v43 = vsel %vm1996_vm5, %v2097_v35, 0.0  ;;  %v446_v54 = vadd.f32 %v2664_v55, %v445_v24  ;;  %vm1678_vm3 = vmand %vm1642_vm2, %vm1606_vm1 }
  0xff   : > { %v1938_v61 = vpack.c.bf16 %v3013_v51, %v3013_v51  ;;  %v1750_v45 = vsel %vm1678_vm3, %v1714_v52, %v784_v7  ;;  %vm1033_vm4 = vc.u32 %v1025_v49, %v1029_v33  ;;  %v1035_v47 = vadd.s32 %v1029_v33, %v1025_v49  ;;  %v468_v33 = vpop.f32.mrf.mxu1 }
 0x100   : > { %v1245_v29 = vadd.s32 %v1244_v39, %v1235_v17  ;;  %v3027_v48 = vsel %vm1996_vm5, %v2946_v21, 0.0  ;;  %vm1786_vm6 = vcmp.lt.s32.totalorder %v1750_v45, 16  ;;  %v1030_v46 = vshrl.u32 %v1026_v18, 16 }
 0x101   : > { %1975 = vst.msk [vmem:[%s2708_s5 + $0x3c] sm:$0xf] %vm1959_vm11, %v1938_v61  ;;  %v1034_v57 = vsel %vm1033_vm4, 1, %v2471_v34  ;;  %v2389_v59 = vsel %vm1786_vm6, 1.0, %v2472_v53  ;;  %vm1037_vm7 = vc.u32 %v1035_v47, %v1031_v36  ;;  %v2090_v55 = vmul.f32 %v2946_v21, %v2946_v21 }
 0x102   : > { %v1246_v60 = vshrl.u32 %v1245_v29, 4  ;;  %v1036_v41 = vadd.s32 %v1034_v57, %v1028_v30  ;;  %v1894_v63 = vmul.f32 %v2389_v59, %v446_v54  ;;  %v1038_v11 = vsel %vm1037_vm7, 1, %v2471_v34 }
 0x103   : > { %v3037_v4 = vadd.s32 64, %v2561_v25  ;;  %v1032_v35 = vshrl.u32 %v1027_v19, 16  ;;  %v3040_v6 = vadd.s32 192, %v2561_v25  ;;  %v486_v17 = vadd.f32 %v3055_v50, %v485_v31 }
 0x104   : > { %v1247_v5 = vmul.u32 18, %v1246_v60  ;;  %v1040_v44 = vadd.s32 %v1038_v11, %v1036_v41  ;;  %v1930_v8 = vpack.c.bf16 %v1894_v63, %v1894_v63  ;;  %v2010_v10 = vsel %vm1996_vm5, %v1894_v63, 0.0 }
 0x105   : > { %v2083_v12 = vmul.f32 %v1894_v63, %v1894_v63  ;;  %v790_v21 = vand.u32 65535, %v3037_v4  ;;  %v3045_v20 = vadd.f32 %v2010_v10, %v2970_v22  ;;  %v791_v15 = vshrl.u32 %v3037_v4, 16 }
 0x106   : > { %v1248_v13 = vsub.s32 %v2977_v28, %v1247_v5  ;;  %v1041_v14 = vadd.s32 %v1040_v44, %v1030_v46  ;;  %1967 = vst.msk [vmem:[%s2708_s5 + $0x1c] sm:$0xf] %vm1959_vm11, %v1930_v8  ;;  %v1254_v27 = vand.u32 65535, %v3040_v6  ;;  %v3063_v49 = vsel %vm1996_vm5, %v2090_v55, 0.0 }
 0x107   : > { %v2125_v16 = vsel %vm1996_vm5, %v2083_v12, 0.0  ;;  %v793_v18 = vmul.u32 14564, %v790_v21  ;;  %v794_v19 = vmul.u32 58254, %v790_v21  ;;  %v795_v24 = vmul.u32 14564, %v791_v15 }
 0x108   : > { %v3059_v22 = vadd.f32 %v2125_v16, %v2980_v62  ;;  %vm1622_vm8 = vcmp.ne.s32.totalorder %v1248_v13, 0  ;;  %vm1658_vm9 = vcmp.lt.s32.totalorder %v1248_v13, 0  ;;  %v1730_v28 = vadd.s32 18, %v1248_v13 }
 0x109   : > { %vm1694_vm10 = vmand %vm1658_vm9, %vm1622_vm8  ;;  %v1042_v37 = vadd.s32 %v1041_v14, %v1032_v35  ;;  %v797_v7 = vshll.u32 %v794_v19, 16  ;;  %v796_v36 = vmul.u32 58254, %v791_v15  ;;  %v1255_v52 = vshrl.u32 %v3040_v6, 16 }
 0x10a   : > { %v1766_v30 = vsel %vm1694_vm10, %v1730_v28, %v1248_v13  ;;  %v469_v62 = vadd.f32 %v3055_v50, %v468_v33  ;;  %v799_v61 = vshll.u32 %v795_v24, 16  ;;  %v3069_v54 = vsel %vm1996_vm5, %v2986_v32, 0.0 }
 0x10b   : > { %vm1802_vm12 = vcmp.lt.s32.totalorder %v1766_v30, 16  ;;  %v1043_v39 = vshrl.u32 %v1042_v37, 4  ;;  %vm801_vm13 = vc.u32 %v793_v18, %v797_v7  ;;  %v803_v29 = vadd.s32 %v797_v7, %v793_v18  ;;  %v448_v37 = vpop.f32.mrf.mxu0 }
 0x10c   : > { %v2405_v45 = vsel %vm1802_vm12, 1.0, %v2472_v53  ;;  %v802_v57 = vsel %vm801_vm13, 1, %v2471_v34  ;;  %v1258_v59 = vmul.u32 58254, %v1254_v27  ;;  %v1257_v41 = vmul.u32 14564, %v1254_v27 }
 0x10d   : > { %v3072_v47 = vmul.f32 %v2405_v45, %v486_v17  ;;  %v1044_v46 = vmul.u32 18, %v1043_v39  ;;  %v804_v60 = vadd.s32 %v802_v57, %v796_v36  ;;  %vm805_vm14 = vc.u32 %v803_v29, %v799_v61 }
 0x10e   : > { %v1259_v55 = vmul.u32 14564, %v1255_v52  ;;  %v798_v31 = vshrl.u32 %v794_v19, 16  ;;  %v3079_v5 = vadd.s32 136, %v2561_v25  ;;  %v806_v35 = vsel %vm805_vm14, 1, %v2471_v34 }
 0x10f   : > { %v1946_v63 = vpack.c.bf16 %v3072_v47, %v3072_v47  ;;  %v1045_v11 = vsub.s32 %v3000_v3, %v1044_v46  ;;  %v1260_v44 = vmul.u32 58254, %v1255_v52  ;;  %v1261_v8 = vshll.u32 %v1258_v59, 16 }
 0x110   : > { %v1263_v10 = vshll.u32 %v1259_v55, 16  ;;  %v3084_v12 = vmul.f32 %v2986_v32, %v2986_v32  ;;  %v800_v3 = vshrl.u32 %v795_v24, 16  ;;  %v808_v13 = vadd.s32 %v806_v35, %v804_v60  ;;  %v488_v60 = vpop.f32.mrf.mxu2 }
 0x111   : > { %1983 = vst.msk [vmem:[%s2708_s5 + $0x5c] sm:$0xf] %vm1959_vm11, %v1946_v63  ;;  %vm1615_vm15 = vcmp.ne.s32.totalorder %v1045_v11, 0  ;;  %vm1651_vm0 = vcmp.lt.s32.totalorder %v1045_v11, 0  ;;  %v1723_v21 = vadd.s32 18, %v1045_v11  ;;  %vm1265_vm2 = vc.u32 %v1257_v41, %v1261_v8 }
 0x112   : > { %vm1687_vm1 = vmand %vm1651_vm0, %vm1615_vm15  ;;  %v1267_v14 = vadd.s32 %v1261_v8, %v1257_v41  ;;  %v1266_v16 = vsel %vm1265_vm2, 1, %v2471_v34  ;;  %v1051_v17 = vand.u32 65535, %v3079_v5  ;;  %v3091_v18 = vadd.s32 72, %v2561_v25 }
 0x113   : > { %v1759_v15 = vsel %vm1687_vm1, %v1723_v21, %v1045_v11  ;;  %v809_v32 = vadd.s32 %v808_v13, %v798_v31  ;;  %v1268_v19 = vadd.s32 %v1266_v16, %v1260_v44  ;;  %v1262_v7 = vshrl.u32 %v1258_v59, 16 }
 0x114   : > { %vm1795_vm3 = vcmp.lt.s32.totalorder %v1759_v15, 16  ;;  %vm1269_vm4 = vc.u32 %v1267_v14, %v1263_v10  ;;  %v1052_v27 = vshrl.u32 %v3079_v5, 16  ;;  %v1055_v52 = vmul.u32 58254, %v1051_v17 }
 0x115   : > { %v2398_v28 = vsel %vm1795_vm3, 1.0, %v2472_v53  ;;  %v1270_v24 = vsel %vm1269_vm4, 1, %v2471_v34  ;;  %v810_v33 = vadd.s32 %v809_v32, %v800_v3  ;;  %v3100_v39 = vmul.f32 %v3013_v51, %v3013_v51 }
 0x116   : > { %v3096_v30 = vmul.f32 %v2398_v28, %v469_v62  ;;  %v1272_v36 = vadd.s32 %v1270_v24, %v1268_v19  ;;  %v1264_v61 = vshrl.u32 %v1259_v55, 16  ;;  %v1054_v45 = vmul.u32 14564, %v1051_v17 }
 0x117   : > { %v1056_v29 = vmul.u32 14564, %v1052_v27  ;;  %v449_v57 = vadd.f32 %v3055_v50, %v448_v37  ;;  %v811_v59 = vshrl.u32 %v810_v33, 4  ;;  %v819_v62 = vand.u32 65535, %v3091_v18 }
 0x118   : > { %v1939_v46 = vpack.c.bf16 %v3096_v30, %v3096_v30  ;;  %v1273_v41 = vadd.s32 %v1272_v36, %v1262_v7  ;;  %v1057_v63 = vmul.u32 58254, %v1052_v27  ;;  %v1058_v11 = vshll.u32 %v1055_v52, 16 }
 0x119   : > { %v1060_v31 = vshll.u32 %v1056_v29, 16  ;;  %v812_v35 = vmul.u32 18, %v811_v59  ;;  %v489_v55 = vadd.f32 %v3055_v50, %v488_v60  ;;  %v1059_v44 = vshrl.u32 %v1055_v52, 16 }
 0x11a   : > { %1976 = vst.msk [vmem:[%s2708_s5 + $0x40] sm:$0xf] %vm1959_vm11, %v1939_v46  ;;  %v820_v8 = vshrl.u32 %v3091_v18, 16  ;;  %v1274_v10 = vadd.s32 %v1273_v41, %v1264_v61  ;;  %v1061_v21 = vshrl.u32 %v1056_v29, 16  ;;  %vm1062_vm6 = vc.u32 %v1054_v45, %v1058_v11 }
 0x11b   : > { %v1064_v3 = vadd.s32 %v1058_v11, %v1054_v45  ;;  %v813_v13 = vsub.s32 %v3037_v4, %v812_v35  ;;  %v1063_v14 = vsel %vm1062_vm6, 1, %v2471_v34  ;;  %v823_v15 = vmul.u32 58254, %v819_v62 }
 0x11c   : > { %v824_v16 = vmul.u32 14564, %v820_v8  ;;  %v1275_v17 = vshrl.u32 %v1274_v10, 4  ;;  %v1065_v32 = vadd.s32 %v1063_v14, %v1057_v63  ;;  %v822_v19 = vmul.u32 14564, %v819_v62 }
 0x11d   : > { %vm1066_vm7 = vc.u32 %v1064_v3, %v1060_v31  ;;  %vm1607_vm8 = vcmp.ne.s32.totalorder %v813_v13, 0  ;;  %vm1643_vm9 = vcmp.lt.s32.totalorder %v813_v13, 0  ;;  %v1715_v28 = vadd.s32 18, %v813_v13 }
 0x11e   : > { %v1067_v37 = vsel %vm1066_vm7, 1, %v2471_v34  ;;  %vm1679_vm10 = vmand %vm1643_vm9, %vm1607_vm8  ;;  %v1276_v7 = vmul.u32 18, %v1275_v17  ;;  %v825_v27 = vmul.u32 58254, %v820_v8  ;;  %v826_v33 = vshll.u32 %v823_v15, 16 }
 0x11f   : > { %v1069_v24 = vadd.s32 %v1067_v37, %v1065_v32  ;;  %v1751_v36 = vsel %vm1679_vm10, %v1715_v28, %v813_v13  ;;  %v827_v4 = vshrl.u32 %v823_v15, 16  ;;  %v828_v52 = vshll.u32 %v824_v16, 16 }
 0x120   : > { %v829_v61 = vshrl.u32 %v824_v16, 16  ;;  %vm1787_vm12 = vcmp.lt.s32.totalorder %v1751_v36, 16  ;;  %v1277_v45 = vsub.s32 %v3040_v6, %v1276_v7  ;;  %vm830_vm13 = vc.u32 %v822_v19, %v826_v33 }
 0x121   : > { %v1070_v29 = vadd.s32 %v1069_v24, %v1059_v44  ;;  %v2390_v46 = vsel %vm1787_vm12, 1.0, %v2472_v53  ;;  %v831_v59 = vsel %vm830_vm13, 1, %v2471_v34  ;;  %v832_v62 = vadd.s32 %v826_v33, %v822_v19 }
 0x122   : > { %v3117_v60 = vadd.s32 200, %v2561_v25  ;;  %v1895_v41 = vmul.f32 %v2390_v46, %v449_v57  ;;  %vm1623_vm14 = vcmp.ne.s32.totalorder %v1277_v45, 0  ;;  %vm1659_vm15 = vcmp.lt.s32.totalorder %v1277_v45, 0 }
 0x123   : > { %v1731_v63 = vadd.s32 18, %v1277_v45  ;;  %vm1695_vm0 = vmand %vm1659_vm15, %vm1623_vm14  ;;  %v1071_v11 = vadd.s32 %v1070_v29, %v1061_v21  ;;  %v833_v31 = vadd.s32 %v831_v59, %v825_v27  ;;  %vm834_vm1 = vc.u32 %v832_v62, %v828_v52 }
 0x124   : > { %v1283_v6 = vand.u32 65535, %v3117_v60  ;;  %v1931_v35 = vpack.c.bf16 %v1895_v41, %v1895_v41  ;;  %v2012_v44 = vsel %vm1996_vm5, %v1895_v41, 0.0  ;;  %v2084_v8 = vmul.f32 %v1895_v41, %v1895_v41 }
 0x125   : > { %v1767_v10 = vsel %vm1695_vm0, %v1731_v63, %v1277_v45  ;;  %v3122_v3 = vadd.f32 %v2012_v44, %v3045_v20  ;;  %v1072_v57 = vshrl.u32 %v1071_v11, 4  ;;  %v835_v13 = vsel %vm834_vm1, 1, %v2471_v34 }
 0x126   : > { %vm1803_vm2 = vcmp.lt.s32.totalorder %v1767_v10, 16  ;;  %1968 = vst.msk [vmem:[%s2708_s5 + $0x20] sm:$0xf] %vm1959_vm11, %v1931_v35  ;;  %v2127_v21 = vsel %vm1996_vm5, %v2084_v8, 0.0  ;;  %v837_v15 = vadd.s32 %v835_v13, %v833_v31  ;;  %v1284_v16 = vshrl.u32 %v3117_v60, 16 }
 0x127   : > { %v2406_v14 = vsel %vm1803_vm2, 1.0, %v2472_v53  ;;  %v3132_v17 = vsel %vm1996_vm5, %v3084_v12, 0.0  ;;  %v3135_v20 = vadd.f32 %v2127_v21, %v3059_v22  ;;  %v1073_v19 = vmul.u32 18, %v1072_v57  ;;  %v470_v12 = vpop.f32.mrf.mxu1 }
 0x128   : > { %v3137_v32 = vmul.f32 %v2406_v14, %v489_v55  ;;  %v838_v28 = vadd.s32 %v837_v15, %v827_v4  ;;  %v1286_v37 = vmul.u32 14564, %v1283_v6  ;;  %v1287_v7 = vmul.u32 58254, %v1283_v6  ;;  %v450_v6 = vpop.f32.mrf.mxu0 }
 0x129   : > { %v1288_v24 = vmul.u32 14564, %v1284_v16  ;;  %v3141_v27 = vsel %vm1996_vm5, %v3013_v51, 0.0  ;;  %v3145_v33 = vsel %vm1996_vm5, %v3100_v39, 0.0  ;;  %v1074_v55 = vsub.s32 %v3079_v5, %v1073_v19 }
 0x12a   : > { %v1947_v22 = vpack.c.bf16 %v3137_v32, %v3137_v32  ;;  %v839_v36 = vadd.s32 %v838_v28, %v829_v61  ;;  %v1289_v52 = vmul.u32 58254, %v1284_v16  ;;  %v1290_v4 = vshll.u32 %v1287_v7, 16 }
 0x12b   : > { %v1292_v45 = vshll.u32 %v1288_v24, 16  ;;  %v3152_v29 = vmul.f32 %v3072_v47, %v3072_v47  ;;  %vm1616_vm3 = vcmp.ne.s32.totalorder %v1074_v55, 0  ;;  %vm1652_vm4 = vcmp.lt.s32.totalorder %v1074_v55, 0 }
 0x12c   : > { %1984 = vst.msk [vmem:[%s2708_s5 + $0x60] sm:$0xf] %vm1959_vm11, %v1947_v22  ;;  %v1724_v51 = vadd.s32 18, %v1074_v55  ;;  %v471_v39 = vadd.f32 %v3055_v50, %v470_v12  ;;  %vm1688_vm6 = vmand %vm1652_vm4, %vm1616_vm3  ;;  %v840_v46 = vshrl.u32 %v839_v36, 4  ;;  %vm1294_vm7 = vc.u32 %v1286_v37, %v1290_v4 }
 0x12d   : > { %v1296_v59 = vadd.s32 %v1290_v4, %v1286_v37  ;;  %v1291_v61 = vshrl.u32 %v1287_v7, 16  ;;  %v1295_v62 = vsel %vm1294_vm7, 1, %v2471_v34  ;;  %v3159_v41 = vadd.s32 144, %v2561_v25 }
 0x12e   : > { %v1760_v5 = vsel %vm1688_vm6, %v1724_v51, %v1074_v55  ;;  %v841_v63 = vmul.u32 18, %v840_v46  ;;  %v1297_v11 = vadd.s32 %v1295_v62, %v1289_v52  ;;  %v2092_v10 = vmul.f32 %v3096_v30, %v3096_v30 }
 0x12f   : > { %vm1796_vm8 = vcmp.lt.s32.totalorder %v1760_v5, 16  ;;  %vm1298_vm9 = vc.u32 %v1296_v59, %v1292_v45  ;;  %v1080_v44 = vand.u32 65535, %v3159_v41  ;;  %v1081_v8 = vshrl.u32 %v3159_v41, 16 }
 0x130   : > { %v2399_v31 = vsel %vm1796_vm8, 1.0, %v2472_v53  ;;  %v1299_v35 = vsel %vm1298_vm9, 1, %v2471_v34  ;;  %v842_v13 = vsub.s32 %v3091_v18, %v841_v63  ;;  %v1293_v14 = vshrl.u32 %v1288_v24, 16 }
 0x131   : > { %v3167_v57 = vmul.f32 %v2399_v31, %v471_v39  ;;  %v1301_v21 = vadd.s32 %v1299_v35, %v1297_v11  ;;  %v1083_v15 = vmul.u32 14564, %v1080_v44  ;;  %v1084_v16 = vmul.u32 58254, %v1080_v44  ;;  %v490_v39 = vpop.f32.mrf.mxu2 }
 0x132   : > { %v1085_v19 = vmul.u32 14564, %v1081_v8  ;;  %v451_v37 = vadd.f32 %v3055_v50, %v450_v6  ;;  %vm1608_vm10 = vcmp.ne.s32.totalorder %v842_v13, 0  ;;  %v1086_v7 = vmul.u32 58254, %v1081_v8 }
 0x133   : > { %v1940_v28 = vpack.c.bf16 %v3167_v57, %v3167_v57  ;;  %vm1644_vm12 = vcmp.lt.s32.totalorder %v842_v13, 0  ;;  %v1716_v22 = vadd.s32 18, %v842_v13  ;;  %v1302_v12 = vadd.s32 %v1301_v21, %v1291_v61 }
 0x134   : > { %v1087_v55 = vshll.u32 %v1084_v16, 16  ;;  %v3175_v18 = vsel %vm1996_vm5, %v3096_v30, 0.0  ;;  %v3178_v24 = vsel %vm1996_vm5, %v2092_v10, 0.0  ;;  %vm1680_vm13 = vmand %vm1644_vm12, %vm1608_vm10  ;;  %v1088_v36 = vshrl.u32 %v1084_v16, 16 }
 0x135   : > { %1977 = vst.msk [vmem:[%s2708_s5 + $0x44] sm:$0xf] %vm1959_vm11, %v1940_v28  ;;  %v1089_v52 = vshll.u32 %v1085_v19, 16  ;;  %v1752_v4 = vsel %vm1680_vm13, %v1716_v22, %v842_v13  ;;  %v1303_v45 = vadd.s32 %v1302_v12, %v1293_v14  ;;  %v3184_v59 = vadd.s32 240, %v2561_v25 }
 0x136   : > { %vm1091_vm14 = vc.u32 %v1083_v15, %v1087_v55  ;;  %v1093_v51 = vadd.s32 %v1087_v55, %v1083_v15  ;;  %vm1788_vm15 = vcmp.lt.s32.totalorder %v1752_v4, 16  ;;  %v3187_v30 = vadd.s32 208, %v2561_v25 }
 0x137   : > { %v1092_v46 = vsel %vm1091_vm14, 1, %v2471_v34  ;;  %v2391_v5 = vsel %vm1788_vm15, 1.0, %v2472_v53  ;;  %v1304_v61 = vshrl.u32 %v1303_v45, 4  ;;  %v1428_v31 = vand.u32 65535, %v3184_v59 }
 0x138   : > { %v1094_v62 = vadd.s32 %v1092_v46, %v1086_v7  ;;  %vm1095_vm0 = vc.u32 %v1093_v51, %v1089_v52  ;;  %v1896_v63 = vmul.f32 %v2391_v5, %v451_v37  ;;  %v1429_v6 = vshrl.u32 %v3184_v59, 16 }
 0x139   : > { %v1096_v11 = vsel %vm1095_vm0, 1, %v2471_v34  ;;  %v491_v35 = vadd.f32 %v3055_v50, %v490_v39  ;;  %v1305_v44 = vmul.u32 18, %v1304_v61  ;;  %v1090_v8 = vshrl.u32 %v1085_v19, 16 }
 0x13a   : > { %v1098_v10 = vadd.s32 %v1096_v11, %v1094_v62  ;;  %v1932_v13 = vpack.c.bf16 %v1896_v63, %v1896_v63  ;;  %v2014_v21 = vsel %vm1996_vm5, %v1896_v63, 0.0  ;;  %v2085_v14 = vmul.f32 %v1896_v63, %v1896_v63 }
 0x13b   : > { %v1312_v15 = vand.u32 65535, %v3187_v30  ;;  %v2015_v16 = vadd.f32 %v2014_v21, %v3122_v3  ;;  %v1306_v28 = vsub.s32 %v3117_v60, %v1305_v44  ;;  %v1432_v7 = vmul.u32 58254, %v1428_v31 }
 0x13c   : > { %v1099_v37 = vadd.s32 %v1098_v10, %v1088_v36  ;;  %1969 = vst.msk [vmem:[%s2708_s5 + $0x24] sm:$0xf] %vm1959_vm11, %v1932_v13  ;;  %v2129_v22 = vsel %vm1996_vm5, %v2085_v14, 0.0  ;;  %v1431_v12 = vmul.u32 14564, %v1428_v31  ;;  %v1433_v55 = vmul.u32 14564, %v1429_v6  ;;  %v473_v10 = vpop.f32.mrf.mxu1 }
 0x13d   : > { %v1434_v19 = vmul.u32 58254, %v1429_v6  ;;  %v2017_v52 = vadd.f32 %v2848_v0, %v2015_v16  ;;  %v2130_v4 = vadd.f32 %v2129_v22, %v3135_v20  ;;  %vm1624_vm1 = vcmp.ne.s32.totalorder %v1306_v28, 0 }
 0x13e   : > { %vm1660_vm2 = vcmp.lt.s32.totalorder %v1306_v28, 0  ;;  %v1732_v45 = vadd.s32 18, %v1306_v28  ;;  %v1100_v3 = vadd.s32 %v1099_v37, %v1090_v8  ;;  %v1435_v51 = vshll.u32 %v1432_v7, 16 }
 0x13f   : > { %vm1696_vm3 = vmand %vm1660_vm2, %vm1624_vm1  ;;  %v1313_v60 = vshrl.u32 %v3187_v30, 16  ;;  %v2019_v36 = vadd.f32 %v2857_v9, %v2017_v52  ;;  %v2132_v39 = vadd.f32 %v2851_v2, %v2130_v4  ;;  %v1436_v46 = vshrl.u32 %v1432_v7, 16 }
 0x140   : > { %v1437_v5 = vshll.u32 %v1433_v55, 16  ;;  %v1768_v61 = vsel %vm1696_vm3, %v1732_v45, %v1306_v28  ;;  %v1101_v62 = vshrl.u32 %v1100_v3, 4  ;;  %vm1439_vm4 = vc.u32 %v1431_v12, %v1435_v51 }
 0x141   : > { %v1441_v0 = vadd.s32 %v1435_v51, %v1431_v12  ;;  %v2021_v20 = vadd.f32 %v2878_v40, %v2019_v36  ;;  %v2134_v63 = vadd.f32 %v2874_v38, %v2132_v39  ;;  %vm1804_vm6 = vcmp.lt.s32.totalorder %v1768_v61, 16 }
 0x142   : > { %v1440_v11 = vsel %vm1439_vm4, 1, %v2471_v34  ;;  %v2407_v31 = vsel %vm1804_vm6, 1.0, %v2472_v53  ;;  %v1102_v6 = vmul.u32 18, %v1101_v62  ;;  %v474_v38 = vadd.f32 %v3055_v50, %v473_v10 }
 0x143   : > { %v1442_v44 = vadd.s32 %v1440_v11, %v1434_v19  ;;  %vm1443_vm7 = vc.u32 %v1441_v0, %v1437_v5  ;;  %v2023_v2 = vadd.f32 %v2990_v23, %v2021_v20  ;;  %v2136_v9 = vadd.f32 %v2922_v58, %v2134_v63 }
 0x144   : > { %v3212_v8 = vmul.f32 %v2407_v31, %v491_v35  ;;  %v1444_v40 = vsel %vm1443_vm7, 1, %v2471_v34  ;;  %v1103_v13 = vsub.s32 %v3159_v41, %v1102_v6  ;;  %v1316_v14 = vmul.u32 58254, %v1312_v15 }
 0x145   : > { %v1446_v21 = vadd.s32 %v1444_v40, %v1442_v44  ;;  %v2093_v16 = vmul.f32 %v3167_v57, %v3167_v57  ;;  %v2138_v28 = vadd.f32 %v2994_v56, %v2136_v9  ;;  %v1438_v23 = vshrl.u32 %v1433_v55, 16 }
 0x146   : > { %v1948_v58 = vpack.c.bf16 %v3212_v8, %v3212_v8  ;;  %vm1617_vm8 = vcmp.ne.s32.totalorder %v1103_v13, 0  ;;  %vm1653_vm9 = vcmp.lt.s32.totalorder %v1103_v13, 0  ;;  %v1725_v35 = vadd.s32 18, %v1103_v13 }
 0x147   : > { %v2025_v37 = vadd.f32 %v3027_v48, %v2023_v2  ;;  %vm1689_vm10 = vmand %vm1653_vm9, %vm1617_vm8  ;;  %v2140_v41 = vadd.f32 %v3063_v49, %v2138_v28  ;;  %v1447_v7 = vadd.s32 %v1446_v21, %v1436_v46  ;;  %v1315_v22 = vmul.u32 14564, %v1312_v15 }
 0x148   : > { %1985 = vst.msk [vmem:[%s2708_s5 + $0x64] sm:$0xf] %vm1959_vm11, %v1948_v58  ;;  %v1317_v12 = vmul.u32 14564, %v1313_v60  ;;  %v2030_v56 = vsel %vm1996_vm5, %v3167_v57, 0.0  ;;  %v1761_v19 = vsel %vm1689_vm10, %v1725_v35, %v1103_v13  ;;  %v1319_v55 = vshll.u32 %v1316_v14, 16 }
 0x149   : > { %v2027_v52 = vadd.f32 %v3141_v27, %v2025_v37  ;;  %v2145_v4 = vsel %vm1996_vm5, %v2093_v16, 0.0  ;;  %vm1797_vm12 = vcmp.lt.s32.totalorder %v1761_v19, 16  ;;  %v2142_v48 = vadd.f32 %v3145_v33, %v2140_v41 }
 0x14a   : > { %v1448_v45 = vadd.s32 %v1447_v7, %v1438_v23  ;;  %v2400_v3 = vsel %vm1797_vm12, 1.0, %v2472_v53  ;;  %v1318_v51 = vmul.u32 58254, %v1313_v60  ;;  %v1321_v15 = vshll.u32 %v1317_v12, 16 }
 0x14b   : > { %v2029_v49 = vadd.f32 %v3175_v18, %v2027_v52  ;;  %v1905_v36 = vmul.f32 %v2400_v3, %v474_v38  ;;  %v2144_v57 = vadd.f32 %v3178_v24, %v2142_v48  ;;  %vm1323_vm13 = vc.u32 %v1315_v22, %v1319_v55 }
 0x14c   : > { %v1449_v39 = vshrl.u32 %v1448_v45, 4  ;;  %v1320_v46 = vshrl.u32 %v1316_v14, 16  ;;  %v1324_v5 = vsel %vm1323_vm13, 1, %v2471_v34  ;;  %v1325_v61 = vadd.s32 %v1319_v55, %v1315_v22  ;;  %v503_v14 = vpop.f32.mrf.mxu3  ;;  %v493_v22 = vpop.f32.mrf.mxu2 }
 0x14d   : > { %v2031_v27 = vadd.f32 %v2030_v56, %v2029_v49  ;;  %v1941_v62 = vpack.c.bf16 %v1905_v36, %v1905_v36  ;;  %v2032_v33 = vsel %vm1996_vm5, %v1905_v36, 0.0  ;;  %v2094_v0 = vmul.f32 %v1905_v36, %v1905_v36 }
 0x14e   : > { %v2146_v20 = vadd.f32 %v2145_v4, %v2144_v57  ;;  %v1450_v18 = vmul.u32 18, %v1449_v39  ;;  %v1326_v60 = vadd.s32 %v1324_v5, %v1318_v51  ;;  %vm1327_vm14 = vc.u32 %v1325_v61, %v1321_v15 }
 0x14f   : > { %v3236_v63 = vadd.f32 %v2032_v33, %v2031_v27  ;;  %1978 = vst.msk [vmem:[%s2708_s5 + $0x48] sm:$0xf] %vm1959_vm11, %v1941_v62  ;;  %v2147_v24 = vsel %vm1996_vm5, %v2094_v0, 0.0  ;;  %v1322_v11 = vshrl.u32 %v1317_v12, 16  ;;  %v1328_v31 = vsel %vm1327_vm14, 1, %v2471_v34 }
 0x150   : > { %v3243_v6 = vadd.s32 152, %v2561_v25  ;;  %v3245_v44 = vadd.f32 %v2147_v24, %v2146_v20  ;;  %v1451_v2 = vsub.s32 %v3184_v59, %v1450_v18  ;;  %v1330_v9 = vadd.s32 %v1328_v31, %v1326_v60 }
 0x151   : > { %v3249_v10 = vadd.s32 248, %v2561_v25  ;;  %v3253_v40 = vsel %vm1996_vm5, %v3072_v47, 0.0  ;;  %v3257_v38 = vsel %vm1996_vm5, %v3152_v29, 0.0  ;;  %v504_v28 = vadd.f32 %v3055_v50, %v503_v14 }
 0x152   : > { %v1109_v13 = vand.u32 65535, %v3243_v6  ;;  %v1110_v21 = vshrl.u32 %v3243_v6, 16  ;;  %vm1629_vm15 = vcmp.ne.s32.totalorder %v1451_v2, 0  ;;  %vm1665_vm0 = vcmp.lt.s32.totalorder %v1451_v2, 0 }
 0x153   : > { %v1737_v59 = vadd.s32 18, %v1451_v2  ;;  %v1331_v16 = vadd.s32 %v1330_v9, %v1320_v46  ;;  %vm1701_vm1 = vmand %vm1665_vm0, %vm1629_vm15  ;;  %v1457_v29 = vand.u32 65535, %v3249_v10  ;;  %v1458_v41 = vshrl.u32 %v3249_v10, 16 }
 0x154   : > { %v1112_v58 = vmul.u32 14564, %v1109_v13  ;;  %v1113_v23 = vmul.u32 58254, %v1109_v13  ;;  %v1114_v47 = vmul.u32 14564, %v1110_v21  ;;  %v2100_v7 = vmul.f32 %v3137_v32, %v3137_v32 }
 0x155   : > { %v1773_v35 = vsel %vm1701_vm1, %v1737_v59, %v1451_v2  ;;  %v1332_v37 = vadd.s32 %v1331_v16, %v1322_v11  ;;  %v1115_v12 = vmul.u32 58254, %v1110_v21  ;;  %v494_v52 = vadd.f32 %v3055_v50, %v493_v22  ;;  %v475_v22 = vpop.f32.mrf.mxu1 }
 0x156   : > { %vm1809_vm2 = vcmp.lt.s32.totalorder %v1773_v35, 16  ;;  %v1116_v56 = vshll.u32 %v1113_v23, 16  ;;  %v1118_v4 = vshll.u32 %v1114_v47, 16  ;;  %v1461_v3 = vmul.u32 58254, %v1457_v29 }
 0x157   : > { %v2412_v19 = vsel %vm1809_vm2, 1.0, %v2472_v53  ;;  %v1333_v55 = vshrl.u32 %v1332_v37, 4  ;;  %v1462_v15 = vmul.u32 14564, %v1458_v41  ;;  %v3272_v36 = vadd.s32 216, %v2561_v25 }
 0x158   : > { %v3268_v48 = vmul.f32 %v2412_v19, %v504_v28  ;;  %vm1120_vm3 = vc.u32 %v1112_v58, %v1116_v56  ;;  %v1122_v45 = vadd.s32 %v1116_v56, %v1112_v58  ;;  %v1460_v27 = vmul.u32 14564, %v1457_v29 }
 0x159   : > { %v1334_v49 = vmul.u32 18, %v1333_v55  ;;  %v1121_v51 = vsel %vm1120_vm3, 1, %v2471_v34  ;;  %v3277_v46 = vadd.s32 256, %v2561_v25  ;;  %v1117_v61 = vshrl.u32 %v1113_v23, 16 }
 0x15a   : > { %v1953_v57 = vpack.c.bf16 %v3268_v48, %v3268_v48  ;;  %v1123_v39 = vadd.s32 %v1121_v51, %v1115_v12  ;;  %vm1124_vm4 = vc.u32 %v1122_v45, %v1118_v4  ;;  %v1464_v62 = vshll.u32 %v1461_v3, 16 }
 0x15b   : > { %v1335_v5 = vsub.s32 %v3187_v30, %v1334_v49  ;;  %v1119_v33 = vshrl.u32 %v1114_v47, 16  ;;  %v1125_v0 = vsel %vm1124_vm4, 1, %v2471_v34  ;;  %v1463_v20 = vmul.u32 58254, %v1458_v41 }
 0x15c   : > { %1990 = vst.msk [vmem:[%s2708_s5 + $0x78] sm:$0xf] %vm1959_vm11, %v1953_v57  ;;  %v1466_v18 = vshll.u32 %v1462_v15, 16  ;;  %v1127_v24 = vadd.s32 %v1125_v0, %v1123_v39  ;;  %v1465_v11 = vshrl.u32 %v1461_v3, 16  ;;  %vm1468_vm9 = vc.u32 %v1460_v27, %v1464_v62 }
 0x15d   : > { %vm1625_vm6 = vcmp.ne.s32.totalorder %v1335_v5, 0  ;;  %vm1661_vm7 = vcmp.lt.s32.totalorder %v1335_v5, 0  ;;  %v1733_v60 = vadd.s32 18, %v1335_v5  ;;  %v1470_v31 = vadd.s32 %v1464_v62, %v1460_v27  ;;  %v505_v27 = vpop.f32.mrf.mxu3 }
 0x15e   : > { %vm1697_vm8 = vmand %vm1661_vm7, %vm1625_vm6  ;;  %v1341_v30 = vand.u32 65535, %v3272_v36  ;;  %v1128_v9 = vadd.s32 %v1127_v24, %v1117_v61  ;;  %v1469_v13 = vsel %vm1468_vm9, 1, %v2471_v34  ;;  %v1342_v21 = vshrl.u32 %v3272_v36, 16 }
 0x15f   : > { %v1769_v2 = vsel %vm1697_vm8, %v1733_v60, %v1335_v5  ;;  %v1471_v14 = vadd.s32 %v1469_v13, %v1463_v20  ;;  %vm1472_vm12 = vc.u32 %v1470_v31, %v1466_v18  ;;  %v1467_v35 = vshrl.u32 %v1462_v15, 16 }
 0x160   : > { %vm1805_vm10 = vcmp.lt.s32.totalorder %v1769_v2, 16  ;;  %v1344_v59 = vmul.u32 14564, %v1341_v30  ;;  %v1129_v28 = vadd.s32 %v1128_v9, %v1119_v33  ;;  %v1473_v58 = vsel %vm1472_vm12, 1, %v2471_v34 }
 0x161   : > { %v2408_v16 = vsel %vm1805_vm10, 1.0, %v2472_v53  ;;  %v1345_v23 = vmul.u32 58254, %v1341_v30  ;;  %v1475_v37 = vadd.s32 %v1473_v58, %v1471_v14  ;;  %v1346_v29 = vmul.u32 14564, %v1342_v21 }
 0x162   : > { %v3288_v47 = vmul.f32 %v2408_v16, %v494_v52  ;;  %v3292_v41 = vsel %vm1996_vm5, %v3137_v32, 0.0  ;;  %v1130_v12 = vshrl.u32 %v1129_v28, 4  ;;  %v1347_v56 = vmul.u32 58254, %v1342_v21 }
 0x163   : > { %v1348_v19 = vshll.u32 %v1345_v23, 16  ;;  %v3295_v55 = vsel %vm1996_vm5, %v2100_v7, 0.0  ;;  %v1476_v52 = vadd.s32 %v1475_v37, %v1465_v11  ;;  %v1486_v45 = vand.u32 65535, %v3277_v46 }
 0x164   : > { %v1949_v4 = vpack.c.bf16 %v3288_v47, %v3288_v47  ;;  %v3302_v3 = vmul.f32 %v3212_v8, %v3212_v8  ;;  %v1131_v49 = vmul.u32 18, %v1130_v12  ;;  %v1350_v32 = vshll.u32 %v1346_v29, 16 }
 0x165   : > { %vm1352_vm13 = vc.u32 %v1344_v59, %v1348_v19  ;;  %v476_v51 = vadd.f32 %v3055_v50, %v475_v22  ;;  %v1477_v15 = vadd.s32 %v1476_v52, %v1467_v35  ;;  %v1354_v57 = vadd.s32 %v1348_v19, %v1344_v59 }
 0x166   : > { %1986 = vst.msk [vmem:[%s2708_s5 + $0x68] sm:$0xf] %vm1959_vm11, %v1949_v4  ;;  %v1353_v7 = vsel %vm1352_vm13, 1, %v2471_v34  ;;  %v1132_v39 = vsub.s32 %v3243_v6, %v1131_v49  ;;  %v1349_v5 = vshrl.u32 %v1345_v23, 16  ;;  %v1487_v62 = vshrl.u32 %v3277_v46, 16 }
 0x167   : > { %v1355_v61 = vadd.s32 %v1353_v7, %v1347_v56  ;;  %v1478_v33 = vshrl.u32 %v1477_v15, 4  ;;  %vm1356_vm14 = vc.u32 %v1354_v57, %v1350_v32  ;;  %v1489_v0 = vmul.u32 14564, %v1486_v45 }
 0x168   : > { %v1490_v20 = vmul.u32 58254, %v1486_v45  ;;  %vm1618_vm15 = vcmp.ne.s32.totalorder %v1132_v39, 0  ;;  %vm1654_vm0 = vcmp.lt.s32.totalorder %v1132_v39, 0  ;;  %v1726_v18 = vadd.s32 18, %v1132_v39 }
 0x169   : > { %v1357_v60 = vsel %vm1356_vm14, 1, %v2471_v34  ;;  %vm1690_vm1 = vmand %vm1654_vm0, %vm1618_vm15  ;;  %v506_v24 = vadd.f32 %v3055_v50, %v505_v27  ;;  %v1479_v11 = vmul.u32 18, %v1478_v33  ;;  %v3312_v6 = vmul.u32 14564, %v1487_v62 }
 0x16a   : > { %v1359_v31 = vadd.s32 %v1357_v60, %v1355_v61  ;;  %v1762_v30 = vsel %vm1690_vm1, %v1726_v18, %v1132_v39  ;;  %v1351_v2 = vshrl.u32 %v1346_v29, 16  ;;  %v1492_v9 = vmul.u32 58254, %v1487_v62 }
 0x16b   : > { %v1493_v13 = vshll.u32 %v1490_v20, 16  ;;  %vm1798_vm2 = vcmp.lt.s32.totalorder %v1762_v30, 16  ;;  %v1480_v21 = vsub.s32 %v3249_v10, %v1479_v11  ;;  %v1495_v59 = vshll.u32 %v3312_v6, 16 }
 0x16c   : > { %v1360_v14 = vadd.s32 %v1359_v31, %v1349_v5  ;;  %v2401_v16 = vsel %vm1798_vm2, 1.0, %v2472_v53  ;;  %v1494_v28 = vshrl.u32 %v1490_v20, 16  ;;  %v3319_v10 = vadd.s32 224, %v2561_v25 }
 0x16d   : > { %vm1497_vm3 = vc.u32 %v1489_v0, %v1493_v13  ;;  %v1499_v58 = vadd.s32 %v1493_v13, %v1489_v0  ;;  %v1906_v23 = vmul.f32 %v2401_v16, %v476_v51  ;;  %vm1630_vm4 = vcmp.ne.s32.totalorder %v1480_v21, 0 }
 0x16e   : > { %vm1666_vm6 = vcmp.lt.s32.totalorder %v1480_v21, 0  ;;  %v1738_v35 = vadd.s32 18, %v1480_v21  ;;  %v1361_v37 = vadd.s32 %v1360_v14, %v1351_v2  ;;  %v1498_v29 = vsel %vm1497_vm3, 1, %v2471_v34 }
 0x16f   : > { %vm1702_vm7 = vmand %vm1666_vm6, %vm1630_vm4  ;;  %vm1501_vm8 = vc.u32 %v1499_v58, %v1495_v59  ;;  %v1942_v22 = vpack.c.bf16 %v1906_v23, %v1906_v23  ;;  %v2034_v12 = vsel %vm1996_vm5, %v1906_v23, 0.0  ;;  %v2095_v56 = vmul.f32 %v1906_v23, %v1906_v23 }
 0x170   : > { %v1774_v19 = vsel %vm1702_vm7, %v1738_v35, %v1480_v21  ;;  %v2035_v4 = vadd.f32 %v2034_v12, %v3236_v63  ;;  %v1362_v52 = vshrl.u32 %v1361_v37, 4  ;;  %v1500_v45 = vadd.s32 %v1498_v29, %v1492_v9  ;;  %v508_v37 = vpop.f32.mrf.mxu3  ;;  %v3376_v12 = vld [vmem:[%s3498_s2] ss:$0 sm:$0xff] }
 0x171   : > { %vm1810_vm9 = vcmp.lt.s32.totalorder %v1774_v19, 16  ;;  %1979 = vst.msk [vmem:[%s2708_s5 + $0x4c] sm:$0xf] %vm1959_vm11, %v1942_v22  ;;  %v2149_v49 = vsel %vm1996_vm5, %v2095_v56, 0.0  ;;  %v1502_v51 = vsel %vm1501_vm8, 1, %v2471_v34  ;;  %v1370_v15 = vand.u32 65535, %v3319_v10 }
 0x172   : > { %v2413_v32 = vsel %vm1810_vm9, 1.0, %v2472_v53  ;;  %v2037_v7 = vadd.f32 %v2927_v1, %v2035_v4  ;;  %v2150_v57 = vadd.f32 %v2149_v49, %v3245_v44  ;;  %v1363_v63 = vmul.u32 18, %v1362_v52  ;;  %v495_v44 = vpop.f32.mrf.mxu2 }
 0x173   : > { %v3331_v39 = vmul.f32 %v2413_v32, %v506_v24  ;;  %v2046_v27 = vsel %vm1996_vm5, %v3212_v8, 0.0  ;;  %v1504_v5 = vadd.s32 %v1502_v51, %v1500_v45  ;;  %v1371_v61 = vshrl.u32 %v3319_v10, 16 }
 0x174   : > { %v3336_v62 = vmul.u32 58254, %v1370_v15  ;;  %v2039_v33 = vadd.f32 %v3017_v42, %v2037_v7  ;;  %v2152_v0 = vadd.f32 %v2949_v26, %v2150_v57  ;;  %v1496_v20 = vshrl.u32 %v3312_v6, 16 }
 0x175   : > { %v1954_v1 = vpack.c.bf16 %v3331_v39, %v3331_v39  ;;  %v1364_v18 = vsub.s32 %v3272_v36, %v1363_v63  ;;  %v1505_v60 = vadd.s32 %v1504_v5, %v1494_v28  ;;  %v1373_v8 = vmul.u32 14564, %v1370_v15 }
 0x176   : > { %v1375_v24 = vmul.u32 14564, %v1371_v61  ;;  %v2161_v11 = vsel %vm1996_vm5, %v3302_v3, 0.0  ;;  %v2041_v31 = vadd.f32 %v3069_v54, %v2039_v33  ;;  %v2154_v42 = vadd.f32 %v3020_v43, %v2152_v0 }
 0x177   : > { %1991 = vst.msk [vmem:[%s2708_s5 + $0x7c] sm:$0xf] %vm1959_vm11, %v1954_v1  ;;  %v1377_v26 = vshll.u32 %v3336_v62, 16  ;;  %v496_v30 = vadd.f32 %v3055_v50, %v495_v44  ;;  %vm1626_vm10 = vcmp.ne.s32.totalorder %v1364_v18, 0  ;;  %vm1662_vm12 = vcmp.lt.s32.totalorder %v1364_v18, 0 }
 0x178   : > { %v1734_v6 = vadd.s32 18, %v1364_v18  ;;  %v2102_v36 = vmul.f32 %v3288_v47, %v3288_v47  ;;  %v2156_v2 = vadd.f32 %v3132_v17, %v2154_v42  ;;  %vm1698_vm13 = vmand %vm1662_vm12, %vm1626_vm10  ;;  %v2043_v3 = vadd.f32 %v3253_v40, %v2041_v31 }
 0x179   : > { %v1506_v54 = vadd.s32 %v1505_v60, %v1496_v20  ;;  %v1376_v43 = vmul.u32 58254, %v1371_v61  ;;  %v1379_v13 = vshll.u32 %v1375_v24, 16  ;;  %vm1381_vm14 = vc.u32 %v1373_v8, %v1377_v26 }
 0x17a   : > { %v1770_v9 = vsel %vm1698_vm13, %v1734_v6, %v1364_v18  ;;  %v2045_v21 = vadd.f32 %v3292_v41, %v2043_v3  ;;  %v2158_v50 = vadd.f32 %v3257_v38, %v2156_v2  ;;  %v2048_v59 = vsel %vm1996_vm5, %v3288_v47, 0.0 }
 0x17b   : > { %vm1806_vm15 = vcmp.lt.s32.totalorder %v1770_v9, 16  ;;  %v1507_v14 = vshrl.u32 %v1506_v54, 4  ;;  %v1382_v17 = vsel %vm1381_vm14, 1, %v2471_v34  ;;  %v1383_v28 = vadd.s32 %v1377_v26, %v1373_v8 }
 0x17c   : > { %v2409_v16 = vsel %vm1806_vm15, 1.0, %v2472_v53  ;;  %v2047_v58 = vadd.f32 %v2046_v27, %v2045_v21  ;;  %v2160_v23 = vadd.f32 %v3295_v55, %v2158_v50  ;;  %v2163_v41 = vsel %vm1996_vm5, %v2102_v36, 0.0 }
 0x17d   : > { %v3362_v40 = vmul.f32 %v2409_v16, %v496_v30  ;;  %v1508_v35 = vmul.u32 18, %v1507_v14  ;;  %v1384_v38 = vadd.s32 %v1382_v17, %v1376_v43  ;;  %vm1385_vm0 = vc.u32 %v1383_v28, %v1379_v13  ;;  %v498_v14 = vpop.f32.mrf.mxu2 }
 0x17e   : > { %v3367_v29 = vadd.s32 264, %v2561_v25  ;;  %v3371_v22 = vadd.f32 %v2048_v59, %v2047_v58  ;;  %v509_v55 = vadd.f32 %v3376_v12, %v508_v37  ;;  %v1378_v56 = vshrl.u32 %v3336_v62, 16 }
 0x17f   : > { %v1950_v47 = vpack.c.bf16 %v3362_v40, %v3362_v40  ;;  %v2162_v19 = vadd.f32 %v2161_v11, %v2160_v23  ;;  %v1509_v4 = vsub.s32 %v3277_v46, %v1508_v35  ;;  %v1386_v52 = vsel %vm1385_vm0, 1, %v2471_v34 }
 0x180   : > { %v1515_v45 = vand.u32 65535, %v3367_v29  ;;  %v1380_v49 = vshrl.u32 %v1375_v24, 16  ;;  %v1388_v32 = vadd.s32 %v1386_v52, %v1384_v38  ;;  %v1516_v51 = vshrl.u32 %v3367_v29, 16 }
 0x181   : > { %1987 = vst.msk [vmem:[%s2708_s5 + $0x6c] sm:$0xf] %vm1959_vm11, %v1950_v47  ;;  %v3387_v15 = vadd.s32 232, %v2561_v25  ;;  %v3389_v7 = vadd.f32 %v2163_v41, %v2162_v19  ;;  %vm1631_vm1 = vcmp.ne.s32.totalorder %v1509_v4, 0  ;;  %vm1667_vm2 = vcmp.lt.s32.totalorder %v1509_v4, 0  ;;  %v510_v47 = vpop.f32.mrf.mxu3 }
 0x182   : > { %v1739_v57 = vadd.s32 18, %v1509_v4  ;;  %vm1703_vm3 = vmand %vm1667_vm2, %vm1631_vm1  ;;  %v1389_v46 = vadd.s32 %v1388_v32, %v1378_v56  ;;  %v1518_v63 = vmul.u32 14564, %v1515_v45  ;;  %v1519_v27 = vmul.u32 58254, %v1515_v45 }
 0x183   : > { %v1520_v5 = vmul.u32 14564, %v1516_v51  ;;  %v1521_v1 = vmul.u32 58254, %v1516_v51  ;;  %v1399_v20 = vand.u32 65535, %v3387_v15  ;;  %v1400_v11 = vshrl.u32 %v3387_v15, 16 }
 0x184   : > { %v1775_v61 = vsel %vm1703_vm3, %v1739_v57, %v1509_v4  ;;  %v1390_v62 = vadd.s32 %v1389_v46, %v1380_v49  ;;  %v1522_v33 = vshll.u32 %v1519_v27, 16  ;;  %v1523_v6 = vshrl.u32 %v1519_v27, 16 }
 0x185   : > { %vm1811_vm4 = vcmp.lt.s32.totalorder %v1775_v61, 16  ;;  %v1524_v44 = vshll.u32 %v1520_v5, 16  ;;  %v1403_v31 = vmul.u32 58254, %v1399_v20  ;;  %v1402_v30 = vmul.u32 14564, %v1399_v20 }
 0x186   : > { %v2414_v0 = vsel %vm1811_vm4, 1.0, %v2472_v53  ;;  %v1391_v60 = vshrl.u32 %v1390_v62, 4  ;;  %vm1526_vm6 = vc.u32 %v1518_v63, %v1522_v33  ;;  %v1528_v8 = vadd.s32 %v1522_v33, %v1518_v63 }
 0x187   : > { %v3393_v18 = vmul.f32 %v2414_v0, %v509_v55  ;;  %v1527_v24 = vsel %vm1526_vm6, 1, %v2471_v34  ;;  %v1404_v2 = vmul.u32 14564, %v1400_v11  ;;  %v1405_v9 = vmul.u32 58254, %v1400_v11 }
 0x188   : > { %v1392_v26 = vmul.u32 18, %v1391_v60  ;;  %v1529_v36 = vadd.s32 %v1527_v24, %v1521_v1  ;;  %vm1530_vm7 = vc.u32 %v1528_v8, %v1524_v44  ;;  %v1406_v43 = vshll.u32 %v1403_v31, 16 }
 0x189   : > { %v1955_v42 = vpack.c.bf16 %v3393_v18, %v3393_v18  ;;  %v1531_v54 = vsel %vm1530_vm7, 1, %v2471_v34  ;;  %v1525_v13 = vshrl.u32 %v1520_v5, 16  ;;  %v1408_v50 = vshll.u32 %v1404_v2, 16 }
 0x18a   : > { %v1393_v3 = vsub.s32 %v3319_v10, %v1392_v26  ;;  %v1533_v21 = vadd.s32 %v1531_v54, %v1529_v36  ;;  %vm1410_vm10 = vc.u32 %v1402_v30, %v1406_v43  ;;  %v499_v16 = vadd.f32 %v3376_v12, %v498_v14 }
 0x18b   : > { %1992 = vst.msk [vmem:[%s2708_s5 + $0x80] sm:$0xf] %vm1959_vm11, %v1955_v42  ;;  %v1411_v28 = vsel %vm1410_vm10, 1, %v2471_v34  ;;  %v1412_v58 = vadd.s32 %v1406_v43, %v1402_v30  ;;  %v3406_v35 = vadd.s32 272, %v2561_v25  ;;  %v1407_v37 = vshrl.u32 %v1403_v31, 16  ;;  %v500_v43 = vpop.f32.mrf.mxu2 }
 0x18c   : > { %vm1627_vm8 = vcmp.ne.s32.totalorder %v1393_v3, 0  ;;  %vm1663_vm9 = vcmp.lt.s32.totalorder %v1393_v3, 0  ;;  %v1735_v59 = vadd.s32 18, %v1393_v3  ;;  %v1534_v17 = vadd.s32 %v1533_v21, %v1523_v6 }
 0x18d   : > { %vm1699_vm12 = vmand %vm1663_vm9, %vm1627_vm8  ;;  %v1413_v23 = vadd.s32 %v1411_v28, %v1405_v9  ;;  %vm1414_vm14 = vc.u32 %v1412_v58, %v1408_v50  ;;  %v1544_v56 = vand.u32 65535, %v3406_v35  ;;  %v1545_v19 = vshrl.u32 %v3406_v35, 16 }
 0x18e   : > { %v1771_v10 = vsel %vm1699_vm12, %v1735_v59, %v1393_v3  ;;  %v1535_v41 = vadd.s32 %v1534_v17, %v1525_v13  ;;  %v1415_v55 = vsel %vm1414_vm14, 1, %v2471_v34  ;;  %v3415_v49 = vadd.s32 280, %v2561_v25 }
 0x18f   : > { %vm1807_vm13 = vcmp.lt.s32.totalorder %v1771_v10, 16  ;;  %v1417_v45 = vadd.s32 %v1415_v55, %v1413_v23  ;;  %v1409_v32 = vshrl.u32 %v1404_v2, 16  ;;  %v1547_v51 = vmul.u32 14564, %v1544_v56 }
 0x190   : > { %v2410_v38 = vsel %vm1807_vm13, 1.0, %v2472_v53  ;;  %v1536_v52 = vshrl.u32 %v1535_v41, 4  ;;  %v1548_v57 = vmul.u32 58254, %v1544_v56  ;;  %v1549_v46 = vmul.u32 14564, %v1545_v19 }
 0x191   : > { %v3412_v4 = vmul.f32 %v2410_v38, %v499_v16  ;;  %v511_v27 = vadd.f32 %v3376_v12, %v510_v47  ;;  %v2050_v61 = vsel %vm1996_vm5, %v3362_v40, 0.0  ;;  %v1418_v62 = vadd.s32 %v1417_v45, %v1407_v37 }
 0x192   : > { %v1537_v5 = vmul.u32 18, %v1536_v52  ;;  %v1550_v33 = vmul.u32 58254, %v1545_v19  ;;  %v1551_v0 = vshll.u32 %v1548_v57, 16  ;;  %v2103_v25 = vmul.f32 %v3362_v40, %v3362_v40 }
 0x193   : > { %v1951_v63 = vpack.c.bf16 %v3412_v4, %v3412_v4  ;;  %v1553_v44 = vshll.u32 %v1549_v46, 16  ;;  %v1573_v20 = vand.u32 65535, %v3415_v49  ;;  %v1419_v60 = vadd.s32 %v1418_v62, %v1409_v32 }
 0x194   : > { %v1538_v1 = vsub.s32 %v3367_v29, %v1537_v5  ;;  %v1552_v8 = vshrl.u32 %v1548_v57, 16  ;;  %vm1555_vm15 = vc.u32 %v1547_v51, %v1551_v0  ;;  %v1557_v24 = vadd.s32 %v1551_v0, %v1547_v51 }
 0x195   : > { %1988 = vst.msk [vmem:[%s2708_s5 + $0x70] sm:$0xf] %vm1959_vm11, %v1951_v63  ;;  %v1556_v31 = vsel %vm1555_vm15, 1, %v2471_v34  ;;  %v1420_v42 = vshrl.u32 %v1419_v60, 4  ;;  %v1574_v40 = vshrl.u32 %v3415_v49, 16  ;;  %v1576_v6 = vmul.u32 14564, %v1573_v20 }
 0x196   : > { %vm1632_vm0 = vcmp.ne.s32.totalorder %v1538_v1, 0  ;;  %vm1668_vm1 = vcmp.lt.s32.totalorder %v1538_v1, 0  ;;  %v1740_v11 = vadd.s32 18, %v1538_v1  ;;  %v1558_v26 = vadd.s32 %v1556_v31, %v1550_v33 }
 0x197   : > { %vm1704_vm2 = vmand %vm1668_vm1, %vm1632_vm0  ;;  %vm1559_vm3 = vc.u32 %v1557_v24, %v1553_v44  ;;  %v1577_v36 = vmul.u32 58254, %v1573_v20  ;;  %v1421_v2 = vmul.u32 18, %v1420_v42  ;;  %v1578_v54 = vmul.u32 14564, %v1574_v40 }
 0x198   : > { %v1776_v30 = vsel %vm1704_vm2, %v1740_v11, %v1538_v1  ;;  %v1560_v29 = vsel %vm1559_vm3, 1, %v2471_v34  ;;  %v1554_v13 = vshrl.u32 %v1549_v46, 16  ;;  %v1579_v21 = vmul.u32 58254, %v1574_v40 }
 0x199   : > { %vm1812_vm4 = vcmp.lt.s32.totalorder %v1776_v30, 16  ;;  %v1562_v3 = vadd.s32 %v1560_v29, %v1558_v26  ;;  %v1580_v50 = vshll.u32 %v1577_v36, 16  ;;  %v1422_v59 = vsub.s32 %v3387_v15, %v1421_v2 }
 0x19a   : > { %v2415_v9 = vsel %vm1812_vm4, 1.0, %v2472_v53  ;;  %v1582_v17 = vshll.u32 %v1578_v54, 16  ;;  %v2051_v28 = vadd.f32 %v2050_v61, %v3371_v22  ;;  %v2165_v10 = vsel %vm1996_vm5, %v2103_v25, 0.0 }
 0x19b   : > { %v3432_v14 = vmul.f32 %v2415_v9, %v511_v27  ;;  %v1563_v16 = vadd.s32 %v1562_v3, %v1552_v8  ;;  %vm1584_vm6 = vc.u32 %v1576_v6, %v1580_v50  ;;  %v1586_v58 = vadd.s32 %v1580_v50, %v1576_v6  ;;  %v513_v27 = vpop.f32.mrf.mxu3 }
 0x19c   : > { %v501_v41 = vadd.f32 %v3376_v12, %v500_v43  ;;  %vm1628_vm7 = vcmp.ne.s32.totalorder %v1422_v59, 0  ;;  %vm1664_vm8 = vcmp.lt.s32.totalorder %v1422_v59, 0  ;;  %v1736_v37 = vadd.s32 18, %v1422_v59 }
 0x19d   : > { %v1956_v23 = vpack.c.bf16 %v3432_v14, %v3432_v14  ;;  %v1564_v38 = vadd.s32 %v1563_v16, %v1554_v13  ;;  %v1585_v47 = vsel %vm1584_vm6, 1, %v2471_v34  ;;  %v2104_v15 = vmul.f32 %v3412_v4, %v3412_v4  ;;  %vm1700_vm9 = vmand %vm1664_vm8, %vm1628_vm7 }
 0x19e   : > { %v1581_v22 = vshrl.u32 %v1577_v36, 16  ;;  %v1587_v55 = vadd.s32 %v1585_v47, %v1579_v21  ;;  %vm1588_vm10 = vc.u32 %v1586_v58, %v1582_v17  ;;  %v2166_v56 = vadd.f32 %v2165_v10, %v3389_v7 }
 0x19f   : > { %1993 = vst.msk [vmem:[%s2708_s5 + $0x84] sm:$0xf] %vm1959_vm11, %v1956_v23  ;;  %v1772_v19 = vsel %vm1700_vm9, %v1736_v37, %v1422_v59  ;;  %v1565_v52 = vshrl.u32 %v1564_v38, 4  ;;  %v1589_v45 = vsel %vm1588_vm10, 1, %v2471_v34  ;;  %v2052_v32 = vsel %vm1996_vm5, %v3412_v4, 0.0 }
 0x1a0   : > { %vm1808_vm12 = vcmp.lt.s32.totalorder %v1772_v19, 16  ;;  %v1583_v51 = vshrl.u32 %v1578_v54, 16  ;;  %v1591_v57 = vadd.s32 %v1589_v45, %v1587_v55  ;;  %v2053_v46 = vadd.f32 %v2052_v32, %v2051_v28 }
 0x1a1   : > { %v2411_v63 = vsel %vm1808_vm12, 1.0, %v2472_v53  ;;  %v1566_v5 = vmul.u32 18, %v1565_v52  ;;  %v2167_v61 = vsel %vm1996_vm5, %v2104_v15, 0.0  ;;  %v2106_v33 = vmul.f32 %v3268_v48, %v3268_v48 }
 0x1a2   : > { %v1916_v62 = vmul.f32 %v2411_v63, %v501_v41  ;;  %v1592_v7 = vadd.s32 %v1591_v57, %v1581_v22  ;;  %v2107_v34 = vmul.f32 %v3331_v39, %v3331_v39  ;;  %v2168_v4 = vadd.f32 %v2167_v61, %v2166_v56 }
 0x1a3   : > { %v1567_v0 = vsub.s32 %v3406_v35, %v1566_v5  ;;  %v2056_v24 = vsel %vm1996_vm5, %v3268_v48, 0.0  ;;  %v514_v31 = vadd.f32 %v3376_v12, %v513_v27  ;;  %v2171_v42 = vsel %vm1996_vm5, %v2106_v33, 0.0  ;;  %v515_v59 = vpop.f32.mrf.mxu3 }
 0x1a4   : > { %v1952_v25 = vpack.c.bf16 %v1916_v62, %v1916_v62  ;;  %v2054_v1 = vsel %vm1996_vm5, %v1916_v62, 0.0  ;;  %v2105_v44 = vmul.f32 %v1916_v62, %v1916_v62  ;;  %v1593_v20 = vadd.s32 %v1592_v7, %v1583_v51 }
 0x1a5   : > { %v2055_v60 = vadd.f32 %v2054_v1, %v2053_v46  ;;  %vm1633_vm13 = vcmp.ne.s32.totalorder %v1567_v0, 0  ;;  %vm1669_vm14 = vcmp.lt.s32.totalorder %v1567_v0, 0  ;;  %v1741_v8 = vadd.s32 18, %v1567_v0 }
 0x1a6   : > { %1989 = vst.msk [vmem:[%s2708_s5 + $0x74] sm:$0xf] %vm1959_vm11, %v1952_v25  ;;  %v2169_v11 = vsel %vm1996_vm5, %v2105_v44, 0.0  ;;  %vm1705_vm15 = vmand %vm1669_vm14, %vm1633_vm13  ;;  %v1594_v35 = vshrl.u32 %v1593_v20, 4  ;;  %v2058_v29 = vsel %vm1996_vm5, %v3331_v39, 0.0  ;;  %v2108_v6 = vmul.f32 %v3393_v18, %v3393_v18 }
 0x1a7   : > { %v2057_v26 = vadd.f32 %v2056_v24, %v2055_v60  ;;  %v2170_v40 = vadd.f32 %v2169_v11, %v2168_v4  ;;  %v1777_v30 = vsel %vm1705_vm15, %v1741_v8, %v1567_v0  ;;  %v2173_v36 = vsel %vm1996_vm5, %v2107_v34, 0.0 }
 0x1a8   : > { %vm1813_vm0 = vcmp.lt.s32.totalorder %v1777_v30, 16  ;;  %v1595_v48 = vmul.u32 18, %v1594_v35  ;;  %v2060_v9 = vsel %vm1996_vm5, %v3393_v18, 0.0  ;;  %v2109_v43 = vmul.f32 %v3432_v14, %v3432_v14 }
 0x1a9   : > { %v2059_v2 = vadd.f32 %v2058_v29, %v2057_v26  ;;  %v2172_v3 = vadd.f32 %v2171_v42, %v2170_v40  ;;  %v2416_v54 = vsel %vm1813_vm0, 1.0, %v2472_v53  ;;  %v2175_v16 = vsel %vm1996_vm5, %v2108_v6, 0.0 }
 0x1aa   : > { %v1921_v13 = vmul.f32 %v2416_v54, %v514_v31  ;;  %v1596_v39 = vsub.s32 %v3415_v49, %v1595_v48  ;;  %v2062_v17 = vsel %vm1996_vm5, %v3432_v14, 0.0  ;;  %v2177_v23 = vsel %vm1996_vm5, %v2109_v43, 0.0 }
 0x1ab   : > { %v2174_v21 = vadd.f32 %v2173_v36, %v2172_v3  ;;  %v2061_v50 = vadd.f32 %v2060_v9, %v2059_v2  ;;  %v516_v49 = vadd.f32 %v3376_v12, %v515_v59  ;;  %vm2074_vm6 = vcmask 253952  }
 0x1ac   : > { %v1957_v28 = vpack.c.bf16 %v1921_v13, %v1921_v13  ;;  %vm1634_vm1 = vcmp.ne.s32.totalorder %v1596_v39, 0  ;;  %vm1670_vm2 = vcmp.lt.s32.totalorder %v1596_v39, 0  ;;  %v1742_v18 = vadd.s32 18, %v1596_v39 }
 0x1ad   : > { %v2063_v58 = vadd.f32 %v2062_v17, %v2061_v50  ;;  %v2176_v10 = vadd.f32 %v2175_v16, %v2174_v21  ;;  %v2110_v41 = vmul.f32 %v1921_v13, %v1921_v13  ;;  %vm1706_vm3 = vmand %vm1670_vm2, %vm1634_vm1  ;;  %v2064_v47 = vsel %vm1996_vm5, %v1921_v13, 0.0 }
 0x1ae   : > { %1994 = vst.msk [vmem:[%s2708_s5 + $0x88] sm:$0xf] %vm1959_vm11, %v1957_v28  ;;  %v1778_v38 = vsel %vm1706_vm3, %v1742_v18, %v1596_v39 }
 0x1af   : > { %v2178_v37 = vadd.f32 %v2177_v23, %v2176_v10  ;;  %vm1814_vm4 = vcmp.lt.s32.totalorder %v1778_v38, 16  ;;  %v2065_v14 = vadd.f32 %v2064_v47, %v2063_v58  ;;  %v2179_v22 = vsel %vm1996_vm5, %v2110_v41, 0.0 }
 0x1b0   : > { %v2417_v15 = vsel %vm1814_vm4, 1.0, %v2472_v53 }
 0x1b1   : > { %v1922_v55 = vmul.f32 %v2417_v15, %v516_v49  ;;  %v2180_v56 = vadd.f32 %v2179_v22, %v2178_v37 }
 0x1b3   : > { %v1958_v19 = vpack.c.bf16 %v1922_v55, %v1922_v55  ;;  %v2066_v52 = vsel %vm1996_vm5, %v1922_v55, 0.0  ;;  %v2111_v45 = vmul.f32 %v1922_v55, %v1922_v55 }
 0x1b4   : > { %v2067_v32 = vadd.f32 %v2066_v52, %v2065_v14 }
 0x1b5   : > { %1995 = vst.msk [vmem:[%s2708_s5 + $0x8c] sm:$0xf] %vm1959_vm11, %v1958_v19  ;;  %v2181_v12 = vsel %vm1996_vm5, %v2111_v45, 0.0 }
 0x1b6   : > { %v2068_v51 = vrot.slane %v2067_v32, 4  ;;  %v2182_v57 = vadd.f32 %v2181_v12, %v2180_v56 }
 0x1b8   : > { %v2069_v46 = vadd.f32 %v2068_v51, %v2067_v32  ;;  %v2183_v63 = vrot.slane %v2182_v57, 4 }
 0x1ba   : > { %v2070_v27 = vrot.slane %v2069_v46, 2  ;;  %v2184_v53 = vadd.f32 %v2183_v63, %v2182_v57 }
 0x1bc   : > { %v2071_v5 = vadd.f32 %v2070_v27, %v2069_v46  ;;  %v2185_v61 = vrot.slane %v2184_v53, 2 }
 0x1be   : > { %v2072_v62 = vrot.slane %v2071_v5, 1  ;;  %v2186_v7 = vadd.f32 %v2185_v61, %v2184_v53 }
 0x1c0   : > { %v2073_v33 = vadd.f32 %v2072_v62, %v2071_v5  ;;  %v2187_v34 = vrot.slane %v2186_v7, 1 }
 0x1c2   : > { %2075 = vst.msk [vmem:[%s208_s13] sm:$0x1] %vm2074_vm6, %v2073_v33  ;;  %v2188_v4 = vadd.f32 %v2187_v34, %v2186_v7 }
 0x1c4   : > { %2189 = vst.msk [vmem:[%s208_s13 + $0x1] sm:$0x1] %vm2074_vm6, %v2188_v4 }
 0x1c5 PF: > { %s15_s15 = sadd.s32 1, %s2469_s15  }
 0x1c6   : > { %p12_p4 = scmp.ge.s32.totalorder %s15_s15, 4  }
 0x1c8   :  { %14 = sbr.rel (!%p12_p4) target bundleno = 1 (0x1), region = 74 }

// kernel: realnvp_conv_base_net.4
= control target key start
LH: loop header
LB: loop body
LE: loop exit
PB: predicated region body
PF: predicated region fallthrough
CT: control target
= control target key end

     0   :  { %s2595_s18 = smov 0   ;;  %s3690_s0 = inlined_call_operand.vmem [shape: bf16[2,288,32], index: 0, kind: input, shape index: {}, may-alias: {0,4}]   ;;  %s3691_s1 = inlined_call_operand.vmem [shape: bf16[32,32], index: 1, kind: input, shape index: {}]   ;;  %s3692_s2 = inlined_call_operand.vmem [shape: f32[1,32], index: 2, kind: input, shape index: {}]   ;;  %s3693_s3 = inlined_call_operand.vmem [shape: f32[2,32], index: 3, kind: input, shape index: {}]   ;;  %s3694_s4 = inlined_call_operand.vmem [shape: bf16[2,288,32], index: 4, kind: output, shape index: {0}, may-alias: {0,4}]   ;;  %s3695_s5 = inlined_call_operand.vmem [shape: f32[2,2,32], index: 5, kind: output, shape index: {1}]  }
   0x1 LB: > { %s2370_s19 = sadd.s32 4294967295, %s2561_s18   ;;  %p2374_p0 = scmp.ge.s32.totalorder %s2561_s18, 1  ;;  %s2561_s18 = sphi %s2595_s18, %s16_s18  }
   0x2   : > { %p190_p1 = scmp.lt.s32.totalorder %s2561_s18, 3 }
   0x4   : > { %p191_p2 = pnand %p2374_p0, %p190_p1 }
   0x5   : > { %p222_p3 = scmp.lt.s32.totalorder (!%p191_p2), %s2370_s19, 1 }
   0x6   : > { %194 = sbr.rel (%p191_p2) target bundleno = 453 (0x1c5), region = 36 }
   0xb   : > { %v2443_v0 = vld [vmem:[%s3691_s1 + $0x8] sm:$0xff]  ;;  %v2442_v1 = vld [vmem:[%s3691_s1] sm:$0xff]  ;;  %s3719_s19 = smov (!%p222_p3, %s2370_s19), 1  ;;  %vm459_vm0 = vcmask 261120  }
   0xc   : > { %520 = vmatpush.bf16.msra.mxu0 %v2443_v0  ;;  %2533 = vmatpush.bf16.msra.mxu1 %v2443_v0  ;;  %s2539_s24 = smul.u32 144, %s3719_s19  ;;  %v2622_v2 = vld [vmem:[%s3693_s3] ss:$0 sm:$0xff]  ;;  %v2629_v7 = vld [vmem:[%s3693_s3 + $0x1] ss:$0 sm:$0xff]  ;;  %s2377_s16 = sshll.u32 %s3719_s19, 1 }
   0xd   : > { %2534 = vmatpush.bf16.msra.mxu2 %v2443_v0  ;;  %2535 = vmatpush.bf16.msra.mxu3 %v2443_v0  ;;  %s235_s21 = scalar_lea.vmem %s3695_s5, %s2377_s16 }
   0xe   : > { %s2617_s27 = scalar_lea.vmem %s3690_s0, %s2539_s24  ;;  %s2891_s11 = scalar_lea.vmem %s3694_s4, %s2539_s24 }
   0xf   : > { %v2445_v3 = vld [vmem:[%s2617_s27] sm:$0xff]   ;;  %v2520_v4 = vld [vmem:[%s2617_s27 + $0x28] sm:$0xff]   ;;  %v2525_v10 = vld [vmem:[%s2617_s27 + $0x50] sm:$0xff]  }
  0x10   : > { %521 = vmatpush.bf16.msra.mxu0 %v2442_v1  ;;  %2536 = vmatpush.bf16.msra.mxu1 %v2442_v1  ;;  %v2446_v5 = vunpack.c.l.bf16 %v2445_v3  ;;  %v2447_v6 = vunpack.c.h.bf16 %v2445_v3  ;;  %v2466_v8 = vunpack.c.l.bf16 %v2520_v4  ;;  %v2467_v9 = vunpack.c.h.bf16 %v2520_v4  ;;  %v2516_v17 = vld [vmem:[%s2617_s27 + $0x8] sm:$0xff]   ;;  %v2521_v28 = vld [vmem:[%s2617_s27 + $0x30] sm:$0xff]   ;;  %v2526_v42 = vld [vmem:[%s2617_s27 + $0x58] sm:$0xff]  }
  0x11   : > { %2537 = vmatpush.bf16.msra.mxu2 %v2442_v1  ;;  %2538 = vmatpush.bf16.msra.mxu3 %v2442_v1  ;;  %v2486_v11 = vunpack.c.l.bf16 %v2525_v10  ;;  %v2487_v12 = vunpack.c.h.bf16 %v2525_v10  ;;  %v2450_v24 = vunpack.c.l.bf16 %v2516_v17  ;;  %v2451_v25 = vunpack.c.h.bf16 %v2516_v17  ;;  %v2517_v59 = vld [vmem:[%s2617_s27 + $0x10] sm:$0xff]   ;;  %v2522_v62 = vld [vmem:[%s2617_s27 + $0x38] sm:$0xff]   ;;  %v2527_v10 = vld [vmem:[%s2617_s27 + $0x60] sm:$0xff]  }
  0x12   : > { %v311_v13 = vsub.f32 %v2446_v5, %v2622_v2  ;;  %v312_v14 = vsub.f32 %v2447_v6, %v2622_v2  ;;  %v321_v15 = vsub.f32 %v2466_v8, %v2622_v2  ;;  %v322_v16 = vsub.f32 %v2467_v9, %v2622_v2 }
  0x13   : > { %v331_v18 = vsub.f32 %v2486_v11, %v2622_v2  ;;  %v332_v19 = vsub.f32 %v2487_v12, %v2622_v2  ;;  %v2470_v37 = vunpack.c.l.bf16 %v2521_v28  ;;  %v2471_v38 = vunpack.c.h.bf16 %v2521_v28 }
  0x14   : > { %v349_v20 = vmul.f32 %v2629_v7, %v311_v13  ;;  %v350_v21 = vmul.f32 %v2629_v7, %v312_v14  ;;  %v359_v22 = vmul.f32 %v2629_v7, %v321_v15  ;;  %v360_v23 = vmul.f32 %v2629_v7, %v322_v16  ;;  %v2519_v15 = vld [vmem:[%s2617_s27 + $0x20] sm:$0xff]  }
  0x15   : > { %v369_v26 = vmul.f32 %v2629_v7, %v331_v18  ;;  %v370_v27 = vmul.f32 %v2629_v7, %v332_v19  ;;  %v313_v39 = vsub.f32 %v2450_v24, %v2622_v2  ;;  %v314_v40 = vsub.f32 %v2451_v25, %v2622_v2 }
  0x16   : > { %v385_v29 = vmax.f32 %v349_v20, 0.0  ;;  %v386_v30 = vmax.f32 %v350_v21, 0.0  ;;  %v395_v31 = vmax.f32 %v359_v22, 0.0  ;;  %v396_v32 = vmax.f32 %v360_v23, 0.0 }
  0x17   : > { %v405_v33 = vmax.f32 %v369_v26, 0.0  ;;  %v406_v34 = vmax.f32 %v370_v27, 0.0  ;;  %v323_v43 = vsub.f32 %v2470_v37, %v2622_v2  ;;  %v324_v44 = vsub.f32 %v2471_v38, %v2622_v2  ;;  %v2518_v26 = vld [vmem:[%s2617_s27 + $0x18] sm:$0xff]  }
  0x18   : > { %v421_v35 = vpack.c.bf16 %v386_v30, %v385_v29  ;;  %v426_v36 = vpack.c.bf16 %v396_v32, %v395_v31  ;;  %v2490_v45 = vunpack.c.l.bf16 %v2526_v42  ;;  %v2491_v46 = vunpack.c.h.bf16 %v2526_v42 }
  0x19   : > { %v431_v41 = vpack.c.bf16 %v406_v34, %v405_v33  ;;  %v351_v49 = vmul.f32 %v2629_v7, %v313_v39  ;;  %v352_v50 = vmul.f32 %v2629_v7, %v314_v40  ;;  %v361_v51 = vmul.f32 %v2629_v7, %v323_v43  ;;  %v2523_v39 = vld [vmem:[%s2617_s27 + $0x40] sm:$0xff]  }
  0x1a   : > { %2386 = vmatmul.msk.bf16.vlgmr.msra.gmra.mxu0 %vm459_vm0, %v421_v35  ;;  %2391 = vmatmul.msk.bf16.vlgmr.msra.gmra.mxu1 %vm459_vm0, %v426_v36  ;;  %v333_v47 = vsub.f32 %v2490_v45, %v2622_v2  ;;  %v334_v48 = vsub.f32 %v2491_v46, %v2622_v2  ;;  %v362_v52 = vmul.f32 %v2629_v7, %v324_v44  ;;  %v2454_v63 = vunpack.c.l.bf16 %v2517_v59 }
  0x1b   : > { %2396 = vmatmul.msk.bf16.vlgmr.msra.gmra.mxu2 %vm459_vm0, %v431_v41  ;;  %v387_v55 = vmax.f32 %v351_v49, 0.0  ;;  %v388_v56 = vmax.f32 %v352_v50, 0.0  ;;  %v397_v57 = vmax.f32 %v361_v51, 0.0  ;;  %v2455_v0 = vunpack.c.h.bf16 %v2517_v59  ;;  %v2528_v59 = vld [vmem:[%s2617_s27 + $0x68] sm:$0xff]  }
  0x1c   : > { %v371_v53 = vmul.f32 %v2629_v7, %v333_v47  ;;  %v372_v54 = vmul.f32 %v2629_v7, %v334_v48  ;;  %v398_v58 = vmax.f32 %v362_v52, 0.0  ;;  %v2474_v4 = vunpack.c.l.bf16 %v2522_v62  ;;  %v2530_v47 = vld [vmem:[%s2617_s27 + $0x78] sm:$0xff]  }
  0x1d   : > { %v422_v1 = vpack.c.bf16 %v388_v56, %v387_v55  ;;  %v2475_v5 = vunpack.c.h.bf16 %v2522_v62  ;;  %v315_v8 = vsub.f32 %v2454_v63, %v2622_v2  ;;  %v316_v9 = vsub.f32 %v2455_v0, %v2622_v2  ;;  %v2524_v0 = vld [vmem:[%s2617_s27 + $0x48] sm:$0xff]  }
  0x1e   : > { %v407_v60 = vmax.f32 %v371_v53, 0.0  ;;  %v408_v61 = vmax.f32 %v372_v54, 0.0  ;;  %v427_v3 = vpack.c.bf16 %v398_v58, %v397_v57  ;;  %v325_v11 = vsub.f32 %v2474_v4, %v2622_v2 }
  0x1f   : > { %v326_v12 = vsub.f32 %v2475_v5, %v2622_v2  ;;  %v2494_v13 = vunpack.c.l.bf16 %v2527_v10  ;;  %v2495_v14 = vunpack.c.h.bf16 %v2527_v10  ;;  %v2462_v16 = vunpack.c.l.bf16 %v2519_v15 }
  0x20   : > { %v432_v6 = vpack.c.bf16 %v408_v61, %v407_v60  ;;  %v2463_v17 = vunpack.c.h.bf16 %v2519_v15  ;;  %v353_v22 = vmul.f32 %v2629_v7, %v315_v8  ;;  %v354_v23 = vmul.f32 %v2629_v7, %v316_v9  ;;  %v2529_v8 = vld [vmem:[%s2617_s27 + $0x70] sm:$0xff]  }
  0x21   : > { %v335_v18 = vsub.f32 %v2494_v13, %v2622_v2  ;;  %v336_v19 = vsub.f32 %v2495_v14, %v2622_v2  ;;  %v319_v20 = vsub.f32 %v2462_v16, %v2622_v2  ;;  %v363_v24 = vmul.f32 %v2629_v7, %v325_v11 }
  0x22   : > { %v320_v21 = vsub.f32 %v2463_v17, %v2622_v2  ;;  %v364_v25 = vmul.f32 %v2629_v7, %v326_v12  ;;  %v2458_v31 = vunpack.c.l.bf16 %v2518_v26  ;;  %v2459_v32 = vunpack.c.h.bf16 %v2518_v26 }
  0x23   : > { %v373_v27 = vmul.f32 %v2629_v7, %v335_v18  ;;  %v374_v28 = vmul.f32 %v2629_v7, %v336_v19  ;;  %v357_v29 = vmul.f32 %v2629_v7, %v319_v20  ;;  %v389_v35 = vmax.f32 %v353_v22, 0.0 }
  0x24   : > { %v358_v30 = vmul.f32 %v2629_v7, %v320_v21  ;;  %v390_v36 = vmax.f32 %v354_v23, 0.0  ;;  %v399_v37 = vmax.f32 %v363_v24, 0.0  ;;  %v400_v38 = vmax.f32 %v364_v25, 0.0  ;;  %v2532_v25 = vld [vmem:[%s2617_s27 + $0x88] sm:$0xff]  }
  0x25   : > { %v393_v33 = vmax.f32 %v357_v29, 0.0  ;;  %v409_v40 = vmax.f32 %v373_v27, 0.0  ;;  %v410_v41 = vmax.f32 %v374_v28, 0.0  ;;  %v317_v43 = vsub.f32 %v2458_v31, %v2622_v2 }
  0x26   : > { %v394_v34 = vmax.f32 %v358_v30, 0.0  ;;  %v318_v44 = vsub.f32 %v2459_v32, %v2622_v2  ;;  %v2478_v45 = vunpack.c.l.bf16 %v2523_v39  ;;  %v2479_v46 = vunpack.c.h.bf16 %v2523_v39 }
  0x27   : > { %v423_v48 = vpack.c.bf16 %v390_v36, %v389_v35  ;;  %v428_v49 = vpack.c.bf16 %v400_v38, %v399_v37  ;;  %v2506_v50 = vunpack.c.l.bf16 %v2530_v47  ;;  %v2507_v51 = vunpack.c.h.bf16 %v2530_v47 }
  0x28   : > { %v2687_v42 = vpack.c.bf16 %v394_v34, %v393_v33  ;;  %v433_v52 = vpack.c.bf16 %v410_v41, %v409_v40  ;;  %v355_v55 = vmul.f32 %v2629_v7, %v317_v43  ;;  %v356_v56 = vmul.f32 %v2629_v7, %v318_v44 }
  0x29   : > { %v341_v53 = vsub.f32 %v2506_v50, %v2622_v2  ;;  %v342_v54 = vsub.f32 %v2507_v51, %v2622_v2  ;;  %v327_v57 = vsub.f32 %v2478_v45, %v2622_v2  ;;  %v328_v58 = vsub.f32 %v2479_v46, %v2622_v2 }
  0x2a   : > { %2387 = vmatmul.msk.bf16.gmra.mxu0 %vm459_vm0, %v422_v1  ;;  %2392 = vmatmul.msk.bf16.gmra.mxu1 %vm459_vm0, %v427_v3  ;;  %v2498_v62 = vunpack.c.l.bf16 %v2528_v59  ;;  %v2499_v63 = vunpack.c.h.bf16 %v2528_v59  ;;  %v2531_v1 = vld [vmem:[%s2617_s27 + $0x80] sm:$0xff]   ;;  %v2482_v3 = vunpack.c.l.bf16 %v2524_v0  ;;  %v2483_v4 = vunpack.c.h.bf16 %v2524_v0 }
  0x2b   : > { %2397 = vmatmul.msk.bf16.gmra.mxu2 %vm459_vm0, %v432_v6  ;;  %v379_v60 = vmul.f32 %v2629_v7, %v341_v53  ;;  %v380_v61 = vmul.f32 %v2629_v7, %v342_v54  ;;  %v2510_v5 = vunpack.c.l.bf16 %v2531_v1  ;;  %v2511_v6 = vunpack.c.h.bf16 %v2531_v1 }
  0x2c   : > { %v337_v11 = vsub.f32 %v2498_v62, %v2622_v2  ;;  %v338_v12 = vsub.f32 %v2499_v63, %v2622_v2  ;;  %v365_v13 = vmul.f32 %v2629_v7, %v327_v57  ;;  %v366_v14 = vmul.f32 %v2629_v7, %v328_v58 }
  0x2d   : > { %v415_v9 = vmax.f32 %v379_v60, 0.0  ;;  %v416_v10 = vmax.f32 %v380_v61, 0.0  ;;  %v329_v15 = vsub.f32 %v2482_v3, %v2622_v2  ;;  %v330_v16 = vsub.f32 %v2483_v4, %v2622_v2 }
  0x2e   : > { %v391_v17 = vmax.f32 %v355_v55, 0.0  ;;  %v343_v19 = vsub.f32 %v2510_v5, %v2622_v2  ;;  %v2502_v20 = vunpack.c.l.bf16 %v2529_v8  ;;  %v375_v21 = vmul.f32 %v2629_v7, %v337_v11 }
  0x2f   : > { %v436_v18 = vpack.c.bf16 %v416_v10, %v415_v9  ;;  %v376_v22 = vmul.f32 %v2629_v7, %v338_v12  ;;  %v367_v23 = vmul.f32 %v2629_v7, %v329_v15  ;;  %v368_v24 = vmul.f32 %v2629_v7, %v330_v16 }
  0x30   : > { %v392_v26 = vmax.f32 %v356_v56, 0.0  ;;  %v344_v27 = vsub.f32 %v2511_v6, %v2622_v2  ;;  %v2503_v28 = vunpack.c.h.bf16 %v2529_v8  ;;  %v339_v29 = vsub.f32 %v2502_v20, %v2622_v2 }
  0x31   : > { %2401 = vmatmul.msk.bf16.vlgmr.msra.gmra.mxu3 %vm459_vm0, %v436_v18  ;;  %v401_v30 = vmax.f32 %v365_v13, 0.0  ;;  %v402_v31 = vmax.f32 %v366_v14, 0.0  ;;  %v403_v32 = vmax.f32 %v367_v23, 0.0  ;;  %v404_v33 = vmax.f32 %v368_v24, 0.0 }
  0x32   : > { %v381_v34 = vmul.f32 %v2629_v7, %v343_v19  ;;  %v340_v35 = vsub.f32 %v2503_v28, %v2622_v2  ;;  %v377_v36 = vmul.f32 %v2629_v7, %v339_v29  ;;  %v2514_v37 = vunpack.c.l.bf16 %v2532_v25 }
  0x33   : > { %v411_v38 = vmax.f32 %v375_v21, 0.0  ;;  %v412_v39 = vmax.f32 %v376_v22, 0.0  ;;  %v430_v40 = vpack.c.bf16 %v404_v33, %v403_v32  ;;  %v2515_v41 = vunpack.c.h.bf16 %v2532_v25 }
  0x34   : > { %v382_v43 = vmul.f32 %v2629_v7, %v344_v27  ;;  %v378_v44 = vmul.f32 %v2629_v7, %v340_v35  ;;  %v413_v45 = vmax.f32 %v377_v36, 0.0  ;;  %v345_v46 = vsub.f32 %v2514_v37, %v2622_v2 }
  0x35   : > { %v346_v47 = vsub.f32 %v2515_v41, %v2622_v2  ;;  %v417_v54 = vmax.f32 %v381_v34, 0.0 }
  0x36   : > { %v414_v50 = vmax.f32 %v378_v44, 0.0  ;;  %v383_v51 = vmul.f32 %v2629_v7, %v345_v46  ;;  %v418_v55 = vmax.f32 %v382_v43, 0.0 }
  0x37   : > { %v384_v53 = vmul.f32 %v2629_v7, %v346_v47  ;;  %v613_v7 = vlaneseq }
  0x38   : > { %v435_v56 = vpack.c.bf16 %v414_v50, %v413_v45  ;;  %v419_v57 = vmax.f32 %v383_v51, 0.0  ;;  %v437_v59 = vpack.c.bf16 %v418_v55, %v417_v54 }
  0x39   : > { %v420_v58 = vmax.f32 %v384_v53, 0.0  ;;  %v2739_v60 = vshrl.u32 %v613_v7, 7 }
  0x3a   : > { %2388 = vmatmul.msk.bf16.gmra.mxu0 %vm459_vm0, %v423_v48  ;;  %2393 = vmatmul.msk.bf16.gmra.mxu1 %vm459_vm0, %v428_v49  ;;  %v424_v48 = vpack.c.bf16 %v392_v26, %v391_v17  ;;  %v429_v49 = vpack.c.bf16 %v402_v31, %v401_v30 }
  0x3b   : > { %2398 = vmatmul.msk.bf16.gmra.mxu2 %vm459_vm0, %v433_v52  ;;  %v434_v52 = vpack.c.bf16 %v412_v39, %v411_v38  ;;  %v438_v2 = vpack.c.bf16 %v420_v58, %v419_v57  ;;  %v653_v61 = vand.u32 65535, %v2739_v60  ;;  %v654_v62 = vshrl.u32 %v2739_v60, 16 }
  0x3c   : > { %v2746_v9 = vadd.s32 8, %v2739_v60  ;;  %v2752_v24 = vadd.s32 16, %v2739_v60  ;;  %v2758_v33 = vadd.s32 80, %v2739_v60  ;;  %v2767_v50 = vadd.s32 88, %v2739_v60 }
  0x3d   : > { %v657_v63 = vmul.u32 58254, %v653_v61  ;;  %v656_v0 = vmul.u32 14564, %v653_v61  ;;  %v658_v1 = vmul.u32 14564, %v654_v62  ;;  %v659_v4 = vmul.u32 58254, %v654_v62 }
  0x3e   : > { %v682_v11 = vand.u32 65535, %v2746_v9  ;;  %v683_v14 = vshrl.u32 %v2746_v9, 16  ;;  %v711_v28 = vand.u32 65535, %v2752_v24  ;;  %v712_v34 = vshrl.u32 %v2752_v24, 16 }
  0x3f   : > { %v660_v3 = vshll.u32 %v657_v63, 16  ;;  %v662_v5 = vshll.u32 %v658_v1, 16  ;;  %v661_v12 = vshrl.u32 %v657_v63, 16  ;;  %v663_v17 = vshrl.u32 %v658_v1, 16 }
  0x40   : > { %v686_v16 = vmul.u32 58254, %v682_v11  ;;  %v685_v18 = vmul.u32 14564, %v682_v11  ;;  %v687_v19 = vmul.u32 14564, %v683_v14  ;;  %v688_v22 = vmul.u32 58254, %v683_v14 }
  0x41   : > { %2402 = vmatmul.msk.bf16.gmra.mxu3 %vm459_vm0, %v437_v59  ;;  %vm664_vm1 = vc.u32 %v656_v0, %v660_v3  ;;  %v666_v8 = vadd.s32 %v660_v3, %v656_v0  ;;  %v715_v37 = vmul.u32 58254, %v711_v28  ;;  %v943_v39 = vand.u32 65535, %v2758_v33 }
  0x42   : > { %v689_v21 = vshll.u32 %v686_v16, 16  ;;  %v691_v23 = vshll.u32 %v687_v19, 16  ;;  %v690_v31 = vshrl.u32 %v686_v16, 16  ;;  %v692_v38 = vshrl.u32 %v687_v19, 16 }
  0x43   : > { %vm668_vm2 = vc.u32 %v666_v8, %v662_v5  ;;  %v716_v44 = vmul.u32 14564, %v712_v34  ;;  %v718_v45 = vshll.u32 %v715_v37, 16  ;;  %v944_v46 = vshrl.u32 %v2758_v33, 16 }
  0x44   : > { %vm693_vm3 = vc.u32 %v685_v18, %v689_v21  ;;  %v695_v26 = vadd.s32 %v689_v21, %v685_v18  ;;  %v947_v47 = vmul.u32 58254, %v943_v39  ;;  %v946_v51 = vmul.u32 14564, %v943_v39 }
  0x45   : > { %v720_v55 = vshll.u32 %v716_v44, 16  ;;  %v972_v1 = vand.u32 65535, %v2767_v50  ;;  %v973_v8 = vshrl.u32 %v2767_v50, 16 }
  0x46   : > { %vm697_vm4 = vc.u32 %v695_v26, %v691_v23  ;;  %v950_v53 = vshll.u32 %v947_v47, 16  ;;  %v951_v5 = vshrl.u32 %v947_v47, 16 }
  0x47   : > { %v977_v19 = vmul.u32 14564, %v973_v8 }
  0x48   : > { %vm954_vm8 = vc.u32 %v946_v51, %v950_v53  ;;  %v956_v61 = vadd.s32 %v950_v53, %v946_v51 }
  0x4a   : > { %2389 = vmatmul.msk.bf16.gmra.mxu0 %vm459_vm0, %v424_v48  ;;  %2394 = vmatmul.msk.bf16.gmra.mxu1 %vm459_vm0, %v429_v49  ;;  %v717_v49 = vmul.u32 58254, %v712_v34 }
  0x4b   : > { %2399 = vmatmul.msk.bf16.gmra.mxu2 %vm459_vm0, %v434_v52  ;;  %v948_v52 = vmul.u32 14564, %v944_v46 }
  0x4d   : > { %v952_v57 = vshll.u32 %v948_v52, 16 }
  0x4f   : > { %vm958_vm10 = vc.u32 %v956_v61, %v952_v57 }
  0x51   : > { %2403 = vmatmul.msk.bf16.gmra.mxu3 %vm459_vm0, %v438_v2 }
  0x5a   : > { %2390 = vmatmul.msk.bf16.gmra.mxu0 %vm459_vm0, %v2687_v42  ;;  %2395 = vmatmul.msk.bf16.gmra.mxu1 %vm459_vm0, %v430_v40  ;;  %v2563_v42 = vmov 0   ;;  %v714_v40 = vmul.u32 14564, %v711_v28  ;;  %v2791_v28 = vadd.s32 24, %v2739_v60 }
  0x5b   : > { %2400 = vmatmul.msk.bf16.gmra.mxu2 %vm459_vm0, %v435_v56  ;;  %v665_v6 = vsel %vm664_vm1, 1, %v2563_v42  ;;  %v669_v13 = vsel %vm668_vm2, 1, %v2563_v42  ;;  %v694_v27 = vsel %vm693_vm3, 1, %v2563_v42  ;;  %v698_v32 = vsel %vm697_vm4, 1, %v2563_v42 }
  0x5c   : > { %v667_v10 = vadd.s32 %v665_v6, %v659_v4  ;;  %v696_v30 = vadd.s32 %v694_v27, %v688_v22  ;;  %vm722_vm5 = vc.u32 %v714_v40, %v718_v45  ;;  %v949_v56 = vmul.u32 58254, %v944_v46 }
  0x5d   : > { %v723_v58 = vsel %vm722_vm5, 1, %v2563_v42  ;;  %v955_v7 = vsel %vm954_vm8, 1, %v2563_v42  ;;  %v724_v0 = vadd.s32 %v718_v45, %v714_v40  ;;  %v959_v6 = vsel %vm958_vm10, 1, %v2563_v42 }
  0x5e   : > { %v671_v15 = vadd.s32 %v669_v13, %v667_v10  ;;  %v700_v36 = vadd.s32 %v698_v32, %v696_v30  ;;  %v957_v63 = vadd.s32 %v955_v7, %v949_v56  ;;  %v725_v4 = vadd.s32 %v723_v58, %v717_v49 }
  0x5f   : > { %vm726_vm11 = vc.u32 %v724_v0, %v720_v55  ;;  %v953_v13 = vshrl.u32 %v948_v52, 16  ;;  %v2798_v40 = vadd.s32 96, %v2739_v60  ;;  %v2564_v7 = vmov 0.0  }
  0x60   : > { %v672_v20 = vadd.s32 %v671_v15, %v661_v12  ;;  %v701_v43 = vadd.s32 %v700_v36, %v690_v31  ;;  %v961_v11 = vadd.s32 %v959_v6, %v957_v63  ;;  %v719_v12 = vshrl.u32 %v715_v37, 16 }
  0x61   : > { %v727_v14 = vsel %vm726_vm11, 1, %v2563_v42  ;;  %v975_v15 = vmul.u32 14564, %v972_v1  ;;  %v982_v31 = vshrl.u32 %v977_v19, 16  ;;  %v741_v36 = vshrl.u32 %v2791_v28, 16 }
  0x62   : > { %v673_v25 = vadd.s32 %v672_v20, %v663_v17  ;;  %v702_v48 = vadd.s32 %v701_v43, %v692_v38  ;;  %v962_v16 = vadd.s32 %v961_v11, %v951_v5  ;;  %v721_v17 = vshrl.u32 %v716_v44, 16 }
  0x63   : > { %v729_v18 = vadd.s32 %v727_v14, %v725_v4  ;;  %v978_v20 = vmul.u32 58254, %v973_v8  ;;  %v745_v45 = vmul.u32 14564, %v741_v36  ;;  %v746_v53 = vmul.u32 58254, %v741_v36 }
  0x64   : > { %v674_v29 = vshrl.u32 %v673_v25, 4  ;;  %v703_v54 = vshrl.u32 %v702_v48, 4  ;;  %v963_v22 = vadd.s32 %v962_v16, %v953_v13  ;;  %v981_v25 = vshll.u32 %v977_v19, 16 }
  0x65   : > { %v730_v23 = vadd.s32 %v729_v18, %v719_v12  ;;  %v749_v55 = vshll.u32 %v745_v45, 16  ;;  %v750_v12 = vshrl.u32 %v745_v45, 16 }
  0x66   : > { %v675_v35 = vmul.u32 18, %v674_v29  ;;  %v704_v59 = vmul.u32 18, %v703_v54  ;;  %v964_v29 = vshrl.u32 %v963_v22, 4  ;;  %v2853_v22 = vld [vmem:[%s3692_s2] ss:$0 sm:$0xff] }
  0x67   : > { %v731_v30 = vadd.s32 %v730_v23, %v721_v17  ;;  %v2838_v17 = vadd.s32 32, %v2739_v60 }
  0x68   : > { %v2763_v41 = vsub.s32 %v2739_v60, %v675_v35  ;;  %v2780_v3 = vsub.s32 %v2746_v9, %v704_v59  ;;  %v976_v9 = vmul.u32 58254, %v972_v1  ;;  %v740_v35 = vand.u32 65535, %v2791_v28 }
  0x69   : > { %v965_v37 = vmul.u32 18, %v964_v29  ;;  %v732_v38 = vshrl.u32 %v731_v30, 4  ;;  %v1001_v59 = vand.u32 65535, %v2798_v40  ;;  %v769_v29 = vand.u32 65535, %v2838_v17 }
  0x6a   : > { %vm1694_vm6 = vcmp.ne.s32.totalorder %v2763_v41, 0  ;;  %vm1730_vm7 = vcmp.lt.s32.totalorder %v2763_v41, 0  ;;  %v1802_v2 = vadd.s32 18, %v2763_v41  ;;  %vm1695_vm12 = vcmp.ne.s32.totalorder %v2780_v3, 0 }
  0x6b   : > { %vm2774_vm9 = vmand %vm1730_vm7, %vm1694_vm6  ;;  %v979_v21 = vshll.u32 %v976_v9, 16  ;;  %vm1731_vm13 = vcmp.lt.s32.totalorder %v2780_v3, 0  ;;  %v980_v26 = vshrl.u32 %v976_v9, 16  ;;  %v743_v43 = vmul.u32 14564, %v740_v35 }
  0x6c   : > { %v1838_v10 = vsel %vm2774_vm9, %v1802_v2, %v2763_v41  ;;  %v744_v44 = vmul.u32 58254, %v740_v35  ;;  %v1803_v47 = vadd.s32 18, %v2780_v3  ;;  %v966_v48 = vsub.s32 %v2758_v33, %v965_v37  ;;  %vm2810_vm2 = vmand %vm1731_vm13, %vm1695_vm12 }
  0x6d   : > { %vm983_vm14 = vc.u32 %v975_v15, %v979_v21  ;;  %v985_v27 = vadd.s32 %v979_v21, %v975_v15  ;;  %vm2800_vm1 = vcmp.lt.s32.totalorder %v1838_v10, 16  ;;  %v733_v49 = vmul.u32 18, %v732_v38 }
  0x6e   : > { %v984_v32 = vsel %vm983_vm14, 1, %v2563_v42  ;;  %v747_v54 = vshll.u32 %v744_v44, 16  ;;  %vm1704_vm3 = vcmp.ne.s32.totalorder %v966_v48, 0  ;;  %vm1740_vm4 = vcmp.lt.s32.totalorder %v966_v48, 0 }
  0x6f   : > { %v986_v34 = vadd.s32 %v984_v32, %v978_v20  ;;  %vm987_vm15 = vc.u32 %v985_v27, %v981_v25  ;;  %v1812_v56 = vadd.s32 18, %v966_v48  ;;  %v2815_v57 = vsub.s32 %v2752_v24, %v733_v49  ;;  %vm2817_vm5 = vmand %vm1740_vm4, %vm1704_vm3 }
  0x70   : > { %v988_v39 = vsel %vm987_vm15, 1, %v2563_v42  ;;  %vm751_vm6 = vc.u32 %v743_v43, %v747_v54  ;;  %v753_v2 = vadd.s32 %v747_v54, %v743_v43  ;;  %v2404_v61 = vsel %vm2800_vm1, 1.0, %v2564_v7 }
  0x71   : > { %v990_v41 = vadd.s32 %v988_v39, %v986_v34  ;;  %v1839_v62 = vsel %vm2810_vm2, %v1803_v47, %v2780_v3  ;;  %v1002_v24 = vshrl.u32 %v2798_v40, 16  ;;  %v748_v0 = vshrl.u32 %v744_v44, 16 }
  0x72   : > { %v752_v1 = vsel %vm751_vm6, 1, %v2563_v42  ;;  %vm755_vm7 = vc.u32 %v753_v2, %v749_v55  ;;  %v1848_v4 = vsel %vm2817_vm5, %v1812_v56, %v966_v48  ;;  %vm1696_vm8 = vcmp.ne.s32.totalorder %v2815_v57, 0 }
  0x73   : > { %v991_v52 = vadd.s32 %v990_v41, %v980_v26  ;;  %v754_v5 = vadd.s32 %v752_v1, %v746_v53  ;;  %v756_v6 = vsel %vm755_vm7, 1, %v2563_v42  ;;  %vm1732_vm9 = vcmp.lt.s32.totalorder %v2815_v57, 0 }
  0x74   : > { %v1004_v10 = vmul.u32 14564, %v1001_v59  ;;  %v1005_v3 = vmul.u32 58254, %v1001_v59  ;;  %v1804_v11 = vadd.s32 18, %v2815_v57  ;;  %v1006_v14 = vmul.u32 14564, %v1002_v24  ;;  %vm2846_vm12 = vmand %vm1732_vm9, %vm1696_vm8 }
  0x75   : > { %v992_v58 = vadd.s32 %v991_v52, %v982_v31  ;;  %v758_v13 = vadd.s32 %v756_v6, %v754_v5  ;;  %v1007_v9 = vmul.u32 58254, %v1002_v24  ;;  %vm2840_vm10 = vcmp.lt.s32.totalorder %v1839_v62, 16 }
  0x76   : > { %v1008_v16 = vshll.u32 %v1005_v3, 16  ;;  %vm1884_vm11 = vcmp.lt.s32.totalorder %v1848_v4, 16  ;;  %v1010_v21 = vshll.u32 %v1006_v14, 16  ;;  %vm2054_vm13 = vcmask 257024  }
  0x77   : > { %v993_v63 = vshrl.u32 %v992_v58, 4  ;;  %v759_v20 = vadd.s32 %v758_v13, %v748_v0  ;;  %v2414_v30 = vsel %vm1884_vm11, 1.0, %v2564_v7  ;;  %v1840_v31 = vsel %vm2846_vm12, %v1804_v11, %v2815_v57 }
  0x78   : > { %vm1012_vm1 = vc.u32 %v1004_v10, %v1008_v16  ;;  %v1014_v27 = vadd.s32 %v1008_v16, %v1004_v10  ;;  %v770_v34 = vshrl.u32 %v2838_v17, 16  ;;  %v1009_v37 = vshrl.u32 %v1005_v3, 16 }
  0x79   : > { %v994_v8 = vmul.u32 18, %v993_v63  ;;  %v760_v25 = vadd.s32 %v759_v20, %v750_v12  ;;  %v1013_v26 = vsel %vm1012_vm1, 1, %v2563_v42  ;;  %v772_v43 = vmul.u32 14564, %v769_v29 }
  0x7a   : > { %v1015_v32 = vadd.s32 %v1013_v26, %v1007_v9  ;;  %vm1016_vm3 = vc.u32 %v1014_v27, %v1010_v21  ;;  %v2869_v44 = vmul.u32 58254, %v769_v29  ;;  %v2871_v45 = vmul.u32 14564, %v770_v34 }
  0x7b   : > { %v995_v15 = vsub.s32 %v2767_v50, %v994_v8  ;;  %v761_v36 = vshrl.u32 %v760_v25, 4  ;;  %v1017_v41 = vsel %vm1016_vm3, 1, %v2563_v42  ;;  %v1011_v52 = vshrl.u32 %v1006_v14, 16 }
  0x7c   : > { %v1019_v49 = vadd.s32 %v1017_v41, %v1015_v32  ;;  %v776_v53 = vshll.u32 %v2869_v44, 16  ;;  %v2881_v54 = vadd.s32 160, %v2739_v60  ;;  %v775_v58 = vmul.u32 58254, %v770_v34 }
  0x7d   : > { %vm1705_vm14 = vcmp.ne.s32.totalorder %v995_v15, 0  ;;  %vm1741_vm15 = vcmp.lt.s32.totalorder %v995_v15, 0  ;;  %v1813_v50 = vadd.s32 18, %v995_v15  ;;  %v762_v48 = vmul.u32 18, %v761_v36 }
  0x7e   : > { %vm2855_vm2 = vmand %vm1741_vm15, %vm1705_vm14  ;;  %v1020_v33 = vadd.s32 %v1019_v49, %v1009_v37  ;;  %v778_v2 = vshll.u32 %v2871_v45, 16  ;;  %vm780_vm5 = vc.u32 %v772_v43, %v776_v53  ;;  %v782_v59 = vadd.s32 %v776_v53, %v772_v43 }
  0x7f   : > { %v1849_v35 = vsel %vm2855_vm2, %v1813_v50, %v995_v15  ;;  %v763_v57 = vsub.s32 %v2791_v28, %v762_v48  ;;  %vm2899_vm6 = vcmp.lt.s32.totalorder %v1840_v31, 16  ;;  %v1233_v63 = vand.u32 65535, %v2881_v54 }
  0x80   : > { %vm2875_vm4 = vcmp.lt.s32.totalorder %v1849_v35, 16  ;;  %v1021_v1 = vadd.s32 %v1020_v33, %v1011_v52  ;;  %v781_v4 = vsel %vm780_vm5, 1, %v2563_v42  ;;  %v1234_v5 = vshrl.u32 %v2881_v54, 16 }
  0x81   : > { %vm1697_vm7 = vcmp.ne.s32.totalorder %v763_v57, 0  ;;  %vm1733_vm8 = vcmp.lt.s32.totalorder %v763_v57, 0  ;;  %v2415_v0 = vsel %vm2875_vm4, 1.0, %v2564_v7  ;;  %v1805_v3 = vadd.s32 18, %v763_v57 }
  0x82   : > { %v783_v11 = vadd.s32 %v781_v4, %v775_v58  ;;  %vm784_vm9 = vc.u32 %v782_v59, %v778_v2  ;;  %v2406_v13 = vsel %vm2899_vm6, 1.0, %v2564_v7  ;;  %v1022_v9 = vshrl.u32 %v1021_v1, 4 }
  0x83   : > { %v777_v16 = vshrl.u32 %v2869_v44, 16  ;;  %v779_v18 = vshrl.u32 %v2871_v45, 16  ;;  %v785_v19 = vsel %vm784_vm9, 1, %v2563_v42  ;;  %v2927_v20 = vmul.u32 58254, %v1233_v63 }
  0x84   : > { %v1023_v25 = vmul.u32 18, %v1022_v9  ;;  %v787_v29 = vadd.s32 %v785_v19, %v783_v11  ;;  %v1239_v45 = vmul.u32 58254, %v1234_v5  ;;  %v2956_v33 = vadd.s32 104, %v2739_v60 }
  0x85   : > { %v1241_v53 = vshrl.u32 %v2927_v20, 16 }
  0x86   : > { %v1024_v37 = vsub.s32 %v2798_v40, %v1023_v25  ;;  %v788_v44 = vadd.s32 %v787_v29, %v777_v16  ;;  %v1031_v11 = vshrl.u32 %v2956_v33, 16 }
  0x88   : > { %vm1706_vm12 = vcmp.ne.s32.totalorder %v1024_v37, 0  ;;  %vm1742_vm14 = vcmp.lt.s32.totalorder %v1024_v37, 0  ;;  %v1814_v51 = vadd.s32 18, %v1024_v37  ;;  %v789_v52 = vadd.s32 %v788_v44, %v779_v18 }
  0x89   : > { %vm1778_vm15 = vmand %vm1742_vm14, %vm1706_vm12  ;;  %v1036_v29 = vmul.u32 58254, %v1031_v11 }
  0x8a   : > { %v1850_v2 = vsel %vm1778_vm15, %v1814_v51, %v1024_v37  ;;  %v790_v59 = vshrl.u32 %v789_v52, 4 }
  0x8b   : > { %vm1886_vm2 = vcmp.lt.s32.totalorder %v1850_v2, 16 }
  0x8c   : > { %v2416_v1 = vsel %vm1886_vm2, 1.0, %v2564_v7 }
  0x97   : > { %v523_v38 = vpop.f32.mrf.mxu0  ;;  %v548_v39 = vpop.f32.mrf.mxu1 }
  0x98   : > { %v524_v46 = vadd.f32 %v2853_v22, %v523_v38  ;;  %v549_v47 = vadd.f32 %v2853_v22, %v548_v39  ;;  %v1236_v38 = vmul.u32 14564, %v1233_v63  ;;  %v1240_v39 = vshll.u32 %v2927_v20, 16 }
  0x9a   : > { %v1982_v55 = vmul.f32 %v2404_v61, %v524_v46  ;;  %v2883_v56 = vmul.f32 %v2414_v30, %v549_v47  ;;  %v2405_v61 = vsel %vm2840_vm10, 1.0, %v2564_v7  ;;  %vm2920_vm10 = vmand %vm1733_vm8, %vm1697_vm7  ;;  %v2935_v30 = vmul.u32 14564, %v1234_v5 }
  0x9b   : > { %v1841_v27 = vsel %vm2920_vm10, %v1805_v3, %v763_v57  ;;  %vm1244_vm1 = vc.u32 %v1236_v38, %v1240_v39  ;;  %v1246_v57 = vadd.s32 %v1240_v39, %v1236_v38 }
  0x9c   : > { %v2018_v62 = vpack.c.bf16 %v1982_v55, %v1982_v55  ;;  %v2028_v28 = vpack.c.bf16 %v2883_v56, %v2883_v56  ;;  %v2170_v6 = vmul.f32 %v1982_v55, %v1982_v55  ;;  %v2091_v21 = vsel %vm459_vm0, %v1982_v55, 0.0 }
  0x9d   : > { %vm2945_vm11 = vcmp.lt.s32.totalorder %v1841_v27, 16  ;;  %v1242_v40 = vshll.u32 %v2935_v30, 16  ;;  %v1243_v9 = vshrl.u32 %v2935_v30, 16 }
  0x9e   : > { %2055 = vst.msk [vmem:[%s2891_s11] sm:$0xf] %vm2054_vm13, %v2018_v62  ;;  %v2206_v26 = vsel %vm459_vm0, %v2170_v6, 0.0  ;;  %v1245_v62 = vsel %vm1244_vm1, 1, %v2563_v42  ;;  %v791_v6 = vmul.u32 18, %v790_v59 }
  0x9f   : > { %v525_v8 = vpop.f32.mrf.mxu0  ;;  %2065 = vst.msk [vmem:[%s2891_s11 + $0x28] sm:$0xf] %vm2054_vm13, %v2028_v28  ;;  %v550_v10 = vpop.f32.mrf.mxu1  ;;  %vm1248_vm3 = vc.u32 %v1246_v57, %v1242_v40  ;;  %v1030_v28 = vand.u32 65535, %v2956_v33 }
  0xa0   : > { %v526_v12 = vadd.f32 %v2853_v22, %v525_v8  ;;  %v551_v14 = vadd.f32 %v2853_v22, %v550_v10  ;;  %v1249_v8 = vsel %vm1248_vm3, 1, %v2563_v42  ;;  %v792_v18 = vsub.s32 %v2838_v17, %v791_v6 }
  0xa1   : > { %v1033_v20 = vmul.u32 14564, %v1030_v28 }
  0xa2   : > { %v1983_v50 = vmul.f32 %v2405_v61, %v526_v12  ;;  %v2930_v23 = vmul.f32 %v2415_v0, %v551_v14  ;;  %v1247_v61 = vadd.s32 %v1245_v62, %v1239_v45  ;;  %v2407_v14 = vsel %vm2945_vm11, 1.0, %v2564_v7 }
  0xa3   : > { %vm1698_vm4 = vcmp.ne.s32.totalorder %v792_v18, 0  ;;  %vm1734_vm5 = vcmp.lt.s32.totalorder %v792_v18, 0 }
  0xa4   : > { %v2019_v31 = vpack.c.bf16 %v1983_v50, %v1983_v50  ;;  %v2092_v32 = vsel %vm459_vm0, %v1983_v50, 0.0  ;;  %v2171_v34 = vmul.f32 %v1983_v50, %v1983_v50  ;;  %v2029_v35 = vpack.c.bf16 %v2930_v23, %v2930_v23  ;;  %vm1770_vm6 = vmand %vm1734_vm5, %vm1698_vm4 }
  0xa5   : > { %v2093_v36 = vadd.f32 %v2092_v32, %v2091_v21  ;;  %v1251_v3 = vadd.s32 %v1249_v8, %v1247_v61  ;;  %v1034_v21 = vmul.u32 58254, %v1030_v28  ;;  %v1035_v50 = vmul.u32 14564, %v1031_v11 }
  0xa6   : > { %2056 = vst.msk [vmem:[%s2891_s11 + $0x4] sm:$0xf] %vm2054_vm13, %v2019_v31  ;;  %v2207_v41 = vsel %vm459_vm0, %v2171_v34, 0.0  ;;  %v2995_v61 = vadd.s32 168, %v2739_v60 }
  0xa7   : > { %v2208_v46 = vadd.f32 %v2207_v41, %v2206_v26  ;;  %v528_v47 = vpop.f32.mrf.mxu0  ;;  %2066 = vst.msk [vmem:[%s2891_s11 + $0x2c] sm:$0xf] %vm2054_vm13, %v2029_v35  ;;  %v553_v49 = vpop.f32.mrf.mxu1  ;;  %v1252_v19 = vadd.s32 %v1251_v3, %v1241_v53  ;;  %v1806_v26 = vadd.s32 18, %v792_v18  ;;  %v1037_v31 = vshll.u32 %v1034_v21, 16 }
  0xa8   : > { %v529_v48 = vadd.f32 %v2853_v22, %v528_v47  ;;  %v554_v55 = vadd.f32 %v2853_v22, %v553_v49  ;;  %v1039_v30 = vshll.u32 %v1035_v50, 16  ;;  %v1038_v51 = vshrl.u32 %v1034_v21, 16 }
  0xa9   : > { %v1253_v27 = vadd.s32 %v1252_v19, %v1243_v9  ;;  %v1842_v35 = vsel %vm1770_vm6, %v1806_v26, %v792_v18  ;;  %vm1041_vm8 = vc.u32 %v1033_v20, %v1037_v31  ;;  %v1043_v44 = vadd.s32 %v1037_v31, %v1033_v20 }
  0xaa   : > { %v1984_v58 = vmul.f32 %v2406_v13, %v529_v48  ;;  %v2962_v5 = vmul.f32 %v2416_v1, %v554_v55  ;;  %vm1878_vm7 = vcmp.lt.s32.totalorder %v1842_v35, 16  ;;  %v1042_v40 = vsel %vm1041_vm8, 1, %v2563_v42 }
  0xab   : > { %v1254_v39 = vshrl.u32 %v1253_v27, 4  ;;  %v2408_v43 = vsel %vm1878_vm7, 1.0, %v2564_v7  ;;  %v2987_v48 = vadd.s32 40, %v2739_v60  ;;  %v1044_v52 = vadd.s32 %v1042_v40, %v1036_v29 }
  0xac   : > { %v2020_v24 = vpack.c.bf16 %v1984_v58, %v1984_v58  ;;  %v2094_v63 = vsel %vm459_vm0, %v1984_v58, 0.0  ;;  %v2172_v0 = vmul.f32 %v1984_v58, %v1984_v58  ;;  %v2030_v15 = vpack.c.bf16 %v2962_v5, %v2962_v5 }
  0xad   : > { %v2095_v4 = vadd.f32 %v2094_v63, %v2093_v36  ;;  %v573_v36 = vpop.f32.mrf.mxu2  ;;  %v1255_v47 = vmul.u32 18, %v1254_v39  ;;  %vm1045_vm9 = vc.u32 %v1043_v44, %v1039_v30  ;;  %v798_v57 = vand.u32 65535, %v2987_v48 }
  0xae   : > { %2057 = vst.msk [vmem:[%s2891_s11 + $0x8] sm:$0xf] %vm2054_vm13, %v2020_v24  ;;  %v2209_v10 = vsel %vm459_vm0, %v2172_v0, 0.0  ;;  %v574_v38 = vadd.f32 %v2853_v22, %v573_v36  ;;  %v1046_v55 = vsel %vm1045_vm9, 1, %v2563_v42  ;;  %v799_v58 = vshrl.u32 %v2987_v48, 16 }
  0xaf   : > { %v2210_v12 = vadd.f32 %v2209_v10, %v2208_v46  ;;  %v530_v13 = vpop.f32.mrf.mxu0  ;;  %2067 = vst.msk [vmem:[%s2891_s11 + $0x30] sm:$0xf] %vm2054_vm13, %v2030_v15  ;;  %v1256_v53 = vsub.s32 %v2881_v54, %v1255_v47  ;;  %v1040_v59 = vshrl.u32 %v1035_v50, 16  ;;  %v1048_v62 = vadd.s32 %v1046_v55, %v1044_v52 }
  0xb0   : > { %v531_v16 = vadd.f32 %v2853_v22, %v530_v13  ;;  %v801_v24 = vmul.u32 14564, %v798_v57  ;;  %v802_v8 = vmul.u32 58254, %v798_v57  ;;  %v803_v10 = vmul.u32 14564, %v799_v58 }
  0xb1   : > { %vm1714_vm10 = vcmp.ne.s32.totalorder %v1256_v53, 0  ;;  %vm1750_vm11 = vcmp.lt.s32.totalorder %v1256_v53, 0  ;;  %v1822_v28 = vadd.s32 18, %v1256_v53  ;;  %v1049_v1 = vadd.s32 %v1048_v62, %v1038_v51 }
  0xb2   : > { %v1985_v25 = vmul.f32 %v2407_v14, %v531_v16  ;;  %vm1786_vm12 = vmand %vm1750_vm11, %vm1714_vm10  ;;  %v2180_v3 = vmul.f32 %v2883_v56, %v2883_v56  ;;  %v805_v15 = vshll.u32 %v802_v8, 16  ;;  %v804_v18 = vmul.u32 58254, %v799_v58 }
  0xb3   : > { %v1858_v6 = vsel %vm1786_vm12, %v1822_v28, %v1256_v53  ;;  %v807_v19 = vshll.u32 %v803_v10, 16  ;;  %v3012_v20 = vsel %vm459_vm0, %v2883_v56, 0.0  ;;  %v1262_v50 = vand.u32 65535, %v2995_v61 }
  0xb4   : > { %v2021_v32 = vpack.c.bf16 %v1985_v25, %v1985_v25  ;;  %v2096_v34 = vsel %vm459_vm0, %v1985_v25, 0.0  ;;  %v2173_v17 = vmul.f32 %v1985_v25, %v1985_v25  ;;  %vm1894_vm14 = vcmp.lt.s32.totalorder %v1858_v6, 16 }
  0xb5   : > { %v2097_v37 = vadd.f32 %v2096_v34, %v2095_v4  ;;  %v2424_v14 = vsel %vm1894_vm14, 1.0, %v2564_v7  ;;  %vm809_vm15 = vc.u32 %v801_v24, %v805_v15  ;;  %v811_v21 = vadd.s32 %v805_v15, %v801_v24  ;;  %v575_v28 = vpop.f32.mrf.mxu2 }
  0xb6   : > { %2058 = vst.msk [vmem:[%s2891_s11 + $0xc] sm:$0xf] %vm2054_vm13, %v2021_v32  ;;  %v2211_v41 = vsel %vm459_vm0, %v2173_v17, 0.0  ;;  %v3008_v9 = vmul.f32 %v2424_v14, %v574_v38  ;;  %v3016_v25 = vsel %vm459_vm0, %v2180_v3, 0.0  ;;  %v3020_v26 = vsel %vm459_vm0, %v2930_v23, 0.0  ;;  %v555_v32 = vpop.f32.mrf.mxu1 }
  0xb7   : > { %v2212_v45 = vadd.f32 %v2211_v41, %v2210_v12  ;;  %v533_v46 = vpop.f32.mrf.mxu0  ;;  %v1050_v12 = vadd.s32 %v1049_v1, %v1040_v59  ;;  %v810_v31 = vsel %vm809_vm15, 1, %v2563_v42  ;;  %vm813_vm1 = vc.u32 %v811_v21, %v807_v19 }
  0xb8   : > { %v534_v49 = vadd.f32 %v2853_v22, %v533_v46  ;;  %v2038_v27 = vpack.c.bf16 %v3008_v9, %v3008_v9  ;;  %v1263_v56 = vshrl.u32 %v2995_v61, 16  ;;  %v3027_v30 = vadd.s32 112, %v2739_v60 }
  0xb9   : > { %v1051_v16 = vshrl.u32 %v1050_v12, 4  ;;  %v806_v17 = vshrl.u32 %v802_v8, 16  ;;  %v812_v35 = vadd.s32 %v810_v31, %v804_v18  ;;  %v814_v36 = vsel %vm813_vm1, 1, %v2563_v42 }
  0xba   : > { %v1986_v2 = vmul.f32 %v2408_v43, %v534_v49  ;;  %2075 = vst.msk [vmem:[%s2891_s11 + $0x50] sm:$0xf] %vm2054_vm13, %v2038_v27  ;;  %v1265_v38 = vmul.u32 14564, %v1262_v50  ;;  %v1266_v39 = vmul.u32 58254, %v1262_v50  ;;  %v1267_v41 = vmul.u32 14564, %v1263_v56 }
  0xbb   : > { %v1052_v29 = vmul.u32 18, %v1051_v16  ;;  %v816_v44 = vadd.s32 %v814_v36, %v812_v35  ;;  %v1268_v46 = vmul.u32 58254, %v1263_v56  ;;  %v1059_v51 = vand.u32 65535, %v3027_v30 }
  0xbc   : > { %v2022_v63 = vpack.c.bf16 %v1986_v2, %v1986_v2  ;;  %v2098_v54 = vsel %vm459_vm0, %v1986_v2, 0.0  ;;  %v2174_v0 = vmul.f32 %v1986_v2, %v1986_v2  ;;  %v1269_v47 = vshll.u32 %v1266_v39, 16 }
  0xbd   : > { %v2998_v4 = vadd.f32 %v2098_v54, %v2097_v37  ;;  %v1053_v34 = vsub.s32 %v2956_v33, %v1052_v29  ;;  %v808_v37 = vshrl.u32 %v803_v10, 16  ;;  %v1271_v40 = vshll.u32 %v1267_v41, 16 }
  0xbe   : > { %2059 = vst.msk [vmem:[%s2891_s11 + $0x10] sm:$0xf] %vm2054_vm13, %v2022_v63  ;;  %v2213_v11 = vsel %vm459_vm0, %v2174_v0, 0.0  ;;  %v817_v33 = vadd.s32 %v816_v44, %v806_v17  ;;  %v1060_v52 = vshrl.u32 %v3027_v30, 16  ;;  %v3038_v53 = vmul.f32 %v2930_v23, %v2930_v23 }
  0xbf   : > { %v3005_v13 = vadd.f32 %v2213_v11, %v2212_v45  ;;  %vm1707_vm2 = vcmp.ne.s32.totalorder %v1053_v34, 0  ;;  %vm1743_vm3 = vcmp.lt.s32.totalorder %v1053_v34, 0  ;;  %v1815_v43 = vadd.s32 18, %v1053_v34  ;;  %v535_v54 = vpop.f32.mrf.mxu0 }
  0xc0   : > { %v556_v45 = vadd.f32 %v2853_v22, %v555_v32  ;;  %vm1779_vm4 = vmand %vm1743_vm3, %vm1707_vm2  ;;  %vm1273_vm6 = vc.u32 %v1265_v38, %v1269_v47  ;;  %v1275_v55 = vadd.s32 %v1269_v47, %v1265_v38  ;;  %v818_v58 = vadd.s32 %v817_v33, %v808_v37 }
  0xc1   : > { %v1851_v49 = vsel %vm1779_vm4, %v1815_v43, %v1053_v34  ;;  %v1270_v2 = vshrl.u32 %v1266_v39, 16  ;;  %v1274_v59 = vsel %vm1273_vm6, 1, %v2563_v42  ;;  %v1063_v63 = vmul.u32 58254, %v1059_v51 }
  0xc2   : > { %vm1887_vm5 = vcmp.lt.s32.totalorder %v1851_v49, 16  ;;  %v1276_v24 = vadd.s32 %v1274_v59, %v1268_v46  ;;  %vm1277_vm7 = vc.u32 %v1275_v55, %v1271_v40  ;;  %v819_v0 = vshrl.u32 %v818_v58, 4 }
  0xc3   : > { %v2417_v57 = vsel %vm1887_vm5, 1.0, %v2564_v7  ;;  %v1278_v23 = vsel %vm1277_vm7, 1, %v2563_v42  ;;  %v1062_v1 = vmul.u32 14564, %v1059_v51  ;;  %v1064_v6 = vmul.u32 14564, %v1060_v52 }
  0xc4   : > { %v3042_v62 = vmul.f32 %v2417_v57, %v556_v45  ;;  %v3047_v8 = vmul.f32 %v2962_v5, %v2962_v5  ;;  %v1272_v3 = vshrl.u32 %v1267_v41, 16  ;;  %v1280_v11 = vadd.s32 %v1278_v23, %v1276_v24 }
  0xc5   : > { %v820_v12 = vmul.u32 18, %v819_v0  ;;  %v3052_v14 = vadd.f32 %v2853_v22, %v575_v28  ;;  %v1065_v15 = vmul.u32 58254, %v1060_v52  ;;  %v1066_v16 = vshll.u32 %v1063_v63, 16 }
  0xc6   : > { %v2031_v10 = vpack.c.bf16 %v3042_v62, %v3042_v62  ;;  %v536_v18 = vadd.f32 %v2853_v22, %v535_v54  ;;  %v1281_v19 = vadd.s32 %v1280_v11, %v1270_v2  ;;  %v1068_v21 = vshll.u32 %v1064_v6, 16 }
  0xc7   : > { %v3058_v50 = vadd.s32 48, %v2739_v60  ;;  %v821_v27 = vsub.s32 %v2987_v48, %v820_v12  ;;  %v1067_v29 = vshrl.u32 %v1063_v63, 16  ;;  %vm1070_vm8 = vc.u32 %v1062_v1, %v1066_v16 }
  0xc8   : > { %2068 = vst.msk [vmem:[%s2891_s11 + $0x34] sm:$0xf] %vm2054_vm13, %v2031_v10  ;;  %v1072_v31 = vadd.s32 %v1066_v16, %v1062_v1  ;;  %v1282_v56 = vadd.s32 %v1281_v19, %v1272_v3  ;;  %v1071_v32 = vsel %vm1070_vm8, 1, %v2563_v42  ;;  %v3066_v44 = vadd.s32 176, %v2739_v60 }
  0xc9   : > { %v827_v34 = vand.u32 65535, %v3058_v50  ;;  %v828_v17 = vshrl.u32 %v3058_v50, 16  ;;  %vm1699_vm9 = vcmp.ne.s32.totalorder %v821_v27, 0  ;;  %vm1735_vm10 = vcmp.lt.s32.totalorder %v821_v27, 0 }
  0xca   : > { %v1807_v35 = vadd.s32 18, %v821_v27  ;;  %v1073_v36 = vadd.s32 %v1071_v32, %v1065_v15  ;;  %vm1771_vm11 = vmand %vm1735_vm10, %vm1699_vm9  ;;  %v1283_v37 = vshrl.u32 %v1282_v56, 4  ;;  %vm1074_vm12 = vc.u32 %v1072_v31, %v1068_v21 }
  0xcb   : > { %v830_v38 = vmul.u32 14564, %v827_v34  ;;  %v831_v39 = vmul.u32 58254, %v827_v34  ;;  %v1075_v41 = vsel %vm1074_vm12, 1, %v2563_v42  ;;  %v832_v43 = vmul.u32 14564, %v828_v17 }
  0xcc   : > { %v1843_v48 = vsel %vm1771_vm11, %v1807_v35, %v821_v27  ;;  %v1284_v45 = vmul.u32 18, %v1283_v37  ;;  %v1077_v46 = vadd.s32 %v1075_v41, %v1073_v36  ;;  %v1069_v49 = vshrl.u32 %v1064_v6, 16 }
  0xcd   : > { %vm1879_vm14 = vcmp.lt.s32.totalorder %v1843_v48, 16  ;;  %v834_v47 = vshll.u32 %v831_v39, 16  ;;  %v833_v33 = vmul.u32 58254, %v828_v17  ;;  %v836_v51 = vshll.u32 %v832_v43, 16 }
  0xce   : > { %v2409_v40 = vsel %vm1879_vm14, 1.0, %v2564_v7  ;;  %v1285_v55 = vsub.s32 %v2995_v61, %v1284_v45  ;;  %v1078_v57 = vadd.s32 %v1077_v46, %v1067_v29  ;;  %v835_v58 = vshrl.u32 %v831_v39, 16  ;;  %v558_v39 = vpop.f32.mrf.mxu1 }
  0xcf   : > { %v1987_v52 = vmul.f32 %v2409_v40, %v536_v18  ;;  %vm838_vm15 = vc.u32 %v830_v38, %v834_v47  ;;  %v840_v59 = vadd.s32 %v834_v47, %v830_v38  ;;  %v1291_v28 = vand.u32 65535, %v3066_v44 }
  0xd0   : > { %v839_v2 = vsel %vm838_vm15, 1, %v2563_v42  ;;  %vm1715_vm1 = vcmp.ne.s32.totalorder %v1285_v55, 0  ;;  %vm1751_vm2 = vcmp.lt.s32.totalorder %v1285_v55, 0  ;;  %v1823_v23 = vadd.s32 18, %v1285_v55 }
  0xd1   : > { %v2023_v24 = vpack.c.bf16 %v1987_v52, %v1987_v52  ;;  %v2100_v63 = vsel %vm459_vm0, %v1987_v52, 0.0  ;;  %v2175_v54 = vmul.f32 %v1987_v52, %v1987_v52  ;;  %v1079_v1 = vadd.s32 %v1078_v57, %v1069_v49  ;;  %vm1787_vm3 = vmand %vm1751_vm2, %vm1715_vm1 }
  0xd2   : > { %v3074_v0 = vadd.f32 %v2100_v63, %v2998_v4  ;;  %v841_v6 = vadd.s32 %v839_v2, %v833_v33  ;;  %vm842_vm4 = vc.u32 %v840_v59, %v836_v51  ;;  %v1292_v10 = vshrl.u32 %v3066_v44, 16  ;;  %v538_v59 = vpop.f32.mrf.mxu0 }
  0xd3   : > { %2060 = vst.msk [vmem:[%s2891_s11 + $0x14] sm:$0xf] %vm2054_vm13, %v2023_v24  ;;  %v2215_v61 = vsel %vm459_vm0, %v2175_v54, 0.0  ;;  %v1859_v11 = vsel %vm1787_vm3, %v1823_v23, %v1285_v55  ;;  %v1080_v12 = vshrl.u32 %v1079_v1, 4  ;;  %v843_v4 = vsel %vm842_vm4, 1, %v2563_v42 }
  0xd4   : > { %v3081_v3 = vadd.f32 %v2215_v61, %v3005_v13  ;;  %vm1895_vm5 = vcmp.lt.s32.totalorder %v1859_v11, 16  ;;  %v837_v15 = vshrl.u32 %v832_v43, 16  ;;  %v845_v16 = vadd.s32 %v843_v4, %v841_v6 }
  0xd5   : > { %v1295_v18 = vmul.u32 58254, %v1291_v28  ;;  %v2425_v19 = vsel %vm1895_vm5, 1.0, %v2564_v7  ;;  %v1081_v21 = vmul.u32 18, %v1080_v12  ;;  %v1294_v27 = vmul.u32 14564, %v1291_v28 }
  0xd6   : > { %v1296_v29 = vmul.u32 14564, %v1292_v10  ;;  %v3087_v31 = vsel %vm459_vm0, %v3038_v53, 0.0  ;;  %v3090_v13 = vmul.f32 %v2425_v19, %v3052_v14  ;;  %v846_v56 = vadd.s32 %v845_v16, %v835_v58 }
  0xd7   : > { %v1298_v32 = vshll.u32 %v1295_v18, 16  ;;  %v3094_v34 = vsel %vm459_vm0, %v2962_v5, 0.0  ;;  %v3098_v17 = vsel %vm459_vm0, %v3047_v8, 0.0  ;;  %v1082_v35 = vsub.s32 %v3027_v30, %v1081_v21 }
  0xd8   : > { %v1297_v36 = vmul.u32 58254, %v1292_v10  ;;  %v3103_v53 = vsel %vm459_vm0, %v3008_v9, 0.0  ;;  %v2039_v14 = vpack.c.bf16 %v3090_v13, %v3090_v13  ;;  %v847_v37 = vadd.s32 %v846_v56, %v837_v15 }
  0xd9   : > { %v1300_v38 = vshll.u32 %v1296_v29, 16  ;;  %vm1708_vm6 = vcmp.ne.s32.totalorder %v1082_v35, 0  ;;  %vm1744_vm7 = vcmp.lt.s32.totalorder %v1082_v35, 0  ;;  %v1816_v5 = vadd.s32 18, %v1082_v35 }
  0xda   : > { %vm1302_vm8 = vc.u32 %v1294_v27, %v1298_v32  ;;  %2076 = vst.msk [vmem:[%s2891_s11 + $0x54] sm:$0xf] %vm2054_vm13, %v2039_v14  ;;  %v559_v8 = vadd.f32 %v2853_v22, %v558_v39  ;;  %vm1780_vm9 = vmand %vm1744_vm7, %vm1708_vm6  ;;  %v848_v30 = vshrl.u32 %v847_v37, 4  ;;  %v1304_v41 = vadd.s32 %v1298_v32, %v1294_v27 }
  0xdb   : > { %v1303_v48 = vsel %vm1302_vm8, 1, %v2563_v42  ;;  %v2190_v43 = vmul.f32 %v3008_v9, %v3008_v9  ;;  %v1852_v45 = vsel %vm1780_vm9, %v1816_v5, %v1082_v35  ;;  %v3114_v47 = vadd.s32 120, %v2739_v60 }
  0xdc   : > { %v1305_v46 = vadd.s32 %v1303_v48, %v1297_v36  ;;  %vm1888_vm10 = vcmp.lt.s32.totalorder %v1852_v45, 16  ;;  %v849_v40 = vmul.u32 18, %v848_v30  ;;  %v1299_v49 = vshrl.u32 %v1295_v18, 16 }
  0xdd   : > { %vm1306_vm11 = vc.u32 %v1304_v41, %v1300_v38  ;;  %v2418_v33 = vsel %vm1888_vm10, 1.0, %v2564_v7  ;;  %v1088_v52 = vand.u32 65535, %v3114_v47  ;;  %v1089_v55 = vshrl.u32 %v3114_v47, 16 }
  0xde   : > { %v1307_v51 = vsel %vm1306_vm11, 1, %v2563_v42  ;;  %v3120_v57 = vmul.f32 %v2418_v33, %v559_v8  ;;  %v850_v9 = vsub.s32 %v3058_v50, %v849_v40  ;;  %v3124_v2 = vadd.s32 56, %v2739_v60  ;;  %v578_v40 = vpop.f32.mrf.mxu2 }
  0xdf   : > { %v1309_v58 = vadd.s32 %v1307_v51, %v1305_v46  ;;  %v1301_v28 = vshrl.u32 %v1296_v29, 16  ;;  %v1091_v24 = vmul.u32 14564, %v1088_v52  ;;  %v1092_v63 = vmul.u32 58254, %v1088_v52 }
  0xe0   : > { %v1093_v54 = vmul.u32 14564, %v1089_v55  ;;  %v3127_v23 = vsel %vm459_vm0, %v2190_v43, 0.0  ;;  %v2032_v1 = vpack.c.bf16 %v3120_v57, %v3120_v57  ;;  %vm1700_vm12 = vcmp.ne.s32.totalorder %v850_v9, 0 }
  0xe1   : > { %v1094_v61 = vmul.u32 58254, %v1089_v55  ;;  %vm1736_vm14 = vcmp.lt.s32.totalorder %v850_v9, 0  ;;  %v1808_v50 = vadd.s32 18, %v850_v9  ;;  %v1310_v6 = vadd.s32 %v1309_v58, %v1299_v49 }
  0xe2   : > { %v1095_v10 = vshll.u32 %v1092_v63, 16  ;;  %2069 = vst.msk [vmem:[%s2891_s11 + $0x38] sm:$0xf] %vm2054_vm13, %v2032_v1  ;;  %v539_v11 = vadd.f32 %v2853_v22, %v538_v59  ;;  %vm1772_vm15 = vmand %vm1736_vm14, %vm1700_vm12  ;;  %v1096_v12 = vshrl.u32 %v1092_v63, 16  ;;  %v1097_v4 = vshll.u32 %v1093_v54, 16 }
  0xe3   : > { %v856_v15 = vand.u32 65535, %v3124_v2  ;;  %v1844_v16 = vsel %vm1772_vm15, %v1808_v50, %v850_v9  ;;  %v1311_v18 = vadd.s32 %v1310_v6, %v1301_v28  ;;  %v857_v27 = vshrl.u32 %v3124_v2, 16 }
  0xe4   : > { %vm1099_vm1 = vc.u32 %v1091_v24, %v1095_v10  ;;  %v1101_v19 = vadd.s32 %v1095_v10, %v1091_v24  ;;  %vm1880_vm2 = vcmp.lt.s32.totalorder %v1844_v16, 16  ;;  %v2183_v39 = vmul.f32 %v3042_v62, %v3042_v62  ;;  %v560_v10 = vpop.f32.mrf.mxu1 }
  0xe5   : > { %v1100_v21 = vsel %vm1099_vm1, 1, %v2563_v42  ;;  %v859_v29 = vmul.u32 14564, %v856_v15  ;;  %v2410_v56 = vsel %vm1880_vm2, 1.0, %v2564_v7  ;;  %v1312_v32 = vshrl.u32 %v1311_v18, 4 }
  0xe6   : > { %v1102_v35 = vadd.s32 %v1100_v21, %v1094_v61  ;;  %vm1103_vm3 = vc.u32 %v1101_v19, %v1097_v4  ;;  %v1988_v36 = vmul.f32 %v2410_v56, %v539_v11  ;;  %v860_v37 = vmul.u32 58254, %v856_v15 }
  0xe7   : > { %v1104_v14 = vsel %vm1103_vm3, 1, %v2563_v42  ;;  %v3139_v38 = vmul.u32 14564, %v857_v27  ;;  %v1313_v5 = vmul.u32 18, %v1312_v32  ;;  %v1098_v8 = vshrl.u32 %v1093_v54, 16 }
  0xe8   : > { %v1106_v30 = vadd.s32 %v1104_v14, %v1102_v35  ;;  %v2024_v48 = vpack.c.bf16 %v1988_v36, %v1988_v36  ;;  %v2102_v41 = vsel %vm459_vm0, %v1988_v36, 0.0  ;;  %v2176_v43 = vmul.f32 %v1988_v36, %v1988_v36 }
  0xe9   : > { %v863_v45 = vshll.u32 %v860_v37, 16  ;;  %v3145_v46 = vadd.f32 %v2102_v41, %v3074_v0  ;;  %v1314_v49 = vsub.s32 %v3066_v44, %v1313_v5  ;;  %v862_v51 = vmul.u32 58254, %v857_v27 }
  0xea   : > { %v1107_v33 = vadd.s32 %v1106_v30, %v1096_v12  ;;  %2061 = vst.msk [vmem:[%s2891_s11 + $0x18] sm:$0xf] %vm2054_vm13, %v2024_v48  ;;  %v2217_v52 = vsel %vm459_vm0, %v2176_v43, 0.0  ;;  %v579_v55 = vadd.f32 %v2853_v22, %v578_v40  ;;  %v865_v9 = vshll.u32 %v3139_v38, 16 }
  0xeb   : > { %vm867_vm4 = vc.u32 %v859_v29, %v863_v45  ;;  %v3154_v58 = vadd.f32 %v2217_v52, %v3081_v3  ;;  %vm1716_vm5 = vcmp.ne.s32.totalorder %v1314_v49, 0  ;;  %vm1752_vm6 = vcmp.lt.s32.totalorder %v1314_v49, 0  ;;  %v540_v52 = vpop.f32.mrf.mxu0 }
  0xec   : > { %v1824_v0 = vadd.s32 18, %v1314_v49  ;;  %vm1788_vm7 = vmand %vm1752_vm6, %vm1716_vm5  ;;  %v1108_v59 = vadd.s32 %v1107_v33, %v1098_v8  ;;  %v868_v44 = vsel %vm867_vm4, 1, %v2563_v42  ;;  %v869_v28 = vadd.s32 %v863_v45, %v859_v29 }
  0xed   : > { %v3158_v24 = vadd.s32 184, %v2739_v60  ;;  %v3162_v63 = vsel %vm459_vm0, %v3042_v62, 0.0  ;;  %v3165_v54 = vsel %vm459_vm0, %v2183_v39, 0.0  ;;  %v870_v1 = vadd.s32 %v868_v44, %v862_v51 }
  0xee   : > { %v1860_v3 = vsel %vm1788_vm7, %v1824_v0, %v1314_v49  ;;  %v1109_v61 = vshrl.u32 %v1108_v59, 4  ;;  %vm871_vm9 = vc.u32 %v869_v28, %v865_v9  ;;  %v864_v11 = vshrl.u32 %v860_v37, 16 }
  0xef   : > { %vm1896_vm8 = vcmp.lt.s32.totalorder %v1860_v3, 16  ;;  %v1320_v50 = vand.u32 65535, %v3158_v24  ;;  %v872_v12 = vsel %vm871_vm9, 1, %v2563_v42  ;;  %v1321_v4 = vshrl.u32 %v3158_v24, 16 }
  0xf0   : > { %v2426_v6 = vsel %vm1896_vm8, 1.0, %v2564_v7  ;;  %v1110_v15 = vmul.u32 18, %v1109_v61  ;;  %v874_v16 = vadd.s32 %v872_v12, %v870_v1  ;;  %v3174_v18 = vadd.s32 128, %v2739_v60 }
  0xf1   : > { %v3171_v62 = vmul.f32 %v2426_v6, %v579_v55  ;;  %v866_v19 = vshrl.u32 %v3139_v38, 16  ;;  %v1323_v21 = vmul.u32 14564, %v1320_v50  ;;  %v1324_v27 = vmul.u32 58254, %v1320_v50 }
  0xf2   : > { %v1325_v29 = vmul.u32 14564, %v1321_v4  ;;  %v3179_v56 = vsel %vm459_vm0, %v3090_v13, 0.0  ;;  %v561_v35 = vadd.f32 %v2853_v22, %v560_v10  ;;  %v1111_v36 = vsub.s32 %v3114_v47, %v1110_v15 }
  0xf3   : > { %v2040_v32 = vpack.c.bf16 %v3171_v62, %v3171_v62  ;;  %v875_v14 = vadd.s32 %v874_v16, %v864_v11  ;;  %v1326_v37 = vmul.u32 58254, %v1321_v4  ;;  %v1327_v39 = vshll.u32 %v1324_v27, 16 }
  0xf4   : > { %v1329_v5 = vshll.u32 %v1325_v29, 16  ;;  %vm1709_vm10 = vcmp.ne.s32.totalorder %v1111_v36, 0  ;;  %vm1745_vm11 = vcmp.lt.s32.totalorder %v1111_v36, 0  ;;  %v1817_v38 = vadd.s32 18, %v1111_v36 }
  0xf5   : > { %2077 = vst.msk [vmem:[%s2891_s11 + $0x58] sm:$0xf] %vm2054_vm13, %v2040_v32  ;;  %v1117_v8 = vand.u32 65535, %v3174_v18  ;;  %vm1781_vm12 = vmand %vm1745_vm11, %vm1709_vm10  ;;  %v876_v30 = vadd.s32 %v875_v14, %v866_v19  ;;  %v1328_v48 = vshrl.u32 %v1324_v27, 16  ;;  %vm1331_vm14 = vc.u32 %v1323_v21, %v1327_v39  ;;  %v580_v32 = vpop.f32.mrf.mxu2 }
  0xf6   : > { %v1333_v41 = vadd.s32 %v1327_v39, %v1323_v21  ;;  %v1853_v43 = vsel %vm1781_vm12, %v1817_v38, %v1111_v36  ;;  %v1332_v45 = vsel %vm1331_vm14, 1, %v2563_v42  ;;  %v1118_v47 = vshrl.u32 %v3174_v18, 16 }
  0xf7   : > { %v1120_v40 = vmul.u32 14564, %v1117_v8  ;;  %vm1889_vm15 = vcmp.lt.s32.totalorder %v1853_v43, 16  ;;  %v877_v49 = vshrl.u32 %v876_v30, 4  ;;  %v1334_v33 = vadd.s32 %v1332_v45, %v1326_v37  ;;  %v3219_v43 = vld [vmem:[%s3692_s2] ss:$0 sm:$0xff] }
  0xf8   : > { %vm1335_vm1 = vc.u32 %v1333_v41, %v1329_v5  ;;  %v2419_v51 = vsel %vm1889_vm15, 1.0, %v2564_v7  ;;  %v1121_v9 = vmul.u32 58254, %v1117_v8  ;;  %v1122_v0 = vmul.u32 14564, %v1118_v47 }
  0xf9   : > { %v1336_v55 = vsel %vm1335_vm1, 1, %v2563_v42  ;;  %v3194_v59 = vmul.f32 %v3090_v13, %v3090_v13  ;;  %v3196_v44 = vmul.f32 %v2419_v51, %v561_v35  ;;  %v878_v28 = vmul.u32 18, %v877_v49 }
  0xfa   : > { %v1338_v3 = vadd.s32 %v1336_v55, %v1334_v33  ;;  %v1330_v1 = vshrl.u32 %v1325_v29, 16  ;;  %v1124_v61 = vshll.u32 %v1121_v9, 16  ;;  %v1126_v50 = vshll.u32 %v1122_v0, 16 }
  0xfb   : > { %v3199_v6 = vadd.s32 64, %v2739_v60  ;;  %v2033_v10 = vpack.c.bf16 %v3196_v44, %v3196_v44  ;;  %v541_v11 = vadd.f32 %v2853_v22, %v540_v52  ;;  %v879_v12 = vsub.s32 %v3124_v2, %v878_v28 }
  0xfc   : > { %v1123_v13 = vmul.u32 58254, %v1118_v47  ;;  %v3207_v4 = vmul.f32 %v3120_v57, %v3120_v57  ;;  %v1339_v15 = vadd.s32 %v1338_v3, %v1328_v48  ;;  %vm1128_vm2 = vc.u32 %v1120_v40, %v1124_v61 }
  0xfd   : > { %v1130_v16 = vadd.s32 %v1124_v61, %v1120_v40  ;;  %2070 = vst.msk [vmem:[%s2891_s11 + $0x3c] sm:$0xf] %vm2054_vm13, %v2033_v10  ;;  %vm1701_vm3 = vcmp.ne.s32.totalorder %v879_v12, 0  ;;  %vm1737_vm4 = vcmp.lt.s32.totalorder %v879_v12, 0  ;;  %v1809_v19 = vadd.s32 18, %v879_v12 }
  0xfe   : > { %v1125_v21 = vshrl.u32 %v1121_v9, 16  ;;  %vm1773_vm5 = vmand %vm1737_vm4, %vm1701_vm3  ;;  %v1340_v27 = vadd.s32 %v1339_v15, %v1330_v1  ;;  %v1129_v22 = vsel %vm1128_vm2, 1, %v2563_v42  ;;  %v885_v2 = vand.u32 65535, %v3199_v6 }
  0xff   : > { %vm1132_vm6 = vc.u32 %v1130_v16, %v1126_v50  ;;  %v1845_v29 = vsel %vm1773_vm5, %v1809_v19, %v879_v12  ;;  %v1131_v35 = vadd.s32 %v1129_v22, %v1123_v13  ;;  %v886_v14 = vshrl.u32 %v3199_v6, 16 }
 0x100   : > { %v1133_v36 = vsel %vm1132_vm6, 1, %v2563_v42  ;;  %vm1881_vm7 = vcmp.lt.s32.totalorder %v1845_v29, 16  ;;  %v1341_v37 = vshrl.u32 %v1340_v27, 4  ;;  %v1127_v39 = vshrl.u32 %v1122_v0, 16 }
 0x101   : > { %v889_v5 = vmul.u32 58254, %v885_v2  ;;  %v2411_v38 = vsel %vm1881_vm7, 1.0, %v2564_v7  ;;  %v1135_v8 = vadd.s32 %v1133_v36, %v1131_v35  ;;  %v888_v30 = vmul.u32 14564, %v885_v2 }
 0x102   : > { %v890_v48 = vmul.u32 14564, %v886_v14  ;;  %v1989_v41 = vmul.f32 %v2411_v38, %v541_v11  ;;  %v581_v45 = vadd.f32 %v3219_v43, %v580_v32  ;;  %v1342_v47 = vmul.u32 18, %v1341_v37 }
 0x103   : > { %v892_v40 = vshll.u32 %v889_v5, 16  ;;  %v1136_v49 = vadd.s32 %v1135_v8, %v1125_v21  ;;  %v891_v33 = vmul.u32 58254, %v886_v14  ;;  %v893_v51 = vshrl.u32 %v889_v5, 16 }
 0x104   : > { %v894_v52 = vshll.u32 %v890_v48, 16  ;;  %v2025_v55 = vpack.c.bf16 %v1989_v41, %v1989_v41  ;;  %v2104_v9 = vsel %vm459_vm0, %v1989_v41, 0.0  ;;  %v2177_v0 = vmul.f32 %v1989_v41, %v1989_v41 }
 0x105   : > { %v1343_v28 = vsub.s32 %v3158_v24, %v1342_v47  ;;  %v3225_v3 = vadd.f32 %v2104_v9, %v3145_v46  ;;  %v1137_v1 = vadd.s32 %v1136_v49, %v1127_v39  ;;  %vm896_vm8 = vc.u32 %v888_v30, %v892_v40 }
 0x106   : > { %v898_v61 = vadd.s32 %v892_v40, %v888_v30  ;;  %2062 = vst.msk [vmem:[%s2891_s11 + $0x1c] sm:$0xf] %vm2054_vm13, %v2025_v55  ;;  %v2219_v50 = vsel %vm459_vm0, %v2177_v0, 0.0  ;;  %v897_v24 = vsel %vm896_vm8, 1, %v2563_v42  ;;  %v3236_v16 = vadd.s32 192, %v2739_v60  ;;  %v563_v30 = vpop.f32.mrf.mxu1 }
 0x107   : > { %vm1717_vm9 = vcmp.ne.s32.totalorder %v1343_v28, 0  ;;  %vm1753_vm10 = vcmp.lt.s32.totalorder %v1343_v28, 0  ;;  %v1825_v10 = vadd.s32 18, %v1343_v28  ;;  %v3231_v11 = vadd.f32 %v2219_v50, %v3154_v58 }
 0x108   : > { %vm1789_vm11 = vmand %vm1753_vm10, %vm1717_vm9  ;;  %v1138_v12 = vshrl.u32 %v1137_v1, 4  ;;  %vm900_vm12 = vc.u32 %v898_v61, %v894_v52  ;;  %v899_v13 = vadd.s32 %v897_v24, %v891_v33  ;;  %v895_v21 = vshrl.u32 %v890_v48, 16 }
 0x109   : > { %v1861_v46 = vsel %vm1789_vm11, %v1825_v10, %v1343_v28  ;;  %v901_v15 = vsel %vm900_vm12, 1, %v2563_v42  ;;  %v3239_v27 = vadd.s32 136, %v2739_v60  ;;  %v1349_v2 = vand.u32 65535, %v3236_v16 }
 0x10a   : > { %vm1897_vm14 = vcmp.lt.s32.totalorder %v1861_v46, 16  ;;  %v1139_v19 = vmul.u32 18, %v1138_v12  ;;  %v903_v22 = vadd.s32 %v901_v15, %v899_v13  ;;  %v1350_v29 = vshrl.u32 %v3236_v16, 16  ;;  %v543_v46 = vpop.f32.mrf.mxu0 }
 0x10b   : > { %v2427_v58 = vsel %vm1897_vm14, 1.0, %v2564_v7  ;;  %v3246_v32 = vsel %vm459_vm0, %v3194_v59, 0.0  ;;  %v3250_v35 = vsel %vm459_vm0, %v3120_v57, 0.0  ;;  %v3257_v37 = vsel %vm459_vm0, %v3207_v4, 0.0 }
 0x10c   : > { %v3252_v36 = vmul.f32 %v2427_v58, %v581_v45  ;;  %v1140_v14 = vsub.s32 %v3174_v18, %v1139_v19  ;;  %v904_v39 = vadd.s32 %v903_v22, %v893_v51  ;;  %v1353_v5 = vmul.u32 58254, %v1349_v2 }
 0x10d   : > { %v1354_v38 = vmul.u32 14564, %v1350_v29  ;;  %v1352_v8 = vmul.u32 14564, %v1349_v2  ;;  %v1146_v57 = vand.u32 65535, %v3239_v27  ;;  %v1147_v18 = vshrl.u32 %v3239_v27, 16 }
 0x10e   : > { %v2041_v59 = vpack.c.bf16 %v3252_v36, %v3252_v36  ;;  %vm1710_vm15 = vcmp.ne.s32.totalorder %v1140_v14, 0  ;;  %vm1746_vm1 = vcmp.lt.s32.totalorder %v1140_v14, 0  ;;  %v1818_v48 = vadd.s32 18, %v1140_v14 }
 0x10f   : > { %v905_v41 = vadd.s32 %v904_v39, %v895_v21  ;;  %v564_v4 = vadd.f32 %v3219_v43, %v563_v30  ;;  %vm1782_vm2 = vmand %vm1746_vm1, %vm1710_vm15  ;;  %v1355_v45 = vmul.u32 58254, %v1350_v29  ;;  %v1356_v47 = vshll.u32 %v1353_v5, 16 }
 0x110   : > { %2078 = vst.msk [vmem:[%s2891_s11 + $0x5c] sm:$0xf] %vm2054_vm13, %v2041_v59  ;;  %v1358_v40 = vshll.u32 %v1354_v38, 16  ;;  %v3268_v49 = vmul.f32 %v3171_v62, %v3171_v62  ;;  %v1854_v33 = vsel %vm1782_vm2, %v1818_v48, %v1140_v14  ;;  %v1357_v52 = vshrl.u32 %v1353_v5, 16 }
 0x111   : > { %v906_v51 = vshrl.u32 %v905_v41, 4  ;;  %vm1890_vm3 = vcmp.lt.s32.totalorder %v1854_v33, 16  ;;  %vm1360_vm4 = vc.u32 %v1352_v8, %v1356_v47  ;;  %v1362_v55 = vadd.s32 %v1356_v47, %v1352_v8 }
 0x112   : > { %v1150_v9 = vmul.u32 58254, %v1146_v57  ;;  %v2420_v0 = vsel %vm1890_vm3, 1.0, %v2564_v7  ;;  %v1361_v1 = vsel %vm1360_vm4, 1, %v2563_v42  ;;  %v1151_v61 = vmul.u32 14564, %v1147_v18 }
 0x113   : > { %v907_v28 = vmul.u32 18, %v906_v51  ;;  %v3272_v50 = vmul.f32 %v2420_v0, %v564_v4  ;;  %v1363_v10 = vadd.s32 %v1361_v1, %v1355_v45  ;;  %vm1364_vm5 = vc.u32 %v1362_v55, %v1358_v40 }
 0x114   : > { %v1149_v12 = vmul.u32 14564, %v1146_v57  ;;  %v2185_v24 = vmul.f32 %v3196_v44, %v3196_v44  ;;  %v1365_v15 = vsel %vm1364_vm5, 1, %v2563_v42  ;;  %v1153_v19 = vshll.u32 %v1150_v9, 16 }
 0x115   : > { %v908_v13 = vsub.s32 %v3199_v6, %v907_v28  ;;  %v2034_v21 = vpack.c.bf16 %v3272_v50, %v3272_v50  ;;  %v1359_v58 = vshrl.u32 %v1354_v38, 16  ;;  %v1367_v22 = vadd.s32 %v1365_v15, %v1363_v10 }
 0x116   : > { %v1152_v2 = vmul.u32 58254, %v1147_v18  ;;  %v1155_v14 = vshll.u32 %v1151_v61, 16  ;;  %v3282_v39 = vsel %vm459_vm0, %v3196_v44, 0.0  ;;  %v544_v6 = vadd.f32 %v3219_v43, %v543_v46 }
 0x117   : > { %vm1702_vm6 = vcmp.ne.s32.totalorder %v908_v13, 0  ;;  %vm1738_vm7 = vcmp.lt.s32.totalorder %v908_v13, 0  ;;  %v1810_v29 = vadd.s32 18, %v908_v13  ;;  %2071 = vst.msk [vmem:[%s2891_s11 + $0x40] sm:$0xf] %vm2054_vm13, %v2034_v21  ;;  %v1368_v5 = vadd.s32 %v1367_v22, %v1357_v52 }
 0x118   : > { %vm1774_vm8 = vmand %vm1738_vm7, %vm1702_vm6  ;;  %vm1157_vm9 = vc.u32 %v1149_v12, %v1153_v19  ;;  %v3288_v59 = vsel %vm459_vm0, %v2185_v24, 0.0  ;;  %v1159_v57 = vadd.s32 %v1153_v19, %v1149_v12  ;;  %v3292_v44 = vadd.s32 72, %v2739_v60 }
 0x119   : > { %v1846_v38 = vsel %vm1774_vm8, %v1810_v29, %v908_v13  ;;  %v1158_v8 = vsel %vm1157_vm9, 1, %v2563_v42  ;;  %v1369_v30 = vadd.s32 %v1368_v5, %v1359_v58  ;;  %v1154_v18 = vshrl.u32 %v1150_v9, 16 }
 0x11a   : > { %vm1882_vm10 = vcmp.lt.s32.totalorder %v1846_v38, 16  ;;  %v1160_v48 = vadd.s32 %v1158_v8, %v1152_v2  ;;  %vm1161_vm11 = vc.u32 %v1159_v57, %v1155_v14  ;;  %v3296_v4 = vadd.s32 200, %v2739_v60 }
 0x11b   : > { %v2412_v41 = vsel %vm1882_vm10, 1.0, %v2564_v7  ;;  %v1370_v47 = vshrl.u32 %v1369_v30, 4  ;;  %v1162_v40 = vsel %vm1161_vm11, 1, %v2563_v42  ;;  %v914_v33 = vand.u32 65535, %v3292_v44 }
 0x11c   : > { %v1990_v45 = vmul.f32 %v2412_v41, %v544_v6  ;;  %v1156_v51 = vshrl.u32 %v1151_v61, 16  ;;  %v1164_v52 = vadd.s32 %v1162_v40, %v1160_v48  ;;  %v915_v55 = vshrl.u32 %v3292_v44, 16  ;;  %v565_v48 = vpop.f32.mrf.mxu1 }
 0x11d   : > { %v1378_v0 = vand.u32 65535, %v3296_v4  ;;  %v1371_v10 = vmul.u32 18, %v1370_v47  ;;  %v917_v46 = vmul.u32 14564, %v914_v33  ;;  %v918_v13 = vmul.u32 58254, %v914_v33 }
 0x11e   : > { %v2026_v28 = vpack.c.bf16 %v1990_v45, %v1990_v45  ;;  %v2106_v9 = vsel %vm459_vm0, %v1990_v45, 0.0  ;;  %v2178_v1 = vmul.f32 %v1990_v45, %v1990_v45  ;;  %v1165_v24 = vadd.s32 %v1164_v52, %v1154_v18 }
 0x11f   : > { %v3304_v12 = vadd.f32 %v2106_v9, %v3225_v3  ;;  %v1372_v15 = vsub.s32 %v3236_v16, %v1371_v10  ;;  %v919_v19 = vmul.u32 14564, %v915_v55  ;;  %v1379_v21 = vshrl.u32 %v3296_v4, 16  ;;  %v583_v3 = vpop.f32.mrf.mxu2 }
 0x120   : > { %2063 = vst.msk [vmem:[%s2891_s11 + $0x20] sm:$0xf] %vm2054_vm13, %v2026_v28  ;;  %v2221_v61 = vsel %vm459_vm0, %v2178_v1, 0.0  ;;  %v1166_v22 = vadd.s32 %v1165_v24, %v1156_v51  ;;  %v920_v2 = vmul.u32 58254, %v915_v55  ;;  %v921_v29 = vshll.u32 %v918_v13, 16 }
 0x121   : > { %v3312_v58 = vadd.f32 %v2221_v61, %v3231_v11  ;;  %vm1718_vm12 = vcmp.ne.s32.totalorder %v1372_v15, 0  ;;  %vm1754_vm14 = vcmp.lt.s32.totalorder %v1372_v15, 0  ;;  %v1826_v14 = vadd.s32 18, %v1372_v15 }
 0x122   : > { %v923_v6 = vshll.u32 %v919_v19, 16  ;;  %v584_v5 = vadd.f32 %v3219_v43, %v583_v3  ;;  %vm1790_vm15 = vmand %vm1754_vm14, %vm1718_vm12  ;;  %v1167_v38 = vshrl.u32 %v1166_v22, 4  ;;  %vm925_vm1 = vc.u32 %v917_v46, %v921_v29 }
 0x123   : > { %v927_v16 = vadd.s32 %v921_v29, %v917_v46  ;;  %v1862_v8 = vsel %vm1790_vm15, %v1826_v14, %v1372_v15  ;;  %v922_v57 = vshrl.u32 %v918_v13, 16  ;;  %v926_v30 = vsel %vm925_vm1, 1, %v2563_v42 }
 0x124   : > { %v1382_v11 = vmul.u32 58254, %v1378_v0  ;;  %vm1898_vm2 = vcmp.lt.s32.totalorder %v1862_v8, 16  ;;  %v1168_v41 = vmul.u32 18, %v1167_v38  ;;  %v928_v18 = vadd.s32 %v926_v30, %v920_v2  ;;  %v545_v38 = vpop.f32.mrf.mxu0 }
 0x125   : > { %vm929_vm3 = vc.u32 %v927_v16, %v923_v6  ;;  %v2428_v45 = vsel %vm1898_vm2, 1.0, %v2564_v7  ;;  %v1381_v40 = vmul.u32 14564, %v1378_v0  ;;  %v1383_v33 = vmul.u32 14564, %v1379_v21 }
 0x126   : > { %v930_v47 = vsel %vm929_vm3, 1, %v2563_v42  ;;  %v3318_v51 = vmul.f32 %v2428_v45, %v584_v5  ;;  %v1169_v52 = vsub.s32 %v3239_v27, %v1168_v41  ;;  %v1385_v28 = vshll.u32 %v1382_v11, 16 }
 0x127   : > { %v932_v55 = vadd.s32 %v930_v47, %v928_v18  ;;  %v3323_v9 = vmul.f32 %v3252_v36, %v3252_v36  ;;  %v566_v1 = vadd.f32 %v3219_v43, %v565_v48  ;;  %v924_v10 = vshrl.u32 %v919_v19, 16  ;;  %v585_v8 = vpop.f32.mrf.mxu2 }
 0x128   : > { %v1384_v24 = vmul.u32 58254, %v1379_v21  ;;  %v3328_v46 = vsel %vm459_vm0, %v3272_v50, 0.0  ;;  %v2042_v0 = vpack.c.bf16 %v3318_v51, %v3318_v51  ;;  %vm1711_vm4 = vcmp.ne.s32.totalorder %v1169_v52, 0 }
 0x129   : > { %v1387_v27 = vshll.u32 %v1383_v33, 16  ;;  %vm1747_vm5 = vcmp.lt.s32.totalorder %v1169_v52, 0  ;;  %v1819_v13 = vadd.s32 18, %v1169_v52  ;;  %v933_v61 = vadd.s32 %v932_v55, %v922_v57 }
 0x12a   : > { %vm1389_vm6 = vc.u32 %v1381_v40, %v1385_v28  ;;  %v2186_v15 = vmul.f32 %v3272_v50, %v3272_v50  ;;  %2079 = vst.msk [vmem:[%s2891_s11 + $0x60] sm:$0xf] %vm2054_vm13, %v2042_v0  ;;  %vm1783_vm7 = vmand %vm1747_vm5, %vm1711_vm4  ;;  %v1391_v21 = vadd.s32 %v1385_v28, %v1381_v40  ;;  %v3338_v22 = vadd.s32 144, %v2739_v60 }
 0x12b   : > { %v1390_v19 = vsel %vm1389_vm6, 1, %v2563_v42  ;;  %v1855_v2 = vsel %vm1783_vm7, %v1819_v13, %v1169_v52  ;;  %v934_v29 = vadd.s32 %v933_v61, %v924_v10  ;;  %v1386_v3 = vshrl.u32 %v1382_v11, 16 }
 0x12c   : > { %v1392_v14 = vadd.s32 %v1390_v19, %v1384_v24  ;;  %vm1891_vm8 = vcmp.lt.s32.totalorder %v1855_v2, 16  ;;  %vm1393_vm9 = vc.u32 %v1391_v21, %v1387_v27  ;;  %v1175_v6 = vand.u32 65535, %v3338_v22  ;;  %v568_v24 = vpop.f32.mrf.mxu1 }
 0x12d   : > { %v1176_v5 = vshrl.u32 %v3338_v22, 16  ;;  %v2421_v50 = vsel %vm1891_vm8, 1.0, %v2564_v7  ;;  %v935_v16 = vshrl.u32 %v934_v29, 4  ;;  %v1394_v57 = vsel %vm1393_vm9, 1, %v2563_v42 }
 0x12e   : > { %v3345_v30 = vadd.s32 240, %v2739_v60  ;;  %v3347_v48 = vmul.f32 %v2421_v50, %v566_v1  ;;  %v1388_v11 = vshrl.u32 %v1383_v33, 16  ;;  %v1396_v41 = vadd.s32 %v1394_v57, %v1392_v14 }
 0x12f   : > { %v1179_v18 = vmul.u32 58254, %v1175_v6  ;;  %v3350_v45 = vsel %vm459_vm0, %v2186_v15, 0.0  ;;  %v936_v47 = vmul.u32 18, %v935_v16  ;;  %v1178_v40 = vmul.u32 14564, %v1175_v6 }
 0x130   : > { %v1180_v52 = vmul.u32 14564, %v1176_v5  ;;  %v2035_v55 = vpack.c.bf16 %v3347_v48, %v3347_v48  ;;  %v546_v28 = vadd.f32 %v3219_v43, %v545_v38  ;;  %v3356_v10 = vadd.f32 %v3219_v43, %v585_v8 }
 0x131   : > { %v1397_v1 = vadd.s32 %v1396_v41, %v1386_v3  ;;  %v937_v33 = vsub.s32 %v3292_v44, %v936_v47  ;;  %v1181_v0 = vmul.u32 58254, %v1176_v5  ;;  %v1182_v27 = vshll.u32 %v1179_v18, 16 }
 0x132   : > { %v1523_v13 = vand.u32 65535, %v3345_v30  ;;  %2072 = vst.msk [vmem:[%s2891_s11 + $0x44] sm:$0xf] %vm2054_vm13, %v2035_v55  ;;  %v3363_v15 = vadd.f32 %v3219_v43, %v568_v24  ;;  %v1184_v19 = vshll.u32 %v1180_v52, 16  ;;  %v1524_v21 = vshrl.u32 %v3345_v30, 16 }
 0x133   : > { %v1398_v61 = vadd.s32 %v1397_v1, %v1388_v11  ;;  %vm1703_vm10 = vcmp.ne.s32.totalorder %v937_v33, 0  ;;  %vm1739_vm11 = vcmp.lt.s32.totalorder %v937_v33, 0  ;;  %v1811_v2 = vadd.s32 18, %v937_v33 }
 0x134   : > { %vm1186_vm12 = vc.u32 %v1178_v40, %v1182_v27  ;;  %vm1775_vm14 = vmand %vm1739_vm11, %vm1703_vm10  ;;  %v1188_v3 = vadd.s32 %v1182_v27, %v1178_v40  ;;  %v1526_v14 = vmul.u32 14564, %v1523_v13  ;;  %v1527_v50 = vmul.u32 58254, %v1523_v13 }
 0x135   : > { %v1399_v44 = vshrl.u32 %v1398_v61, 4  ;;  %v1187_v29 = vsel %vm1186_vm12, 1, %v2563_v42  ;;  %v1847_v6 = vsel %vm1775_vm14, %v1811_v2, %v937_v33  ;;  %v3367_v38 = vmul.u32 14564, %v1524_v21 }
 0x136   : > { %v1189_v5 = vadd.s32 %v1187_v29, %v1181_v0  ;;  %vm1883_vm15 = vcmp.lt.s32.totalorder %v1847_v6, 16  ;;  %v1183_v8 = vshrl.u32 %v1179_v18, 16  ;;  %vm1190_vm1 = vc.u32 %v1188_v3, %v1184_v19 }
 0x137   : > { %v1400_v16 = vmul.u32 18, %v1399_v44  ;;  %v2413_v57 = vsel %vm1883_vm15, 1.0, %v2564_v7  ;;  %v1185_v11 = vshrl.u32 %v1180_v52, 16  ;;  %v1191_v41 = vsel %vm1190_vm1, 1, %v2563_v42 }
 0x138   : > { %v1530_v47 = vshll.u32 %v1527_v50, 16  ;;  %v1991_v55 = vmul.f32 %v2413_v57, %v546_v28  ;;  %v1193_v1 = vadd.s32 %v1191_v41, %v1189_v5  ;;  %v1532_v33 = vshll.u32 %v3367_v38, 16 }
 0x139   : > { %v1401_v40 = vsub.s32 %v3296_v4, %v1400_v16  ;;  %v1529_v24 = vmul.u32 58254, %v1524_v21  ;;  %v1531_v0 = vshrl.u32 %v1527_v50, 16  ;;  %v3380_v2 = vadd.s32 208, %v2739_v60 }
 0x13a   : > { %vm1534_vm2 = vc.u32 %v1526_v14, %v1530_v47  ;;  %v1536_v27 = vadd.s32 %v1530_v47, %v1526_v14  ;;  %v2027_v13 = vpack.c.bf16 %v1991_v55, %v1991_v55  ;;  %v2108_v18 = vsel %vm459_vm0, %v1991_v55, 0.0 }
 0x13b   : > { %v2179_v61 = vmul.f32 %v1991_v55, %v1991_v55  ;;  %vm1719_vm3 = vcmp.ne.s32.totalorder %v1401_v40, 0  ;;  %v2109_v52 = vadd.f32 %v2108_v18, %v3304_v12  ;;  %vm1755_vm4 = vcmp.lt.s32.totalorder %v1401_v40, 0 }
 0x13c   : > { %v1827_v19 = vadd.s32 18, %v1401_v40  ;;  %v1194_v28 = vadd.s32 %v1193_v1, %v1183_v8  ;;  %2064 = vst.msk [vmem:[%s2891_s11 + $0x24] sm:$0xf] %vm2054_vm13, %v2027_v13  ;;  %vm1791_vm5 = vmand %vm1755_vm4, %vm1719_vm3  ;;  %v1535_v21 = vsel %vm1534_vm2, 1, %v2563_v42  ;;  %vm1538_vm6 = vc.u32 %v1536_v27, %v1532_v33 }
 0x13d   : > { %v2223_v4 = vsel %vm459_vm0, %v2179_v61, 0.0  ;;  %v2111_v44 = vadd.f32 %v3012_v20, %v2109_v52  ;;  %v1537_v14 = vadd.s32 %v1535_v21, %v1529_v24  ;;  %v1539_v6 = vsel %vm1538_vm6, 1, %v2563_v42 }
 0x13e   : > { %v2224_v29 = vadd.f32 %v2223_v4, %v3312_v58  ;;  %v1863_v3 = vsel %vm1791_vm5, %v1827_v19, %v1401_v40  ;;  %v1195_v12 = vadd.s32 %v1194_v28, %v1185_v11  ;;  %v1407_v5 = vand.u32 65535, %v3380_v2 }
 0x13f   : > { %vm1899_vm7 = vcmp.lt.s32.totalorder %v1863_v3, 16  ;;  %v2113_v50 = vadd.f32 %v3020_v26, %v2111_v44  ;;  %v1533_v20 = vshrl.u32 %v3367_v38, 16  ;;  %v1541_v58 = vadd.s32 %v1539_v6, %v1537_v14 }
 0x140   : > { %v2226_v16 = vadd.f32 %v3016_v25, %v2224_v29  ;;  %v2429_v8 = vsel %vm1899_vm7, 1.0, %v2564_v7  ;;  %v1196_v57 = vshrl.u32 %v1195_v12, 4  ;;  %v1408_v11 = vshrl.u32 %v3380_v2, 16 }
 0x141   : > { %v3390_v41 = vmul.f32 %v2429_v8, %v3356_v10  ;;  %v2115_v47 = vadd.f32 %v3094_v34, %v2113_v50  ;;  %v3396_v26 = vmul.u32 58254, %v1407_v5  ;;  %v2187_v25 = vmul.f32 %v3347_v48, %v3347_v48  ;;  %v598_v34 = vpop.f32.mrf.mxu3 }
 0x142   : > { %v2228_v55 = vadd.f32 %v3087_v31, %v2226_v16  ;;  %v1197_v40 = vmul.u32 18, %v1196_v57  ;;  %v1542_v1 = vadd.s32 %v1541_v58, %v1531_v0  ;;  %v1410_v33 = vmul.u32 14564, %v1407_v5 }
 0x143   : > { %v2043_v10 = vpack.c.bf16 %v3390_v41, %v3390_v41  ;;  %v2117_v38 = vadd.f32 %v3162_v63, %v2115_v47  ;;  %v3405_v13 = vmul.u32 14564, %v1408_v11  ;;  %v2124_v31 = vsel %vm459_vm0, %v3347_v48, 0.0 }
 0x144   : > { %v2230_v24 = vadd.f32 %v3098_v17, %v2228_v55  ;;  %v1198_v27 = vsub.s32 %v3338_v22, %v1197_v40  ;;  %v599_v18 = vadd.f32 %v3219_v43, %v598_v34  ;;  %v1543_v61 = vadd.s32 %v1542_v1, %v1533_v20 }
 0x145   : > { %2080 = vst.msk [vmem:[%s2891_s11 + $0x64] sm:$0xf] %vm2054_vm13, %v2043_v10  ;;  %v1414_v0 = vshll.u32 %v3396_v26, 16  ;;  %v2239_v63 = vsel %vm459_vm0, %v2187_v25, 0.0  ;;  %v2119_v22 = vadd.f32 %v3250_v35, %v2117_v38  ;;  %v1413_v28 = vmul.u32 58254, %v1408_v11 }
 0x146   : > { %v2232_v52 = vadd.f32 %v3165_v54, %v2230_v24  ;;  %vm1712_vm8 = vcmp.ne.s32.totalorder %v1198_v27, 0  ;;  %vm1748_vm9 = vcmp.lt.s32.totalorder %v1198_v27, 0  ;;  %v1820_v17 = vadd.s32 18, %v1198_v27 }
 0x147   : > { %vm1784_vm10 = vmand %vm1748_vm9, %vm1712_vm8  ;;  %v1544_v19 = vshrl.u32 %v1543_v61, 4  ;;  %v1416_v21 = vshll.u32 %v3405_v13, 16  ;;  %vm1418_vm11 = vc.u32 %v1410_v33, %v1414_v0  ;;  %v2121_v44 = vadd.f32 %v3282_v39, %v2119_v22 }
 0x148   : > { %v1856_v48 = vsel %vm1784_vm10, %v1820_v17, %v1198_v27  ;;  %v2234_v4 = vadd.f32 %v3257_v37, %v2232_v52  ;;  %v1419_v29 = vsel %vm1418_vm11, 1, %v2563_v42  ;;  %v1415_v35 = vshrl.u32 %v3396_v26, 16 }
 0x149   : > { %vm1892_vm12 = vcmp.lt.s32.totalorder %v1856_v48, 16  ;;  %v1545_v54 = vmul.u32 18, %v1544_v19  ;;  %v1420_v14 = vadd.s32 %v1414_v0, %v1410_v33  ;;  %v2123_v37 = vadd.f32 %v3328_v46, %v2121_v44 }
 0x14a   : > { %v2422_v3 = vsel %vm1892_vm12, 1.0, %v2564_v7  ;;  %v2236_v12 = vadd.f32 %v3288_v59, %v2234_v4  ;;  %v1417_v50 = vshrl.u32 %v3405_v13, 16  ;;  %v1421_v16 = vadd.s32 %v1419_v29, %v1413_v28 }
 0x14b   : > { %v2000_v6 = vmul.f32 %v2422_v3, %v3363_v15  ;;  %v1546_v5 = vsub.s32 %v3345_v30, %v1545_v54  ;;  %vm1422_vm14 = vc.u32 %v1420_v14, %v1416_v21  ;;  %v3429_v8 = vadd.s32 152, %v2739_v60 }
 0x14c   : > { %v2238_v39 = vadd.f32 %v3350_v45, %v2236_v12  ;;  %v2125_v57 = vadd.f32 %v2124_v31, %v2123_v37  ;;  %v1423_v11 = vsel %vm1422_vm14, 1, %v2563_v42  ;;  %v3443_v33 = vadd.s32 248, %v2739_v60  ;;  %v570_v12 = vpop.f32.mrf.mxu1 }
 0x14d   : > { %v2036_v59 = vpack.c.bf16 %v2000_v6, %v2000_v6  ;;  %v2126_v20 = vsel %vm459_vm0, %v2000_v6, 0.0  ;;  %v2188_v58 = vmul.f32 %v2000_v6, %v2000_v6  ;;  %vm1724_vm15 = vcmp.ne.s32.totalorder %v1546_v5, 0 }
 0x14e   : > { %v2240_v15 = vadd.f32 %v2239_v63, %v2238_v39  ;;  %vm1760_vm1 = vcmp.lt.s32.totalorder %v1546_v5, 0  ;;  %v1832_v46 = vadd.s32 18, %v1546_v5  ;;  %v3434_v30 = vadd.f32 %v2126_v20, %v2125_v57 }
 0x14f   : > { %2073 = vst.msk [vmem:[%s2891_s11 + $0x48] sm:$0xf] %vm2054_vm13, %v2036_v59  ;;  %v2241_v45 = vsel %vm459_vm0, %v2188_v58, 0.0  ;;  %vm1796_vm2 = vmand %vm1760_vm1, %vm1724_vm15  ;;  %v1204_v47 = vand.u32 65535, %v3429_v8  ;;  %v1425_v26 = vadd.s32 %v1423_v11, %v1421_v16  ;;  %v1205_v25 = vshrl.u32 %v3429_v8, 16 }
 0x150   : > { %v3439_v55 = vadd.f32 %v2241_v45, %v2240_v15  ;;  %v1868_v40 = vsel %vm1796_vm2, %v1832_v46, %v1546_v5  ;;  %v3447_v38 = vsel %vm459_vm0, %v3171_v62, 0.0  ;;  %v1552_v0 = vand.u32 65535, %v3443_v33 }
 0x151   : > { %vm1904_vm3 = vcmp.lt.s32.totalorder %v1868_v40, 16  ;;  %v1207_v10 = vmul.u32 14564, %v1204_v47  ;;  %v1208_v1 = vmul.u32 58254, %v1204_v47  ;;  %v1426_v27 = vadd.s32 %v1425_v26, %v1415_v35 }
 0x152   : > { %v2434_v24 = vsel %vm1904_vm3, 1.0, %v2564_v7  ;;  %v1209_v34 = vmul.u32 14564, %v1205_v25  ;;  %v1210_v31 = vmul.u32 58254, %v1205_v25  ;;  %v3455_v52 = vsel %vm459_vm0, %v3268_v49, 0.0 }
 0x153   : > { %v3450_v13 = vmul.f32 %v2434_v24, %v599_v18  ;;  %v1211_v61 = vshll.u32 %v1208_v1, 16  ;;  %v1427_v17 = vadd.s32 %v1426_v27, %v1417_v50  ;;  %v1553_v62 = vshrl.u32 %v3443_v33, 16 }
 0x154   : > { %v1213_v63 = vshll.u32 %v1209_v34, 16  ;;  %v3460_v22 = vsel %vm459_vm0, %v3252_v36, 0.0  ;;  %v3464_v18 = vsel %vm459_vm0, %v3323_v9, 0.0  ;;  %v3470_v49 = vmul.f32 %v3318_v51, %v3318_v51  ;;  %v588_v36 = vpop.f32.mrf.mxu2 }
 0x155   : > { %v2048_v19 = vpack.c.bf16 %v3450_v13, %v3450_v13  ;;  %vm1215_vm4 = vc.u32 %v1207_v10, %v1211_v61  ;;  %v1428_v28 = vshrl.u32 %v1427_v17, 4  ;;  %v1217_v4 = vadd.s32 %v1211_v61, %v1207_v10  ;;  %v600_v10 = vpop.f32.mrf.mxu3 }
 0x156   : > { %v1216_v48 = vsel %vm1215_vm4, 1, %v2563_v42  ;;  %v1555_v44 = vmul.u32 14564, %v1552_v0  ;;  %v1556_v54 = vmul.u32 58254, %v1552_v0  ;;  %v1557_v9 = vmul.u32 14564, %v1553_v62 }
 0x157   : > { %2085 = vst.msk [vmem:[%s2891_s11 + $0x78] sm:$0xf] %vm2054_vm13, %v2048_v19  ;;  %v1218_v21 = vadd.s32 %v1216_v48, %v1210_v31  ;;  %v589_v29 = vadd.f32 %v3219_v43, %v588_v36  ;;  %v1429_v3 = vmul.u32 18, %v1428_v28  ;;  %v1212_v35 = vshrl.u32 %v1208_v1, 16 }
 0x158   : > { %vm1219_vm5 = vc.u32 %v1217_v4, %v1213_v63  ;;  %v1214_v14 = vshrl.u32 %v1209_v34, 16  ;;  %v1559_v37 = vshll.u32 %v1556_v54, 16  ;;  %v1561_v5 = vshll.u32 %v1557_v9, 16 }
 0x159   : > { %v1220_v6 = vsel %vm1219_vm5, 1, %v2563_v42  ;;  %v1430_v50 = vsub.s32 %v3380_v2, %v1429_v3  ;;  %v1558_v16 = vmul.u32 58254, %v1553_v62  ;;  %v3479_v59 = vadd.s32 216, %v2739_v60 }
 0x15a   : > { %v1222_v39 = vadd.s32 %v1220_v6, %v1218_v21  ;;  %v3482_v57 = vadd.f32 %v3219_v43, %v570_v12  ;;  %v1560_v20 = vshrl.u32 %v1556_v54, 16  ;;  %vm1563_vm6 = vc.u32 %v1555_v44, %v1559_v37 }
 0x15b   : > { %v1565_v58 = vadd.s32 %v1559_v37, %v1555_v44  ;;  %vm1720_vm7 = vcmp.ne.s32.totalorder %v1430_v50, 0  ;;  %vm1756_vm8 = vcmp.lt.s32.totalorder %v1430_v50, 0  ;;  %v1828_v15 = vadd.s32 18, %v1430_v50 }
 0x15c   : > { %v1223_v46 = vadd.s32 %v1222_v39, %v1212_v35  ;;  %vm1792_vm9 = vmand %vm1756_vm8, %vm1720_vm7  ;;  %v1564_v45 = vsel %vm1563_vm6, 1, %v2563_v42  ;;  %v1436_v2 = vand.u32 65535, %v3479_v59  ;;  %v1437_v11 = vshrl.u32 %v3479_v59, 16 }
 0x15d   : > { %vm1567_vm10 = vc.u32 %v1565_v58, %v1561_v5  ;;  %v1864_v47 = vsel %vm1792_vm9, %v1828_v15, %v1430_v50  ;;  %v1566_v26 = vadd.s32 %v1564_v45, %v1558_v16  ;;  %v1562_v61 = vshrl.u32 %v1557_v9, 16 }
 0x15e   : > { %v1224_v40 = vadd.s32 %v1223_v46, %v1214_v14  ;;  %v1568_v25 = vsel %vm1567_vm10, 1, %v2563_v42  ;;  %vm1900_vm11 = vcmp.lt.s32.totalorder %v1864_v47, 16  ;;  %v1439_v1 = vmul.u32 14564, %v1436_v2 }
 0x15f   : > { %v1440_v24 = vmul.u32 58254, %v1436_v2  ;;  %v1441_v27 = vmul.u32 14564, %v1437_v11  ;;  %v2430_v34 = vsel %vm1900_vm11, 1.0, %v2564_v7  ;;  %v1570_v0 = vadd.s32 %v1568_v25, %v1566_v26 }
 0x160   : > { %v1225_v31 = vshrl.u32 %v1224_v40, 4  ;;  %v3489_v17 = vmul.f32 %v2430_v34, %v589_v29  ;;  %v1442_v63 = vmul.u32 58254, %v1437_v11  ;;  %v3492_v19 = vadd.s32 256, %v2739_v60 }
 0x161   : > { %v1443_v62 = vshll.u32 %v1440_v24, 16  ;;  %v3495_v48 = vadd.f32 %v3219_v43, %v600_v10  ;;  %v1571_v4 = vadd.s32 %v1570_v0, %v1560_v20  ;;  %v3498_v36 = vadd.s32 224, %v2739_v60 }
 0x162   : > { %v1226_v28 = vmul.u32 18, %v1225_v31  ;;  %v2044_v21 = vpack.c.bf16 %v3489_v17, %v3489_v17  ;;  %v1444_v44 = vshrl.u32 %v1440_v24, 16  ;;  %v1445_v54 = vshll.u32 %v1441_v27, 16 }
 0x163   : > { %vm1447_vm12 = vc.u32 %v1439_v1, %v1443_v62  ;;  %v1572_v29 = vadd.s32 %v1571_v4, %v1562_v61  ;;  %v1449_v12 = vadd.s32 %v1443_v62, %v1439_v1  ;;  %v1446_v35 = vshrl.u32 %v1441_v27, 16 }
 0x164   : > { %v1227_v9 = vsub.s32 %v3429_v8, %v1226_v28  ;;  %v1448_v3 = vsel %vm1447_vm12, 1, %v2563_v42  ;;  %2081 = vst.msk [vmem:[%s2891_s11 + $0x68] sm:$0xf] %vm2054_vm13, %v2044_v21  ;;  %v1581_v6 = vand.u32 65535, %v3492_v19  ;;  %v1582_v37 = vshrl.u32 %v3492_v19, 16 }
 0x165   : > { %v1450_v14 = vadd.s32 %v1448_v3, %v1442_v63  ;;  %v1573_v50 = vshrl.u32 %v1572_v29, 4  ;;  %vm1451_vm2 = vc.u32 %v1449_v12, %v1445_v54  ;;  %v2253_v3 = vsel %vm459_vm0, %v3470_v49, 0.0 }
 0x166   : > { %vm1713_vm14 = vcmp.ne.s32.totalorder %v1227_v9, 0  ;;  %vm1749_vm15 = vcmp.lt.s32.totalorder %v1227_v9, 0  ;;  %v1821_v5 = vadd.s32 18, %v1227_v9  ;;  %v1584_v39 = vmul.u32 14564, %v1581_v6 }
 0x167   : > { %vm1785_vm1 = vmand %vm1749_vm15, %vm1713_vm14  ;;  %v1585_v8 = vmul.u32 58254, %v1581_v6  ;;  %v1586_v16 = vmul.u32 14564, %v1582_v37  ;;  %v1574_v58 = vmul.u32 18, %v1573_v50  ;;  %v1452_v15 = vsel %vm1451_vm2, 1, %v2563_v42  ;;  %v590_v6 = vpop.f32.mrf.mxu2 }
 0x168   : > { %v1857_v20 = vsel %vm1785_vm1, %v1821_v5, %v1227_v9  ;;  %v1587_v46 = vmul.u32 58254, %v1582_v37  ;;  %v1454_v45 = vadd.s32 %v1452_v15, %v1450_v14  ;;  %v1465_v37 = vand.u32 65535, %v3498_v36 }
 0x169   : > { %vm1893_vm3 = vcmp.lt.s32.totalorder %v1857_v20, 16  ;;  %v1588_v2 = vshll.u32 %v1585_v8, 16  ;;  %v1589_v11 = vshrl.u32 %v1585_v8, 16  ;;  %v1575_v40 = vsub.s32 %v3443_v33, %v1574_v58 }
 0x16a   : > { %v2423_v47 = vsel %vm1893_vm3, 1.0, %v2564_v7  ;;  %v1590_v26 = vshll.u32 %v1586_v16, 16  ;;  %v1591_v25 = vshrl.u32 %v1586_v16, 16  ;;  %v1455_v1 = vadd.s32 %v1454_v45, %v1444_v44 }
 0x16b   : > { %v2001_v10 = vmul.f32 %v2423_v47, %v3482_v57  ;;  %vm1592_vm4 = vc.u32 %v1584_v39, %v1588_v2  ;;  %v1594_v24 = vadd.s32 %v1588_v2, %v1584_v39  ;;  %vm1725_vm5 = vcmp.ne.s32.totalorder %v1575_v40, 0 }
 0x16c   : > { %vm1761_vm6 = vcmp.lt.s32.totalorder %v1575_v40, 0  ;;  %v1833_v27 = vadd.s32 18, %v1575_v40  ;;  %v1593_v34 = vsel %vm1592_vm4, 1, %v2563_v42  ;;  %v1456_v63 = vadd.s32 %v1455_v1, %v1446_v35 }
 0x16d   : > { %v2037_v31 = vpack.c.bf16 %v2001_v10, %v2001_v10  ;;  %v2128_v61 = vsel %vm459_vm0, %v2001_v10, 0.0  ;;  %v2189_v0 = vmul.f32 %v2001_v10, %v2001_v10  ;;  %vm1797_vm7 = vmand %vm1761_vm6, %vm1725_vm5  ;;  %v1595_v28 = vadd.s32 %v1593_v34, %v1587_v46 }
 0x16e   : > { %v2129_v33 = vadd.f32 %v2128_v61, %v3434_v30  ;;  %v1869_v62 = vsel %vm1797_vm7, %v1833_v27, %v1575_v40  ;;  %vm1596_vm8 = vc.u32 %v1594_v24, %v1590_v26  ;;  %v1457_v4 = vshrl.u32 %v1456_v63, 4  ;;  %v603_v24 = vpop.f32.mrf.mxu3  ;;  %v3564_v61 = vld [vmem:[%s3692_s2] ss:$0 sm:$0xff] }
 0x16f   : > { %2074 = vst.msk [vmem:[%s2891_s11 + $0x4c] sm:$0xf] %vm2054_vm13, %v2037_v31  ;;  %v2243_v57 = vsel %vm459_vm0, %v2189_v0, 0.0  ;;  %vm1905_vm9 = vcmp.lt.s32.totalorder %v1869_v62, 16  ;;  %v1597_v21 = vsel %vm1596_vm8, 1, %v2563_v42  ;;  %v2138_v30 = vsel %vm459_vm0, %v3318_v51, 0.0 }
 0x170   : > { %v2131_v44 = vadd.f32 %v3103_v53, %v2129_v33  ;;  %v2244_v54 = vadd.f32 %v2243_v57, %v3439_v55  ;;  %v2435_v9 = vsel %vm1905_vm9, 1.0, %v2564_v7  ;;  %v1599_v29 = vadd.s32 %v1597_v21, %v1595_v28 }
 0x171   : > { %v3527_v12 = vmul.f32 %v2435_v9, %v3495_v48  ;;  %v1458_v35 = vmul.u32 18, %v1457_v4  ;;  %v2195_v5 = vmul.f32 %v3390_v41, %v3390_v41  ;;  %v1466_v48 = vshrl.u32 %v3498_v36, 16 }
 0x172   : > { %v2133_v14 = vadd.f32 %v3179_v56, %v2131_v44  ;;  %v2246_v53 = vadd.f32 %v3127_v23, %v2244_v54  ;;  %v1600_v55 = vadd.s32 %v1599_v29, %v1589_v11  ;;  %v2140_v50 = vsel %vm459_vm0, %v3390_v41, 0.0 }
 0x173   : > { %v2049_v51 = vpack.c.bf16 %v3527_v12, %v3527_v12  ;;  %v1459_v49 = vsub.s32 %v3479_v59, %v1458_v35  ;;  %v591_v8 = vadd.f32 %v3219_v43, %v590_v6  ;;  %v1469_v15 = vmul.u32 58254, %v1465_v37 }
 0x174   : > { %v2135_v56 = vadd.f32 %v3447_v38, %v2133_v14  ;;  %v2248_v23 = vadd.f32 %v3246_v32, %v2246_v53  ;;  %v1601_v39 = vadd.s32 %v1600_v55, %v1591_v25  ;;  %v2255_v41 = vsel %vm459_vm0, %v2195_v5, 0.0 }
 0x175   : > { %2086 = vst.msk [vmem:[%s2891_s11 + $0x7c] sm:$0xf] %vm2054_vm13, %v2049_v51  ;;  %vm1721_vm10 = vcmp.ne.s32.totalorder %v1459_v49, 0  ;;  %vm1757_vm11 = vcmp.lt.s32.totalorder %v1459_v49, 0  ;;  %v1829_v16 = vadd.s32 18, %v1459_v49  ;;  %v1468_v46 = vmul.u32 14564, %v1465_v37 }
 0x176   : > { %v2250_v20 = vadd.f32 %v3455_v52, %v2248_v23  ;;  %vm1793_vm12 = vmand %vm1757_vm11, %vm1721_vm10  ;;  %v2137_v59 = vadd.f32 %v3460_v22, %v2135_v56  ;;  %v1602_v58 = vshrl.u32 %v1601_v39, 4  ;;  %v1470_v32 = vmul.u32 14564, %v1466_v48  ;;  %v593_v56 = vpop.f32.mrf.mxu2 }
 0x177   : > { %v1865_v38 = vsel %vm1793_vm12, %v1829_v16, %v1459_v49  ;;  %v2196_v11 = vmul.f32 %v3489_v17, %v3489_v17  ;;  %v1472_v47 = vshll.u32 %v1469_v15, 16  ;;  %v2142_v1 = vsel %vm459_vm0, %v3489_v17, 0.0 }
 0x178   : > { %vm1901_vm14 = vcmp.lt.s32.totalorder %v1865_v38, 16  ;;  %v2139_v45 = vadd.f32 %v2138_v30, %v2137_v59  ;;  %v2252_v2 = vadd.f32 %v3464_v18, %v2250_v20  ;;  %v1603_v43 = vmul.u32 18, %v1602_v58 }
 0x179   : > { %v2431_v52 = vsel %vm1901_vm14, 1.0, %v2564_v7  ;;  %v1474_v40 = vshll.u32 %v1470_v32, 16  ;;  %v1471_v18 = vmul.u32 58254, %v1466_v48  ;;  %vm1476_vm15 = vc.u32 %v1468_v46, %v1472_v47 }
 0x17a   : > { %v3552_v22 = vmul.f32 %v2431_v52, %v591_v8  ;;  %v2141_v26 = vadd.f32 %v2140_v50, %v2139_v45  ;;  %v2254_v25 = vadd.f32 %v2253_v3, %v2252_v2  ;;  %v1604_v10 = vsub.s32 %v3492_v19, %v1603_v43 }
 0x17b   : > { %v1478_v27 = vadd.s32 %v1472_v47, %v1468_v46  ;;  %v604_v19 = vadd.f32 %v3564_v61, %v603_v24  ;;  %v3568_v0 = vadd.s32 264, %v2739_v60  ;;  %v2257_v33 = vsel %vm459_vm0, %v2196_v11, 0.0 }
 0x17c   : > { %v2045_v34 = vpack.c.bf16 %v3552_v22, %v3552_v22  ;;  %v3559_v31 = vadd.f32 %v2142_v1, %v2141_v26  ;;  %v2256_v17 = vadd.f32 %v2255_v41, %v2254_v25  ;;  %vm1726_vm1 = vcmp.ne.s32.totalorder %v1604_v10, 0 }
 0x17d   : > { %vm1762_vm2 = vcmp.lt.s32.totalorder %v1604_v10, 0  ;;  %v1834_v63 = vadd.s32 18, %v1604_v10  ;;  %v1473_v62 = vshrl.u32 %v1469_v15, 16  ;;  %v1477_v28 = vsel %vm1476_vm15, 1, %v2563_v42 }
 0x17e   : > { %2082 = vst.msk [vmem:[%s2891_s11 + $0x6c] sm:$0xf] %vm2054_vm13, %v2045_v34  ;;  %vm1798_vm3 = vmand %vm1762_vm2, %vm1726_vm1  ;;  %vm1480_vm4 = vc.u32 %v1478_v27, %v1474_v40  ;;  %v3574_v57 = vadd.f32 %v2257_v33, %v2256_v17  ;;  %v1479_v21 = vadd.s32 %v1477_v28, %v1471_v18  ;;  %v1610_v54 = vand.u32 65535, %v3568_v0 }
 0x17f   : > { %v1870_v4 = vsel %vm1798_vm3, %v1834_v63, %v1604_v10  ;;  %v1481_v44 = vsel %vm1480_vm4, 1, %v2563_v42  ;;  %v1611_v9 = vshrl.u32 %v3568_v0, 16  ;;  %v1475_v30 = vshrl.u32 %v1470_v32, 16 }
 0x180   : > { %vm1906_vm5 = vcmp.lt.s32.totalorder %v1870_v4, 16  ;;  %v1483_v3 = vadd.s32 %v1481_v44, %v1479_v21  ;;  %v3581_v35 = vadd.s32 232, %v2739_v60  ;;  %v1613_v53 = vmul.u32 14564, %v1610_v54 }
 0x181   : > { %v2436_v29 = vsel %vm1906_vm5, 1.0, %v2564_v7  ;;  %v1614_v6 = vmul.u32 58254, %v1610_v54  ;;  %v1615_v55 = vmul.u32 14564, %v1611_v9  ;;  %v1616_v48 = vmul.u32 58254, %v1611_v9 }
 0x182   : > { %v3583_v14 = vmul.f32 %v2436_v29, %v604_v19  ;;  %v1484_v37 = vadd.s32 %v1483_v3, %v1473_v62  ;;  %v1494_v5 = vand.u32 65535, %v3581_v35  ;;  %v1495_v51 = vshrl.u32 %v3581_v35, 16 }
 0x183   : > { %v1617_v50 = vshll.u32 %v1614_v6, 16  ;;  %v1619_v39 = vshll.u32 %v1615_v55, 16  ;;  %v594_v8 = vadd.f32 %v3564_v61, %v593_v56  ;;  %v1618_v38 = vshrl.u32 %v1614_v6, 16 }
 0x184   : > { %v2050_v49 = vpack.c.bf16 %v3583_v14, %v3583_v14  ;;  %v1485_v23 = vadd.s32 %v1484_v37, %v1475_v30  ;;  %v1497_v20 = vmul.u32 14564, %v1494_v5  ;;  %v1498_v15 = vmul.u32 58254, %v1494_v5 }
 0x185   : > { %vm1621_vm6 = vc.u32 %v1613_v53, %v1617_v50  ;;  %v1623_v16 = vadd.s32 %v1617_v50, %v1613_v53  ;;  %v1499_v41 = vmul.u32 14564, %v1495_v51  ;;  %v3594_v32 = vadd.s32 272, %v2739_v60  ;;  %v605_v53 = vpop.f32.mrf.mxu3 }
 0x186   : > { %2087 = vst.msk [vmem:[%s2891_s11 + $0x80] sm:$0xf] %vm2054_vm13, %v2050_v49  ;;  %v1486_v59 = vshrl.u32 %v1485_v23, 4  ;;  %v1622_v58 = vsel %vm1621_vm6, 1, %v2563_v42  ;;  %v1500_v43 = vmul.u32 58254, %v1495_v51  ;;  %v1501_v11 = vshll.u32 %v1498_v15, 16 }
 0x187   : > { %v1624_v46 = vadd.s32 %v1622_v58, %v1616_v48  ;;  %vm1625_vm7 = vc.u32 %v1623_v16, %v1619_v39  ;;  %v1620_v52 = vshrl.u32 %v1615_v55, 16  ;;  %v1503_v40 = vshll.u32 %v1499_v41, 16 }
 0x188   : > { %v1487_v45 = vmul.u32 18, %v1486_v59  ;;  %v1626_v2 = vsel %vm1625_vm7, 1, %v2563_v42  ;;  %v1639_v26 = vand.u32 65535, %v3594_v32  ;;  %vm1505_vm8 = vc.u32 %v1497_v20, %v1501_v11 }
 0x189   : > { %v1628_v47 = vadd.s32 %v1626_v2, %v1624_v46  ;;  %v1507_v10 = vadd.s32 %v1501_v11, %v1497_v20  ;;  %v1640_v1 = vshrl.u32 %v3594_v32, 16  ;;  %v1502_v18 = vshrl.u32 %v1498_v15, 16 }
 0x18a   : > { %v1488_v25 = vsub.s32 %v3498_v36, %v1487_v45  ;;  %v1506_v27 = vsel %vm1505_vm8, 1, %v2563_v42  ;;  %v1642_v34 = vmul.u32 14564, %v1639_v26  ;;  %v1643_v33 = vmul.u32 58254, %v1639_v26 }
 0x18b   : > { %v1629_v24 = vadd.s32 %v1628_v47, %v1618_v38  ;;  %v1508_v17 = vadd.s32 %v1506_v27, %v1500_v43  ;;  %vm1509_vm12 = vc.u32 %v1507_v10, %v1503_v40  ;;  %v1644_v62 = vmul.u32 14564, %v1640_v1  ;;  %v595_v43 = vpop.f32.mrf.mxu2 }
 0x18c   : > { %vm1722_vm9 = vcmp.ne.s32.totalorder %v1488_v25, 0  ;;  %vm1758_vm10 = vcmp.lt.s32.totalorder %v1488_v25, 0  ;;  %v1830_v19 = vadd.s32 18, %v1488_v25  ;;  %v1510_v36 = vsel %vm1509_vm12, 1, %v2563_v42 }
 0x18d   : > { %vm1794_vm11 = vmand %vm1758_vm10, %vm1722_vm9  ;;  %v1630_v63 = vadd.s32 %v1629_v24, %v1620_v52  ;;  %v1512_v21 = vadd.s32 %v1510_v36, %v1508_v17  ;;  %v1646_v44 = vshll.u32 %v1643_v33, 16  ;;  %v1504_v9 = vshrl.u32 %v1499_v41, 16 }
 0x18e   : > { %v1866_v28 = vsel %vm1794_vm11, %v1830_v19, %v1488_v25  ;;  %v1645_v29 = vmul.u32 58254, %v1640_v1  ;;  %v1648_v30 = vshll.u32 %v1644_v62, 16  ;;  %v3607_v51 = vadd.s32 280, %v2739_v60 }
 0x18f   : > { %vm1902_vm14 = vcmp.lt.s32.totalorder %v1866_v28, 16  ;;  %v1631_v4 = vshrl.u32 %v1630_v63, 4  ;;  %v1513_v55 = vadd.s32 %v1512_v21, %v1502_v18  ;;  %vm1650_vm15 = vc.u32 %v1642_v34, %v1646_v44 }
 0x190   : > { %v2432_v54 = vsel %vm1902_vm14, 1.0, %v2564_v7  ;;  %v1651_v37 = vsel %vm1650_vm15, 1, %v2563_v42  ;;  %v1652_v5 = vadd.s32 %v1646_v44, %v1642_v34  ;;  %v606_v50 = vadd.f32 %v3564_v61, %v605_v53 }
 0x191   : > { %v3603_v3 = vmul.f32 %v2432_v54, %v594_v8  ;;  %v1632_v6 = vmul.u32 18, %v1631_v4  ;;  %v1514_v56 = vadd.s32 %v1513_v55, %v1504_v9  ;;  %v1653_v23 = vadd.s32 %v1651_v37, %v1645_v29 }
 0x192   : > { %vm1654_vm1 = vc.u32 %v1652_v5, %v1648_v30  ;;  %v1647_v8 = vshrl.u32 %v1643_v33, 16  ;;  %v2197_v60 = vmul.f32 %v3552_v22, %v3552_v22  ;;  %v1649_v58 = vshrl.u32 %v1644_v62, 16  ;;  %v608_v33 = vpop.f32.mrf.mxu3 }
 0x193   : > { %v2046_v49 = vpack.c.bf16 %v3603_v3, %v3603_v3  ;;  %v1633_v48 = vsub.s32 %v3568_v0, %v1632_v6  ;;  %v1515_v16 = vshrl.u32 %v1514_v56, 4  ;;  %v1655_v20 = vsel %vm1654_vm1, 1, %v2563_v42 }
 0x194   : > { %v1668_v0 = vand.u32 65535, %v3607_v51  ;;  %v1657_v15 = vadd.s32 %v1655_v20, %v1653_v23  ;;  %v1669_v41 = vshrl.u32 %v3607_v51, 16  ;;  %v3622_v38 = vmul.f32 %v3450_v13, %v3450_v13 }
 0x195   : > { %2083 = vst.msk [vmem:[%s2891_s11 + $0x70] sm:$0xf] %vm2054_vm13, %v2046_v49  ;;  %vm1727_vm2 = vcmp.ne.s32.totalorder %v1633_v48, 0  ;;  %vm1763_vm3 = vcmp.lt.s32.totalorder %v1633_v48, 0  ;;  %v1835_v39 = vadd.s32 18, %v1633_v48  ;;  %v1516_v46 = vmul.u32 18, %v1515_v16 }
 0x196   : > { %vm1799_vm4 = vmand %vm1763_vm3, %vm1727_vm2  ;;  %v1672_v45 = vmul.u32 58254, %v1668_v0  ;;  %v1658_v11 = vadd.s32 %v1657_v15, %v1647_v8  ;;  %v1671_v52 = vmul.u32 14564, %v1668_v0  ;;  %v1673_v47 = vmul.u32 14564, %v1669_v41 }
 0x197   : > { %v1871_v59 = vsel %vm1799_vm4, %v1835_v39, %v1633_v48  ;;  %v2144_v40 = vsel %vm459_vm0, %v3552_v22, 0.0  ;;  %v1517_v25 = vsub.s32 %v3581_v35, %v1516_v46  ;;  %v2259_v24 = vsel %vm459_vm0, %v2197_v60, 0.0 }
 0x198   : > { %vm1907_vm5 = vcmp.lt.s32.totalorder %v1871_v59, 16  ;;  %v1675_v10 = vshll.u32 %v1672_v45, 16  ;;  %v2145_v1 = vadd.f32 %v2144_v40, %v3559_v31  ;;  %v1659_v18 = vadd.s32 %v1658_v11, %v1649_v58 }
 0x199   : > { %v2437_v2 = vsel %vm1907_vm5, 1.0, %v2564_v7  ;;  %v1674_v27 = vmul.u32 58254, %v1669_v41  ;;  %v596_v19 = vadd.f32 %v3564_v61, %v595_v43  ;;  %vm1723_vm6 = vcmp.ne.s32.totalorder %v1517_v25, 0 }
 0x19a   : > { %v3627_v26 = vmul.f32 %v2437_v2, %v606_v50  ;;  %v1677_v17 = vshll.u32 %v1673_v47, 16  ;;  %vm1759_vm7 = vcmp.lt.s32.totalorder %v1517_v25, 0  ;;  %v1831_v22 = vadd.s32 18, %v1517_v25 }
 0x19b   : > { %v1660_v63 = vshrl.u32 %v1659_v18, 4  ;;  %vm1679_vm8 = vc.u32 %v1671_v52, %v1675_v10  ;;  %v2260_v35 = vadd.f32 %v2259_v24, %v3574_v57  ;;  %v2198_v31 = vmul.f32 %v3603_v3, %v3603_v3  ;;  %vm1795_vm9 = vmand %vm1759_vm7, %vm1723_vm6 }
 0x19c   : > { %v2051_v34 = vpack.c.bf16 %v3627_v26, %v3627_v26  ;;  %v1680_v62 = vsel %vm1679_vm8, 1, %v2563_v42  ;;  %v1681_v28 = vadd.s32 %v1675_v10, %v1671_v52  ;;  %v1867_v36 = vsel %vm1795_vm9, %v1831_v22, %v1517_v25  ;;  %v610_v10 = vpop.f32.mrf.mxu3 }
 0x19d   : > { %v609_v4 = vadd.f32 %v3564_v61, %v608_v33  ;;  %v1661_v21 = vmul.u32 18, %v1660_v63  ;;  %v1682_v44 = vadd.s32 %v1680_v62, %v1674_v27  ;;  %v2146_v54 = vsel %vm459_vm0, %v3603_v3, 0.0 }
 0x19e   : > { %2088 = vst.msk [vmem:[%s2891_s11 + $0x84] sm:$0xf] %vm2054_vm13, %v2051_v34  ;;  %vm1903_vm10 = vcmp.lt.s32.totalorder %v1867_v36, 16  ;;  %v1676_v57 = vshrl.u32 %v1672_v45, 16  ;;  %vm1683_vm11 = vc.u32 %v1681_v28, %v1677_v17  ;;  %v2147_v9 = vadd.f32 %v2146_v54, %v2145_v1 }
 0x19f   : > { %v2433_v29 = vsel %vm1903_vm10, 1.0, %v2564_v7  ;;  %v1662_v30 = vsub.s32 %v3594_v32, %v1661_v21  ;;  %v1684_v53 = vsel %vm1683_vm11, 1, %v2563_v42  ;;  %v2261_v6 = vsel %vm459_vm0, %v2198_v31, 0.0 }
 0x1a0   : > { %v2011_v55 = vmul.f32 %v2433_v29, %v596_v19  ;;  %v1678_v37 = vshrl.u32 %v1673_v47, 16  ;;  %v1686_v5 = vadd.s32 %v1684_v53, %v1682_v44  ;;  %v2262_v49 = vadd.f32 %v2261_v6, %v2260_v35 }
 0x1a1   : > { %vm1728_vm12 = vcmp.ne.s32.totalorder %v1662_v30, 0  ;;  %vm1764_vm14 = vcmp.lt.s32.totalorder %v1662_v30, 0  ;;  %v1836_v3 = vadd.s32 18, %v1662_v30  ;;  %v2150_v32 = vsel %vm459_vm0, %v3450_v13, 0.0 }
 0x1a2   : > { %v2047_v48 = vpack.c.bf16 %v2011_v55, %v2011_v55  ;;  %v2148_v50 = vsel %vm459_vm0, %v2011_v55, 0.0  ;;  %v2199_v56 = vmul.f32 %v2011_v55, %v2011_v55  ;;  %vm1800_vm15 = vmand %vm1764_vm14, %vm1728_vm12  ;;  %v1687_v23 = vadd.s32 %v1686_v5, %v1676_v57 }
 0x1a3   : > { %v2149_v42 = vadd.f32 %v2148_v50, %v2147_v9  ;;  %v1872_v39 = vsel %vm1800_vm15, %v1836_v3, %v1662_v30  ;;  %v2201_v8 = vmul.f32 %v3527_v12, %v3527_v12  ;;  %v2265_v20 = vsel %vm459_vm0, %v3622_v38, 0.0 }
 0x1a4   : > { %2084 = vst.msk [vmem:[%s2891_s11 + $0x74] sm:$0xf] %vm2054_vm13, %v2047_v48  ;;  %v2263_v60 = vsel %vm459_vm0, %v2199_v56, 0.0  ;;  %vm1908_vm1 = vcmp.lt.s32.totalorder %v1872_v39, 16  ;;  %v1688_v16 = vadd.s32 %v1687_v23, %v1678_v37  ;;  %v2152_v13 = vsel %vm459_vm0, %v3527_v12, 0.0 }
 0x1a5   : > { %v2151_v0 = vadd.f32 %v2150_v32, %v2149_v42  ;;  %v2264_v59 = vadd.f32 %v2263_v60, %v2262_v49  ;;  %v2438_v58 = vsel %vm1908_vm1, 1.0, %v2564_v7  ;;  %v2202_v15 = vmul.f32 %v3583_v14, %v3583_v14 }
 0x1a6   : > { %v2016_v41 = vmul.f32 %v2438_v58, %v609_v4  ;;  %v1689_v46 = vshrl.u32 %v1688_v16, 4  ;;  %v2267_v43 = vsel %vm459_vm0, %v2201_v8, 0.0  ;;  %v2154_v38 = vsel %vm459_vm0, %v3583_v14, 0.0 }
 0x1a7   : > { %v2153_v45 = vadd.f32 %v2152_v13, %v2151_v0  ;;  %v2266_v2 = vadd.f32 %v2265_v20, %v2264_v59  ;;  %v2203_v47 = vmul.f32 %v3627_v26, %v3627_v26  ;;  %v2269_v12 = vsel %vm459_vm0, %v2202_v15, 0.0 }
 0x1a8   : > { %v2052_v11 = vpack.c.bf16 %v2016_v41, %v2016_v41  ;;  %v1690_v52 = vmul.u32 18, %v1689_v46  ;;  %v2156_v24 = vsel %vm459_vm0, %v3627_v26, 0.0  ;;  %v2204_v19 = vmul.f32 %v2016_v41, %v2016_v41 }
 0x1a9   : > { %v2268_v40 = vadd.f32 %v2267_v43, %v2266_v2  ;;  %v2155_v25 = vadd.f32 %v2154_v38, %v2153_v45  ;;  %v2271_v34 = vsel %vm459_vm0, %v2203_v47, 0.0  ;;  %v611_v17 = vadd.f32 %v3564_v61, %v610_v10 }
 0x1aa   : > { %2089 = vst.msk [vmem:[%s2891_s11 + $0x88] sm:$0xf] %vm2054_vm13, %v2052_v11  ;;  %v1691_v1 = vsub.s32 %v3607_v51, %v1690_v52  ;;  %v2158_v35 = vsel %vm459_vm0, %v2016_v41, 0.0  ;;  %v2273_v31 = vsel %vm459_vm0, %v2204_v19, 0.0  ;;  %vm2168_vm6 = vcmask 253952  }
 0x1ab   : > { %v2270_v18 = vadd.f32 %v2269_v12, %v2268_v40  ;;  %v2157_v27 = vadd.f32 %v2156_v24, %v2155_v25 }
 0x1ac   : > { %vm1729_vm2 = vcmp.ne.s32.totalorder %v1691_v1, 0  ;;  %vm1765_vm3 = vcmp.lt.s32.totalorder %v1691_v1, 0  ;;  %v1837_v14 = vadd.s32 18, %v1691_v1 }
 0x1ad   : > { %vm1801_vm4 = vmand %vm1765_vm3, %vm1729_vm2  ;;  %v2272_v22 = vadd.f32 %v2271_v34, %v2270_v18  ;;  %v2159_v51 = vadd.f32 %v2158_v35, %v2157_v27 }
 0x1ae   : > { %v1873_v63 = vsel %vm1801_vm4, %v1837_v14, %v1691_v1 }
 0x1af   : > { %vm1909_vm5 = vcmp.lt.s32.totalorder %v1873_v63, 16  ;;  %v2274_v62 = vadd.f32 %v2273_v31, %v2272_v22 }
 0x1b0   : > { %v2439_v26 = vsel %vm1909_vm5, 1.0, %v2564_v7 }
 0x1b1   : > { %v2017_v33 = vmul.f32 %v2439_v26, %v611_v17 }
 0x1b3   : > { %v2053_v28 = vpack.c.bf16 %v2017_v33, %v2017_v33  ;;  %v2160_v36 = vsel %vm459_vm0, %v2017_v33, 0.0  ;;  %v2205_v4 = vmul.f32 %v2017_v33, %v2017_v33 }
 0x1b4   : > { %v2161_v21 = vadd.f32 %v2160_v36, %v2159_v51 }
 0x1b5   : > { %2090 = vst.msk [vmem:[%s2891_s11 + $0x8c] sm:$0xf] %vm2054_vm13, %v2053_v28  ;;  %v2275_v61 = vsel %vm459_vm0, %v2205_v4, 0.0 }
 0x1b6   : > { %v2162_v44 = vrot.slane %v2161_v21, 4  ;;  %v2276_v54 = vadd.f32 %v2275_v61, %v2274_v62 }
 0x1b8   : > { %v2163_v57 = vadd.f32 %v2162_v44, %v2161_v21  ;;  %v2277_v9 = vrot.slane %v2276_v54, 4 }
 0x1ba   : > { %v2164_v29 = vrot.slane %v2163_v57, 2  ;;  %v2278_v7 = vadd.f32 %v2277_v9, %v2276_v54 }
 0x1bc   : > { %v2165_v30 = vadd.f32 %v2164_v29, %v2163_v57  ;;  %v2279_v53 = vrot.slane %v2278_v7, 2 }
 0x1be   : > { %v2166_v6 = vrot.slane %v2165_v30, 1  ;;  %v2280_v55 = vadd.f32 %v2279_v53, %v2278_v7 }
 0x1c0   : > { %v2167_v37 = vadd.f32 %v2166_v6, %v2165_v30  ;;  %v2281_v5 = vrot.slane %v2280_v55, 1 }
 0x1c2   : > { %2169 = vst.msk [vmem:[%s235_s21] sm:$0x1] %vm2168_vm6, %v2167_v37  ;;  %v2282_v49 = vadd.f32 %v2281_v5, %v2280_v55 }
 0x1c4   : > { %2283 = vst.msk [vmem:[%s235_s21 + $0x1] sm:$0x1] %vm2168_vm6, %v2282_v49 }
 0x1c5 PF: > { %s16_s18 = sadd.s32 1, %s2561_s18  }
 0x1c6   : > { %p13_p4 = scmp.ge.s32.totalorder %s16_s18, 4  }
 0x1c8   :  { %15 = sbr.rel (!%p13_p4) target bundleno = 1 (0x1), region = 78 }

// kernel: realnvp_conv_base_net.5
= control target key start
LH: loop header
LB: loop body
LE: loop exit
PB: predicated region body
PF: predicated region fallthrough
CT: control target
= control target key end

     0   :  { %s4279_s20 = smov 0   ;;  %s6664_s0 = inlined_call_operand.vmem [shape: bf16[2,288,32], index: 0, kind: input, shape index: {}]   ;;  %s6665_s1 = inlined_call_operand.vmem [shape: bf16[32,72], index: 1, kind: input, shape index: {}]   ;;  %s6666_s2 = inlined_call_operand.vmem [shape: f32[288,8], index: 2, kind: input, shape index: {}]   ;;  %s6667_s3 = inlined_call_operand.vmem [shape: f32[2,32], index: 3, kind: input, shape index: {}]   ;;  %s6668_s4 = inlined_call_operand.<no memory space> [shape: f32[1,1], index: 4, kind: input, shape index: {}]   ;;  %s6669_s5 = inlined_call_operand.vmem [shape: f32[2,288,8], index: 5, kind: output, shape index: {}]  }
   0x1   :  { %v10_v0 = vstv %s6668_s4 }
   0x2   :  { %11 = vst [vmem:[#allocation3] sm:$0x1] %v10_v0 }
   0x3 LB: > { %s3960_s21 = sadd.s32 4294967295, %s4234_s20   ;;  %p3964_p0 = scmp.ge.s32.totalorder %s4234_s20, 1  ;;  %s4234_s20 = sphi %s4279_s20, %s17_s20  }
   0x4   : > { %p189_p1 = scmp.lt.s32.totalorder %s4234_s20, 3 }
   0x6   : > { %p190_p2 = pnand %p3964_p0, %p189_p1 }
   0x8   : > { %193 = sbr.rel (%p190_p2) target bundleno = 1248 (0x4e0), region = 40 }
   0xd   : > { %v4032_v1 = vld [vmem:[%s6665_s1 + $0x8] sm:$0xff]  ;;  %p217_p3 = scmp.lt.s32.totalorder %s3960_s21, 1  ;;  %v6670_v2 = vlaneseq  ;;  %v4236_v3 = vmov 0   ;;  %v4031_v4 = vld [vmem:[%s6665_s1] sm:$0xff]  ;;  %vm1851_vm10 = vcmask 261120   ;;  %s4238_s16 = smov 120  }
   0xe   : > { %4148 = vset.pattern.permute.xlu0 %v4236_v3  ;;  %1912 = vmatpush.bf16.msra.mxu0 %v4032_v1  ;;  %v4316_v10 = vld [vmem:[%s6667_s3] ss:$0 sm:$0xff]  ;;  %v4333_v24 = vld [vmem:[%s6667_s3 + $0x1] ss:$0 sm:$0xff]  ;;  %s4239_s17 = smov 112   ;;  %s4240_s18 = smov 104  }
   0xf   : > { %4122 = vmatpush.bf16.msra.mxu1 %v4032_v1  ;;  %s6935_s21 = smov (!%p217_p3, %s3960_s21), 1  ;;  %v4297_v5 = vshrl.u32 %v6670_v2, 7  ;;  %4123 = vmatpush.bf16.msra.mxu2 %v4032_v1  ;;  %s4241_s19 = smov 96  }
  0x10   : > { %4124 = vmatpush.bf16.msra.mxu3 %v4032_v1  ;;  %s4128_s25 = smul.u32 144, %s6935_s21  ;;  %s4242_s22 = smov 88  }
  0x11   : > { %v4301_v6 = vadd.s32 8, %v4297_v5  ;;  %v452_v7 = vand.u32 65535, %v4297_v5  ;;  %v453_v8 = vshrl.u32 %v4297_v5, 16  ;;  %v4306_v9 = vadd.s32 80, %v4297_v5  ;;  %s4243_s23 = smov 80   ;;  %s4244_s29 = smov 72  }
  0x12   : > { %1913 = vmatpush.bf16.msra.mxu0 %v4031_v4  ;;  %s4311_s28 = scalar_lea.vmem %s6664_s0, %s4128_s25  ;;  %v4319_v14 = vadd.s32 88, %v4297_v5  ;;  %v4325_v18 = vadd.s32 160, %v4297_v5  ;;  %v4328_v19 = vadd.s32 168, %v4297_v5  ;;  %s4245_s24 = smov 64  }
  0x13   : > { %4125 = vmatpush.bf16.msra.mxu1 %v4031_v4  ;;  %v455_v11 = vmul.u32 14564, %v452_v7  ;;  %v456_v12 = vmul.u32 58254, %v452_v7  ;;  %v457_v13 = vmul.u32 14564, %v453_v8  ;;  %4126 = vmatpush.bf16.msra.mxu2 %v4031_v4  ;;  %v4034_v15 = vld [vmem:[%s4311_s28] sm:$0xff]   ;;  %v481_v16 = vand.u32 65535, %v4301_v6  ;;  %v4109_v39 = vld [vmem:[%s4311_s28 + $0x28] sm:$0xff]  }
  0x14   : > { %4127 = vmatpush.bf16.msra.mxu3 %v4031_v4  ;;  %v482_v17 = vshrl.u32 %v4301_v6, 16  ;;  %v4035_v20 = vunpack.c.l.bf16 %v4034_v15  ;;  %v4036_v21 = vunpack.c.h.bf16 %v4034_v15  ;;  %v458_v22 = vmul.u32 58254, %v453_v8 }
  0x15   : > { %v459_v23 = vshll.u32 %v456_v12, 16  ;;  %v461_v25 = vshll.u32 %v457_v13, 16  ;;  %v484_v26 = vmul.u32 14564, %v481_v16  ;;  %v485_v27 = vmul.u32 58254, %v481_v16  ;;  %v4114_v16 = vld [vmem:[%s4311_s28 + $0x50] sm:$0xff]  }
  0x16   : > { %v742_v28 = vand.u32 65535, %v4306_v9  ;;  %v302_v29 = vsub.f32 %v4035_v20, %v4316_v10  ;;  %v303_v30 = vsub.f32 %v4036_v21, %v4316_v10  ;;  %v460_v32 = vshrl.u32 %v456_v12, 16 }
  0x17   : > { %vm463_vm0 = vc.u32 %v455_v11, %v459_v23  ;;  %v465_v31 = vadd.s32 %v459_v23, %v455_v11  ;;  %v486_v34 = vmul.u32 14564, %v482_v17  ;;  %v488_v35 = vshll.u32 %v485_v27, 16 }
  0x18   : > { %v464_v33 = vsel %vm463_vm0, 1, %v4236_v3  ;;  %v462_v36 = vshrl.u32 %v457_v13, 16  ;;  %v487_v38 = vmul.u32 58254, %v482_v17  ;;  %v4341_v40 = vmul.f32 %v4333_v24, %v302_v29 }
  0x19   : > { %v466_v37 = vadd.s32 %v464_v33, %v458_v22  ;;  %vm467_vm1 = vc.u32 %v465_v31, %v461_v25  ;;  %v4344_v41 = vmul.f32 %v4333_v24, %v303_v30  ;;  %v490_v43 = vshll.u32 %v486_v34, 16 }
  0x1a   : > { %v468_v42 = vsel %vm467_vm1, 1, %v4236_v3  ;;  %v489_v45 = vshrl.u32 %v485_v27, 16  ;;  %v491_v46 = vshrl.u32 %v486_v34, 16  ;;  %vm492_vm2 = vc.u32 %v484_v26, %v488_v35 }
  0x1b   : > { %v470_v44 = vadd.s32 %v468_v42, %v466_v37  ;;  %v493_v47 = vsel %vm492_vm2, 1, %v4236_v3  ;;  %v494_v48 = vadd.s32 %v488_v35, %v484_v26  ;;  %v4055_v49 = vunpack.c.l.bf16 %v4109_v39 }
  0x1c   : > { %v4056_v50 = vunpack.c.h.bf16 %v4109_v39  ;;  %v495_v52 = vadd.s32 %v493_v47, %v487_v38  ;;  %v743_v53 = vshrl.u32 %v4306_v9, 16  ;;  %v745_v54 = vmul.u32 14564, %v742_v28 }
  0x1d   : > { %v471_v51 = vadd.s32 %v470_v44, %v460_v32  ;;  %vm496_vm3 = vc.u32 %v494_v48, %v490_v43  ;;  %v312_v55 = vsub.f32 %v4055_v49, %v4316_v10  ;;  %v746_v57 = vmul.u32 58254, %v742_v28 }
  0x1e   : > { %v313_v56 = vsub.f32 %v4056_v50, %v4316_v10  ;;  %v376_v58 = vmax.f32 %v4341_v40, 0.0  ;;  %v497_v60 = vsel %vm496_vm3, 1, %v4236_v3  ;;  %v747_v61 = vmul.u32 14564, %v743_v53 }
  0x1f   : > { %v472_v59 = vadd.s32 %v471_v51, %v462_v36  ;;  %v499_v62 = vadd.s32 %v497_v60, %v495_v52  ;;  %v4354_v63 = vmul.f32 %v4333_v24, %v312_v55  ;;  %v748_v0 = vmul.u32 58254, %v743_v53 }
  0x20   : > { %v749_v1 = vshll.u32 %v746_v57, 16  ;;  %v377_v4 = vmax.f32 %v4344_v41, 0.0  ;;  %v4358_v8 = vmul.f32 %v4333_v24, %v313_v56  ;;  %v751_v11 = vshll.u32 %v747_v61, 16 }
  0x21   : > { %v473_v7 = vshrl.u32 %v472_v59, 4  ;;  %v500_v12 = vadd.s32 %v499_v62, %v489_v45  ;;  %v750_v13 = vshrl.u32 %v746_v57, 16  ;;  %v752_v15 = vshrl.u32 %v747_v61, 16 }
  0x22   : > { %vm753_vm4 = vc.u32 %v745_v54, %v749_v1  ;;  %v755_v21 = vadd.s32 %v749_v1, %v745_v54  ;;  %v771_v22 = vand.u32 65535, %v4319_v14  ;;  %v386_v25 = vmax.f32 %v4354_v63, 0.0 }
  0x23   : > { %v474_v17 = vmul.u32 18, %v473_v7  ;;  %v754_v20 = vsel %vm753_vm4, 1, %v4236_v3  ;;  %v501_v23 = vadd.s32 %v500_v12, %v491_v46  ;;  %v772_v27 = vshrl.u32 %v4319_v14, 16 }
  0x24   : > { %v756_v26 = vadd.s32 %v754_v20, %v748_v0  ;;  %vm757_vm5 = vc.u32 %v755_v21, %v751_v11  ;;  %v775_v29 = vmul.u32 58254, %v771_v22  ;;  %v4075_v30 = vunpack.c.l.bf16 %v4114_v16 }
  0x25   : > { %v475_v28 = vsub.s32 %v4297_v5, %v474_v17  ;;  %v502_v31 = vshrl.u32 %v501_v23, 4  ;;  %v758_v32 = vsel %vm757_vm5, 1, %v4236_v3  ;;  %v774_v33 = vmul.u32 14564, %v771_v22 }
  0x26   : > { %v776_v34 = vmul.u32 14564, %v772_v27  ;;  %v760_v36 = vadd.s32 %v758_v32, %v756_v26  ;;  %v777_v38 = vmul.u32 58254, %v772_v27  ;;  %v778_v39 = vshll.u32 %v775_v29, 16 }
  0x27   : > { %vm1493_vm6 = vcmp.ne.s32.totalorder %v475_v28, 0  ;;  %vm1529_vm7 = vcmp.lt.s32.totalorder %v475_v28, 0  ;;  %v1601_v35 = vadd.s32 18, %v475_v28  ;;  %v503_v37 = vmul.u32 18, %v502_v31 }
  0x28   : > { %vm1565_vm8 = vmand %vm1529_vm7, %vm1493_vm6  ;;  %v779_v42 = vshrl.u32 %v775_v29, 16  ;;  %v761_v44 = vadd.s32 %v760_v36, %v750_v13  ;;  %v780_v45 = vshll.u32 %v776_v34, 16  ;;  %v4076_v46 = vunpack.c.h.bf16 %v4114_v16 }
  0x29   : > { %v1637_v43 = vsel %vm1565_vm8, %v1601_v35, %v475_v28  ;;  %v504_v47 = vsub.s32 %v4301_v6, %v503_v37  ;;  %vm782_vm11 = vc.u32 %v774_v33, %v778_v39  ;;  %v784_v48 = vadd.s32 %v778_v39, %v774_v33 }
  0x2a   : > { %vm1673_vm9 = vcmp.lt.s32.totalorder %v1637_v43, 16  ;;  %v762_v49 = vadd.s32 %v761_v44, %v752_v15  ;;  %v781_v50 = vshrl.u32 %v776_v34, 16  ;;  %v783_v51 = vsel %vm782_vm11, 1, %v4236_v3 }
  0x2b   : > { %v322_v52 = vsub.f32 %v4075_v30, %v4316_v10  ;;  %vm1494_vm12 = vcmp.ne.s32.totalorder %v504_v47, 0  ;;  %vm1530_vm13 = vcmp.lt.s32.totalorder %v504_v47, 0  ;;  %v1602_v53 = vadd.s32 18, %v504_v47 }
  0x2c   : > { %v6671_v54 = vmov 0.0   ;;  %vm1566_vm14 = vmand %vm1530_vm13, %vm1494_vm12  ;;  %v763_v56 = vshrl.u32 %v762_v49, 4  ;;  %v785_v57 = vadd.s32 %v783_v51, %v777_v38  ;;  %vm786_vm15 = vc.u32 %v784_v48, %v780_v45  ;;  %v4119_v48 = vld [vmem:[%s4311_s28 + $0x78] sm:$0xff]  }
  0x2d   : > { %v3967_v55 = vsel %vm1673_vm9, 1.0, %v6671_v54  ;;  %v323_v6 = vsub.f32 %v4076_v46, %v4316_v10  ;;  %v1638_v59 = vsel %vm1566_vm14, %v1602_v53, %v504_v47  ;;  %v787_v60 = vsel %vm786_vm15, 1, %v4236_v3 }
  0x2e   : > { %v4374_v61 = vmul.f32 %v4333_v24, %v322_v52  ;;  %v1032_v62 = vand.u32 65535, %v4325_v18  ;;  %vm1674_vm0 = vcmp.lt.s32.totalorder %v1638_v59, 16  ;;  %v1781_v0 = vmul.f32 %v3967_v55, %v376_v58 }
  0x2f   : > { %v764_v1 = vmul.u32 18, %v763_v56  ;;  %v789_v7 = vadd.s32 %v787_v60, %v785_v57  ;;  %v3968_v11 = vsel %vm1674_vm0, 1.0, %v6671_v54  ;;  %v387_v12 = vmax.f32 %v4358_v8, 0.0 }
  0x30   : > { %v4382_v13 = vmul.f32 %v4333_v24, %v323_v6  ;;  %v1033_v15 = vshrl.u32 %v4325_v18, 16  ;;  %v1782_v16 = vmul.f32 %v3968_v11, %v377_v4  ;;  %v396_v40 = vmax.f32 %v4374_v61, 0.0 }
  0x31   : > { %v765_v17 = vsub.s32 %v4306_v9, %v764_v1  ;;  %v790_v20 = vadd.s32 %v789_v7, %v779_v42  ;;  %v1035_v58 = vmul.u32 14564, %v1032_v62  ;;  %v1036_v21 = vmul.u32 58254, %v1032_v62 }
  0x32   : > { %v1037_v22 = vmul.u32 14564, %v1033_v15  ;;  %v1061_v23 = vand.u32 65535, %v4328_v19  ;;  %v1817_v26 = vpack.c.bf16 %v1782_v16, %v1781_v0  ;;  %v1038_v29 = vmul.u32 58254, %v1033_v15 }
  0x33   : > { %v791_v27 = vadd.s32 %v790_v20, %v781_v50  ;;  %vm1503_vm1 = vcmp.ne.s32.totalorder %v765_v17, 0  ;;  %vm1539_vm2 = vcmp.lt.s32.totalorder %v765_v17, 0  ;;  %v1611_v28 = vadd.s32 18, %v765_v17 }
  0x34   : > { %vm1575_vm3 = vmand %vm1539_vm2, %vm1503_vm1  ;;  %v1039_v30 = vshll.u32 %v1036_v21, 16  ;;  %v1041_v41 = vshll.u32 %v1037_v22, 16  ;;  %4011 = vmatmul.msk.bf16.vlgmr.msra.gmra.mxu0 %vm1851_vm10, %v1817_v26  ;;  %v1040_v4 = vshrl.u32 %v1036_v21, 16  ;;  %v1062_v31 = vshrl.u32 %v4328_v19, 16 }
  0x35   : > { %v792_v9 = vshrl.u32 %v791_v27, 4  ;;  %v1064_v32 = vmul.u32 14564, %v1061_v23  ;;  %v1647_v33 = vsel %vm1575_vm3, %v1611_v28, %v765_v17  ;;  %v1065_v35 = vmul.u32 58254, %v1061_v23 }
  0x36   : > { %vm1043_vm4 = vc.u32 %v1035_v58, %v1039_v30  ;;  %v1045_v34 = vadd.s32 %v1039_v30, %v1035_v58  ;;  %vm1683_vm5 = vcmp.lt.s32.totalorder %v1647_v33, 16  ;;  %v1066_v38 = vmul.u32 14564, %v1062_v31 }
  0x37   : > { %v793_v36 = vmul.u32 18, %v792_v9  ;;  %v1044_v37 = vsel %vm1043_vm4, 1, %v4236_v3  ;;  %v3977_v39 = vsel %vm1683_vm5, 1.0, %v6671_v54  ;;  %v1042_v42 = vshrl.u32 %v1037_v22, 16 }
  0x38   : > { %v1046_v43 = vadd.s32 %v1044_v37, %v1038_v29  ;;  %vm1047_vm6 = vc.u32 %v1045_v34, %v1041_v41  ;;  %v1067_v46 = vmul.u32 58254, %v1062_v31  ;;  %v1068_v47 = vshll.u32 %v1065_v35, 16 }
  0x39   : > { %v794_v44 = vsub.s32 %v4319_v14, %v793_v36  ;;  %v1048_v45 = vsel %vm1047_vm6, 1, %v4236_v3  ;;  %v1791_v49 = vmul.f32 %v3977_v39, %v386_v25  ;;  %v1069_v51 = vshrl.u32 %v1065_v35, 16 }
  0x3a   : > { %v1050_v50 = vadd.s32 %v1048_v45, %v1046_v43  ;;  %v1070_v52 = vshll.u32 %v1066_v38, 16  ;;  %vm1072_vm9 = vc.u32 %v1064_v32, %v1068_v47  ;;  %v1074_v14 = vadd.s32 %v1068_v47, %v1064_v32 }
  0x3b   : > { %vm1504_vm7 = vcmp.ne.s32.totalorder %v794_v44, 0  ;;  %vm1540_vm8 = vcmp.lt.s32.totalorder %v794_v44, 0  ;;  %v1612_v53 = vadd.s32 18, %v794_v44  ;;  %v1073_v56 = vsel %vm1072_vm9, 1, %v4236_v3 }
  0x3c   : > { %vm1576_vm11 = vmand %vm1540_vm8, %vm1504_vm7  ;;  %v1051_v55 = vadd.s32 %v1050_v50, %v1040_v4  ;;  %v4095_v57 = vunpack.c.l.bf16 %v4119_v48  ;;  %v1075_v59 = vadd.s32 %v1073_v56, %v1067_v46  ;;  %v4096_v60 = vunpack.c.h.bf16 %v4119_v48 }
  0x3d   : > { %v1648_v6 = vsel %vm1576_vm11, %v1612_v53, %v794_v44  ;;  %v4401_v62 = vadd.s32 240, %v4297_v5  ;;  %vm1076_vm13 = vc.u32 %v1074_v14, %v1070_v52  ;;  %v4408_v11 = vadd.s32 248, %v4297_v5  ;;  %v4105_v53 = vld [vmem:[%s4311_s28 + $0x8] sm:$0xff]  }
  0x3e   : > { %vm1684_vm12 = vcmp.lt.s32.totalorder %v1648_v6, 16  ;;  %v1052_v63 = vadd.s32 %v1051_v55, %v1042_v42  ;;  %v332_v25 = vsub.f32 %v4095_v57, %v4316_v10  ;;  %v1077_v1 = vsel %vm1076_vm13, 1, %v4236_v3 }
  0x3f   : > { %v3978_v0 = vsel %vm1684_vm12, 1.0, %v6671_v54  ;;  %v333_v7 = vsub.f32 %v4096_v60, %v4316_v10  ;;  %v1071_v17 = vshrl.u32 %v1066_v38, 16  ;;  %v1079_v20 = vadd.s32 %v1077_v1, %v1075_v59 }
  0x40   : > { %v1792_v15 = vmul.f32 %v3978_v0, %v387_v12  ;;  %v1053_v16 = vshrl.u32 %v1052_v63, 4  ;;  %v397_v58 = vmax.f32 %v4382_v13, 0.0  ;;  %v4414_v21 = vmul.f32 %v4333_v24, %v332_v25 }
  0x41   : > { %v1322_v22 = vand.u32 65535, %v4401_v62  ;;  %v1323_v23 = vshrl.u32 %v4401_v62, 16  ;;  %v1080_v28 = vadd.s32 %v1079_v20, %v1069_v51  ;;  %v4419_v29 = vmul.f32 %v4333_v24, %v333_v7 }
  0x42   : > { %v1822_v26 = vpack.c.bf16 %v1792_v15, %v1791_v49  ;;  %v1054_v27 = vmul.u32 18, %v1053_v16  ;;  %v1351_v41 = vand.u32 65535, %v4408_v11  ;;  %v1352_v32 = vshrl.u32 %v4408_v11, 16 }
  0x43   : > { %v1325_v8 = vmul.u32 14564, %v1322_v22  ;;  %v1326_v12 = vmul.u32 58254, %v1322_v22  ;;  %v1327_v30 = vmul.u32 14564, %v1323_v23  ;;  %v1081_v4 = vadd.s32 %v1080_v28, %v1071_v17 }
  0x44   : > { %4016 = vmatmul.msk.bf16.vlgmr.msra.gmra.mxu1 %vm1851_vm10, %v1822_v26  ;;  %v1055_v9 = vsub.s32 %v4325_v18, %v1054_v27  ;;  %v1328_v31 = vmul.u32 58254, %v1323_v23  ;;  %v1354_v42 = vmul.u32 14564, %v1351_v41  ;;  %v1355_v43 = vmul.u32 58254, %v1351_v41 }
  0x45   : > { %v1329_v33 = vshll.u32 %v1326_v12, 16  ;;  %v1330_v34 = vshrl.u32 %v1326_v12, 16  ;;  %v1331_v35 = vshll.u32 %v1327_v30, 16  ;;  %v1332_v36 = vshrl.u32 %v1327_v30, 16 }
  0x46   : > { %v1082_v37 = vshrl.u32 %v1081_v4, 4  ;;  %vm1513_vm14 = vcmp.ne.s32.totalorder %v1055_v9, 0  ;;  %vm1549_vm15 = vcmp.lt.s32.totalorder %v1055_v9, 0  ;;  %v1621_v38 = vadd.s32 18, %v1055_v9 }
  0x47   : > { %vm1585_vm0 = vmand %vm1549_vm15, %vm1513_vm14  ;;  %vm1333_vm1 = vc.u32 %v1325_v8, %v1329_v33  ;;  %v1335_v39 = vadd.s32 %v1329_v33, %v1325_v8  ;;  %v1356_v46 = vmul.u32 14564, %v1352_v32  ;;  %v1357_v48 = vmul.u32 58254, %v1352_v32 }
  0x48   : > { %v1083_v44 = vmul.u32 18, %v1082_v37  ;;  %v1657_v18 = vsel %vm1585_vm0, %v1621_v38, %v1055_v9  ;;  %v1334_v45 = vsel %vm1333_vm1, 1, %v4236_v3  ;;  %v1358_v52 = vshll.u32 %v1355_v43, 16 }
  0x49   : > { %vm1693_vm2 = vcmp.lt.s32.totalorder %v1657_v18, 16  ;;  %v1336_v47 = vadd.s32 %v1334_v45, %v1328_v31  ;;  %vm1337_vm3 = vc.u32 %v1335_v39, %v1331_v35  ;;  %v1359_v14 = vshrl.u32 %v1355_v43, 16 }
  0x4a   : > { %v1084_v49 = vsub.s32 %v4328_v19, %v1083_v44  ;;  %v3987_v50 = vsel %vm1693_vm2, 1.0, %v6671_v54  ;;  %v1338_v51 = vsel %vm1337_vm3, 1, %v4236_v3  ;;  %v1360_v57 = vshll.u32 %v1356_v46, 16 }
  0x4b   : > { %v1801_v55 = vmul.f32 %v3987_v50, %v396_v40  ;;  %v1340_v56 = vadd.s32 %v1338_v51, %v1336_v47  ;;  %v1361_v59 = vshrl.u32 %v1356_v46, 16  ;;  %vm1362_vm7 = vc.u32 %v1354_v42, %v1358_v52 }
  0x4c   : > { %vm1514_vm4 = vcmp.ne.s32.totalorder %v1084_v49, 0  ;;  %vm1550_vm5 = vcmp.lt.s32.totalorder %v1084_v49, 0  ;;  %v1622_v6 = vadd.s32 18, %v1084_v49  ;;  %v1364_v19 = vadd.s32 %v1358_v52, %v1354_v42 }
  0x4d   : > { %vm1586_vm6 = vmand %vm1550_vm5, %vm1514_vm4  ;;  %v1341_v60 = vadd.s32 %v1340_v56, %v1330_v34  ;;  %v4039_v63 = vunpack.c.l.bf16 %v4105_v53  ;;  %v1363_v0 = vsel %vm1362_vm7, 1, %v4236_v3  ;;  %v4040_v1 = vunpack.c.h.bf16 %v4105_v53 }
  0x4e   : > { %v1658_v25 = vsel %vm1586_vm6, %v1622_v6, %v1084_v49  ;;  %v4434_v7 = vadd.s32 16, %v4297_v5  ;;  %v1365_v40 = vadd.s32 %v1363_v0, %v1357_v48  ;;  %vm1366_vm9 = vc.u32 %v1364_v19, %v1360_v57 }
  0x4f   : > { %vm1694_vm8 = vcmp.lt.s32.totalorder %v1658_v25, 16  ;;  %v1342_v61 = vadd.s32 %v1341_v60, %v1332_v36  ;;  %v1367_v16 = vsel %vm1366_vm9, 1, %v4236_v3  ;;  %v304_v17 = vsub.f32 %v4039_v63, %v4316_v10  ;;  %v4110_v60 = vld [vmem:[%s4311_s28 + $0x30] sm:$0xff]  }
  0x50   : > { %v3988_v15 = vsel %vm1694_vm8, 1.0, %v6671_v54  ;;  %v305_v20 = vsub.f32 %v4040_v1, %v4316_v10  ;;  %v1369_v26 = vadd.s32 %v1367_v16, %v1365_v40  ;;  %v4443_v27 = vadd.s32 24, %v4297_v5 }
  0x51   : > { %v1802_v22 = vmul.f32 %v3988_v15, %v397_v58  ;;  %v1343_v23 = vshrl.u32 %v1342_v61, 4  ;;  %v406_v28 = vmax.f32 %v4414_v21, 0.0  ;;  %v407_v8 = vmax.f32 %v4419_v29, 0.0 }
  0x52   : > { %v510_v12 = vand.u32 65535, %v4434_v7  ;;  %v511_v30 = vshrl.u32 %v4434_v7, 16  ;;  %v1370_v4 = vadd.s32 %v1369_v26, %v1359_v14  ;;  %v4450_v31 = vmul.f32 %v4333_v24, %v304_v17 }
  0x53   : > { %v1827_v41 = vpack.c.bf16 %v1802_v22, %v1801_v55  ;;  %v1344_v9 = vmul.u32 18, %v1343_v23  ;;  %v4453_v13 = vmul.f32 %v4333_v24, %v305_v20  ;;  %v539_v33 = vand.u32 65535, %v4443_v27 }
  0x54   : > { %v513_v58 = vmul.u32 14564, %v510_v12  ;;  %v514_v32 = vmul.u32 58254, %v510_v12  ;;  %v1371_v34 = vadd.s32 %v1370_v4, %v1361_v59  ;;  %v515_v35 = vmul.u32 14564, %v511_v30 }
  0x55   : > { %4021 = vmatmul.msk.bf16.vlgmr.msra.gmra.mxu2 %vm1851_vm10, %v1827_v41  ;;  %v1345_v21 = vsub.s32 %v4401_v62, %v1344_v9  ;;  %v516_v36 = vmul.u32 58254, %v511_v30  ;;  %v540_v39 = vshrl.u32 %v4443_v27, 16  ;;  %v542_v42 = vmul.u32 14564, %v539_v33  ;;  %v4475_v9 = vld [vmem:[%s4311_s28 + $0x58] sm:$0xff]  }
  0x56   : > { %v517_v37 = vshll.u32 %v514_v32, 16  ;;  %v518_v38 = vshrl.u32 %v514_v32, 16  ;;  %v1372_v43 = vshrl.u32 %v1371_v34, 4  ;;  %v519_v18 = vshll.u32 %v515_v35, 16 }
  0x57   : > { %vm1523_vm11 = vcmp.ne.s32.totalorder %v1345_v21, 0  ;;  %vm1559_vm12 = vcmp.lt.s32.totalorder %v1345_v21, 0  ;;  %v1631_v44 = vadd.s32 18, %v1345_v21  ;;  %v520_v45 = vshrl.u32 %v515_v35, 16 }
  0x58   : > { %vm1595_vm13 = vmand %vm1559_vm12, %vm1523_vm11  ;;  %vm521_vm14 = vc.u32 %v513_v58, %v517_v37  ;;  %v523_v46 = vadd.s32 %v517_v37, %v513_v58  ;;  %v1373_v47 = vmul.u32 18, %v1372_v43  ;;  %v543_v49 = vmul.u32 58254, %v539_v33 }
  0x59   : > { %v1667_v62 = vsel %vm1595_vm13, %v1631_v44, %v1345_v21  ;;  %v522_v48 = vsel %vm521_vm14, 1, %v4236_v3  ;;  %v544_v51 = vmul.u32 14564, %v540_v39  ;;  %v545_v56 = vmul.u32 58254, %v540_v39 }
  0x5a   : > { %vm1703_vm15 = vcmp.lt.s32.totalorder %v1667_v62, 16  ;;  %v524_v50 = vadd.s32 %v522_v48, %v516_v36  ;;  %vm525_vm0 = vc.u32 %v523_v46, %v519_v18  ;;  %v1374_v52 = vsub.s32 %v4408_v11, %v1373_v47 }
  0x5b   : > { %v3997_v53 = vsel %vm1703_vm15, 1.0, %v6671_v54  ;;  %v526_v55 = vsel %vm525_vm0, 1, %v4236_v3  ;;  %v546_v6 = vshll.u32 %v543_v49, 16  ;;  %v547_v59 = vshrl.u32 %v543_v49, 16 }
  0x5c   : > { %v1811_v14 = vmul.f32 %v3997_v53, %v406_v28  ;;  %v528_v57 = vadd.s32 %v526_v55, %v524_v50  ;;  %vm1524_vm1 = vcmp.ne.s32.totalorder %v1374_v52, 0  ;;  %vm1560_vm2 = vcmp.lt.s32.totalorder %v1374_v52, 0 }
  0x5d   : > { %v1632_v19 = vadd.s32 18, %v1374_v52  ;;  %v548_v63 = vshll.u32 %v544_v51, 16  ;;  %vm1596_vm3 = vmand %vm1560_vm2, %vm1524_vm1  ;;  %v549_v0 = vshrl.u32 %v544_v51, 16  ;;  %vm550_vm4 = vc.u32 %v542_v42, %v546_v6 }
  0x5e   : > { %v529_v25 = vadd.s32 %v528_v57, %v518_v38  ;;  %v552_v1 = vadd.s32 %v546_v6, %v542_v42  ;;  %v551_v61 = vsel %vm550_vm4, 1, %v4236_v3  ;;  %v4059_v40 = vunpack.c.l.bf16 %v4110_v60 }
  0x5f   : > { %v1668_v11 = vsel %vm1596_vm3, %v1632_v19, %v1374_v52  ;;  %v4060_v15 = vunpack.c.h.bf16 %v4110_v60  ;;  %v553_v17 = vadd.s32 %v551_v61, %v545_v56  ;;  %v4472_v41 = vadd.s32 96, %v4297_v5 }
  0x60   : > { %vm1704_vm5 = vcmp.lt.s32.totalorder %v1668_v11, 16  ;;  %v530_v16 = vadd.s32 %v529_v25, %v520_v45  ;;  %vm554_vm6 = vc.u32 %v552_v1, %v548_v63  ;;  %v314_v23 = vsub.f32 %v4059_v40, %v4316_v10 }
  0x61   : > { %v3998_v20 = vsel %vm1704_vm5, 1.0, %v6671_v54  ;;  %v555_v22 = vsel %vm554_vm6, 1, %v4236_v3  ;;  %v315_v26 = vsub.f32 %v4060_v15, %v4316_v10  ;;  %v378_v4 = vmax.f32 %v4450_v31, 0.0 }
  0x62   : > { %v1812_v28 = vmul.f32 %v3998_v20, %v407_v8  ;;  %v531_v12 = vshrl.u32 %v530_v16, 4  ;;  %v557_v30 = vadd.s32 %v555_v22, %v553_v17  ;;  %v379_v58 = vmax.f32 %v4453_v13, 0.0 }
  0x63   : > { %v4480_v32 = vmul.f32 %v4333_v24, %v314_v23  ;;  %v4483_v33 = vadd.s32 104, %v4297_v5  ;;  %v800_v34 = vand.u32 65535, %v4472_v41  ;;  %v4487_v35 = vmul.f32 %v4333_v24, %v315_v26 }
  0x64   : > { %v1832_v21 = vpack.c.bf16 %v1812_v28, %v1811_v14  ;;  %v532_v29 = vmul.u32 18, %v531_v12  ;;  %v558_v8 = vadd.s32 %v557_v30, %v547_v59  ;;  %v801_v31 = vshrl.u32 %v4472_v41, 16 }
  0x65   : > { %v388_v36 = vmax.f32 %v4480_v32, 0.0  ;;  %v4079_v37 = vunpack.c.l.bf16 %v4475_v9  ;;  %v804_v42 = vmul.u32 58254, %v800_v34  ;;  %v829_v43 = vand.u32 65535, %v4483_v33 }
  0x66   : > { %4026 = vmatmul.msk.bf16.vlgmr.msra.gmra.mxu3 %vm1851_vm10, %v1832_v21  ;;  %v533_v38 = vsub.s32 %v4434_v7, %v532_v29  ;;  %v559_v39 = vadd.s32 %v558_v8, %v549_v0  ;;  %v803_v44 = vmul.u32 14564, %v800_v34  ;;  %v805_v18 = vmul.u32 14564, %v801_v31 }
  0x67   : > { %v806_v45 = vmul.u32 58254, %v801_v31  ;;  %v830_v46 = vshrl.u32 %v4483_v33, 16  ;;  %v807_v48 = vshll.u32 %v804_v42, 16  ;;  %v808_v49 = vshrl.u32 %v804_v42, 16 }
  0x68   : > { %v560_v47 = vshrl.u32 %v559_v39, 4  ;;  %vm1495_vm7 = vcmp.ne.s32.totalorder %v533_v38, 0  ;;  %vm1531_vm8 = vcmp.lt.s32.totalorder %v533_v38, 0  ;;  %v1603_v62 = vadd.s32 18, %v533_v38 }
  0x69   : > { %vm1567_vm9 = vmand %vm1531_vm8, %vm1495_vm7  ;;  %v809_v50 = vshll.u32 %v805_v18, 16  ;;  %v832_v51 = vmul.u32 14564, %v829_v43  ;;  %v810_v53 = vshrl.u32 %v805_v18, 16  ;;  %v833_v55 = vmul.u32 58254, %v829_v43 }
  0x6a   : > { %v561_v52 = vmul.u32 18, %v560_v47  ;;  %v1639_v7 = vsel %vm1567_vm9, %v1603_v62, %v533_v38  ;;  %vm811_vm12 = vc.u32 %v803_v44, %v807_v48  ;;  %v813_v56 = vadd.s32 %v807_v48, %v803_v44 }
  0x6b   : > { %vm1675_vm11 = vcmp.lt.s32.totalorder %v1639_v7, 16  ;;  %v834_v14 = vmul.u32 14564, %v830_v46  ;;  %v812_v59 = vsel %vm811_vm12, 1, %v4236_v3  ;;  %v836_v60 = vshll.u32 %v833_v55, 16 }
  0x6c   : > { %v562_v57 = vsub.s32 %v4443_v27, %v561_v52  ;;  %v3969_v6 = vsel %vm1675_vm11, 1.0, %v6671_v54  ;;  %v814_v63 = vadd.s32 %v812_v59, %v806_v45  ;;  %vm815_vm13 = vc.u32 %v813_v56, %v809_v50 }
  0x6d   : > { %v1783_v19 = vmul.f32 %v3969_v6, %v378_v4  ;;  %v835_v25 = vmul.u32 58254, %v830_v46  ;;  %v816_v1 = vsel %vm815_vm13, 1, %v4236_v3  ;;  %v837_v61 = vshrl.u32 %v833_v55, 16 }
  0x6e   : > { %vm1496_vm14 = vcmp.ne.s32.totalorder %v562_v57, 0  ;;  %vm1532_vm15 = vcmp.lt.s32.totalorder %v562_v57, 0  ;;  %v1604_v0 = vadd.s32 18, %v562_v57  ;;  %v818_v11 = vadd.s32 %v816_v1, %v814_v63 }
  0x6f   : > { %vm1568_vm0 = vmand %vm1532_vm15, %vm1496_vm14  ;;  %v838_v40 = vshll.u32 %v834_v14, 16  ;;  %vm840_vm1 = vc.u32 %v832_v51, %v836_v60  ;;  %v842_v16 = vadd.s32 %v836_v60, %v832_v51  ;;  %v4080_v17 = vunpack.c.h.bf16 %v4475_v9 }
  0x70   : > { %v1640_v27 = vsel %vm1568_vm0, %v1604_v0, %v562_v57  ;;  %v841_v15 = vsel %vm840_vm1, 1, %v4236_v3  ;;  %v819_v20 = vadd.s32 %v818_v11, %v808_v49  ;;  %v324_v23 = vsub.f32 %v4079_v37, %v4316_v10 }
  0x71   : > { %vm1676_vm2 = vcmp.lt.s32.totalorder %v1640_v27, 16  ;;  %v843_v22 = vadd.s32 %v841_v15, %v835_v25  ;;  %vm844_vm3 = vc.u32 %v842_v16, %v838_v40  ;;  %v325_v28 = vsub.f32 %v4080_v17, %v4316_v10  ;;  %v4120_v40 = vld [vmem:[%s4311_s28 + $0x80] sm:$0xff]  }
  0x72   : > { %v3970_v26 = vsel %vm1676_vm2, 1.0, %v6671_v54  ;;  %v4506_v12 = vadd.s32 176, %v4297_v5  ;;  %v820_v4 = vadd.s32 %v819_v20, %v810_v53  ;;  %v845_v21 = vsel %vm844_vm3, 1, %v4236_v3 }
  0x73   : > { %v1784_v30 = vmul.f32 %v3970_v26, %v379_v58  ;;  %v4512_v9 = vmul.f32 %v4333_v24, %v324_v23  ;;  %v839_v29 = vshrl.u32 %v834_v14, 16  ;;  %v847_v8 = vadd.s32 %v845_v21, %v843_v22 }
  0x74   : > { %v4515_v34 = vadd.s32 184, %v4297_v5  ;;  %v1090_v31 = vand.u32 65535, %v4506_v12  ;;  %v389_v38 = vmax.f32 %v4487_v35, 0.0  ;;  %v821_v39 = vshrl.u32 %v820_v4, 4 }
  0x75   : > { %v1818_v37 = vpack.c.bf16 %v1784_v30, %v1783_v19  ;;  %v1091_v13 = vshrl.u32 %v4506_v12, 16  ;;  %v848_v58 = vadd.s32 %v847_v8, %v837_v61  ;;  %v4521_v42 = vmul.f32 %v4333_v24, %v325_v28 }
  0x76   : > { %v1093_v43 = vmul.u32 14564, %v1090_v31  ;;  %v1094_v44 = vmul.u32 58254, %v1090_v31  ;;  %v822_v18 = vmul.u32 18, %v821_v39  ;;  %v398_v45 = vmax.f32 %v4512_v9, 0.0 }
  0x77   : > { %4012 = vmatmul.msk.bf16.gmra.mxu0 %vm1851_vm10, %v1818_v37  ;;  %v1095_v46 = vmul.u32 14564, %v1091_v13  ;;  %v1119_v47 = vand.u32 65535, %v4515_v34  ;;  %v849_v62 = vadd.s32 %v848_v58, %v839_v29  ;;  %v1096_v48 = vmul.u32 58254, %v1091_v13 }
  0x78   : > { %v1097_v49 = vshll.u32 %v1094_v44, 16  ;;  %v1120_v50 = vshrl.u32 %v4515_v34, 16  ;;  %v823_v51 = vsub.s32 %v4472_v41, %v822_v18  ;;  %v1098_v52 = vshrl.u32 %v1094_v44, 16 }
  0x79   : > { %v1099_v7 = vshll.u32 %v1095_v46, 16  ;;  %v1122_v53 = vmul.u32 14564, %v1119_v47  ;;  %v850_v55 = vshrl.u32 %v849_v62, 4  ;;  %v1123_v14 = vmul.u32 58254, %v1119_v47 }
  0x7a   : > { %vm1101_vm4 = vc.u32 %v1093_v43, %v1097_v49  ;;  %v1103_v56 = vadd.s32 %v1097_v49, %v1093_v43  ;;  %vm1505_vm5 = vcmp.ne.s32.totalorder %v823_v51, 0  ;;  %vm1541_vm6 = vcmp.lt.s32.totalorder %v823_v51, 0 }
  0x7b   : > { %v1613_v57 = vadd.s32 18, %v823_v51  ;;  %v1102_v6 = vsel %vm1101_vm4, 1, %v4236_v3  ;;  %v851_v59 = vmul.u32 18, %v850_v55  ;;  %vm1577_vm7 = vmand %vm1541_vm6, %vm1505_vm5  ;;  %v1124_v19 = vmul.u32 14564, %v1120_v50 }
  0x7c   : > { %v1104_v60 = vadd.s32 %v1102_v6, %v1096_v48  ;;  %vm1105_vm8 = vc.u32 %v1103_v56, %v1099_v7  ;;  %v1100_v41 = vshrl.u32 %v1095_v46, 16  ;;  %v1126_v0 = vshll.u32 %v1123_v14, 16 }
  0x7d   : > { %v1649_v63 = vsel %vm1577_vm7, %v1613_v57, %v823_v51  ;;  %v1106_v25 = vsel %vm1105_vm8, 1, %v4236_v3  ;;  %v852_v1 = vsub.s32 %v4483_v33, %v851_v59  ;;  %v1125_v61 = vmul.u32 58254, %v1120_v50 }
  0x7e   : > { %vm1685_vm9 = vcmp.lt.s32.totalorder %v1649_v63, 16  ;;  %v1108_v11 = vadd.s32 %v1106_v25, %v1104_v60  ;;  %v1127_v15 = vshrl.u32 %v1123_v14, 16  ;;  %v1128_v16 = vshll.u32 %v1124_v19, 16 }
  0x7f   : > { %v3979_v27 = vsel %vm1685_vm9, 1.0, %v6671_v54  ;;  %vm1130_vm11 = vc.u32 %v1122_v53, %v1126_v0  ;;  %vm1506_vm12 = vcmp.ne.s32.totalorder %v852_v1, 0  ;;  %vm1542_vm13 = vcmp.lt.s32.totalorder %v852_v1, 0 }
  0x80   : > { %v1614_v17 = vadd.s32 18, %v852_v1  ;;  %v1793_v20 = vmul.f32 %v3979_v27, %v388_v36  ;;  %vm1578_vm14 = vmand %vm1542_vm13, %vm1506_vm12  ;;  %v1109_v22 = vadd.s32 %v1108_v11, %v1098_v52  ;;  %v1131_v23 = vsel %vm1130_vm11, 1, %v4236_v3 }
  0x81   : > { %v1132_v33 = vadd.s32 %v1126_v0, %v1122_v53  ;;  %v4099_v26 = vunpack.c.l.bf16 %v4120_v40  ;;  %v1133_v30 = vadd.s32 %v1131_v23, %v1125_v61  ;;  %v4100_v4 = vunpack.c.h.bf16 %v4120_v40 }
  0x82   : > { %v1650_v28 = vsel %vm1578_vm14, %v1614_v17, %v852_v1  ;;  %v4537_v21 = vadd.s32 256, %v4297_v5  ;;  %v1110_v29 = vadd.s32 %v1109_v22, %v1100_v41  ;;  %v4544_v37 = vadd.s32 264, %v4297_v5 }
  0x83   : > { %vm1686_vm15 = vcmp.lt.s32.totalorder %v1650_v28, 16  ;;  %vm1134_vm0 = vc.u32 %v1132_v33, %v1128_v16  ;;  %v334_v8 = vsub.f32 %v4099_v26, %v4316_v10  ;;  %v335_v31 = vsub.f32 %v4100_v4, %v4316_v10  ;;  %v4106_v16 = vld [vmem:[%s4311_s28 + $0x10] sm:$0xff]  }
  0x84   : > { %v3980_v32 = vsel %vm1686_vm15, 1.0, %v6671_v54  ;;  %v1135_v36 = vsel %vm1134_vm0, 1, %v4236_v3  ;;  %v1111_v13 = vshrl.u32 %v1110_v29, 4  ;;  %v1129_v58 = vshrl.u32 %v1124_v19, 16 }
  0x85   : > { %v1794_v39 = vmul.f32 %v3980_v32, %v389_v38  ;;  %v1137_v43 = vadd.s32 %v1135_v36, %v1133_v30  ;;  %v399_v44 = vmax.f32 %v4521_v42, 0.0  ;;  %v4550_v18 = vmul.f32 %v4333_v24, %v334_v8  ;;  %v4593_v42 = vld [vmem:[%s6667_s3 + $0x1] ss:$0 sm:$0xff] }
  0x86   : > { %v1380_v46 = vand.u32 65535, %v4537_v21  ;;  %v1381_v47 = vshrl.u32 %v4537_v21, 16  ;;  %v1112_v10 = vmul.u32 18, %v1111_v13  ;;  %v4555_v49 = vmul.f32 %v4333_v24, %v335_v31 }
  0x87   : > { %v1823_v62 = vpack.c.bf16 %v1794_v39, %v1793_v20  ;;  %v1138_v48 = vadd.s32 %v1137_v43, %v1127_v15  ;;  %v1409_v51 = vand.u32 65535, %v4544_v37  ;;  %v1410_v55 = vshrl.u32 %v4544_v37, 16  ;;  %v4577_v39 = vld [vmem:[%s6667_s3] ss:$0 sm:$0xff] }
  0x88   : > { %v1383_v35 = vmul.u32 14564, %v1380_v46  ;;  %v1384_v38 = vmul.u32 58254, %v1380_v46  ;;  %v1385_v50 = vmul.u32 14564, %v1381_v47  ;;  %v1113_v52 = vsub.s32 %v4506_v12, %v1112_v10 }
  0x89   : > { %4017 = vmatmul.msk.bf16.gmra.mxu1 %vm1851_vm10, %v1823_v62  ;;  %v1139_v7 = vadd.s32 %v1138_v48, %v1129_v58  ;;  %v1386_v53 = vmul.u32 58254, %v1381_v47  ;;  %v1412_v19 = vmul.u32 14564, %v1409_v51  ;;  %v1413_v63 = vmul.u32 58254, %v1409_v51 }
  0x8a   : > { %v1387_v56 = vshll.u32 %v1384_v38, 16  ;;  %v1388_v14 = vshrl.u32 %v1384_v38, 16  ;;  %v1389_v57 = vshll.u32 %v1385_v50, 16  ;;  %v1390_v6 = vshrl.u32 %v1385_v50, 16 }
  0x8b   : > { %v1140_v59 = vshrl.u32 %v1139_v7, 4  ;;  %vm1515_vm1 = vcmp.ne.s32.totalorder %v1113_v52, 0  ;;  %vm1551_vm2 = vcmp.lt.s32.totalorder %v1113_v52, 0  ;;  %v1623_v24 = vadd.s32 18, %v1113_v52 }
  0x8c   : > { %vm1587_vm3 = vmand %vm1551_vm2, %vm1515_vm1  ;;  %vm1391_vm4 = vc.u32 %v1383_v35, %v1387_v56  ;;  %v1393_v60 = vadd.s32 %v1387_v56, %v1383_v35  ;;  %v1414_v0 = vmul.u32 14564, %v1410_v55  ;;  %v1415_v11 = vmul.u32 58254, %v1410_v55 }
  0x8d   : > { %v1141_v41 = vmul.u32 18, %v1140_v59  ;;  %v1659_v12 = vsel %vm1587_vm3, %v1623_v24, %v1113_v52  ;;  %v1392_v25 = vsel %vm1391_vm4, 1, %v4236_v3  ;;  %v1416_v15 = vshll.u32 %v1413_v63, 16 }
  0x8e   : > { %vm1695_vm5 = vcmp.lt.s32.totalorder %v1659_v12, 16  ;;  %v1394_v1 = vadd.s32 %v1392_v25, %v1386_v53  ;;  %vm1395_vm6 = vc.u32 %v1393_v60, %v1389_v57  ;;  %v1417_v22 = vshrl.u32 %v1413_v63, 16 }
  0x8f   : > { %v1142_v61 = vsub.s32 %v4515_v34, %v1141_v41  ;;  %v3989_v40 = vsel %vm1695_vm5, 1.0, %v6671_v54  ;;  %v1396_v27 = vsel %vm1395_vm6, 1, %v4236_v3  ;;  %v1418_v23 = vshll.u32 %v1414_v0, 16 }
  0x90   : > { %v1803_v17 = vmul.f32 %v3989_v40, %v398_v45  ;;  %v1398_v20 = vadd.s32 %v1396_v27, %v1394_v1  ;;  %v1419_v26 = vshrl.u32 %v1414_v0, 16  ;;  %vm1420_vm11 = vc.u32 %v1412_v19, %v1416_v15 }
  0x91   : > { %vm1516_vm7 = vcmp.ne.s32.totalorder %v1142_v61, 0  ;;  %vm1552_vm8 = vcmp.lt.s32.totalorder %v1142_v61, 0  ;;  %v1624_v33 = vadd.s32 18, %v1142_v61  ;;  %v1422_v34 = vadd.s32 %v1416_v15, %v1412_v19 }
  0x92   : > { %vm1588_vm9 = vmand %vm1552_vm8, %vm1516_vm7  ;;  %v1399_v28 = vadd.s32 %v1398_v20, %v1388_v14  ;;  %v4043_v30 = vunpack.c.l.bf16 %v4106_v16  ;;  %v1421_v29 = vsel %vm1420_vm11, 1, %v4236_v3  ;;  %v4044_v8 = vunpack.c.h.bf16 %v4106_v16 }
  0x93   : > { %v1660_v4 = vsel %vm1588_vm9, %v1624_v33, %v1142_v61  ;;  %v4570_v32 = vadd.s32 32, %v4297_v5  ;;  %v1423_v45 = vadd.s32 %v1421_v29, %v1415_v11  ;;  %vm1424_vm13 = vc.u32 %v1422_v34, %v1418_v23 }
  0x94   : > { %vm1696_vm12 = vcmp.lt.s32.totalorder %v1660_v4, 16  ;;  %v1400_v9 = vadd.s32 %v1399_v28, %v1390_v6  ;;  %v1425_v31 = vsel %vm1424_vm13, 1, %v4236_v3  ;;  %v306_v13 = vsub.f32 %v4043_v30, %v4577_v39  ;;  %v4111_v28 = vld [vmem:[%s4311_s28 + $0x38] sm:$0xff]  }
  0x95   : > { %v3990_v36 = vsel %vm1696_vm12, 1.0, %v6671_v54  ;;  %v307_v58 = vsub.f32 %v4044_v8, %v4577_v39  ;;  %v1427_v47 = vadd.s32 %v1425_v31, %v1423_v45  ;;  %v4584_v62 = vadd.s32 40, %v4297_v5 }
  0x96   : > { %v1804_v43 = vmul.f32 %v3990_v36, %v399_v44  ;;  %v1401_v46 = vshrl.u32 %v1400_v9, 4  ;;  %v408_v10 = vmax.f32 %v4550_v18, 0.0  ;;  %v409_v48 = vmax.f32 %v4555_v49, 0.0 }
  0x97   : > { %v568_v35 = vand.u32 65535, %v4570_v32  ;;  %v569_v38 = vshrl.u32 %v4570_v32, 16  ;;  %v1428_v52 = vadd.s32 %v1427_v47, %v1417_v22  ;;  %v4596_v44 = vmul.f32 %v4593_v42, %v306_v13 }
  0x98   : > { %v1828_v50 = vpack.c.bf16 %v1804_v43, %v1803_v17  ;;  %v1402_v51 = vmul.u32 18, %v1401_v46  ;;  %v4599_v7 = vmul.f32 %v4593_v42, %v307_v58  ;;  %v597_v55 = vand.u32 65535, %v4584_v62 }
  0x99   : > { %v571_v18 = vmul.u32 14564, %v568_v35  ;;  %v572_v53 = vmul.u32 58254, %v568_v35  ;;  %v1429_v14 = vadd.s32 %v1428_v52, %v1419_v26  ;;  %v573_v57 = vmul.u32 14564, %v569_v38 }
  0x9a   : > { %4022 = vmatmul.msk.bf16.gmra.mxu2 %vm1851_vm10, %v1828_v50  ;;  %v1403_v56 = vsub.s32 %v4537_v21, %v1402_v51  ;;  %v574_v6 = vmul.u32 58254, %v569_v38  ;;  %v598_v60 = vshrl.u32 %v4584_v62, 16  ;;  %v600_v19 = vmul.u32 14564, %v597_v55  ;;  %v4621_v51 = vld [vmem:[%s4311_s28 + $0x60] sm:$0xff]  }
  0x9b   : > { %v575_v59 = vshll.u32 %v572_v53, 16  ;;  %v576_v24 = vshrl.u32 %v572_v53, 16  ;;  %v1430_v63 = vshrl.u32 %v1429_v14, 4  ;;  %v577_v12 = vshll.u32 %v573_v57, 16 }
  0x9c   : > { %vm1525_vm14 = vcmp.ne.s32.totalorder %v1403_v56, 0  ;;  %vm1561_vm15 = vcmp.lt.s32.totalorder %v1403_v56, 0  ;;  %v1633_v41 = vadd.s32 18, %v1403_v56  ;;  %v578_v25 = vshrl.u32 %v573_v57, 16 }
  0x9d   : > { %vm1597_vm0 = vmand %vm1561_vm15, %vm1525_vm14  ;;  %vm579_vm1 = vc.u32 %v571_v18, %v575_v59  ;;  %v581_v0 = vadd.s32 %v575_v59, %v571_v18  ;;  %v1431_v1 = vmul.u32 18, %v1430_v63  ;;  %v601_v61 = vmul.u32 58254, %v597_v55 }
  0x9e   : > { %v1669_v21 = vsel %vm1597_vm0, %v1633_v41, %v1403_v56  ;;  %v580_v11 = vsel %vm579_vm1, 1, %v4236_v3  ;;  %v602_v27 = vmul.u32 14564, %v598_v60  ;;  %v603_v20 = vmul.u32 58254, %v598_v60 }
  0x9f   : > { %vm1705_vm2 = vcmp.lt.s32.totalorder %v1669_v21, 16  ;;  %v582_v40 = vadd.s32 %v580_v11, %v574_v6  ;;  %vm583_vm3 = vc.u32 %v581_v0, %v577_v12  ;;  %v1432_v15 = vsub.s32 %v4544_v37, %v1431_v1 }
  0xa0   : > { %v3999_v16 = vsel %vm1705_vm2, 1.0, %v6671_v54  ;;  %v584_v17 = vsel %vm583_vm3, 1, %v4236_v3  ;;  %v604_v33 = vshll.u32 %v601_v61, 16  ;;  %v605_v26 = vshrl.u32 %v601_v61, 16 }
  0xa1   : > { %v1813_v22 = vmul.f32 %v3999_v16, %v408_v10  ;;  %v586_v23 = vadd.s32 %v584_v17, %v582_v40  ;;  %vm1526_vm4 = vcmp.ne.s32.totalorder %v1432_v15, 0  ;;  %vm1562_vm5 = vcmp.lt.s32.totalorder %v1432_v15, 0 }
  0xa2   : > { %v1634_v34 = vadd.s32 18, %v1432_v15  ;;  %v606_v30 = vshll.u32 %v602_v27, 16  ;;  %vm1598_vm6 = vmand %vm1562_vm5, %vm1526_vm4  ;;  %v607_v29 = vshrl.u32 %v602_v27, 16  ;;  %vm608_vm7 = vc.u32 %v600_v19, %v604_v33 }
  0xa3   : > { %v587_v4 = vadd.s32 %v586_v23, %v576_v24  ;;  %v610_v8 = vadd.s32 %v604_v33, %v600_v19  ;;  %v609_v9 = vsel %vm608_vm7, 1, %v4236_v3  ;;  %v4063_v45 = vunpack.c.l.bf16 %v4111_v28 }
  0xa4   : > { %v1670_v37 = vsel %vm1598_vm6, %v1634_v34, %v1432_v15  ;;  %v4064_v36 = vunpack.c.h.bf16 %v4111_v28  ;;  %v611_v13 = vadd.s32 %v609_v9, %v603_v20  ;;  %v4618_v50 = vadd.s32 112, %v4297_v5 }
  0xa5   : > { %vm1706_vm8 = vcmp.lt.s32.totalorder %v1670_v37, 16  ;;  %v588_v31 = vadd.s32 %v587_v4, %v578_v25  ;;  %vm612_vm9 = vc.u32 %v610_v8, %v606_v30  ;;  %v316_v46 = vsub.f32 %v4063_v45, %v4577_v39 }
  0xa6   : > { %v4000_v58 = vsel %vm1706_vm8, 1.0, %v6671_v54  ;;  %v613_v43 = vsel %vm612_vm9, 1, %v4236_v3  ;;  %v317_v47 = vsub.f32 %v4064_v36, %v4577_v39  ;;  %v380_v52 = vmax.f32 %v4596_v44, 0.0 }
  0xa7   : > { %v1814_v10 = vmul.f32 %v4000_v58, %v409_v48  ;;  %v589_v35 = vshrl.u32 %v588_v31, 4  ;;  %v615_v38 = vadd.s32 %v613_v43, %v611_v13  ;;  %v4625_v18 = vmul.f32 %v4593_v42, %v316_v46 }
  0xa8   : > { %v4628_v53 = vadd.s32 120, %v4297_v5  ;;  %v858_v49 = vand.u32 65535, %v4618_v50  ;;  %v381_v48 = vmax.f32 %v4599_v7, 0.0  ;;  %v4633_v57 = vmul.f32 %v4593_v42, %v317_v47 }
  0xa9   : > { %v1833_v55 = vpack.c.bf16 %v1814_v10, %v1813_v22  ;;  %v590_v56 = vmul.u32 18, %v589_v35  ;;  %v616_v14 = vadd.s32 %v615_v38, %v605_v26  ;;  %v859_v6 = vshrl.u32 %v4618_v50, 16 }
  0xaa   : > { %v4083_v44 = vunpack.c.l.bf16 %v4621_v51  ;;  %v862_v60 = vmul.u32 58254, %v858_v49  ;;  %v887_v19 = vand.u32 65535, %v4628_v53  ;;  %v390_v63 = vmax.f32 %v4625_v18, 0.0 }
  0xab   : > { %4027 = vmatmul.msk.bf16.gmra.mxu3 %vm1851_vm10, %v1833_v55  ;;  %v591_v59 = vsub.s32 %v4570_v32, %v590_v56  ;;  %v617_v24 = vadd.s32 %v616_v14, %v607_v29  ;;  %v861_v41 = vmul.u32 14564, %v858_v49  ;;  %v863_v12 = vmul.u32 14564, %v859_v6 }
  0xac   : > { %v888_v7 = vshrl.u32 %v4628_v53, 16  ;;  %v864_v1 = vmul.u32 58254, %v859_v6  ;;  %v865_v21 = vshll.u32 %v862_v60, 16  ;;  %v890_v61 = vmul.u32 14564, %v887_v19 }
  0xad   : > { %v618_v25 = vshrl.u32 %v617_v24, 4  ;;  %vm1497_vm11 = vcmp.ne.s32.totalorder %v591_v59, 0  ;;  %vm1533_vm12 = vcmp.lt.s32.totalorder %v591_v59, 0  ;;  %v1605_v0 = vadd.s32 18, %v591_v59 }
  0xae   : > { %vm1569_vm13 = vmand %vm1533_vm12, %vm1497_vm11  ;;  %v867_v11 = vshll.u32 %v863_v12, 16  ;;  %v866_v27 = vshrl.u32 %v862_v60, 16  ;;  %v891_v15 = vmul.u32 58254, %v887_v19  ;;  %vm869_vm15 = vc.u32 %v861_v41, %v865_v21 }
  0xaf   : > { %v619_v32 = vmul.u32 18, %v618_v25  ;;  %v1641_v40 = vsel %vm1569_vm13, %v1605_v0, %v591_v59  ;;  %v871_v16 = vadd.s32 %v865_v21, %v861_v41  ;;  %v892_v17 = vmul.u32 14564, %v888_v7 }
  0xb0   : > { %vm1677_vm14 = vcmp.lt.s32.totalorder %v1641_v40, 16  ;;  %v870_v23 = vsel %vm869_vm15, 1, %v4236_v3  ;;  %v894_v33 = vshll.u32 %v891_v15, 16  ;;  %v868_v26 = vshrl.u32 %v863_v12, 16 }
  0xb1   : > { %v620_v20 = vsub.s32 %v4584_v62, %v619_v32  ;;  %v3971_v22 = vsel %vm1677_vm14, 1.0, %v6671_v54  ;;  %v872_v28 = vadd.s32 %v870_v23, %v864_v1  ;;  %vm873_vm0 = vc.u32 %v871_v16, %v867_v11 }
  0xb2   : > { %v893_v34 = vmul.u32 58254, %v888_v7  ;;  %v874_v4 = vsel %vm873_vm0, 1, %v4236_v3  ;;  %v1785_v29 = vmul.f32 %v3971_v22, %v380_v52  ;;  %v896_v37 = vshll.u32 %v892_v17, 16 }
  0xb3   : > { %vm1498_vm1 = vcmp.ne.s32.totalorder %v620_v20, 0  ;;  %vm1534_vm2 = vcmp.lt.s32.totalorder %v620_v20, 0  ;;  %v1606_v30 = vadd.s32 18, %v620_v20  ;;  %v876_v8 = vadd.s32 %v874_v4, %v872_v28 }
  0xb4   : > { %vm1570_vm3 = vmand %vm1534_vm2, %vm1498_vm1  ;;  %vm898_vm4 = vc.u32 %v890_v61, %v894_v33  ;;  %v900_v45 = vadd.s32 %v894_v33, %v890_v61  ;;  %v4084_v36 = vunpack.c.h.bf16 %v4621_v51  ;;  %v895_v13 = vshrl.u32 %v891_v15, 16 }
  0xb5   : > { %v1642_v62 = vsel %vm1570_vm3, %v1606_v30, %v620_v20  ;;  %v899_v9 = vsel %vm898_vm4, 1, %v4236_v3  ;;  %v877_v31 = vadd.s32 %v876_v8, %v866_v27  ;;  %v326_v46 = vsub.f32 %v4083_v44, %v4577_v39 }
  0xb6   : > { %vm1678_vm5 = vcmp.lt.s32.totalorder %v1642_v62, 16  ;;  %v901_v58 = vadd.s32 %v899_v9, %v893_v34  ;;  %vm902_vm6 = vc.u32 %v900_v45, %v896_v37  ;;  %v4651_v47 = vadd.s32 192, %v4297_v5  ;;  %v4121_v37 = vld [vmem:[%s4311_s28 + $0x88] sm:$0xff]  }
  0xb7   : > { %v3972_v43 = vsel %vm1678_vm5, 1.0, %v6671_v54  ;;  %v878_v35 = vadd.s32 %v877_v31, %v868_v26  ;;  %v903_v38 = vsel %vm902_vm6, 1, %v4236_v3  ;;  %v327_v52 = vsub.f32 %v4084_v36, %v4577_v39 }
  0xb8   : > { %v1786_v10 = vmul.f32 %v3972_v43, %v381_v48  ;;  %v897_v55 = vshrl.u32 %v892_v17, 16  ;;  %v905_v51 = vadd.s32 %v903_v38, %v901_v58  ;;  %v4656_v56 = vadd.s32 200, %v4297_v5 }
  0xb9   : > { %v1148_v14 = vand.u32 65535, %v4651_v47  ;;  %v391_v6 = vmax.f32 %v4633_v57, 0.0  ;;  %v879_v44 = vshrl.u32 %v878_v35, 4  ;;  %v1149_v59 = vshrl.u32 %v4651_v47, 16 }
  0xba   : > { %v1819_v49 = vpack.c.bf16 %v1786_v10, %v1785_v29  ;;  %v906_v24 = vadd.s32 %v905_v51, %v895_v13  ;;  %v4662_v48 = vmul.f32 %v4593_v42, %v326_v46  ;;  %v4666_v12 = vmul.f32 %v4593_v42, %v327_v52 }
  0xbb   : > { %v1151_v60 = vmul.u32 14564, %v1148_v14  ;;  %v1152_v19 = vmul.u32 58254, %v1148_v14  ;;  %v880_v41 = vmul.u32 18, %v879_v44  ;;  %v1153_v7 = vmul.u32 14564, %v1149_v59 }
  0xbc   : > { %4013 = vmatmul.msk.bf16.gmra.mxu0 %vm1851_vm10, %v1819_v49  ;;  %v1177_v25 = vand.u32 65535, %v4656_v56  ;;  %v907_v0 = vadd.s32 %v906_v24, %v897_v55  ;;  %v1154_v1 = vmul.u32 58254, %v1149_v59  ;;  %v1178_v11 = vshrl.u32 %v4656_v56, 16 }
  0xbd   : > { %v1155_v21 = vshll.u32 %v1152_v19, 16  ;;  %v881_v61 = vsub.s32 %v4618_v50, %v880_v41  ;;  %v1156_v32 = vshrl.u32 %v1152_v19, 16  ;;  %v1157_v40 = vshll.u32 %v1153_v7, 16 }
  0xbe   : > { %v1180_v27 = vmul.u32 14564, %v1177_v25  ;;  %v908_v15 = vshrl.u32 %v907_v0, 4  ;;  %v1181_v17 = vmul.u32 58254, %v1177_v25  ;;  %v1182_v26 = vmul.u32 14564, %v1178_v11 }
  0xbf   : > { %vm1159_vm7 = vc.u32 %v1151_v60, %v1155_v21  ;;  %v1161_v16 = vadd.s32 %v1155_v21, %v1151_v60  ;;  %vm1507_vm8 = vcmp.ne.s32.totalorder %v881_v61, 0  ;;  %vm1543_vm9 = vcmp.lt.s32.totalorder %v881_v61, 0 }
  0xc0   : > { %v1615_v20 = vadd.s32 18, %v881_v61  ;;  %v1160_v22 = vsel %vm1159_vm7, 1, %v4236_v3  ;;  %v909_v23 = vmul.u32 18, %v908_v15  ;;  %vm1579_vm11 = vmand %vm1543_vm9, %vm1507_vm8  ;;  %v1158_v50 = vshrl.u32 %v1153_v7, 16 }
  0xc1   : > { %v1162_v33 = vadd.s32 %v1160_v22, %v1154_v1  ;;  %vm1163_vm12 = vc.u32 %v1161_v16, %v1157_v40  ;;  %v1184_v30 = vshll.u32 %v1181_v17, 16  ;;  %v1183_v8 = vmul.u32 58254, %v1178_v11 }
  0xc2   : > { %v1651_v28 = vsel %vm1579_vm11, %v1615_v20, %v881_v61  ;;  %v1164_v34 = vsel %vm1163_vm12, 1, %v4236_v3  ;;  %v910_v4 = vsub.s32 %v4628_v53, %v909_v23  ;;  %v1185_v9 = vshrl.u32 %v1181_v17, 16 }
  0xc3   : > { %vm1687_vm13 = vcmp.lt.s32.totalorder %v1651_v28, 16  ;;  %v1166_v29 = vadd.s32 %v1164_v34, %v1162_v33  ;;  %v1186_v45 = vshll.u32 %v1182_v26, 16  ;;  %vm1188_vm14 = vc.u32 %v1180_v27, %v1184_v30 }
  0xc4   : > { %v3981_v62 = vsel %vm1687_vm13, 1.0, %v6671_v54  ;;  %vm1508_vm15 = vcmp.ne.s32.totalorder %v910_v4, 0  ;;  %vm1544_vm0 = vcmp.lt.s32.totalorder %v910_v4, 0  ;;  %v1616_v36 = vadd.s32 18, %v910_v4 }
  0xc5   : > { %v1795_v31 = vmul.f32 %v3981_v62, %v390_v63  ;;  %vm1580_vm1 = vmand %vm1544_vm0, %vm1508_vm15  ;;  %v1167_v13 = vadd.s32 %v1166_v29, %v1156_v32  ;;  %v1189_v58 = vsel %vm1188_vm14, 1, %v4236_v3  ;;  %v1190_v53 = vadd.s32 %v1184_v30, %v1180_v27 }
  0xc6   : > { %v4103_v43 = vunpack.c.l.bf16 %v4121_v37  ;;  %v1652_v46 = vsel %vm1580_vm1, %v1616_v36, %v910_v4  ;;  %v1191_v10 = vadd.s32 %v1189_v58, %v1183_v8  ;;  %v4104_v35 = vunpack.c.h.bf16 %v4121_v37 }
  0xc7   : > { %v4680_v38 = vadd.s32 272, %v4297_v5  ;;  %vm1688_vm2 = vcmp.lt.s32.totalorder %v1652_v46, 16  ;;  %v1168_v52 = vadd.s32 %v1167_v13, %v1158_v50  ;;  %vm1192_vm3 = vc.u32 %v1190_v53, %v1186_v45  ;;  %v4107_v45 = vld [vmem:[%s4311_s28 + $0x18] sm:$0xff]  }
  0xc8   : > { %v336_v55 = vsub.f32 %v4103_v43, %v4577_v39  ;;  %v3982_v18 = vsel %vm1688_vm2, 1.0, %v6671_v54  ;;  %v1187_v63 = vshrl.u32 %v1182_v26, 16  ;;  %v1193_v51 = vsel %vm1192_vm3, 1, %v4236_v3 }
  0xc9   : > { %v4686_v14 = vadd.s32 280, %v4297_v5  ;;  %v1796_v49 = vmul.f32 %v3982_v18, %v391_v6  ;;  %v1169_v44 = vshrl.u32 %v1168_v52, 4  ;;  %v1195_v59 = vadd.s32 %v1193_v51, %v1191_v10 }
  0xca   : > { %v337_v24 = vsub.f32 %v4104_v35, %v4577_v39  ;;  %v400_v60 = vmax.f32 %v4662_v48, 0.0  ;;  %v401_v19 = vmax.f32 %v4666_v12, 0.0  ;;  %v1438_v41 = vand.u32 65535, %v4680_v38 }
  0xcb   : > { %v1439_v7 = vshrl.u32 %v4680_v38, 16  ;;  %v1824_v25 = vpack.c.bf16 %v1796_v49, %v1795_v31  ;;  %v1170_v0 = vmul.u32 18, %v1169_v44  ;;  %v1196_v1 = vadd.s32 %v1195_v59, %v1185_v9 }
  0xcc   : > { %v4696_v21 = vmul.f32 %v4593_v42, %v336_v55  ;;  %v1441_v57 = vmul.u32 14564, %v1438_v41  ;;  %v1442_v6 = vmul.u32 58254, %v1438_v41  ;;  %v1467_v61 = vand.u32 65535, %v4686_v14 }
  0xcd   : > { %v1443_v11 = vmul.u32 14564, %v1439_v7  ;;  %4018 = vmatmul.msk.bf16.gmra.mxu1 %vm1851_vm10, %v1824_v25  ;;  %v1171_v48 = vsub.s32 %v4651_v47, %v1170_v0  ;;  %v1197_v32 = vadd.s32 %v1196_v1, %v1187_v63  ;;  %v4702_v40 = vmul.f32 %v4593_v42, %v337_v24 }
  0xce   : > { %v1468_v27 = vshrl.u32 %v4686_v14, 16  ;;  %v1444_v15 = vmul.u32 58254, %v1439_v7  ;;  %v1445_v16 = vshll.u32 %v1442_v6, 16  ;;  %v1446_v17 = vshrl.u32 %v1442_v6, 16 }
  0xcf   : > { %v1447_v20 = vshll.u32 %v1443_v11, 16  ;;  %v1198_v22 = vshrl.u32 %v1197_v32, 4  ;;  %vm1517_vm4 = vcmp.ne.s32.totalorder %v1171_v48, 0  ;;  %vm1553_vm5 = vcmp.lt.s32.totalorder %v1171_v48, 0 }
  0xd0   : > { %v1625_v23 = vadd.s32 18, %v1171_v48  ;;  %vm1589_vm6 = vmand %vm1553_vm5, %vm1517_vm4  ;;  %v1448_v33 = vshrl.u32 %v1443_v11, 16  ;;  %vm1449_vm7 = vc.u32 %v1441_v57, %v1445_v16  ;;  %v1451_v26 = vadd.s32 %v1445_v16, %v1441_v57 }
  0xd1   : > { %v1471_v47 = vmul.u32 58254, %v1467_v61  ;;  %v1199_v28 = vmul.u32 18, %v1198_v22  ;;  %v1450_v34 = vsel %vm1449_vm7, 1, %v4236_v3  ;;  %v1472_v30 = vmul.u32 14564, %v1468_v27 }
  0xd2   : > { %v1661_v50 = vsel %vm1589_vm6, %v1625_v23, %v1171_v48  ;;  %v1452_v4 = vadd.s32 %v1450_v34, %v1444_v15  ;;  %vm1453_vm9 = vc.u32 %v1451_v26, %v1447_v20  ;;  %v1470_v29 = vmul.u32 14564, %v1467_v61 }
  0xd3   : > { %vm1697_vm8 = vcmp.lt.s32.totalorder %v1661_v50, 16  ;;  %v1200_v8 = vsub.s32 %v4656_v56, %v1199_v28  ;;  %v1454_v62 = vsel %vm1453_vm9, 1, %v4236_v3  ;;  %v1474_v9 = vshll.u32 %v1471_v47, 16 }
  0xd4   : > { %v3991_v37 = vsel %vm1697_vm8, 1.0, %v6671_v54  ;;  %v1456_v31 = vadd.s32 %v1454_v62, %v1452_v4  ;;  %v1473_v13 = vmul.u32 58254, %v1468_v27  ;;  %v1476_v58 = vshll.u32 %v1472_v30, 16 }
  0xd5   : > { %v1805_v36 = vmul.f32 %v3991_v37, %v400_v60  ;;  %vm1518_vm11 = vcmp.ne.s32.totalorder %v1200_v8, 0  ;;  %vm1554_vm12 = vcmp.lt.s32.totalorder %v1200_v8, 0  ;;  %v1626_v53 = vadd.s32 18, %v1200_v8 }
  0xd6   : > { %v1475_v43 = vshrl.u32 %v1471_v47, 16  ;;  %vm1590_vm13 = vmand %vm1554_vm12, %vm1518_vm11  ;;  %v1457_v46 = vadd.s32 %v1456_v31, %v1446_v17  ;;  %vm1478_vm14 = vc.u32 %v1470_v29, %v1474_v9  ;;  %v1480_v10 = vadd.s32 %v1474_v9, %v1470_v29 }
  0xd7   : > { %v4047_v35 = vunpack.c.l.bf16 %v4107_v45  ;;  %v1662_v56 = vsel %vm1590_vm13, %v1626_v53, %v1200_v8  ;;  %v1477_v52 = vshrl.u32 %v1472_v30, 16  ;;  %v1479_v55 = vsel %vm1478_vm14, 1, %v4236_v3 }
  0xd8   : > { %v4712_v18 = vadd.s32 48, %v4297_v5  ;;  %vm1698_vm15 = vcmp.lt.s32.totalorder %v1662_v56, 16  ;;  %v1458_v63 = vadd.s32 %v1457_v46, %v1448_v33  ;;  %v1481_v51 = vadd.s32 %v1479_v55, %v1473_v13 }
  0xd9   : > { %vm1482_vm0 = vc.u32 %v1480_v10, %v1476_v58  ;;  %v3992_v49 = vsel %vm1698_vm15, 1.0, %v6671_v54  ;;  %v4048_v59 = vunpack.c.h.bf16 %v4107_v45  ;;  %v308_v24 = vsub.f32 %v4047_v35, %v4577_v39 }
  0xda   : > { %v1483_v44 = vsel %vm1482_vm0, 1, %v4236_v3  ;;  %v1806_v60 = vmul.f32 %v3992_v49, %v401_v19  ;;  %v1459_v41 = vshrl.u32 %v1458_v63, 4  ;;  %v4720_v25 = vadd.s32 56, %v4297_v5 }
  0xdb   : > { %v1485_v7 = vadd.s32 %v1483_v44, %v1481_v51  ;;  %v410_v0 = vmax.f32 %v4696_v21, 0.0  ;;  %v626_v1 = vand.u32 65535, %v4712_v18  ;;  %v627_v57 = vshrl.u32 %v4712_v18, 16 }
  0xdc   : > { %v1829_v6 = vpack.c.bf16 %v1806_v60, %v1805_v36  ;;  %v411_v11 = vmax.f32 %v4702_v40, 0.0  ;;  %v1460_v61 = vmul.u32 18, %v1459_v41  ;;  %v309_v32 = vsub.f32 %v4048_v59, %v4577_v39 }
  0xdd   : > { %v1486_v48 = vadd.s32 %v1485_v7, %v1475_v43  ;;  %v4728_v12 = vmul.f32 %v4593_v42, %v308_v24  ;;  %v629_v19 = vmul.u32 14564, %v626_v1  ;;  %v630_v27 = vmul.u32 58254, %v626_v1  ;;  %v4112_v43 = vld [vmem:[%s4311_s28 + $0x40] sm:$0xff]  }
  0xde   : > { %4023 = vmatmul.msk.bf16.gmra.mxu2 %vm1851_vm10, %v1829_v6  ;;  %v1461_v21 = vsub.s32 %v4680_v38, %v1460_v61  ;;  %v631_v16 = vmul.u32 14564, %v627_v57  ;;  %v655_v17 = vand.u32 65535, %v4720_v25  ;;  %v632_v20 = vmul.u32 58254, %v627_v57 }
  0xdf   : > { %v1487_v15 = vadd.s32 %v1486_v48, %v1477_v52  ;;  %v633_v22 = vshll.u32 %v630_v27, 16  ;;  %v634_v23 = vshrl.u32 %v630_v27, 16  ;;  %v656_v33 = vshrl.u32 %v4720_v25, 16 }
  0xe0   : > { %vm1527_vm1 = vcmp.ne.s32.totalorder %v1461_v21, 0  ;;  %vm1563_vm2 = vcmp.lt.s32.totalorder %v1461_v21, 0  ;;  %v1635_v47 = vadd.s32 18, %v1461_v21  ;;  %v635_v28 = vshll.u32 %v631_v16, 16 }
  0xe1   : > { %v1488_v26 = vshrl.u32 %v1487_v15, 4  ;;  %vm1599_vm3 = vmand %vm1563_vm2, %vm1527_vm1  ;;  %vm637_vm4 = vc.u32 %v629_v19, %v633_v22  ;;  %v639_v50 = vadd.s32 %v633_v22, %v629_v19  ;;  %v658_v34 = vmul.u32 14564, %v655_v17 }
  0xe2   : > { %v1671_v38 = vsel %vm1599_vm3, %v1635_v47, %v1461_v21  ;;  %v638_v4 = vsel %vm637_vm4, 1, %v4236_v3  ;;  %v659_v29 = vmul.u32 58254, %v655_v17  ;;  %v660_v37 = vmul.u32 14564, %v656_v33 }
  0xe3   : > { %v1489_v30 = vmul.u32 18, %v1488_v26  ;;  %vm1707_vm5 = vcmp.lt.s32.totalorder %v1671_v38, 16  ;;  %v640_v8 = vadd.s32 %v638_v4, %v632_v20  ;;  %vm641_vm6 = vc.u32 %v639_v50, %v635_v28 }
  0xe4   : > { %v4001_v9 = vsel %vm1707_vm5, 1.0, %v6671_v54  ;;  %v4738_v45 = vmul.f32 %v4593_v42, %v309_v32  ;;  %v642_v36 = vsel %vm641_vm6, 1, %v4236_v3  ;;  %v636_v31 = vshrl.u32 %v631_v16, 16 }
  0xe5   : > { %v1490_v62 = vsub.s32 %v4686_v14, %v1489_v30  ;;  %v644_v13 = vadd.s32 %v642_v36, %v640_v8  ;;  %v661_v58 = vmul.u32 58254, %v656_v33  ;;  %v662_v53 = vshll.u32 %v659_v29, 16 }
  0xe6   : > { %v664_v10 = vshll.u32 %v660_v37, 16  ;;  %v1815_v35 = vmul.f32 %v4001_v9, %v410_v0  ;;  %v663_v55 = vshrl.u32 %v659_v29, 16  ;;  %v4067_v51 = vunpack.c.l.bf16 %v4112_v43 }
  0xe7   : > { %vm1528_vm7 = vcmp.ne.s32.totalorder %v1490_v62, 0  ;;  %vm1564_vm8 = vcmp.lt.s32.totalorder %v1490_v62, 0  ;;  %v1636_v46 = vadd.s32 18, %v1490_v62  ;;  %v645_v56 = vadd.s32 %v644_v13, %v634_v23 }
  0xe8   : > { %vm1600_vm9 = vmand %vm1564_vm8, %vm1528_vm7  ;;  %vm666_vm11 = vc.u32 %v658_v34, %v662_v53  ;;  %v668_v14 = vadd.s32 %v662_v53, %v658_v34  ;;  %v665_v24 = vshrl.u32 %v660_v37, 16  ;;  %v4068_v41 = vunpack.c.h.bf16 %v4112_v43  ;;  %v4117_v43 = vld [vmem:[%s4311_s28 + $0x68] sm:$0xff]  }
  0xe9   : > { %v1672_v52 = vsel %vm1600_vm9, %v1636_v46, %v1490_v62  ;;  %v667_v63 = vsel %vm666_vm11, 1, %v4236_v3  ;;  %v646_v49 = vadd.s32 %v645_v56, %v636_v31  ;;  %v4748_v57 = vadd.s32 128, %v4297_v5 }
  0xea   : > { %vm1708_vm12 = vcmp.lt.s32.totalorder %v1672_v52, 16  ;;  %v669_v44 = vadd.s32 %v667_v63, %v661_v58  ;;  %vm670_vm13 = vc.u32 %v668_v14, %v664_v10  ;;  %v318_v6 = vsub.f32 %v4067_v51, %v4577_v39 }
  0xeb   : > { %v4002_v59 = vsel %vm1708_vm12, 1.0, %v6671_v54  ;;  %v671_v60 = vsel %vm670_vm13, 1, %v4236_v3  ;;  %v647_v0 = vshrl.u32 %v646_v49, 4  ;;  %v4752_v61 = vadd.s32 136, %v4297_v5 }
  0xec   : > { %v1816_v7 = vmul.f32 %v4002_v59, %v411_v11  ;;  %v673_v1 = vadd.s32 %v671_v60, %v669_v44  ;;  %v916_v27 = vand.u32 65535, %v4748_v57  ;;  %v382_v21 = vmax.f32 %v4728_v12, 0.0 }
  0xed   : > { %v648_v32 = vmul.u32 18, %v647_v0  ;;  %v383_v40 = vmax.f32 %v4738_v45, 0.0  ;;  %v319_v11 = vsub.f32 %v4068_v41, %v4577_v39  ;;  %v917_v15 = vshrl.u32 %v4748_v57, 16 }
  0xee   : > { %v1834_v48 = vpack.c.bf16 %v1816_v7, %v1815_v35  ;;  %v674_v19 = vadd.s32 %v673_v1, %v663_v55  ;;  %v920_v20 = vmul.u32 58254, %v916_v27  ;;  %v945_v22 = vand.u32 65535, %v4752_v61 }
  0xef   : > { %v649_v16 = vsub.s32 %v4712_v18, %v648_v32  ;;  %v4763_v23 = vmul.f32 %v4593_v42, %v318_v6  ;;  %v919_v33 = vmul.u32 14564, %v916_v27  ;;  %v921_v26 = vmul.u32 14564, %v917_v15 }
  0xf0   : > { %4028 = vmatmul.msk.bf16.gmra.mxu3 %vm1851_vm10, %v1834_v48  ;;  %v675_v17 = vadd.s32 %v674_v19, %v665_v24  ;;  %v946_v12 = vshrl.u32 %v4752_v61, 16  ;;  %v4767_v50 = vmul.f32 %v4593_v42, %v319_v11  ;;  %v922_v18 = vmul.u32 58254, %v917_v15 }
  0xf1   : > { %vm1499_vm14 = vcmp.ne.s32.totalorder %v649_v16, 0  ;;  %vm1535_vm15 = vcmp.lt.s32.totalorder %v649_v16, 0  ;;  %v1607_v28 = vadd.s32 18, %v649_v16  ;;  %v923_v34 = vshll.u32 %v920_v20, 16 }
  0xf2   : > { %v676_v47 = vshrl.u32 %v675_v17, 4  ;;  %vm1571_vm0 = vmand %vm1535_vm15, %vm1499_vm14  ;;  %v925_v30 = vshll.u32 %v921_v26, 16  ;;  %v948_v29 = vmul.u32 14564, %v945_v22  ;;  %v949_v8 = vmul.u32 58254, %v945_v22 }
  0xf3   : > { %v1643_v4 = vsel %vm1571_vm0, %v1607_v28, %v649_v16  ;;  %vm927_vm2 = vc.u32 %v919_v33, %v923_v34  ;;  %v929_v37 = vadd.s32 %v923_v34, %v919_v33  ;;  %v950_v62 = vmul.u32 14564, %v946_v12 }
  0xf4   : > { %v677_v38 = vmul.u32 18, %v676_v47  ;;  %vm1679_vm1 = vcmp.lt.s32.totalorder %v1643_v4, 16  ;;  %v924_v45 = vshrl.u32 %v920_v20, 16  ;;  %v928_v36 = vsel %vm927_vm2, 1, %v4236_v3 }
  0xf5   : > { %v952_v31 = vshll.u32 %v949_v8, 16  ;;  %v3973_v13 = vsel %vm1679_vm1, 1.0, %v6671_v54  ;;  %v930_v58 = vadd.s32 %v928_v36, %v922_v18  ;;  %vm931_vm3 = vc.u32 %v929_v37, %v925_v30 }
  0xf6   : > { %v678_v9 = vsub.s32 %v4720_v25, %v677_v38  ;;  %v951_v53 = vmul.u32 58254, %v946_v12  ;;  %v932_v10 = vsel %vm931_vm3, 1, %v4236_v3  ;;  %v926_v35 = vshrl.u32 %v921_v26, 16 }
  0xf7   : > { %v934_v56 = vadd.s32 %v932_v10, %v930_v58  ;;  %v954_v14 = vshll.u32 %v950_v62, 16  ;;  %vm956_vm7 = vc.u32 %v948_v29, %v952_v31  ;;  %v958_v55 = vadd.s32 %v952_v31, %v948_v29 }
  0xf8   : > { %vm1500_vm4 = vcmp.ne.s32.totalorder %v678_v9, 0  ;;  %vm1536_vm5 = vcmp.lt.s32.totalorder %v678_v9, 0  ;;  %v1608_v46 = vadd.s32 18, %v678_v9  ;;  %v957_v52 = vsel %vm956_vm7, 1, %v4236_v3 }
  0xf9   : > { %vm1572_vm6 = vmand %vm1536_vm5, %vm1500_vm4  ;;  %v4087_v63 = vunpack.c.l.bf16 %v4117_v43  ;;  %v1787_v51 = vmul.f32 %v3973_v13, %v382_v21  ;;  %v935_v49 = vadd.s32 %v934_v56, %v924_v45  ;;  %v959_v44 = vadd.s32 %v957_v52, %v951_v53 }
  0xfa   : > { %v1644_v25 = vsel %vm1572_vm6, %v1608_v46, %v678_v9  ;;  %v953_v24 = vshrl.u32 %v949_v8, 16  ;;  %vm960_vm9 = vc.u32 %v958_v55, %v954_v14  ;;  %v4777_v60 = vadd.s32 208, %v4297_v5 }
  0xfb   : > { %vm1680_vm8 = vcmp.lt.s32.totalorder %v1644_v25, 16  ;;  %v392_v7 = vmax.f32 %v4763_v23, 0.0  ;;  %v936_v0 = vadd.s32 %v935_v49, %v926_v35  ;;  %v961_v1 = vsel %vm960_vm9, 1, %v4236_v3 }
  0xfc   : > { %v3974_v59 = vsel %vm1680_vm8, 1.0, %v6671_v54  ;;  %v955_v6 = vshrl.u32 %v950_v62, 16  ;;  %v963_v48 = vadd.s32 %v961_v1, %v959_v44  ;;  %v4782_v32 = vadd.s32 216, %v4297_v5 }
  0xfd   : > { %v1788_v41 = vmul.f32 %v3974_v59, %v383_v40  ;;  %v1206_v19 = vand.u32 65535, %v4777_v60  ;;  %v937_v21 = vshrl.u32 %v936_v0, 4  ;;  %v4088_v11 = vunpack.c.h.bf16 %v4117_v43 }
  0xfe   : > { %v1207_v15 = vshrl.u32 %v4777_v60, 16  ;;  %v393_v16 = vmax.f32 %v4767_v50, 0.0  ;;  %v964_v40 = vadd.s32 %v963_v48, %v953_v24  ;;  %v328_v33 = vsub.f32 %v4087_v63, %v4577_v39  ;;  %v4108_v24 = vld [vmem:[%s4311_s28 + $0x20] sm:$0xff]  }
  0xff   : > { %v1820_v27 = vpack.c.bf16 %v1788_v41, %v1787_v51  ;;  %v1209_v17 = vmul.u32 14564, %v1206_v19  ;;  %v1210_v20 = vmul.u32 58254, %v1206_v19  ;;  %v938_v22 = vmul.u32 18, %v937_v21 }
 0x100   : > { %v1211_v26 = vmul.u32 14564, %v1207_v15  ;;  %v1235_v12 = vand.u32 65535, %v4782_v32  ;;  %v965_v47 = vadd.s32 %v964_v40, %v955_v6  ;;  %v1212_v28 = vmul.u32 58254, %v1207_v15 }
 0x101   : > { %4014 = vmatmul.msk.bf16.gmra.mxu0 %vm1851_vm10, %v1820_v27  ;;  %v1213_v18 = vshll.u32 %v1210_v20, 16  ;;  %v1236_v34 = vshrl.u32 %v4782_v32, 16  ;;  %v939_v30 = vsub.s32 %v4748_v57, %v938_v22  ;;  %v329_v38 = vsub.f32 %v4088_v11, %v4577_v39 }
 0x102   : > { %v1215_v4 = vshll.u32 %v1211_v26, 16  ;;  %v1238_v29 = vmul.u32 14564, %v1235_v12  ;;  %v966_v8 = vshrl.u32 %v965_v47, 4  ;;  %v1239_v62 = vmul.u32 58254, %v1235_v12 }
 0x103   : > { %vm1217_vm11 = vc.u32 %v1209_v17, %v1213_v18  ;;  %v1219_v37 = vadd.s32 %v1213_v18, %v1209_v17  ;;  %vm1509_vm12 = vcmp.ne.s32.totalorder %v939_v30, 0  ;;  %vm1545_vm13 = vcmp.lt.s32.totalorder %v939_v30, 0 }
 0x104   : > { %v1617_v9 = vadd.s32 18, %v939_v30  ;;  %v1218_v45 = vsel %vm1217_vm11, 1, %v4236_v3  ;;  %v967_v36 = vmul.u32 18, %v966_v8  ;;  %vm1581_vm14 = vmand %vm1545_vm13, %vm1509_vm12  ;;  %v1240_v13 = vmul.u32 14564, %v1236_v34 }
 0x105   : > { %v1220_v31 = vadd.s32 %v1218_v45, %v1212_v28  ;;  %vm1221_vm15 = vc.u32 %v1219_v37, %v1215_v4  ;;  %v1214_v57 = vshrl.u32 %v1210_v20, 16  ;;  %v1242_v53 = vshll.u32 %v1239_v62, 16 }
 0x106   : > { %v1653_v58 = vsel %vm1581_vm14, %v1617_v9, %v939_v30  ;;  %v1222_v39 = vsel %vm1221_vm15, 1, %v4236_v3  ;;  %v968_v43 = vsub.s32 %v4752_v61, %v967_v36  ;;  %v1241_v10 = vmul.u32 58254, %v1236_v34  ;;  %v4827_v34 = vld [vmem:[%s6667_s3] ss:$0 sm:$0xff] }
 0x107   : > { %vm1689_vm0 = vcmp.lt.s32.totalorder %v1653_v58, 16  ;;  %v1224_v46 = vadd.s32 %v1222_v39, %v1220_v31  ;;  %v4797_v35 = vmul.f32 %v4593_v42, %v328_v33  ;;  %v1216_v56 = vshrl.u32 %v1211_v26, 16 }
 0x108   : > { %v1244_v14 = vshll.u32 %v1240_v13, 16  ;;  %vm1246_vm1 = vc.u32 %v1238_v29, %v1242_v53  ;;  %vm1510_vm2 = vcmp.ne.s32.totalorder %v968_v43, 0  ;;  %vm1546_vm3 = vcmp.lt.s32.totalorder %v968_v43, 0 }
 0x109   : > { %v1618_v25 = vadd.s32 18, %v968_v43  ;;  %v3983_v52 = vsel %vm1689_vm0, 1.0, %v6671_v54  ;;  %vm1582_vm4 = vmand %vm1546_vm3, %vm1510_vm2  ;;  %v4801_v55 = vmul.f32 %v4593_v42, %v329_v38  ;;  %v1225_v61 = vadd.s32 %v1224_v46, %v1214_v57 }
 0x10a   : > { %v1247_v63 = vsel %vm1246_vm1, 1, %v4236_v3  ;;  %v1248_v51 = vadd.s32 %v1242_v53, %v1238_v29  ;;  %v1243_v44 = vshrl.u32 %v1239_v62, 16  ;;  %v4806_v41 = vadd.s32 64, %v4297_v5 }
 0x10b   : > { %v1654_v49 = vsel %vm1582_vm4, %v1618_v25, %v968_v43  ;;  %v1249_v59 = vadd.s32 %v1247_v63, %v1241_v10  ;;  %v1797_v0 = vmul.f32 %v3983_v52, %v392_v7  ;;  %v1226_v1 = vadd.s32 %v1225_v61, %v1216_v56  ;;  %v4839_v63 = vld [vmem:[%s6667_s3 + $0x1] ss:$0 sm:$0xff] }
 0x10c   : > { %vm1690_vm5 = vcmp.lt.s32.totalorder %v1654_v49, 16  ;;  %vm1250_vm6 = vc.u32 %v1248_v51, %v1244_v14  ;;  %v1245_v6 = vshrl.u32 %v1240_v13, 16  ;;  %v4813_v19 = vadd.s32 72, %v4297_v5 }
 0x10d   : > { %v3984_v42 = vsel %vm1690_vm5, 1.0, %v6671_v54  ;;  %v1251_v48 = vsel %vm1250_vm6, 1, %v4236_v3  ;;  %v1227_v21 = vshrl.u32 %v1226_v1, 4  ;;  %v4051_v15 = vunpack.c.l.bf16 %v4108_v24 }
 0x10e   : > { %v1798_v27 = vmul.f32 %v3984_v42, %v393_v16  ;;  %v1253_v11 = vadd.s32 %v1251_v48, %v1249_v59  ;;  %v402_v40 = vmax.f32 %v4797_v35, 0.0  ;;  %v4052_v23 = vunpack.c.h.bf16 %v4108_v24 }
 0x10f   : > { %v684_v7 = vand.u32 65535, %v4806_v41  ;;  %v685_v17 = vshrl.u32 %v4806_v41, 16  ;;  %v403_v22 = vmax.f32 %v4801_v55, 0.0  ;;  %v1228_v33 = vmul.u32 18, %v1227_v21 }
 0x110   : > { %v1825_v20 = vpack.c.bf16 %v1798_v27, %v1797_v0  ;;  %v1254_v26 = vadd.s32 %v1253_v11, %v1243_v44  ;;  %v713_v50 = vand.u32 65535, %v4813_v19  ;;  %v310_v30 = vsub.f32 %v4051_v15, %v4827_v34 }
 0x111   : > { %v687_v12 = vmul.u32 14564, %v684_v7  ;;  %v688_v47 = vmul.u32 58254, %v684_v7  ;;  %v689_v28 = vmul.u32 14564, %v685_v17  ;;  %v1229_v16 = vsub.s32 %v4777_v60, %v1228_v33  ;;  %v4856_v7 = vld [vmem:[%s4311_s28 + $0x48] sm:$0xff]  }
 0x112   : > { %4019 = vmatmul.msk.bf16.gmra.mxu1 %vm1851_vm10, %v1825_v20  ;;  %v1255_v18 = vadd.s32 %v1254_v26, %v1245_v6  ;;  %v714_v38 = vshrl.u32 %v4813_v19, 16  ;;  %v311_v4 = vsub.f32 %v4052_v23, %v4827_v34  ;;  %v690_v29 = vmul.u32 58254, %v685_v17 }
 0x113   : > { %v691_v8 = vshll.u32 %v688_v47, 16  ;;  %v693_v37 = vshll.u32 %v689_v28, 16  ;;  %vm1519_vm7 = vcmp.ne.s32.totalorder %v1229_v16, 0  ;;  %vm1555_vm8 = vcmp.lt.s32.totalorder %v1229_v16, 0 }
 0x114   : > { %v1256_v62 = vshrl.u32 %v1255_v18, 4  ;;  %v1627_v9 = vadd.s32 18, %v1229_v16  ;;  %vm1591_vm9 = vmand %vm1555_vm8, %vm1519_vm7  ;;  %v692_v60 = vshrl.u32 %v688_v47, 16  ;;  %v717_v36 = vmul.u32 58254, %v713_v50 }
 0x115   : > { %vm695_vm11 = vc.u32 %v687_v12, %v691_v8  ;;  %v697_v45 = vadd.s32 %v691_v8, %v687_v12  ;;  %v718_v57 = vmul.u32 14564, %v714_v38  ;;  %v716_v53 = vmul.u32 14564, %v713_v50 }
 0x116   : > { %v1257_v31 = vmul.u32 18, %v1256_v62  ;;  %v1663_v13 = vsel %vm1591_vm9, %v1627_v9, %v1229_v16  ;;  %v696_v58 = vsel %vm695_vm11, 1, %v4236_v3  ;;  %v720_v35 = vshll.u32 %v717_v36, 16 }
 0x117   : > { %vm1699_vm12 = vcmp.lt.s32.totalorder %v1663_v13, 16  ;;  %v698_v39 = vadd.s32 %v696_v58, %v690_v29  ;;  %vm699_vm13 = vc.u32 %v697_v45, %v693_v37  ;;  %v694_v56 = vshrl.u32 %v689_v28, 16 }
 0x118   : > { %v1258_v43 = vsub.s32 %v4782_v32, %v1257_v31  ;;  %v3993_v46 = vsel %vm1699_vm12, 1.0, %v6671_v54  ;;  %v700_v10 = vsel %vm699_vm13, 1, %v4236_v3  ;;  %v719_v25 = vmul.u32 58254, %v714_v38 }
 0x119   : > { %v702_v14 = vadd.s32 %v700_v10, %v698_v39  ;;  %v722_v52 = vshll.u32 %v718_v57, 16  ;;  %v4842_v51 = vmul.f32 %v4839_v63, %v310_v30  ;;  %v1807_v32 = vmul.f32 %v3993_v46, %v402_v40 }
 0x11a   : > { %vm1520_vm14 = vcmp.ne.s32.totalorder %v1258_v43, 0  ;;  %vm1556_vm15 = vcmp.lt.s32.totalorder %v1258_v43, 0  ;;  %v1628_v61 = vadd.s32 18, %v1258_v43  ;;  %vm724_vm1 = vc.u32 %v716_v53, %v720_v35 }
 0x11b   : > { %vm1592_vm0 = vmand %vm1556_vm15, %vm1520_vm14  ;;  %v703_v49 = vadd.s32 %v702_v14, %v692_v60  ;;  %v726_v44 = vadd.s32 %v720_v35, %v716_v53  ;;  %v721_v24 = vshrl.u32 %v717_v36, 16  ;;  %v725_v0 = vsel %vm724_vm1, 1, %v4236_v3 }
 0x11c   : > { %v1664_v59 = vsel %vm1592_vm0, %v1628_v61, %v1258_v43  ;;  %v4846_v1 = vadd.s32 144, %v4297_v5  ;;  %v727_v6 = vadd.s32 %v725_v0, %v719_v25  ;;  %v4850_v27 = vmul.f32 %v4839_v63, %v311_v4 }
 0x11d   : > { %vm1700_vm2 = vcmp.lt.s32.totalorder %v1664_v59, 16  ;;  %v704_v42 = vadd.s32 %v703_v49, %v694_v56  ;;  %vm728_vm3 = vc.u32 %v726_v44, %v722_v52  ;;  %v723_v21 = vshrl.u32 %v718_v57, 16 }
 0x11e   : > { %v3994_v48 = vsel %vm1700_vm2, 1.0, %v6671_v54  ;;  %v729_v11 = vsel %vm728_vm3, 1, %v4236_v3  ;;  %v4859_v17 = vadd.s32 152, %v4297_v5  ;;  %v974_v20 = vand.u32 65535, %v4846_v1 }
 0x11f   : > { %v1808_v15 = vmul.f32 %v3994_v48, %v403_v22  ;;  %v705_v40 = vshrl.u32 %v704_v42, 4  ;;  %v731_v23 = vadd.s32 %v729_v11, %v727_v6  ;;  %v975_v33 = vshrl.u32 %v4846_v1, 16 }
 0x120   : > { %v384_v12 = vmax.f32 %v4842_v51, 0.0  ;;  %v385_v50 = vmax.f32 %v4850_v27, 0.0  ;;  %v4071_v55 = vunpack.c.l.bf16 %v4856_v7  ;;  %v977_v22 = vmul.u32 14564, %v974_v20 }
 0x121   : > { %v1830_v26 = vpack.c.bf16 %v1808_v15, %v1807_v32  ;;  %v706_v47 = vmul.u32 18, %v705_v40  ;;  %v732_v28 = vadd.s32 %v731_v23, %v721_v24  ;;  %v978_v16 = vmul.u32 58254, %v974_v20 }
 0x122   : > { %v979_v38 = vmul.u32 14564, %v975_v33  ;;  %v1003_v4 = vand.u32 65535, %v4859_v17  ;;  %v980_v29 = vmul.u32 58254, %v975_v33  ;;  %v1004_v62 = vshrl.u32 %v4859_v17, 16 }
 0x123   : > { %4024 = vmatmul.msk.bf16.gmra.mxu2 %vm1851_vm10, %v1830_v26  ;;  %v707_v18 = vsub.s32 %v4806_v41, %v706_v47  ;;  %v733_v30 = vadd.s32 %v732_v28, %v723_v21  ;;  %v981_v8 = vshll.u32 %v978_v16, 16  ;;  %v982_v37 = vshrl.u32 %v978_v16, 16 }
 0x124   : > { %v983_v45 = vshll.u32 %v979_v38, 16  ;;  %v1006_v31 = vmul.u32 14564, %v1003_v4  ;;  %v1007_v57 = vmul.u32 58254, %v1003_v4  ;;  %v1008_v53 = vmul.u32 14564, %v1004_v62 }
 0x125   : > { %v734_v9 = vshrl.u32 %v733_v30, 4  ;;  %vm1501_vm4 = vcmp.ne.s32.totalorder %v707_v18, 0  ;;  %vm1537_vm5 = vcmp.lt.s32.totalorder %v707_v18, 0  ;;  %v1609_v60 = vadd.s32 18, %v707_v18 }
 0x126   : > { %vm1573_vm6 = vmand %vm1537_vm5, %vm1501_vm4  ;;  %vm985_vm7 = vc.u32 %v977_v22, %v981_v8  ;;  %v987_v36 = vadd.s32 %v981_v8, %v977_v22  ;;  %v4072_v46 = vunpack.c.h.bf16 %v4856_v7  ;;  %v984_v10 = vshrl.u32 %v979_v38, 16 }
 0x127   : > { %v735_v13 = vmul.u32 18, %v734_v9  ;;  %v1645_v41 = vsel %vm1573_vm6, %v1609_v60, %v707_v18  ;;  %v986_v58 = vsel %vm985_vm7, 1, %v4236_v3  ;;  %v1009_v25 = vmul.u32 58254, %v1004_v62 }
 0x128   : > { %vm1681_vm8 = vcmp.lt.s32.totalorder %v1645_v41, 16  ;;  %v988_v39 = vadd.s32 %v986_v58, %v980_v29  ;;  %vm989_vm9 = vc.u32 %v987_v36, %v983_v45  ;;  %v1010_v52 = vshll.u32 %v1007_v57, 16  ;;  %v4897_v36 = vpop.f32.mrf.mxu1 }
 0x129   : > { %v736_v43 = vsub.s32 %v4813_v19, %v735_v13  ;;  %v990_v35 = vsel %vm989_vm9, 1, %v4236_v3  ;;  %v3975_v56 = vsel %vm1681_vm8, 1.0, %v6671_v54  ;;  %v1012_v51 = vshll.u32 %v1008_v53, 16 }
 0x12a   : > { %v992_v14 = vadd.s32 %v990_v35, %v988_v39  ;;  %v320_v32 = vsub.f32 %v4071_v55, %v4827_v34  ;;  %vm1014_vm14 = vc.u32 %v1006_v31, %v1010_v52  ;;  %v1016_v19 = vadd.s32 %v1010_v52, %v1006_v31  ;;  %v4899_v39 = vpop.f32.mrf.mxu3 }
 0x12b   : > { %vm1502_vm11 = vcmp.ne.s32.totalorder %v736_v43, 0  ;;  %vm1538_vm12 = vcmp.lt.s32.totalorder %v736_v43, 0  ;;  %v1610_v61 = vadd.s32 18, %v736_v43  ;;  %v1789_v59 = vmul.f32 %v3975_v56, %v384_v12 }
 0x12c   : > { %vm1574_vm13 = vmand %vm1538_vm12, %vm1502_vm11  ;;  %v993_v49 = vadd.s32 %v992_v14, %v982_v37  ;;  %v1011_v24 = vshrl.u32 %v1007_v57, 16  ;;  %v1015_v0 = vsel %vm1014_vm14, 1, %v4236_v3  ;;  %vm1018_vm0 = vc.u32 %v1016_v19, %v1012_v51  ;;  %v1965_v57 = vpop.f32.mrf.mxu2 }
 0x12d   : > { %v1646_v44 = vsel %vm1574_vm13, %v1610_v61, %v736_v43  ;;  %v1017_v6 = vadd.s32 %v1015_v0, %v1009_v25  ;;  %v321_v27 = vsub.f32 %v4072_v46, %v4827_v34  ;;  %v1013_v21 = vshrl.u32 %v1008_v53, 16 }
 0x12e   : > { %vm1682_vm15 = vcmp.lt.s32.totalorder %v1646_v44, 16  ;;  %v994_v42 = vadd.s32 %v993_v49, %v984_v10  ;;  %v1019_v11 = vsel %vm1018_vm0, 1, %v4236_v3  ;;  %v4881_v7 = vadd.s32 224, %v4297_v5  ;;  %v4118_v44 = vld [vmem:[%s4311_s28 + $0x70] sm:$0xff]  }
 0x12f   : > { %v3976_v48 = vsel %vm1682_vm15, 1.0, %v6671_v54  ;;  %v1021_v23 = vadd.s32 %v1019_v11, %v1017_v6  ;;  %v358_v20 = vmul.f32 %v4839_v63, %v320_v32  ;;  %v4885_v33 = vadd.s32 232, %v4297_v5 }
 0x130   : > { %v1790_v15 = vmul.f32 %v3976_v48, %v385_v50  ;;  %v995_v40 = vshrl.u32 %v994_v42, 4  ;;  %v1264_v28 = vand.u32 65535, %v4881_v7  ;;  %v4889_v55 = vmul.f32 %v4839_v63, %v321_v27  ;;  %v1942_v27 = vpop.f32.mrf.mxu1 }
 0x131   : > { %v1022_v47 = vadd.s32 %v1021_v23, %v1011_v24  ;;  %v1265_v50 = vshrl.u32 %v4881_v7, 16  ;;  %v1293_v30 = vand.u32 65535, %v4885_v33  ;;  %v394_v5 = vmax.f32 %v358_v20, 0.0 }
 0x132   : > { %v1821_v26 = vpack.c.bf16 %v1790_v15, %v1789_v59  ;;  %v996_v12 = vmul.u32 18, %v995_v40  ;;  %v1268_v18 = vmul.u32 58254, %v1264_v28  ;;  %v1267_v38 = vmul.u32 14564, %v1264_v28  ;;  %v1992_v28 = vpop.f32.mrf.mxu3 }
 0x133   : > { %v1023_v16 = vadd.s32 %v1022_v47, %v1013_v21  ;;  %v1269_v4 = vmul.u32 14564, %v1265_v50  ;;  %v1294_v29 = vshrl.u32 %v4885_v33, 16  ;;  %v395_v62 = vmax.f32 %v4889_v55, 0.0 }
 0x134   : > { %4015 = vmatmul.msk.bf16.gmra.mxu0 %vm1851_vm10, %v1821_v26  ;;  %v997_v22 = vsub.s32 %v4846_v1, %v996_v12  ;;  %v1270_v9 = vmul.u32 58254, %v1265_v50  ;;  %v1271_v60 = vshll.u32 %v1268_v18, 16  ;;  %v1915_v1 = vpop.f32.mrf.mxu0  ;;  %v1296_v41 = vmul.u32 14564, %v1293_v30  ;;  %v1967_v15 = vpop.f32.mrf.mxu2 }
 0x135   : > { %v1024_v8 = vshrl.u32 %v1023_v16, 4  ;;  %v1273_v45 = vshll.u32 %v1269_v4, 16  ;;  %v1297_v58 = vmul.u32 58254, %v1293_v30  ;;  %v1298_v43 = vmul.u32 14564, %v1294_v29 }
 0x136   : > { %vm1511_vm1 = vcmp.ne.s32.totalorder %v997_v22, 0  ;;  %vm1547_vm2 = vcmp.lt.s32.totalorder %v997_v22, 0  ;;  %v1619_v37 = vadd.s32 18, %v997_v22  ;;  %vm1275_vm5 = vc.u32 %v1267_v38, %v1271_v60 }
 0x137   : > { %vm1583_vm3 = vmand %vm1547_vm2, %vm1511_vm1  ;;  %v1025_v31 = vmul.u32 18, %v1024_v8  ;;  %v1277_v53 = vadd.s32 %v1271_v60, %v1267_v38  ;;  %v1272_v10 = vshrl.u32 %v1268_v18, 16  ;;  %v1276_v35 = vsel %vm1275_vm5, 1, %v4236_v3 }
 0x138   : > { %v1655_v13 = vsel %vm1583_vm3, %v1619_v37, %v997_v22  ;;  %v1300_v56 = vshll.u32 %v1297_v58, 16  ;;  %v1278_v25 = vadd.s32 %v1276_v35, %v1270_v9  ;;  %v1299_v52 = vmul.u32 58254, %v1294_v29  ;;  %v1945_v8 = vpop.f32.mrf.mxu1 }
 0x139   : > { %vm1691_vm4 = vcmp.lt.s32.totalorder %v1655_v13, 16  ;;  %v1026_v46 = vsub.s32 %v4859_v17, %v1025_v31  ;;  %vm1279_vm6 = vc.u32 %v1277_v53, %v1273_v45  ;;  %v1274_v32 = vshrl.u32 %v1269_v4, 16 }
 0x13a   : > { %v3985_v14 = vsel %vm1691_vm4, 1.0, %v6671_v54  ;;  %v1280_v51 = vsel %vm1279_vm6, 1, %v4236_v3  ;;  %v1302_v19 = vshll.u32 %v1298_v43, 16  ;;  %vm1304_vm11 = vc.u32 %v1296_v41, %v1300_v56  ;;  %v1995_v13 = vpop.f32.mrf.mxu3 }
 0x13b   : > { %vm1512_vm7 = vcmp.ne.s32.totalorder %v1026_v46, 0  ;;  %vm1548_vm8 = vcmp.lt.s32.totalorder %v1026_v46, 0  ;;  %v1620_v61 = vadd.s32 18, %v1026_v46  ;;  %v1282_v49 = vadd.s32 %v1280_v51, %v1278_v25 }
 0x13c   : > { %vm1584_vm9 = vmand %vm1548_vm8, %vm1512_vm7  ;;  %v1305_v59 = vsel %vm1304_vm11, 1, %v4236_v3  ;;  %v1306_v24 = vadd.s32 %v1300_v56, %v1296_v41  ;;  %vm2005_vm12 = vcmask 588800   ;;  %v1799_v0 = vmul.f32 %v3985_v14, %v394_v5  ;;  %v1917_v48 = vpop.f32.mrf.mxu0 }
 0x13d   : > { %v1656_v17 = vsel %vm1584_vm9, %v1620_v61, %v1026_v46  ;;  %v1283_v42 = vadd.s32 %v1282_v49, %v1272_v10  ;;  %v1307_v6 = vadd.s32 %v1305_v59, %v1299_v52  ;;  %2006 = vst.msk [vmem:[#allocation2] sm:$0xff] %vm2005_vm12, %v6671_v54  ;;  %v1301_v11 = vshrl.u32 %v1297_v58, 16 }
 0x13e   : > { %vm1692_vm13 = vcmp.lt.s32.totalorder %v1656_v17, 16  ;;  %vm1308_vm14 = vc.u32 %v1306_v24, %v1302_v19  ;;  %2007 = vst.msk [vmem:[#allocation2 + $0x8] sm:$0xff] %vm2005_vm12, %v6671_v54  ;;  %vm2008_vm15 = vcmask 583680   ;;  %v4091_v23 = vunpack.c.l.bf16 %v4118_v44 }
 0x13f   : > { %v3986_v21 = vsel %vm1692_vm13, 1.0, %v6671_v54  ;;  %v1284_v20 = vadd.s32 %v1283_v42, %v1274_v32  ;;  %v1309_v26 = vsel %vm1308_vm14, 1, %v4236_v3  ;;  %2010 = vst.msk [vmem:[#allocation2 + $0x133] sm:$0xff] %vm2005_vm12, %v6671_v54  ;;  %v1303_v12 = vshrl.u32 %v1298_v43, 16 }
 0x140   : > { %v1800_v40 = vmul.f32 %v3986_v21, %v395_v62  ;;  %v1311_v47 = vadd.s32 %v1309_v26, %v1307_v6  ;;  %2011 = vst.msk [vmem:[#allocation2 + $0x13b] sm:$0xff] %vm2005_vm12, %v6671_v54  ;;  %v4092_v50 = vunpack.c.h.bf16 %v4118_v44  ;;  %v330_v3 = vsub.f32 %v4091_v23, %v4827_v34  ;;  %v1970_v62 = vpop.f32.mrf.mxu2  ;;  %v1947_v53 = vpop.f32.mrf.mxu1 }
 0x141   : > { %v1285_v22 = vshrl.u32 %v1284_v20, 4  ;;  %2009 = vst.msk [vmem:[#allocation2 + $0x10] sm:$0x7] %vm2008_vm15, %v6671_v54  ;;  %vm3868_vm9 = vcmask 64512  }
 0x142   : > { %v1826_v55 = vpack.c.bf16 %v1800_v40, %v1799_v0  ;;  %v1312_v16 = vadd.s32 %v1311_v47, %v1301_v11  ;;  %2014 = vst.msk [vmem:[#allocation2 + $0x13] sm:$0xff] %vm2005_vm12, %v1915_v1  ;;  %v331_v5 = vsub.f32 %v4092_v50, %v4827_v34  ;;  %v368_v9 = vmul.f32 %v4839_v63, %v330_v3  ;;  %v1997_v17 = vpop.f32.mrf.mxu3 }
 0x143   : > { %v1286_v18 = vmul.u32 18, %v1285_v22  ;;  %2024 = vst.msk [vmem:[#allocation2 + $0x63] sm:$0xff] %vm2005_vm12, %v4897_v36 }
 0x144   : > { %4020 = vmatmul.msk.bf16.gmra.mxu1 %vm1851_vm10, %v1826_v55  ;;  %v1313_v30 = vadd.s32 %v1312_v16, %v1303_v12  ;;  %2034 = vst.msk [vmem:[#allocation2 + $0xb3] sm:$0xff] %vm2005_vm12, %v1965_v57  ;;  %v1920_v29 = vpop.f32.mrf.mxu0  ;;  %v369_v45 = vmul.f32 %v4839_v63, %v331_v5  ;;  %v404_v41 = vmax.f32 %v368_v9, 0.0 }
 0x145   : > { %v1287_v38 = vsub.s32 %v4881_v7, %v1286_v18  ;;  %v2158_v4 = vld [vmem:[#allocation2 + $0x1] sm:$0xff]  ;;  %2015 = vst.msk [vmem:[#allocation2 + $0x1b] sm:$0xff] %vm2005_vm12, %v1917_v48 }
 0x146   : > { %v1314_v37 = vshrl.u32 %v1313_v30, 4  ;;  %2230 = vrot.lane.b32.xlu0 %v2158_v4, %s4238_s16  ;;  %2025 = vst.msk [vmem:[#allocation2 + $0x6b] sm:$0xff] %vm2005_vm12, %v1942_v27  ;;  %v2374_v61 = vld [vmem:[#allocation2 + $0x2] sm:$0xff] }
 0x147   : > { %vm1521_vm0 = vcmp.ne.s32.totalorder %v1287_v38, 0  ;;  %vm1557_vm1 = vcmp.lt.s32.totalorder %v1287_v38, 0  ;;  %v1629_v60 = vadd.s32 18, %v1287_v38  ;;  %2044 = vst.msk [vmem:[#allocation2 + $0x103] sm:$0xff] %vm2005_vm12, %v4899_v39  ;;  %v405_v39 = vmax.f32 %v369_v45, 0.0 }
 0x148   : > { %v1315_v34 = vmul.u32 18, %v1314_v37  ;;  %vm1593_vm2 = vmand %vm1557_vm1, %vm1521_vm0  ;;  %v2375_v7 = vld [vmem:[#allocation2 + $0xa] sm:$0xff]  ;;  %2035 = vst.msk [vmem:[#allocation2 + $0xbb] sm:$0xff] %vm2005_vm12, %v1967_v15  ;;  %v1972_v56 = vpop.f32.mrf.mxu2 }
 0x149   : > { %v1665_v1 = vsel %vm1593_vm2, %v1629_v60, %v1287_v38  ;;  %2448 = vrot.lane.b32.xlu1 %v2375_v7, %s4239_s17  ;;  %v2376_v36 = vld [vmem:[#allocation2 + $0x12] sm:$0xff]  ;;  %2016 = vst.msk [vmem:[#allocation2 + $0x23] sm:$0xff] %vm2005_vm12, %v1920_v29  ;;  %v2159_v58 = vld [vmem:[#allocation2 + $0x9] sm:$0xff] }
 0x14a   : > { %v1316_v31 = vsub.s32 %v4885_v33, %v1315_v34  ;;  %vm1701_vm3 = vcmp.lt.s32.totalorder %v1665_v1, 16  ;;  %2450 = vrot.lane.b32.xlu2 %v2376_v36, %s4239_s17  ;;  %2026 = vst.msk [vmem:[#allocation2 + $0x73] sm:$0xff] %vm2005_vm12, %v1945_v8  ;;  %v2160_v46 = vld [vmem:[#allocation2 + $0x11] sm:$0xff]  ;;  %v1950_v32 = vpop.f32.mrf.mxu1 }
 0x14b   : > { %2045 = vst.msk [vmem:[#allocation2 + $0x10b] sm:$0xff] %vm2005_vm12, %v1992_v28  ;;  %v3995_v57 = vsel %vm1701_vm3, 1.0, %v6671_v54 }
 0x14c   : > { %vm1522_vm4 = vcmp.ne.s32.totalorder %v1316_v31, 0  ;;  %vm1558_vm5 = vcmp.lt.s32.totalorder %v1316_v31, 0  ;;  %v1630_v63 = vadd.s32 18, %v1316_v31  ;;  %2036 = vst.msk [vmem:[#allocation2 + $0xc3] sm:$0xff] %vm2005_vm12, %v1970_v62  ;;  %v1922_v33 = vpop.f32.mrf.mxu0  ;;  %v1809_v10 = vmul.f32 %v3995_v57, %v404_v41  ;;  %v2161_v49 = vld [vmem:[#allocation2 + $0x19] sm:$0xff] }
 0x14d   : > { %vm1594_vm6 = vmand %vm1558_vm5, %vm1522_vm4  ;;  %2046 = vst.msk [vmem:[#allocation2 + $0x113] sm:$0xff] %vm2005_vm12, %v1995_v13  ;;  %v2387_v35 = vld [vmem:[#allocation2 + $0x6a] sm:$0xff]  ;;  %v2377_v6 = vld [vmem:[#allocation2 + $0x1a] sm:$0xff] }
 0x14e   : > { %v1666_v43 = vsel %vm1594_vm6, %v1630_v63, %v1316_v31  ;;  %2232 = vrot.lane.b32.xlu0 %v2159_v58, %s4238_s16  ;;  %2017 = vst.msk [vmem:[#allocation2 + $0x2b] sm:$0xff] %vm2005_vm12, %v1922_v33  ;;  %v2171_v42 = vld [vmem:[#allocation2 + $0x69] sm:$0xff] }
 0x14f   : > { %vm1702_vm7 = vcmp.lt.s32.totalorder %v1666_v43, 16  ;;  %2027 = vst.msk [vmem:[#allocation2 + $0x7b] sm:$0xff] %vm2005_vm12, %v1947_v53  ;;  %v2181_v19 = vld [vmem:[#allocation2 + $0xb9] sm:$0xff] }
 0x150   : > { %v3996_v14 = vsel %vm1702_vm7, 1.0, %v6671_v54  ;;  %2037 = vst.msk [vmem:[#allocation2 + $0xcb] sm:$0xff] %vm2005_vm12, %v1972_v56  ;;  %v4959_v24 = vld [vmem:[#allocation2 + $0xba] sm:$0xff]  ;;  %v2378_v23 = vld [vmem:[#allocation2 + $0x22] sm:$0xff] }
 0x151   : > { %v1810_v25 = vmul.f32 %v3996_v14, %v405_v39  ;;  %2234 = vrot.lane.b32.xlu1 %v2160_v46, %s4238_s16  ;;  %2028 = vst.msk [vmem:[#allocation2 + $0x83] sm:$0xff] %vm2005_vm12, %v1950_v32  ;;  %v2162_v27 = vld [vmem:[#allocation2 + $0x21] sm:$0xff]  ;;  %v2172_v15 = vld [vmem:[#allocation2 + $0x71] sm:$0xff] }
 0x152   : > { %2616 = vrot.lane.b32.xlu2 %v2387_v35, %s4240_s18  ;;  %2047 = vst.msk [vmem:[#allocation2 + $0x11b] sm:$0xff] %vm2005_vm12, %v1997_v17  ;;  %v1952_v59 = vpop.f32.mrf.mxu1  ;;  %v2191_v21 = vld [vmem:[#allocation2 + $0x109] sm:$0xff]  ;;  %v2388_v20 = vld [vmem:[#allocation2 + $0x72] sm:$0xff] }
 0x153   : > { %v1831_v52 = vpack.c.bf16 %v1810_v25, %v1809_v10  ;;  %2029 = vst.msk [vmem:[#allocation2 + $0x8b] sm:$0xff] %vm2005_vm12, %v1952_v59  ;;  %v4974_v40 = vld [vmem:[#allocation2 + $0x10a] sm:$0xff]  ;;  %v2182_v12 = vld [vmem:[#allocation2 + $0xc1] sm:$0xff] }
 0x154   : > { %v1925_v51 = vpop.f32.mrf.mxu0  ;;  %v2192_v28 = vld [vmem:[#allocation2 + $0x111] sm:$0xff]  ;;  %v4986_v50 = vld [vmem:[#allocation2 + $0xc2] sm:$0xff] }
 0x155   : > { %4025 = vmatmul.msk.bf16.gmra.mxu2 %vm1851_vm10, %v1831_v52  ;;  %2018 = vst.msk [vmem:[#allocation2 + $0x33] sm:$0xff] %vm2005_vm12, %v1925_v51  ;;  %v4991_v22 = vld [vmem:[#allocation2 + $0x112] sm:$0xff]  ;;  %v2163_v18 = vld [vmem:[#allocation2 + $0x29] sm:$0xff]  ;;  %vm2012_vm10 = vcmask 585728  }
 0x156   : > { %2446 = vrot.lane.b32.xlu0 %v2374_v61, %s4239_s17  ;;  %v2173_v3 = vld [vmem:[#allocation2 + $0x79] sm:$0xff]  ;;  %v2379_v38 = vld [vmem:[#allocation2 + $0x2a] sm:$0xff] }
 0x157   : > { %v2389_v5 = vld [vmem:[#allocation2 + $0x7a] sm:$0xff]  ;;  %v2183_v8 = vld [vmem:[#allocation2 + $0xc9] sm:$0xff] }
 0x158   : > { %v5008_v9 = vld [vmem:[#allocation2 + $0xca] sm:$0xff]  ;;  %v2390_v41 = vld [vmem:[#allocation2 + $0x82] sm:$0xff] }
 0x159   : > { %2236 = vrot.lane.b32.xlu1 %v2161_v49, %s4238_s16  ;;  %v2193_v37 = vld [vmem:[#allocation2 + $0x119] sm:$0xff] }
 0x15a   : > { %2276 = vrot.lane.b32.xlu2 %v2181_v19, %s4238_s16  ;;  %v5013_v34 = vld [vmem:[#allocation2 + $0x11a] sm:$0xff]  ;;  %v2391_v39 = vld [vmem:[#allocation2 + $0x8a] sm:$0xff] }
 0x15b   : > { %v2175_v32 = vld [vmem:[#allocation2 + $0x89] sm:$0xff] }
 0x15c   : > { %v1927_v44 = vpop.f32.mrf.mxu0  ;;  %v2164_v60 = vld [vmem:[#allocation2 + $0x31] sm:$0xff] }
 0x15d   : > { %2019 = vst.msk [vmem:[#allocation2 + $0x3b] sm:$0xff] %vm2005_vm12, %v1927_v44  ;;  %v2380_v31 = vld [vmem:[#allocation2 + $0x32] sm:$0xff] }
 0x15e   : > { %2594 = vrot.lane.b32.xlu0 %v2376_v36, %s4240_s18  ;;  %v2174_v36 = vld [vmem:[#allocation2 + $0x81] sm:$0xff] }
 0x161   : > { %v1975_v0 = vpop.f32.mrf.mxu2  ;;  %2256 = vrot.lane.b32.xlu1 %v2171_v42, %s4238_s16 }
 0x162   : > { %2038 = vst.msk [vmem:[#allocation2 + $0xd3] sm:$0xff] %vm2005_vm12, %v1975_v0  ;;  %2492 = vrot.lane.b32.xlu2 %v4959_v24, %s4239_s17 }
 0x164   : > { %v2165_v51 = vld [vmem:[#allocation2 + $0x39] sm:$0xff] }
 0x165   : > { %v2381_v0 = vld [vmem:[#allocation2 + $0x3a] sm:$0xff] }
 0x166   : > { %2452 = vrot.lane.b32.xlu0 %v2377_v6, %s4239_s17 }
 0x169   : > { %v1977_v48 = vpop.f32.mrf.mxu2  ;;  %2472 = vrot.lane.b32.xlu1 %v2387_v35, %s4239_s17  ;;  %v2184_v33 = vld [vmem:[#allocation2 + $0xd1] sm:$0xff] }
 0x16a   : > { %2039 = vst.msk [vmem:[#allocation2 + $0xdb] sm:$0xff] %vm2005_vm12, %v1977_v48  ;;  %2238 = vrot.lane.b32.xlu2 %v2162_v27, %s4238_s16  ;;  %v5043_v35 = vld [vmem:[#allocation2 + $0xd2] sm:$0xff] }
 0x16e   : > { %2296 = vrot.lane.b32.xlu0 %v2191_v21, %s4238_s16 }
 0x171   : > { %2596 = vrot.lane.b32.xlu1 %v2377_v6, %s4240_s18  ;;  %v2185_v43 = vld [vmem:[#allocation2 + $0xd9] sm:$0xff] }
 0x172   : > { %2258 = vrot.lane.b32.xlu2 %v2172_v15, %s4238_s16  ;;  %v5049_v25 = vld [vmem:[#allocation2 + $0xda] sm:$0xff] }
 0x173   : > { %v2000_v11 = vpop.f32.mrf.mxu3 }
 0x174   : > { %2048 = vst.msk [vmem:[#allocation2 + $0x123] sm:$0xff] %vm2005_vm12, %v2000_v11 }
 0x176   : > { %2512 = vrot.lane.b32.xlu0 %v4974_v40, %s4239_s17 }
 0x179   : > { %2454 = vrot.lane.b32.xlu1 %v2378_v23, %s4239_s17 }
 0x17a   : > { %2474 = vrot.lane.b32.xlu2 %v2388_v20, %s4239_s17 }
 0x17e   : > { %v1930_v26 = vpop.f32.mrf.mxu0  ;;  %2618 = vrot.lane.b32.xlu0 %v2388_v20, %s4240_s18 }
 0x17f   : > { %2020 = vst.msk [vmem:[#allocation2 + $0x43] sm:$0xff] %vm2005_vm12, %v1930_v26 }
 0x181   : > { %2298 = vrot.lane.b32.xlu1 %v2192_v28, %s4238_s16 }
 0x182   : > { %2598 = vrot.lane.b32.xlu2 %v2378_v23, %s4240_s18 }
 0x186   : > { %v1932_v47 = vpop.f32.mrf.mxu0  ;;  %2278 = vrot.lane.b32.xlu0 %v2182_v12, %s4238_s16  ;;  %v2382_v23 = vld [vmem:[#allocation2 + $0x42] sm:$0xff] }
 0x187   : > { %2021 = vst.msk [vmem:[#allocation2 + $0x4b] sm:$0xff] %vm2005_vm12, %v1932_v47  ;;  %v2166_v20 = vld [vmem:[#allocation2 + $0x41] sm:$0xff] }
 0x189   : > { %2514 = vrot.lane.b32.xlu1 %v4991_v22, %s4239_s17 }
 0x18a   : > { %2240 = vrot.lane.b32.xlu2 %v2163_v18, %s4238_s16 }
 0x18e   : > { %2494 = vrot.lane.b32.xlu0 %v4986_v50, %s4239_s17  ;;  %v2167_v12 = vld [vmem:[#allocation2 + $0x49] sm:$0xff] }
 0x18f   : > { %v1955_v55 = vpop.f32.mrf.mxu1 }
 0x190   : > { %2030 = vst.msk [vmem:[#allocation2 + $0x93] sm:$0xff] %vm2005_vm12, %v1955_v55 }
 0x191   : > { %2620 = vrot.lane.b32.xlu1 %v2389_v5, %s4240_s18 }
 0x192   : > { %2456 = vrot.lane.b32.xlu2 %v2379_v38, %s4239_s17 }
 0x196   : > { %2260 = vrot.lane.b32.xlu0 %v2173_v3, %s4238_s16  ;;  %v2383_v3 = vld [vmem:[#allocation2 + $0x4a] sm:$0xff] }
 0x197   : > { %v1957_v16 = vpop.f32.mrf.mxu1  ;;  %v2176_v59 = vld [vmem:[#allocation2 + $0x91] sm:$0xff] }
 0x198   : > { %2031 = vst.msk [vmem:[#allocation2 + $0x9b] sm:$0xff] %vm2005_vm12, %v1957_v16  ;;  %v2392_v48 = vld [vmem:[#allocation2 + $0x92] sm:$0xff] }
 0x199   : > { %2280 = vrot.lane.b32.xlu1 %v2183_v8, %s4238_s16 }
 0x19a   : > { %2300 = vrot.lane.b32.xlu2 %v2193_v37, %s4238_s16 }
 0x19e   : > { %2476 = vrot.lane.b32.xlu0 %v2389_v5, %s4239_s17 }
 0x19f   : > { %v2177_v5 = vld [vmem:[#allocation2 + $0x99] sm:$0xff] }
 0x1a1   : > { %2496 = vrot.lane.b32.xlu1 %v5008_v9, %s4239_s17 }
 0x1a2   : > { %2516 = vrot.lane.b32.xlu2 %v5013_v34, %s4239_s17 }
 0x1a4   : > { %v5020_v1 = vpop.permute.xlu2 %2450 }
 0x1a6   : > { %v1980_v30 = vpop.f32.mrf.mxu2  ;;  %2600 = vrot.lane.b32.xlu0 %v2379_v38, %s4240_s18  ;;  %v2393_v38 = vld [vmem:[#allocation2 + $0x9a] sm:$0xff] }
 0x1a7   : > { %2040 = vst.msk [vmem:[#allocation2 + $0xe3] sm:$0xff] %vm2005_vm12, %v1980_v30 }
 0x1a9   : > { %2262 = vrot.lane.b32.xlu1 %v2174_v36, %s4238_s16 }
 0x1aa   : > { %2622 = vrot.lane.b32.xlu2 %v2390_v41, %s4240_s18 }
 0x1ac   : > { %v5030_v57 = vpop.permute.xlu2 %2616 }
 0x1ad   : > { %6673 = vst [vmem:[#allocation5_spill] sm:$0xff] %v5030_v57 }
 0x1ae   : > { %v1982_v4 = vpop.f32.mrf.mxu2  ;;  %2242 = vrot.lane.b32.xlu0 %v2164_v60, %s4238_s16  ;;  %v2186_v15 = vld [vmem:[#allocation2 + $0xe1] sm:$0xff] }
 0x1af   : > { %2041 = vst.msk [vmem:[#allocation2 + $0xeb] sm:$0xff] %vm2005_vm12, %v1982_v4  ;;  %v5092_v55 = vld [vmem:[#allocation2 + $0xe2] sm:$0xff] }
 0x1b1   : > { %v1935_v29 = vpop.f32.mrf.mxu0  ;;  %2478 = vrot.lane.b32.xlu1 %v2390_v41, %s4239_s17 }
 0x1b2   : > { %2022 = vst.msk [vmem:[#allocation2 + $0x53] sm:$0xff] %vm2005_vm12, %v1935_v29  ;;  %2282 = vrot.lane.b32.xlu2 %v2184_v33, %s4238_s16 }
 0x1b4   : > { %v5039_v10 = vpop.permute.xlu2 %2276 }
 0x1b5   : > { %6674 = vst [vmem:[#allocation6_spill] sm:$0xff] %v5039_v10  ;;  %v2752_v10 = vld [vmem:[#allocation2 + $0x83] sm:$0xff] }
 0x1b6   : > { %2458 = vrot.lane.b32.xlu0 %v2380_v31, %s4239_s17 }
 0x1b8   : > { %v5018_v45 = vpop.permute.xlu0 %2230 }
 0x1b9   : > { %v1937_v62 = vpop.f32.mrf.mxu0  ;;  %2602 = vrot.lane.b32.xlu1 %v2380_v31, %s4240_s18  ;;  %v5122_v31 = vld [vmem:[#allocation2 + $0xea] sm:$0xff] }
 0x1ba   : > { %2023 = vst.msk [vmem:[#allocation2 + $0x5b] sm:$0xff] %vm2005_vm12, %v1937_v62  ;;  %2498 = vrot.lane.b32.xlu2 %v5043_v35, %s4239_s17  ;;  %v2187_v62 = vld [vmem:[#allocation2 + $0xe9] sm:$0xff]  ;;  %v2168_v33 = vld [vmem:[#allocation2 + $0x51] sm:$0xff] }
 0x1bb   : > { %v5022_v13 = vpop.permute.xlu1 %2448 }
 0x1bc   : > { %6672 = vst [vmem:[#allocation4_spill] sm:$0xff] %v5022_v13  ;;  %v5054_v61 = vpop.permute.xlu2 %2492 }
 0x1bd   : > { %6675 = vst [vmem:[#allocation7_spill] sm:$0xff] %v5054_v61  ;;  %v2749_v61 = vld [vmem:[#allocation2 + $0x6b] sm:$0xff] }
 0x1be   : > { %2624 = vrot.lane.b32.xlu0 %v2391_v39, %s4240_s18 }
 0x1c0   : > { %v5028_v63 = vpop.permute.xlu0 %2232 }
 0x1c1   : > { %v1960_v7 = vpop.f32.mrf.mxu1  ;;  %2244 = vrot.lane.b32.xlu1 %v2165_v51, %s4238_s16 }
 0x1c2   : > { %2032 = vst.msk [vmem:[#allocation2 + $0xa3] sm:$0xff] %vm2005_vm12, %v1960_v7  ;;  %2264 = vrot.lane.b32.xlu2 %v2175_v32, %s4238_s16 }
 0x1c3   : > { %v5035_v53 = vpop.permute.xlu1 %2234 }
 0x1c4   : > { %v5065_v44 = vpop.permute.xlu2 %2238 }
 0x1c5   : > { %6677 = vst [vmem:[#allocation9_spill] sm:$0xff] %v5065_v44  ;;  %v5514_v44 = vld [vmem:[#allocation2 + $0xdc] sm:$0xff] }
 0x1c6   : > { %2284 = vrot.lane.b32.xlu0 %v2185_v43, %s4238_s16 }
 0x1c8   : > { %v5037_v46 = vpop.permute.xlu0 %2446 }
 0x1c9   : > { %v1962_v58 = vpop.f32.mrf.mxu1  ;;  %2460 = vrot.lane.b32.xlu1 %v2381_v0, %s4239_s17  ;;  %v2394_v8 = vld [vmem:[#allocation2 + $0xa2] sm:$0xff] }
 0x1ca   : > { %2033 = vst.msk [vmem:[#allocation2 + $0xab] sm:$0xff] %vm2005_vm12, %v1962_v58  ;;  %2480 = vrot.lane.b32.xlu2 %v2391_v39, %s4239_s17  ;;  %v2178_v43 = vld [vmem:[#allocation2 + $0xa1] sm:$0xff] }
 0x1cb   : > { %v5047_v56 = vpop.permute.xlu1 %2236 }
 0x1cc   : > { %v5072_v6 = vpop.permute.xlu2 %2258 }
 0x1cd   : > { %6679 = vst [vmem:[#allocation11_spill] sm:$0xff] %v5072_v6 }
 0x1ce   : > { %2500 = vrot.lane.b32.xlu0 %v5049_v25, %s4239_s17 }
 0x1d0   : > { %v5052_v52 = vpop.permute.xlu0 %2594 }
 0x1d1   : > { %2626 = vrot.lane.b32.xlu1 %v2392_v48, %s4240_s18  ;;  %v5478_v6 = vld [vmem:[#allocation2 + $0xac] sm:$0xff] }
 0x1d2   : > { %2604 = vrot.lane.b32.xlu2 %v2381_v0, %s4240_s18 }
 0x1d3   : > { %v5060_v19 = vpop.permute.xlu1 %2256 }
 0x1d4   : > { %6676 = vst [vmem:[#allocation8_spill] sm:$0xff] %v5060_v19  ;;  %v5081_v11 = vpop.permute.xlu2 %2474  ;;  %v2771_v19 = vld [vmem:[#allocation2 + $0x11b] sm:$0xff] }
 0x1d5   : > { %6682 = vst [vmem:[#allocation14_spill] sm:$0xff] %v5081_v11  ;;  %v5460_v11 = vld [vmem:[#allocation2 + $0x94] sm:$0xff] }
 0x1d6   : > { %2266 = vrot.lane.b32.xlu0 %v2176_v59, %s4238_s16  ;;  %v2170_v59 = vld [vmem:[#allocation2 + $0x61] sm:$0xff] }
 0x1d8   : > { %v1985_v14 = vpop.f32.mrf.mxu2  ;;  %v5063_v17 = vpop.permute.xlu0 %2452 }
 0x1d9   : > { %2042 = vst.msk [vmem:[#allocation2 + $0xf3] sm:$0xff] %vm2005_vm12, %v1985_v14  ;;  %2286 = vrot.lane.b32.xlu1 %v2186_v15, %s4238_s16 }
 0x1da   : > { %2246 = vrot.lane.b32.xlu2 %v2166_v20, %s4238_s16  ;;  %v2179_v20 = vld [vmem:[#allocation2 + $0xa9] sm:$0xff] }
 0x1db   : > { %v5076_v27 = vpop.permute.xlu1 %2472 }
 0x1dc   : > { %6680 = vst [vmem:[#allocation12_spill] sm:$0xff] %v5076_v27  ;;  %v5090_v28 = vpop.permute.xlu2 %2598  ;;  %v2758_v27 = vld [vmem:[#allocation2 + $0xb3] sm:$0xff] }
 0x1de   : > { %2482 = vrot.lane.b32.xlu0 %v2392_v48, %s4239_s17 }
 0x1e0   : > { %v1987_v49 = vpop.f32.mrf.mxu2  ;;  %v5070_v42 = vpop.permute.xlu0 %2296  ;;  %v2188_v7 = vld [vmem:[#allocation2 + $0xf1] sm:$0xff] }
 0x1e1   : > { %2043 = vst.msk [vmem:[#allocation2 + $0xfb] sm:$0xff] %vm2005_vm12, %v1987_v49  ;;  %2502 = vrot.lane.b32.xlu1 %v5092_v55, %s4239_s17  ;;  %v5130_v39 = vld [vmem:[#allocation2 + $0xf2] sm:$0xff] }
 0x1e2   : > { %6678 = vst [vmem:[#allocation10_spill] sm:$0xff] %v5070_v42  ;;  %2462 = vrot.lane.b32.xlu2 %v2382_v23, %s4239_s17  ;;  %v2384_v49 = vld [vmem:[#allocation2 + $0x52] sm:$0xff] }
 0x1e3   : > { %v5086_v26 = vpop.permute.xlu1 %2596  ;;  %v5498_v57 = vld [vmem:[#allocation2 + $0xec] sm:$0xff] }
 0x1e4   : > { %6683 = vst [vmem:[#allocation15_spill] sm:$0xff] %v5086_v26  ;;  %v5102_v30 = vpop.permute.xlu2 %2240 }
 0x1e6   : > { %2606 = vrot.lane.b32.xlu0 %v2382_v23, %s4240_s18  ;;  %v2180_v23 = vld [vmem:[#allocation2 + $0xb1] sm:$0xff] }
 0x1e8   : > { %v5079_v21 = vpop.permute.xlu0 %2512  ;;  %v2189_v42 = vld [vmem:[#allocation2 + $0xf9] sm:$0xff] }
 0x1e9   : > { %6681 = vst [vmem:[#allocation13_spill] sm:$0xff] %v5079_v21  ;;  %2268 = vrot.lane.b32.xlu1 %v2177_v5, %s4238_s16  ;;  %v5540_v26 = vld [vmem:[#allocation2 + $0xfc] sm:$0xff] }
 0x1ea   : > { %2628 = vrot.lane.b32.xlu2 %v2393_v38, %s4240_s18 }
 0x1eb   : > { %v5098_v16 = vpop.permute.xlu1 %2454 }
 0x1ec   : > { %6685 = vst [vmem:[#allocation17_spill] sm:$0xff] %v5098_v16  ;;  %v5109_v29 = vpop.permute.xlu2 %2456  ;;  %v5496_v16 = vld [vmem:[#allocation2 + $0xc4] sm:$0xff] }
 0x1ee   : > { %2248 = vrot.lane.b32.xlu0 %v2167_v12, %s4238_s16 }
 0x1f0   : > { %v5088_v47 = vpop.permute.xlu0 %2618 }
 0x1f1   : > { %6684 = vst [vmem:[#allocation16_spill] sm:$0xff] %v5088_v47  ;;  %2484 = vrot.lane.b32.xlu1 %v2393_v38, %s4239_s17  ;;  %v2396_v38 = vld [vmem:[#allocation2 + $0xb2] sm:$0xff] }
 0x1f2   : > { %2288 = vrot.lane.b32.xlu2 %v2187_v62, %s4238_s16  ;;  %v2169_v62 = vld [vmem:[#allocation2 + $0x59] sm:$0xff]  ;;  %v5426_v47 = vld [vmem:[#allocation2 + $0x8c] sm:$0xff] }
 0x1f3   : > { %v5107_v4 = vpop.permute.xlu1 %2298 }
 0x1f4   : > { %v5116_v60 = vpop.permute.xlu2 %2300 }
 0x1f6   : > { %2464 = vrot.lane.b32.xlu0 %v2383_v3, %s4239_s17 }
 0x1f8   : > { %v5100_v18 = vpop.permute.xlu0 %2278 }
 0x1f9   : > { %6686 = vst [vmem:[#allocation18_spill] sm:$0xff] %v5100_v18  ;;  %2608 = vrot.lane.b32.xlu1 %v2383_v3, %s4240_s18  ;;  %v2740_v18 = vld [vmem:[#allocation2 + $0x23] sm:$0xff] }
 0x1fa   : > { %2504 = vrot.lane.b32.xlu2 %v5122_v31, %s4239_s17 }
 0x1fb   : > { %v5120_v36 = vpop.permute.xlu1 %2514 }
 0x1fc   : > { %v5128_v58 = vpop.permute.xlu2 %2516 }
 0x1fe   : > { %2630 = vrot.lane.b32.xlu0 %v2394_v8, %s4240_s18 }
 0x200   : > { %v5111_v37 = vpop.permute.xlu0 %2494 }
 0x201   : > { %6687 = vst [vmem:[#allocation19_spill] sm:$0xff] %v5111_v37  ;;  %2250 = vrot.lane.b32.xlu1 %v2168_v33, %s4238_s16 }
 0x202   : > { %2270 = vrot.lane.b32.xlu2 %v2178_v43, %s4238_s16 }
 0x203   : > { %v5138_v51 = vpop.permute.xlu1 %2620 }
 0x204   : > { %6690 = vst [vmem:[#allocation22_spill] sm:$0xff] %v5138_v51  ;;  %v5140_v32 = vpop.permute.xlu2 %2622  ;;  %v2756_v51 = vld [vmem:[#allocation2 + $0xa3] sm:$0xff] }
 0x205   : > { %6691 = vst [vmem:[#allocation23_spill] sm:$0xff] %v5140_v32  ;;  %v5444_v32 = vld [vmem:[#allocation2 + $0xa4] sm:$0xff] }
 0x206   : > { %2290 = vrot.lane.b32.xlu0 %v2188_v7, %s4238_s16 }
 0x208   : > { %v5124_v41 = vpop.permute.xlu0 %2260 }
 0x209   : > { %6688 = vst [vmem:[#allocation20_spill] sm:$0xff] %v5124_v41  ;;  %2466 = vrot.lane.b32.xlu1 %v2384_v49, %s4239_s17 }
 0x20a   : > { %2486 = vrot.lane.b32.xlu2 %v2394_v8, %s4239_s17  ;;  %v2386_v8 = vld [vmem:[#allocation2 + $0x62] sm:$0xff] }
 0x20b   : > { %v5145_v0 = vpop.permute.xlu1 %2280 }
 0x20c   : > { %6692 = vst [vmem:[#allocation24_spill] sm:$0xff] %v5145_v0  ;;  %v5149_v15 = vpop.permute.xlu2 %2282  ;;  %v2405_v0 = vld [vmem:[#allocation2 + $0xfa] sm:$0xff] }
 0x20d   : > { %6693 = vst [vmem:[#allocation25_spill] sm:$0xff] %v5149_v15  ;;  %v2745_v15 = vld [vmem:[#allocation2 + $0x4b] sm:$0xff] }
 0x20e   : > { %2506 = vrot.lane.b32.xlu0 %v5130_v39, %s4239_s17 }
 0x210   : > { %v5136_v14 = vpop.permute.xlu0 %2476 }
 0x211   : > { %6689 = vst [vmem:[#allocation21_spill] sm:$0xff] %v5136_v14  ;;  %2274 = vrot.lane.b32.xlu1 %v2180_v23, %s4238_s16  ;;  %v5414_v14 = vld [vmem:[#allocation2 + $0x54] sm:$0xff] }
 0x212   : > { %2610 = vrot.lane.b32.xlu2 %v2384_v49, %s4240_s18  ;;  %v2395_v49 = vld [vmem:[#allocation2 + $0xaa] sm:$0xff] }
 0x213   : > { %v5154_v12 = vpop.permute.xlu1 %2496 }
 0x214   : > { %6694 = vst [vmem:[#allocation26_spill] sm:$0xff] %v5154_v12  ;;  %v5158_v5 = vpop.permute.xlu2 %2498 }
 0x215   : > { %6696 = vst [vmem:[#allocation28_spill] sm:$0xff] %v5158_v5  ;;  %v2747_v5 = vld [vmem:[#allocation2 + $0x5b] sm:$0xff] }
 0x216   : > { %2254 = vrot.lane.b32.xlu0 %v2170_v59, %s4238_s16  ;;  %v2385_v59 = vld [vmem:[#allocation2 + $0x5a] sm:$0xff] }
 0x218   : > { %v5147_v48 = vpop.permute.xlu0 %2600 }
 0x219   : > { %2490 = vrot.lane.b32.xlu1 %v2396_v38, %s4239_s17 }
 0x21a   : > { %2252 = vrot.lane.b32.xlu2 %v2169_v62, %s4238_s16 }
 0x21b   : > { %v5163_v7 = vpop.permute.xlu1 %2262 }
 0x21c   : > { %6697 = vst [vmem:[#allocation29_spill] sm:$0xff] %v5163_v7  ;;  %v5167_v43 = vpop.permute.xlu2 %2264  ;;  %v2753_v7 = vld [vmem:[#allocation2 + $0x8b] sm:$0xff] }
 0x21d   : > { %6699 = vst [vmem:[#allocation31_spill] sm:$0xff] %v5167_v43 }
 0x21e   : > { %2272 = vrot.lane.b32.xlu0 %v2179_v20, %s4238_s16 }
 0x220   : > { %v5156_v3 = vpop.permute.xlu0 %2242 }
 0x221   : > { %6695 = vst [vmem:[#allocation27_spill] sm:$0xff] %v5156_v3  ;;  %2638 = vrot.lane.b32.xlu1 %v4986_v50, %s4240_s18 }
 0x222   : > { %2468 = vrot.lane.b32.xlu2 %v2385_v59, %s4239_s17 }
 0x223   : > { %v5173_v23 = vpop.permute.xlu1 %2478 }
 0x224   : > { %6700 = vst [vmem:[#allocation32_spill] sm:$0xff] %v5173_v23  ;;  %v5177_v62 = vpop.permute.xlu2 %2480  ;;  %v2750_v23 = vld [vmem:[#allocation2 + $0x73] sm:$0xff] }
 0x225   : > { %6702 = vst [vmem:[#allocation34_spill] sm:$0xff] %v5177_v62  ;;  %v5424_v62 = vld [vmem:[#allocation2 + $0x64] sm:$0xff] }
 0x226   : > { %2470 = vrot.lane.b32.xlu0 %v2386_v8, %s4239_s17 }
 0x228   : > { %v5165_v33 = vpop.permute.xlu0 %2458 }
 0x229   : > { %6698 = vst [vmem:[#allocation30_spill] sm:$0xff] %v5165_v33  ;;  %2614 = vrot.lane.b32.xlu1 %v2386_v8, %s4240_s18 }
 0x22a   : > { %2640 = vrot.lane.b32.xlu2 %v5008_v9, %s4240_s18 }
 0x22b   : > { %v5183_v2 = vpop.permute.xlu1 %2602 }
 0x22c   : > { %6703 = vst [vmem:[#allocation35_spill] sm:$0xff] %v5183_v2  ;;  %v5187_v54 = vpop.permute.xlu2 %2604  ;;  %v5468_v2 = vld [vmem:[#allocation2 + $0x9c] sm:$0xff] }
 0x22e   : > { %2488 = vrot.lane.b32.xlu0 %v2395_v49, %s4239_s17 }
 0x230   : > { %v5175_v20 = vpop.permute.xlu0 %2624 }
 0x231   : > { %6701 = vst [vmem:[#allocation33_spill] sm:$0xff] %v5175_v20  ;;  %2632 = vrot.lane.b32.xlu1 %v2395_v49, %s4240_s18  ;;  %v2190_v49 = vld [vmem:[#allocation2 + $0x101] sm:$0xff]  ;;  %v5406_v20 = vld [vmem:[#allocation2 + $0x4c] sm:$0xff] }
 0x232   : > { %2634 = vrot.lane.b32.xlu2 %v2396_v38, %s4240_s18 }
 0x233   : > { %v5195_v8 = vpop.permute.xlu1 %2244 }
 0x234   : > { %6706 = vst [vmem:[#allocation38_spill] sm:$0xff] %v5195_v8  ;;  %v5198_v9 = vpop.permute.xlu2 %2246  ;;  %v5442_v8 = vld [vmem:[#allocation2 + $0x7c] sm:$0xff] }
 0x236   : > { %2612 = vrot.lane.b32.xlu0 %v2385_v59, %s4240_s18  ;;  %v2002_v59 = vpop.f32.mrf.mxu3 }
 0x237   : > { %2049 = vst.msk [vmem:[#allocation2 + $0x12b] sm:$0xff] %vm2005_vm12, %v2002_v59  ;;  %v2406_v59 = vld [vmem:[#allocation2 + $0x102] sm:$0xff] }
 0x238   : > { %v5185_v50 = vpop.permute.xlu0 %2284 }
 0x239   : > { %6704 = vst [vmem:[#allocation36_spill] sm:$0xff] %v5185_v50  ;;  %2292 = vrot.lane.b32.xlu1 %v2189_v42, %s4238_s16 }
 0x23a   : > { %2294 = vrot.lane.b32.xlu2 %v2190_v49, %s4238_s16 }
 0x23b   : > { %v5206_v38 = vpop.permute.xlu1 %2460 }
 0x23c   : > { %6708 = vst [vmem:[#allocation40_spill] sm:$0xff] %v5206_v38  ;;  %v5208_v12 = vpop.permute.xlu2 %2462 }
 0x23e   : > { %2636 = vrot.lane.b32.xlu0 %v4959_v24, %s4240_s18 }
 0x240   : > { %v5193_v21 = vpop.permute.xlu0 %2500 }
 0x241   : > { %6705 = vst [vmem:[#allocation37_spill] sm:$0xff] %v5193_v21  ;;  %2508 = vrot.lane.b32.xlu1 %v2405_v0, %s4239_s17 }
 0x242   : > { %2510 = vrot.lane.b32.xlu2 %v2406_v59, %s4239_s17 }
 0x244   : > { %v5218_v49 = vpop.permute.xlu2 %2628 }
 0x245   : > { %6711 = vst [vmem:[#allocation43_spill] sm:$0xff] %v5218_v49 }
 0x246   : > { %2642 = vrot.lane.b32.xlu0 %v5043_v35, %s4240_s18  ;;  %v5216_v35 = vpop.permute.xlu1 %2626 }
 0x247   : > { %6710 = vst [vmem:[#allocation42_spill] sm:$0xff] %v5216_v35  ;;  %v2743_v35 = vld [vmem:[#allocation2 + $0x3b] sm:$0xff] }
 0x248   : > { %v5204_v24 = vpop.permute.xlu0 %2266 }
 0x249   : > { %6707 = vst [vmem:[#allocation39_spill] sm:$0xff] %v5204_v24  ;;  %2644 = vrot.lane.b32.xlu1 %v5049_v25, %s4240_s18  ;;  %v2768_v24 = vld [vmem:[#allocation2 + $0x103] sm:$0xff] }
 0x24a   : > { %2646 = vrot.lane.b32.xlu2 %v5092_v55, %s4240_s18  ;;  %v2738_v55 = vld [vmem:[#allocation2 + $0x13] sm:$0xff] }
 0x24c   : > { %v5229_v50 = vpop.permute.xlu2 %2288 }
 0x24d   : > { %6714 = vst [vmem:[#allocation46_spill] sm:$0xff] %v5229_v50  ;;  %v2739_v50 = vld [vmem:[#allocation2 + $0x1b] sm:$0xff] }
 0x24e   : > { %2648 = vrot.lane.b32.xlu0 %v5122_v31, %s4240_s18  ;;  %v5225_v21 = vpop.permute.xlu1 %2286 }
 0x24f   : > { %6712 = vst [vmem:[#allocation44_spill] sm:$0xff] %v5225_v21  ;;  %v2741_v21 = vld [vmem:[#allocation2 + $0x2b] sm:$0xff] }
 0x250   : > { %v5214_v42 = vpop.permute.xlu0 %2482 }
 0x251   : > { %6709 = vst [vmem:[#allocation41_spill] sm:$0xff] %v5214_v42  ;;  %2650 = vrot.lane.b32.xlu1 %v5130_v39, %s4240_s18  ;;  %v2759_v42 = vld [vmem:[#allocation2 + $0xbb] sm:$0xff] }
 0x252   : > { %2652 = vrot.lane.b32.xlu2 %v2405_v0, %s4240_s18 }
 0x254   : > { %v5240_v37 = vpop.permute.xlu2 %2504 }
 0x255   : > { %6717 = vst [vmem:[#allocation49_spill] sm:$0xff] %v5240_v37  ;;  %v2591_v37 = vld [vmem:[#allocation2 + $0x12a] sm:$0xff] }
 0x256   : > { %2654 = vrot.lane.b32.xlu0 %v2406_v59, %s4240_s18  ;;  %v5236_v25 = vpop.permute.xlu1 %2502 }
 0x257   : > { %6715 = vst [vmem:[#allocation47_spill] sm:$0xff] %v5236_v25  ;;  %v2590_v25 = vld [vmem:[#allocation2 + $0x122] sm:$0xff] }
 0x258   : > { %v5227_v31 = vpop.permute.xlu0 %2606 }
 0x259   : > { %6713 = vst [vmem:[#allocation45_spill] sm:$0xff] %v5227_v31  ;;  %2656 = vrot.lane.b32.xlu1 %v4974_v40, %s4240_s18  ;;  %v5534_v31 = vld [vmem:[#allocation2 + $0x11c] sm:$0xff] }
 0x25a   : > { %2658 = vrot.lane.b32.xlu2 %v4991_v22, %s4240_s18 }
 0x25c   : > { %v5251_v0 = vpop.permute.xlu2 %2270 }
 0x25d   : > { %6720 = vst [vmem:[#allocation52_spill] sm:$0xff] %v5251_v0 }
 0x25e   : > { %2660 = vrot.lane.b32.xlu0 %v5013_v34, %s4240_s18  ;;  %v5247_v39 = vpop.permute.xlu1 %2268 }
 0x25f   : > { %6718 = vst [vmem:[#allocation50_spill] sm:$0xff] %v5247_v39  ;;  %v2744_v39 = vld [vmem:[#allocation2 + $0x43] sm:$0xff] }
 0x260   : > { %v5238_v59 = vpop.permute.xlu0 %2248 }
 0x261   : > { %6716 = vst [vmem:[#allocation48_spill] sm:$0xff] %v5238_v59  ;;  %2662 = vrot.lane.b32.xlu1 %v2590_v25, %s4240_s18  ;;  %v5504_v59 = vld [vmem:[#allocation2 + $0xcc] sm:$0xff] }
 0x262   : > { %2664 = vrot.lane.b32.xlu2 %v2591_v37, %s4240_s18 }
 0x264   : > { %v5260_v22 = vpop.permute.xlu2 %2486 }
 0x265   : > { %6723 = vst [vmem:[#allocation55_spill] sm:$0xff] %v5260_v22  ;;  %v5390_v22 = vld [vmem:[#allocation2 + $0x5c] sm:$0xff] }
 0x266   : > { %2810 = vrot.lane.b32.xlu0 %v2738_v55, %s4241_s19  ;;  %v5256_v40 = vpop.permute.xlu1 %2484 }
 0x267   : > { %6721 = vst [vmem:[#allocation53_spill] sm:$0xff] %v5256_v40  ;;  %v2742_v40 = vld [vmem:[#allocation2 + $0x33] sm:$0xff] }
 0x268   : > { %v5249_v34 = vpop.permute.xlu0 %2464 }
 0x269   : > { %6719 = vst [vmem:[#allocation51_spill] sm:$0xff] %v5249_v34  ;;  %2812 = vrot.lane.b32.xlu1 %v2739_v50, %s4241_s19  ;;  %v5486_v34 = vld [vmem:[#allocation2 + $0xb4] sm:$0xff] }
 0x26a   : > { %2814 = vrot.lane.b32.xlu2 %v2740_v18, %s4241_s19 }
 0x26c   : > { %v5269_v37 = vpop.permute.xlu2 %2610 }
 0x26d   : > { %6726 = vst [vmem:[#allocation58_spill] sm:$0xff] %v5269_v37 }
 0x26e   : > { %2816 = vrot.lane.b32.xlu0 %v2741_v21, %s4241_s19  ;;  %v5265_v25 = vpop.permute.xlu1 %2608 }
 0x26f   : > { %6724 = vst [vmem:[#allocation56_spill] sm:$0xff] %v5265_v25  ;;  %v5432_v25 = vld [vmem:[#allocation2 + $0x6c] sm:$0xff] }
 0x270   : > { %v5258_v55 = vpop.permute.xlu0 %2630 }
 0x271   : > { %6722 = vst [vmem:[#allocation54_spill] sm:$0xff] %v5258_v55  ;;  %2818 = vrot.lane.b32.xlu1 %v2742_v40, %s4241_s19  ;;  %v2751_v55 = vld [vmem:[#allocation2 + $0x7b] sm:$0xff] }
 0x272   : > { %2820 = vrot.lane.b32.xlu2 %v2743_v35, %s4241_s19 }
 0x274   : > { %v5278_v18 = vpop.permute.xlu2 %2252 }
 0x275   : > { %6729 = vst [vmem:[#allocation61_spill] sm:$0xff] %v5278_v18  ;;  %v2986_v18 = vld [vmem:[#allocation2 + $0x114] sm:$0xff] }
 0x276   : > { %2822 = vrot.lane.b32.xlu0 %v2744_v39, %s4241_s19  ;;  %v5276_v39 = vpop.permute.xlu1 %2250 }
 0x277   : > { %6728 = vst [vmem:[#allocation60_spill] sm:$0xff] %v5276_v39 }
 0x278   : > { %v5267_v21 = vpop.permute.xlu0 %2290 }
 0x279   : > { %6725 = vst [vmem:[#allocation57_spill] sm:$0xff] %v5267_v21  ;;  %2824 = vrot.lane.b32.xlu1 %v2745_v15, %s4241_s19  ;;  %v2746_v21 = vld [vmem:[#allocation2 + $0x53] sm:$0xff] }
 0x27a   : > { %2826 = vrot.lane.b32.xlu2 %v2746_v21, %s4241_s19 }
 0x27c   : > { %v5287_v35 = vpop.permute.xlu2 %2468 }
 0x27d   : > { %6732 = vst [vmem:[#allocation64_spill] sm:$0xff] %v5287_v35  ;;  %v5532_v35 = vld [vmem:[#allocation2 + $0xf4] sm:$0xff] }
 0x27e   : > { %2828 = vrot.lane.b32.xlu0 %v2747_v5, %s4241_s19  ;;  %v5283_v40 = vpop.permute.xlu1 %2466 }
 0x27f   : > { %6730 = vst [vmem:[#allocation62_spill] sm:$0xff] %v5283_v40  ;;  %v5408_v40 = vld [vmem:[#allocation2 + $0x74] sm:$0xff] }
 0x280   : > { %v5274_v50 = vpop.permute.xlu0 %2506 }
 0x281   : > { %6727 = vst [vmem:[#allocation59_spill] sm:$0xff] %v5274_v50  ;;  %v2748_v50 = vld [vmem:[#allocation2 + $0x63] sm:$0xff] }
 0x282   : > { %2830 = vrot.lane.b32.xlu1 %v2748_v50, %s4241_s19  ;;  %2832 = vrot.lane.b32.xlu2 %v2749_v61, %s4241_s19 }
 0x284   : > { %v5296_v21 = vpop.permute.xlu2 %2640 }
 0x285   : > { %6735 = vst [vmem:[#allocation67_spill] sm:$0xff] %v5296_v21  ;;  %v2755_v21 = vld [vmem:[#allocation2 + $0x9b] sm:$0xff] }
 0x286   : > { %2834 = vrot.lane.b32.xlu0 %v2750_v23, %s4241_s19  ;;  %v5292_v15 = vpop.permute.xlu1 %2274 }
 0x287   : > { %6733 = vst [vmem:[#allocation65_spill] sm:$0xff] %v5292_v15  ;;  %v2754_v15 = vld [vmem:[#allocation2 + $0x93] sm:$0xff] }
 0x288   : > { %v5285_v5 = vpop.permute.xlu0 %2254 }
 0x289   : > { %6731 = vst [vmem:[#allocation63_spill] sm:$0xff] %v5285_v5  ;;  %v5450_v5 = vld [vmem:[#allocation2 + $0x84] sm:$0xff] }
 0x28a   : > { %2836 = vrot.lane.b32.xlu1 %v2751_v55, %s4241_s19  ;;  %2838 = vrot.lane.b32.xlu2 %v2752_v10, %s4241_s19 }
 0x28c   : > { %v5305_v61 = vpop.permute.xlu2 %2634 }
 0x28d   : > { %6738 = vst [vmem:[#allocation70_spill] sm:$0xff] %v5305_v61  ;;  %v2765_v61 = vld [vmem:[#allocation2 + $0xeb] sm:$0xff] }
 0x28e   : > { %2840 = vrot.lane.b32.xlu0 %v2753_v7, %s4241_s19  ;;  %v5301_v50 = vpop.permute.xlu1 %2490 }
 0x28f   : > { %6736 = vst [vmem:[#allocation68_spill] sm:$0xff] %v5301_v50  ;;  %v2757_v50 = vld [vmem:[#allocation2 + $0xab] sm:$0xff] }
 0x290   : > { %v5294_v23 = vpop.permute.xlu0 %2272 }
 0x291   : > { %6734 = vst [vmem:[#allocation66_spill] sm:$0xff] %v5294_v23  ;;  %v2762_v23 = vld [vmem:[#allocation2 + $0xd3] sm:$0xff] }
 0x292   : > { %2842 = vrot.lane.b32.xlu1 %v2754_v15, %s4241_s19  ;;  %2844 = vrot.lane.b32.xlu2 %v2755_v21, %s4241_s19 }
 0x294   : > { %v5314_v10 = vpop.permute.xlu2 %2294 }
 0x295   : > { %6741 = vst [vmem:[#allocation73_spill] sm:$0xff] %v5314_v10  ;;  %v2761_v10 = vld [vmem:[#allocation2 + $0xcb] sm:$0xff] }
 0x296   : > { %2846 = vrot.lane.b32.xlu0 %v2756_v51, %s4241_s19  ;;  %v5310_v55 = vpop.permute.xlu1 %2638 }
 0x297   : > { %6739 = vst [vmem:[#allocation71_spill] sm:$0xff] %v5310_v55  ;;  %v2760_v55 = vld [vmem:[#allocation2 + $0xc3] sm:$0xff] }
 0x298   : > { %v5303_v7 = vpop.permute.xlu0 %2470 }
 0x299   : > { %6737 = vst [vmem:[#allocation69_spill] sm:$0xff] %v5303_v7 }
 0x29a   : > { %2848 = vrot.lane.b32.xlu1 %v2757_v50, %s4241_s19  ;;  %2850 = vrot.lane.b32.xlu2 %v2758_v27, %s4241_s19 }
 0x29c   : > { %v5323_v21 = vpop.permute.xlu2 %2510 }
 0x29d   : > { %6744 = vst [vmem:[#allocation76_spill] sm:$0xff] %v5323_v21  ;;  %v2764_v21 = vld [vmem:[#allocation2 + $0xe3] sm:$0xff] }
 0x29e   : > { %2852 = vrot.lane.b32.xlu0 %v2759_v42, %s4241_s19  ;;  %v5319_v15 = vpop.permute.xlu1 %2614 }
 0x29f   : > { %6742 = vst [vmem:[#allocation74_spill] sm:$0xff] %v5319_v15 }
 0x2a0   : > { %v5312_v51 = vpop.permute.xlu0 %2488 }
 0x2a1   : > { %6740 = vst [vmem:[#allocation72_spill] sm:$0xff] %v5312_v51  ;;  %v2763_v51 = vld [vmem:[#allocation2 + $0xdb] sm:$0xff] }
 0x2a2   : > { %2854 = vrot.lane.b32.xlu1 %v2760_v55, %s4241_s19  ;;  %2856 = vrot.lane.b32.xlu2 %v2761_v10, %s4241_s19 }
 0x2a4   : > { %v5332_v27 = vpop.permute.xlu2 %2646 }
 0x2a5   : > { %6747 = vst [vmem:[#allocation79_spill] sm:$0xff] %v5332_v27  ;;  %v2767_v27 = vld [vmem:[#allocation2 + $0xfb] sm:$0xff] }
 0x2a6   : > { %2858 = vrot.lane.b32.xlu0 %v2762_v23, %s4241_s19  ;;  %v5328_v50 = vpop.permute.xlu1 %2632 }
 0x2a7   : > { %6745 = vst [vmem:[#allocation77_spill] sm:$0xff] %v5328_v50  ;;  %v2766_v50 = vld [vmem:[#allocation2 + $0xf3] sm:$0xff] }
 0x2a8   : > { %v5321_v42 = vpop.permute.xlu0 %2612 }
 0x2a9   : > { %6743 = vst [vmem:[#allocation75_spill] sm:$0xff] %v5321_v42  ;;  %v5462_v42 = vld [vmem:[#allocation2 + $0xbc] sm:$0xff] }
 0x2aa   : > { %2860 = vrot.lane.b32.xlu1 %v2763_v51, %s4241_s19  ;;  %2862 = vrot.lane.b32.xlu2 %v2764_v21, %s4241_s19 }
 0x2ac   : > { %v5341_v10 = vpop.permute.xlu2 %2652 }
 0x2ad   : > { %6750 = vst [vmem:[#allocation82_spill] sm:$0xff] %v5341_v10  ;;  %v2770_v10 = vld [vmem:[#allocation2 + $0x113] sm:$0xff] }
 0x2ae   : > { %2864 = vrot.lane.b32.xlu0 %v2765_v61, %s4241_s19  ;;  %v5337_v55 = vpop.permute.xlu1 %2292 }
 0x2af   : > { %6748 = vst [vmem:[#allocation80_spill] sm:$0xff] %v5337_v55  ;;  %v2769_v55 = vld [vmem:[#allocation2 + $0x10b] sm:$0xff] }
 0x2b0   : > { %v5330_v23 = vpop.permute.xlu0 %2636 }
 0x2b1   : > { %6746 = vst [vmem:[#allocation78_spill] sm:$0xff] %v5330_v23  ;;  %v2954_v23 = vld [vmem:[#allocation2 + $0x14] sm:$0xff] }
 0x2b2   : > { %2866 = vrot.lane.b32.xlu1 %v2766_v50, %s4241_s19  ;;  %2868 = vrot.lane.b32.xlu2 %v2767_v27, %s4241_s19 }
 0x2b4   : > { %v5350_v21 = vpop.permute.xlu2 %2658 }
 0x2b5   : > { %6753 = vst [vmem:[#allocation85_spill] sm:$0xff] %v5350_v21  ;;  %v5373_v21 = vld [vmem:[#allocation2 + $0x44] sm:$0xff] }
 0x2b6   : > { %2870 = vrot.lane.b32.xlu0 %v2768_v24, %s4241_s19  ;;  %v5346_v51 = vpop.permute.xlu1 %2508 }
 0x2b7   : > { %6751 = vst [vmem:[#allocation83_spill] sm:$0xff] %v5346_v51  ;;  %v2772_v51 = vld [vmem:[#allocation2 + $0x123] sm:$0xff] }
 0x2b8   : > { %v5339_v61 = vpop.permute.xlu0 %2642 }
 0x2b9   : > { %6749 = vst [vmem:[#allocation81_spill] sm:$0xff] %v5339_v61  ;;  %v5388_v61 = vld [vmem:[#allocation2 + $0x34] sm:$0xff] }
 0x2ba   : > { %2872 = vrot.lane.b32.xlu1 %v2769_v55, %s4241_s19  ;;  %2874 = vrot.lane.b32.xlu2 %v2770_v10, %s4241_s19  ;;  %v2773_v55 = vld [vmem:[#allocation2 + $0x12b] sm:$0xff] }
 0x2bc   : > { %v5359_v27 = vpop.permute.xlu2 %2664 }
 0x2be   : > { %2876 = vrot.lane.b32.xlu0 %v2771_v19, %s4241_s19  ;;  %v5355_v19 = vpop.permute.xlu1 %2644 }
 0x2bf   : > { %6754 = vst [vmem:[#allocation86_spill] sm:$0xff] %v5355_v19 }
 0x2c0   : > { %v5348_v24 = vpop.permute.xlu0 %2648 }
 0x2c1   : > { %6752 = vst [vmem:[#allocation84_spill] sm:$0xff] %v5348_v24  ;;  %v5361_v24 = vld [vmem:[#allocation2 + $0x2c] sm:$0xff] }
 0x2c2   : > { %2878 = vrot.lane.b32.xlu1 %v2772_v51, %s4241_s19  ;;  %2880 = vrot.lane.b32.xlu2 %v2773_v55, %s4241_s19  ;;  %v5378_v51 = vld [vmem:[#allocation2 + $0x24] sm:$0xff] }
 0x2c4   : > { %v5371_v19 = vpop.permute.xlu2 %2814 }
 0x2c6   : > { %3026 = vrot.lane.b32.xlu0 %v2954_v23, %s4242_s22  ;;  %v5367_v23 = vpop.permute.xlu1 %2650 }
 0x2c7   : > { %6756 = vst [vmem:[#allocation88_spill] sm:$0xff] %v5367_v23 }
 0x2c8   : > { %v5357_v50 = vpop.permute.xlu0 %2654 }
 0x2c9   : > { %6755 = vst [vmem:[#allocation87_spill] sm:$0xff] %v5357_v50  ;;  %v2955_v50 = vld [vmem:[#allocation2 + $0x1c] sm:$0xff] }
 0x2ca   : > { %3028 = vrot.lane.b32.xlu1 %v2955_v50, %s4242_s22  ;;  %3030 = vrot.lane.b32.xlu2 %v5378_v51, %s4242_s22  ;;  %v5396_v50 = vld [vmem:[#allocation2 + $0x3c] sm:$0xff] }
 0x2ce   : > { %3032 = vrot.lane.b32.xlu0 %v5361_v24, %s4242_s22  ;;  %v5382_v55 = vpop.permute.xlu1 %2656 }
 0x2cf   : > { %6758 = vst [vmem:[#allocation90_spill] sm:$0xff] %v5382_v55 }
 0x2d0   : > { %v5369_v10 = vpop.permute.xlu0 %2660 }
 0x2d1   : > { %6757 = vst [vmem:[#allocation89_spill] sm:$0xff] %v5369_v10  ;;  %v5386_v10 = vpop.permute.xlu2 %2820 }
 0x2d2   : > { %3034 = vrot.lane.b32.xlu1 %v5388_v61, %s4242_s22  ;;  %3036 = vrot.lane.b32.xlu2 %v5396_v50, %s4242_s22 }
 0x2d6   : > { %3038 = vrot.lane.b32.xlu0 %v5373_v21, %s4242_s22  ;;  %v5400_v55 = vpop.permute.xlu1 %2662 }
 0x2d8   : > { %v5384_v23 = vpop.permute.xlu0 %2810 }
 0x2d9   : > { %v5404_v0 = vpop.permute.xlu2 %2826 }
 0x2da   : > { %6759 = vst [vmem:[#allocation91_spill] sm:$0xff] %v5404_v0  ;;  %3040 = vrot.lane.b32.xlu1 %v5406_v20, %s4242_s22  ;;  %3042 = vrot.lane.b32.xlu2 %v5414_v14, %s4242_s22  ;;  %v5550_v0 = vld [vmem:[#allocation2 + $0x10c] sm:$0xff] }
 0x2de   : > { %3044 = vrot.lane.b32.xlu0 %v5390_v22, %s4242_s22  ;;  %v5418_v39 = vpop.permute.xlu1 %2812 }
 0x2df   : > { %6760 = vst [vmem:[#allocation92_spill] sm:$0xff] %v5418_v39  ;;  %v5522_v39 = vld [vmem:[#allocation2 + $0xe4] sm:$0xff] }
 0x2e0   : > { %v5402_v15 = vpop.permute.xlu0 %2816 }
 0x2e1   : > { %v5422_v41 = vpop.permute.xlu2 %2832 }
 0x2e2   : > { %6762 = vst [vmem:[#allocation94_spill] sm:$0xff] %v5422_v41  ;;  %3046 = vrot.lane.b32.xlu1 %v5424_v62, %s4242_s22  ;;  %3048 = vrot.lane.b32.xlu2 %v5432_v25, %s4242_s22  ;;  %v5480_v41 = vld [vmem:[#allocation2 + $0xd4] sm:$0xff] }
 0x2e6   : > { %3050 = vrot.lane.b32.xlu0 %v5408_v40, %s4242_s22  ;;  %v5436_v43 = vpop.permute.xlu1 %2818 }
 0x2e7   : > { %6763 = vst [vmem:[#allocation95_spill] sm:$0xff] %v5436_v43 }
 0x2e8   : > { %v5420_v49 = vpop.permute.xlu0 %2822 }
 0x2e9   : > { %6761 = vst [vmem:[#allocation93_spill] sm:$0xff] %v5420_v49  ;;  %v5440_v7 = vpop.permute.xlu2 %2838  ;;  %v5516_v49 = vld [vmem:[#allocation2 + $0x104] sm:$0xff] }
 0x2ea   : > { %6765 = vst [vmem:[#allocation97_spill] sm:$0xff] %v5440_v7  ;;  %3052 = vrot.lane.b32.xlu1 %v5442_v8, %s4242_s22  ;;  %3054 = vrot.lane.b32.xlu2 %v5450_v5, %s4242_s22 }
 0x2ee   : > { %3056 = vrot.lane.b32.xlu0 %v5426_v47, %s4242_s22  ;;  %v5454_v43 = vpop.permute.xlu1 %2824 }
 0x2ef   : > { %6766 = vst [vmem:[#allocation98_spill] sm:$0xff] %v5454_v43 }
 0x2f0   : > { %v5438_v38 = vpop.permute.xlu0 %2828 }
 0x2f1   : > { %6764 = vst [vmem:[#allocation96_spill] sm:$0xff] %v5438_v38  ;;  %v5458_v7 = vpop.permute.xlu2 %2844 }
 0x2f2   : > { %6768 = vst [vmem:[#allocation100_spill] sm:$0xff] %v5458_v7  ;;  %3058 = vrot.lane.b32.xlu1 %v5460_v11, %s4242_s22  ;;  %3060 = vrot.lane.b32.xlu2 %v5468_v2, %s4242_s22 }
 0x2f6   : > { %3062 = vrot.lane.b32.xlu0 %v5444_v32, %s4242_s22  ;;  %v5472_v43 = vpop.permute.xlu1 %2830 }
 0x2f7   : > { %6769 = vst [vmem:[#allocation101_spill] sm:$0xff] %v5472_v43 }
 0x2f8   : > { %v5456_v38 = vpop.permute.xlu0 %2834 }
 0x2f9   : > { %6767 = vst [vmem:[#allocation99_spill] sm:$0xff] %v5456_v38  ;;  %v5476_v7 = vpop.permute.xlu2 %2850 }
 0x2fa   : > { %6771 = vst [vmem:[#allocation103_spill] sm:$0xff] %v5476_v7  ;;  %3064 = vrot.lane.b32.xlu1 %v5478_v6, %s4242_s22  ;;  %3066 = vrot.lane.b32.xlu2 %v5486_v34, %s4242_s22 }
 0x2fe   : > { %3068 = vrot.lane.b32.xlu0 %v5462_v42, %s4242_s22  ;;  %v5490_v43 = vpop.permute.xlu1 %2836 }
 0x2ff   : > { %6772 = vst [vmem:[#allocation104_spill] sm:$0xff] %v5490_v43 }
 0x300   : > { %v5474_v38 = vpop.permute.xlu0 %2840 }
 0x301   : > { %6770 = vst [vmem:[#allocation102_spill] sm:$0xff] %v5474_v38  ;;  %v5494_v7 = vpop.permute.xlu2 %2856 }
 0x302   : > { %6774 = vst [vmem:[#allocation106_spill] sm:$0xff] %v5494_v7  ;;  %3070 = vrot.lane.b32.xlu1 %v5496_v16, %s4242_s22  ;;  %3072 = vrot.lane.b32.xlu2 %v5504_v59, %s4242_s22 }
 0x306   : > { %3074 = vrot.lane.b32.xlu0 %v5480_v41, %s4242_s22  ;;  %v5508_v43 = vpop.permute.xlu1 %2842 }
 0x307   : > { %6775 = vst [vmem:[#allocation107_spill] sm:$0xff] %v5508_v43 }
 0x308   : > { %v5492_v38 = vpop.permute.xlu0 %2846 }
 0x309   : > { %6773 = vst [vmem:[#allocation105_spill] sm:$0xff] %v5492_v38  ;;  %v5512_v7 = vpop.permute.xlu2 %2862 }
 0x30a   : > { %6777 = vst [vmem:[#allocation109_spill] sm:$0xff] %v5512_v7  ;;  %3076 = vrot.lane.b32.xlu1 %v5514_v44, %s4242_s22  ;;  %3078 = vrot.lane.b32.xlu2 %v5522_v39, %s4242_s22 }
 0x30e   : > { %3080 = vrot.lane.b32.xlu0 %v5498_v57, %s4242_s22  ;;  %v5526_v43 = vpop.permute.xlu1 %2848 }
 0x30f   : > { %6778 = vst [vmem:[#allocation110_spill] sm:$0xff] %v5526_v43 }
 0x310   : > { %v5510_v38 = vpop.permute.xlu0 %2852 }
 0x311   : > { %6776 = vst [vmem:[#allocation108_spill] sm:$0xff] %v5510_v38  ;;  %v5530_v7 = vpop.permute.xlu2 %2868 }
 0x312   : > { %6780 = vst [vmem:[#allocation112_spill] sm:$0xff] %v5530_v7  ;;  %3082 = vrot.lane.b32.xlu1 %v5532_v35, %s4242_s22  ;;  %3084 = vrot.lane.b32.xlu2 %v5540_v26, %s4242_s22 }
 0x316   : > { %3086 = vrot.lane.b32.xlu0 %v5516_v49, %s4242_s22  ;;  %v5544_v43 = vpop.permute.xlu1 %2854 }
 0x317   : > { %6781 = vst [vmem:[#allocation113_spill] sm:$0xff] %v5544_v43 }
 0x318   : > { %v5528_v38 = vpop.permute.xlu0 %2858 }
 0x319   : > { %6779 = vst [vmem:[#allocation111_spill] sm:$0xff] %v5528_v38  ;;  %v5548_v7 = vpop.permute.xlu2 %2874 }
 0x31a   : > { %6783 = vst [vmem:[#allocation115_spill] sm:$0xff] %v5548_v7  ;;  %3088 = vrot.lane.b32.xlu1 %v5550_v0, %s4242_s22  ;;  %3090 = vrot.lane.b32.xlu2 %v2986_v18, %s4242_s22  ;;  %v2989_v7 = vld [vmem:[#allocation2 + $0x12c] sm:$0xff] }
 0x31e   : > { %3092 = vrot.lane.b32.xlu0 %v5534_v31, %s4242_s22  ;;  %v5557_v33 = vpop.permute.xlu1 %2860 }
 0x31f   : > { %6784 = vst [vmem:[#allocation116_spill] sm:$0xff] %v5557_v33 }
 0x320   : > { %v5546_v38 = vpop.permute.xlu0 %2864 }
 0x321   : > { %6782 = vst [vmem:[#allocation114_spill] sm:$0xff] %v5546_v38  ;;  %v5561_v43 = vpop.permute.xlu2 %2880  ;;  %v5563_v38 = vld [vmem:[#allocation2 + $0x124] sm:$0xff] }
 0x322   : > { %3094 = vrot.lane.b32.xlu1 %v5563_v38, %s4242_s22  ;;  %3096 = vrot.lane.b32.xlu2 %v2989_v7, %s4242_s22 }
 0x326   : > { %3174 = vrot.lane.b32.xlu0 %v5378_v51, %s4243_s23  ;;  %v5570_v51 = vpop.permute.xlu1 %2866 }
 0x327   : > { %6786 = vst [vmem:[#allocation118_spill] sm:$0xff] %v5570_v51  ;;  %v2052_v51 = vld [vmem:[%s6666_s2 + $0x10] sm:$0xff] }
 0x328   : > { %v5559_v13 = vpop.permute.xlu0 %2870 }
 0x329   : > { %6785 = vst [vmem:[#allocation117_spill] sm:$0xff] %v5559_v13  ;;  %v5574_v33 = vpop.permute.xlu2 %3030 }
 0x32a   : > { %3176 = vrot.lane.b32.xlu1 %v5361_v24, %s4243_s23  ;;  %3178 = vrot.lane.b32.xlu2 %v5388_v61, %s4243_s23 }
 0x32e   : > { %3180 = vrot.lane.b32.xlu0 %v5396_v50, %s4243_s23  ;;  %v5582_v13 = vpop.permute.xlu1 %2872 }
 0x32f   : > { %6788 = vst [vmem:[#allocation120_spill] sm:$0xff] %v5582_v13 }
 0x330   : > { %v5572_v37 = vpop.permute.xlu0 %2876 }
 0x331   : > { %6787 = vst [vmem:[#allocation119_spill] sm:$0xff] %v5572_v37  ;;  %v5586_v3 = vpop.permute.xlu2 %3036 }
 0x332   : > { %3182 = vrot.lane.b32.xlu1 %v5373_v21, %s4243_s23  ;;  %3184 = vrot.lane.b32.xlu2 %v5406_v20, %s4243_s23 }
 0x336   : > { %3186 = vrot.lane.b32.xlu0 %v5414_v14, %s4243_s23  ;;  %v5594_v24 = vpop.permute.xlu1 %2878 }
 0x338   : > { %v5584_v50 = vpop.permute.xlu0 %3026 }
 0x339   : > { %v5598_v61 = vpop.permute.xlu2 %3042 }
 0x33a   : > { %3188 = vrot.lane.b32.xlu1 %v5390_v22, %s4243_s23  ;;  %3190 = vrot.lane.b32.xlu2 %v5424_v62, %s4243_s23 }
 0x33e   : > { %3192 = vrot.lane.b32.xlu0 %v5432_v25, %s4243_s23  ;;  %v5606_v21 = vpop.permute.xlu1 %3028 }
 0x340   : > { %v5596_v14 = vpop.permute.xlu0 %3032 }
 0x341   : > { %v5610_v20 = vpop.permute.xlu2 %3048 }
 0x342   : > { %3194 = vrot.lane.b32.xlu1 %v5408_v40, %s4243_s23  ;;  %3196 = vrot.lane.b32.xlu2 %v5442_v8, %s4243_s23 }
 0x346   : > { %3198 = vrot.lane.b32.xlu0 %v5450_v5, %s4243_s23  ;;  %v5618_v22 = vpop.permute.xlu1 %3034 }
 0x348   : > { %v5608_v25 = vpop.permute.xlu0 %3038 }
 0x349   : > { %v5622_v62 = vpop.permute.xlu2 %3054 }
 0x34a   : > { %3200 = vrot.lane.b32.xlu1 %v5426_v47, %s4243_s23  ;;  %3202 = vrot.lane.b32.xlu2 %v5460_v11, %s4243_s23 }
 0x34e   : > { %3204 = vrot.lane.b32.xlu0 %v5468_v2, %s4243_s23  ;;  %v5630_v40 = vpop.permute.xlu1 %3040 }
 0x350   : > { %v5620_v5 = vpop.permute.xlu0 %3044 }
 0x351   : > { %v5634_v8 = vpop.permute.xlu2 %3060 }
 0x352   : > { %3206 = vrot.lane.b32.xlu1 %v5444_v32, %s4243_s23  ;;  %3208 = vrot.lane.b32.xlu2 %v5478_v6, %s4243_s23 }
 0x356   : > { %3210 = vrot.lane.b32.xlu0 %v5486_v34, %s4243_s23  ;;  %v5642_v47 = vpop.permute.xlu1 %3046 }
 0x358   : > { %v5632_v2 = vpop.permute.xlu0 %3050 }
 0x359   : > { %v5646_v11 = vpop.permute.xlu2 %3066 }
 0x35a   : > { %3212 = vrot.lane.b32.xlu1 %v5462_v42, %s4243_s23  ;;  %3214 = vrot.lane.b32.xlu2 %v5496_v16, %s4243_s23 }
 0x35e   : > { %3216 = vrot.lane.b32.xlu0 %v5504_v59, %s4243_s23  ;;  %v5654_v32 = vpop.permute.xlu1 %3052 }
 0x360   : > { %v5644_v34 = vpop.permute.xlu0 %3056 }
 0x361   : > { %v5658_v6 = vpop.permute.xlu2 %3072 }
 0x362   : > { %3218 = vrot.lane.b32.xlu1 %v5480_v41, %s4243_s23  ;;  %3220 = vrot.lane.b32.xlu2 %v5514_v44, %s4243_s23  ;;  %v6791_v41 = vmov 0.0  }
 0x363   : > { %2013 = vst.msk [vmem:[#allocation2 + $0x143] sm:$0x1f] %vm2012_vm10, %v6791_v41 }
 0x366   : > { %3222 = vrot.lane.b32.xlu0 %v5522_v39, %s4243_s23  ;;  %v5666_v42 = vpop.permute.xlu1 %3058 }
 0x368   : > { %v5656_v59 = vpop.permute.xlu0 %3062 }
 0x369   : > { %v5670_v16 = vpop.permute.xlu2 %3078 }
 0x36a   : > { %6790 = vst [vmem:[#allocation122_spill] sm:$0xff] %v5670_v16  ;;  %3224 = vrot.lane.b32.xlu1 %v5498_v57, %s4243_s23  ;;  %3226 = vrot.lane.b32.xlu2 %v5532_v35, %s4243_s23  ;;  %v2085_v57 = vld [vmem:[%s6666_s2 + $0x118] sm:$0xff] }
 0x36b   : > { %v3170_v16 = vld [vmem:[#allocation2 + $0x134] sm:$0xff] }
 0x36e   : > { %3228 = vrot.lane.b32.xlu0 %v5540_v26, %s4243_s23  ;;  %v5678_v26 = vpop.permute.xlu1 %3064 }
 0x36f   : > { %6792 = vst [vmem:[#allocation123_spill] sm:$0xff] %v5678_v26  ;;  %v2086_v26 = vld [vmem:[#allocation2] sm:$0xff] }
 0x370   : > { %v5668_v39 = vpop.permute.xlu0 %3068 }
 0x371   : > { %6789 = vst [vmem:[#allocation121_spill] sm:$0xff] %v5668_v39  ;;  %v5682_v13 = vpop.permute.xlu2 %3084 }
 0x372   : > { %6794 = vst [vmem:[#allocation125_spill] sm:$0xff] %v5682_v13  ;;  %3230 = vrot.lane.b32.xlu1 %v5516_v49, %s4243_s23  ;;  %3232 = vrot.lane.b32.xlu2 %v5550_v0, %s4243_s23  ;;  %v2088_v49 = vld [vmem:[#allocation2 + $0x10] sm:$0xff]  ;;  %v3318_v0 = vld [vmem:[#allocation2 + $0x25] sm:$0xff] }
 0x376   : > { %3234 = vrot.lane.b32.xlu0 %v2986_v18, %s4243_s23  ;;  %v2121_v18 = vld [vmem:[#allocation2 + $0x118] sm:$0xff]  ;;  %v5692_v35 = vpop.permute.xlu1 %3070 }
 0x377   : > { %6795 = vst [vmem:[#allocation126_spill] sm:$0xff] %v5692_v35  ;;  %v2157_v37 = vadd.f32 %v2121_v18, %v2085_v57  ;;  %v2124_v57 = vadd.f32 %v2088_v49, %v2052_v51  ;;  %v3321_v49 = vld [vmem:[#allocation2 + $0x3d] sm:$0xff] }
 0x378   : > { %v5680_v44 = vpop.permute.xlu0 %3074 }
 0x379   : > { %6793 = vst [vmem:[#allocation124_spill] sm:$0xff] %v5680_v44  ;;  %v5699_v13 = vpop.permute.xlu2 %3090  ;;  %v2050_v44 = vld [vmem:[%s6666_s2] sm:$0xff] }
 0x37a   : > { %6797 = vst [vmem:[#allocation128_spill] sm:$0xff] %v5699_v13  ;;  %3236 = vrot.lane.b32.xlu1 %v5534_v31, %s4243_s23  ;;  %3238 = vrot.lane.b32.xlu2 %v5563_v38, %s4243_s23 }
 0x37e   : > { %3240 = vrot.lane.b32.xlu0 %v2989_v7, %s4243_s23  ;;  %v2373_v7 = vadd.f32 %v5116_v60, %v2157_v37  ;;  %v5711_v13 = vpop.permute.xlu1 %3076  ;;  %v2122_v37 = vadd.f32 %v2086_v26, %v2050_v44  ;;  %v2055_v26 = vld [vmem:[%s6666_s2 + $0x28] sm:$0xff] }
 0x37f   : > { %v2091_v44 = vld [vmem:[#allocation2 + $0x28] sm:$0xff] }
 0x380   : > { %v5694_v41 = vpop.permute.xlu0 %3080  ;;  %v2589_v18 = vadd.f32 %v5128_v58, %v2373_v7  ;;  %v2338_v51 = vadd.f32 %v5018_v45, %v2122_v37  ;;  %v2053_v45 = vld [vmem:[%s6666_s2 + $0x18] sm:$0xff] }
 0x381   : > { %6796 = vst [vmem:[#allocation127_spill] sm:$0xff] %v5694_v41  ;;  %v2340_v41 = vadd.f32 %v5035_v53, %v2124_v57  ;;  %v3097_v39 = vpop.permute.xlu2 %3096  ;;  %v2084_v57 = vld [vmem:[%s6666_s2 + $0x110] sm:$0xff] }
 0x382   : > { %v2737_v35 = vadd.f32 %v5359_v27, %v2589_v18  ;;  %3242 = vrot.lane.b32.xlu1 %v3170_v16, %s4243_s23  ;;  %v2120_v18 = vld [vmem:[#allocation2 + $0x110] sm:$0xff] }
 0x383   : > { %v2556_v58 = vadd.f32 %v5020_v1, %v2340_v41  ;;  %v2089_v1 = vld [vmem:[#allocation2 + $0x18] sm:$0xff] }
 0x384   : > { %v2953_v31 = vadd.f32 %v5561_v43, %v2737_v35  ;;  %v2127_v35 = vadd.f32 %v2091_v44, %v2055_v26  ;;  %v2125_v7 = vadd.f32 %v2089_v1, %v2053_v45  ;;  %v3324_v26 = vld [vmem:[#allocation2 + $0x55] sm:$0xff] }
 0x385   : > { %v2704_v53 = vadd.f32 %v5090_v28, %v2556_v58  ;;  %v2094_v58 = vld [vmem:[#allocation2 + $0x40] sm:$0xff]  ;;  %v3320_v44 = vld [vmem:[#allocation2 + $0x35] sm:$0xff] }
 0x386   : > { %3390 = vrot.lane.b32.xlu0 %v3318_v0, %s4244_s29  ;;  %v3171_v0 = vld [vmem:[#allocation2 + $0x13c] sm:$0xff]  ;;  %v5720_v38 = vadd.f32 %v3097_v39, %v2953_v31  ;;  %v5732_v43 = vpop.permute.xlu1 %3082  ;;  %v2554_v39 = vadd.f32 %v5037_v46, %v2338_v51  ;;  %v2343_v28 = vadd.f32 %v5102_v30, %v2127_v35  ;;  %v2051_v31 = vld [vmem:[%s6666_s2 + $0x8] sm:$0xff] }
 0x387   : > { %3244 = vrot.lane.b32.xlu2 %v3171_v0, %s4243_s23  ;;  %v2920_v16 = vadd.f32 %v5371_v19, %v2704_v53  ;;  %v2087_v46 = vld [vmem:[#allocation2 + $0x8] sm:$0xff]  ;;  %v2341_v19 = vadd.f32 %v5047_v56, %v2125_v7  ;;  %v2058_v30 = vld [vmem:[%s6666_s2 + $0x40] sm:$0xff]  ;;  %v2156_v53 = vadd.f32 %v2120_v18, %v2084_v57  ;;  %v2092_v7 = vld [vmem:[#allocation2 + $0x30] sm:$0xff] }
 0x388   : > { %v5713_v60 = vpop.permute.xlu0 %3086  ;;  %v2702_v41 = vadd.f32 %v5052_v52, %v2554_v39  ;;  %v3319_v0 = vld [vmem:[#allocation2 + $0x2d] sm:$0xff]  ;;  %v2559_v52 = vadd.f32 %v5109_v29, %v2343_v28  ;;  %v2123_v45 = vadd.f32 %v2087_v46, %v2051_v31  ;;  %v2130_v1 = vadd.f32 %v2094_v58, %v2058_v30  ;;  %v2061_v31 = vld [vmem:[%s6666_s2 + $0x58] sm:$0xff] }
 0x389   : > { %v3136_v37 = vadd.f32 %v5574_v33, %v2920_v16  ;;  %v3179_v51 = vpop.permute.xlu2 %3178  ;;  %v2372_v35 = vadd.f32 %v5107_v4, %v2156_v53  ;;  %v2557_v16 = vadd.f32 %v5063_v17, %v2341_v19  ;;  %v2097_v46 = vld [vmem:[#allocation2 + $0x58] sm:$0xff]  ;;  %v3327_v19 = vld [vmem:[#allocation2 + $0x6d] sm:$0xff] }
 0x38a   : > { %3392 = vrot.lane.b32.xlu1 %v3319_v0, %s4244_s29  ;;  %v2707_v56 = vadd.f32 %v5187_v54, %v2559_v52  ;;  %v2346_v18 = vadd.f32 %v5198_v9, %v2130_v1  ;;  %v2339_v4 = vadd.f32 %v5028_v63, %v2123_v45  ;;  %v3323_v63 = vld [vmem:[#allocation2 + $0x4d] sm:$0xff]  ;;  %v6799_v30 = vld [vmem:[#allocation58_spill] sm:$0xff] }
 0x38b   : > { %v5753_v33 = vadd.f32 %v3179_v51, %v3136_v37  ;;  %v2705_v57 = vadd.f32 %v5147_v48, %v2557_v16  ;;  %v3322_v48 = vld [vmem:[#allocation2 + $0x45] sm:$0xff] }
 0x38c   : > { %v2923_v54 = vadd.f32 %v5386_v10, %v2707_v56  ;;  %v2562_v10 = vadd.f32 %v5208_v12, %v2346_v18  ;;  %v2054_v45 = vld [vmem:[%s6666_s2 + $0x20] sm:$0xff]  ;;  %v6805_v18 = vld [vmem:[#allocation45_spill] sm:$0xff] }
 0x38d   : > { %v2090_v1 = vld [vmem:[#allocation2 + $0x20] sm:$0xff] }
 0x38e   : > { %3396 = vrot.lane.b32.xlu0 %v3321_v49, %s4244_s29  ;;  %v2918_v49 = vadd.f32 %v5384_v23, %v2702_v41  ;;  %v5760_v39 = vpop.permute.xlu1 %3088  ;;  %v2056_v41 = vld [vmem:[%s6666_s2 + $0x30] sm:$0xff]  ;;  %v3139_v37 = vadd.f32 %v5586_v3, %v2923_v54  ;;  %v6798_v3 = vld [vmem:[#allocation27_spill] sm:$0xff]  ;;  %v2710_v58 = vadd.f32 %v6799_v30, %v2562_v10 }
 0x38f   : > { %3394 = vrot.lane.b32.xlu2 %v3320_v44, %s4244_s29  ;;  %v2128_v17 = vadd.f32 %v2092_v7, %v2056_v41  ;;  %v6801_v44 = vld [vmem:[#allocation30_spill] sm:$0xff]  ;;  %v6803_v16 = vld [vmem:[#allocation91_spill] sm:$0xff] }
 0x390   : > { %v5734_v27 = vpop.permute.xlu0 %3092  ;;  %v3134_v29 = vadd.f32 %v5584_v50, %v2918_v49  ;;  %v2588_v50 = vadd.f32 %v5120_v36, %v2372_v35  ;;  %v2921_v36 = vadd.f32 %v5402_v15, %v2705_v57  ;;  %v2133_v49 = vadd.f32 %v2097_v46, %v2061_v31  ;;  %v6800_v15 = vld [vmem:[#allocation4_spill] sm:$0xff] }
 0x391   : > { %v3185_v0 = vpop.permute.xlu2 %3184  ;;  %v2344_v52 = vadd.f32 %v6798_v3, %v2128_v17  ;;  %v2926_v41 = vadd.f32 %v6803_v16, %v2710_v58  ;;  %v2059_v7 = vld [vmem:[%s6666_s2 + $0x48] sm:$0xff]  ;;  %v2126_v46 = vadd.f32 %v2090_v1, %v2054_v45  ;;  %v6808_v3 = vld [vmem:[#allocation93_spill] sm:$0xff] }
 0x392   : > { %v2736_v51 = vadd.f32 %v5400_v55, %v2588_v50  ;;  %v5781_v9 = vadd.f32 %v3185_v0, %v3139_v37  ;;  %3398 = vrot.lane.b32.xlu1 %v3322_v48, %s4244_s29  ;;  %v3137_v55 = vadd.f32 %v5596_v14, %v2921_v36  ;;  %v2095_v54 = vld [vmem:[#allocation2 + $0x48] sm:$0xff]  ;;  %v2064_v0 = vld [vmem:[%s6666_s2 + $0x70] sm:$0xff] }
 0x393   : > { %v2560_v53 = vadd.f32 %v6801_v44, %v2344_v52  ;;  %v6804_v50 = vld [vmem:[#allocation15_spill] sm:$0xff]  ;;  %v3142_v31 = vadd.f32 %v5598_v61, %v2926_v41  ;;  %v2131_v36 = vadd.f32 %v2095_v54, %v2059_v7  ;;  %v6807_v48 = vld [vmem:[#allocation92_spill] sm:$0xff]  ;;  %v6812_v45 = vld [vmem:[#allocation17_spill] sm:$0xff] }
 0x394   : > { %v2952_v12 = vadd.f32 %v5594_v24, %v2736_v51  ;;  %v2100_v51 = vld [vmem:[#allocation2 + $0x70] sm:$0xff]  ;;  %v3330_v30 = vld [vmem:[#allocation2 + $0x85] sm:$0xff]  ;;  %v2057_v7 = vld [vmem:[%s6666_s2 + $0x38] sm:$0xff] }
 0x395   : > { %v2708_v37 = vadd.f32 %v6805_v18, %v2560_v53  ;;  %v3326_v61 = vld [vmem:[#allocation2 + $0x65] sm:$0xff]  ;;  %v2093_v54 = vld [vmem:[#allocation2 + $0x38] sm:$0xff] }
 0x396   : > { %3402 = vrot.lane.b32.xlu0 %v3324_v26, %s4244_s29  ;;  %v2555_v26 = vadd.f32 %v6800_v15, %v2339_v4  ;;  %v3095_v56 = vpop.permute.xlu1 %3094  ;;  %v6806_v4 = vld [vmem:[#allocation64_spill] sm:$0xff] }
 0x397   : > { %3400 = vrot.lane.b32.xlu2 %v3323_v63, %s4244_s29  ;;  %v5797_v24 = vadd.f32 %v3095_v56, %v2952_v12  ;;  %v2924_v52 = vadd.f32 %v6808_v3, %v2708_v37  ;;  %v3325_v63 = vld [vmem:[#allocation2 + $0x5d] sm:$0xff]  ;;  %v2129_v3 = vadd.f32 %v2093_v54, %v2057_v7 }
 0x398   : > { %v3175_v23 = vpop.permute.xlu0 %3174  ;;  %v2703_v57 = vadd.f32 %v6804_v50, %v2555_v26  ;;  %v6811_v26 = vld [vmem:[#allocation5_spill] sm:$0xff] }
 0x399   : > { %v5768_v28 = vadd.f32 %v3175_v23, %v3134_v29  ;;  %v6802_v23 = vld [vmem:[#allocation61_spill] sm:$0xff]  ;;  %v3191_v10 = vpop.permute.xlu2 %3190  ;;  %v3140_v56 = vadd.f32 %v5608_v25, %v2924_v52  ;;  %v6814_v25 = vld [vmem:[#allocation94_spill] sm:$0xff] }
 0x39a   : > { %v2349_v35 = vadd.f32 %v6802_v23, %v2133_v49  ;;  %v5813_v58 = vadd.f32 %v3191_v10, %v3142_v31  ;;  %v6809_v49 = vld [vmem:[#allocation9_spill] sm:$0xff]  ;;  %3404 = vrot.lane.b32.xlu1 %v3325_v63, %s4244_s29  ;;  %v2062_v23 = vld [vmem:[%s6666_s2 + $0x60] sm:$0xff] }
 0x39b   : > { %v2342_v12 = vadd.f32 %v6809_v49, %v2126_v46  ;;  %v6816_v31 = vld [vmem:[#allocation35_spill] sm:$0xff]  ;;  %v3328_v52 = vld [vmem:[#allocation2 + $0x75] sm:$0xff] }
 0x39c   : > { %v2565_v17 = vadd.f32 %v6806_v4, %v2349_v35  ;;  %v2098_v35 = vld [vmem:[#allocation2 + $0x60] sm:$0xff]  ;;  %v2103_v49 = vld [vmem:[#allocation2 + $0x88] sm:$0xff]  ;;  %v2065_v54 = vld [vmem:[%s6666_s2 + $0x78] sm:$0xff] }
 0x39d   : > { %v2558_v1 = vadd.f32 %v6812_v45, %v2342_v12  ;;  %v6815_v4 = vld [vmem:[#allocation11_spill] sm:$0xff] }
 0x39e   : > { %3408 = vrot.lane.b32.xlu0 %v3327_v19, %s4244_s29  ;;  %v2919_v19 = vadd.f32 %v6807_v48, %v2703_v57  ;;  %v2713_v44 = vadd.f32 %v6811_v26, %v2565_v17  ;;  %v3177_v16 = vpop.permute.xlu1 %3176  ;;  %v6817_v10 = vld [vmem:[#allocation75_spill] sm:$0xff]  ;;  %v6818_v48 = vld [vmem:[#allocation14_spill] sm:$0xff]  ;;  %v6821_v26 = vld [vmem:[#allocation96_spill] sm:$0xff] }
 0x39f   : > { %3406 = vrot.lane.b32.xlu2 %v3326_v61, %s4244_s29  ;;  %v2706_v46 = vadd.f32 %v6816_v31, %v2558_v1  ;;  %v6819_v12 = vld [vmem:[#allocation63_spill] sm:$0xff]  ;;  %v6823_v1 = vld [vmem:[#allocation38_spill] sm:$0xff]  ;;  %v2060_v31 = vld [vmem:[%s6666_s2 + $0x50] sm:$0xff] }
 0x3a0   : > { %v3181_v29 = vpop.permute.xlu0 %3180  ;;  %v3135_v53 = vadd.f32 %v5606_v21, %v2919_v19  ;;  %v6813_v21 = vld [vmem:[#allocation51_spill] sm:$0xff]  ;;  %v2929_v57 = vadd.f32 %v6814_v25, %v2713_v44 }
 0x3a1   : > { %v5799_v14 = vadd.f32 %v3181_v29, %v3137_v55  ;;  %v6810_v55 = vld [vmem:[#allocation48_spill] sm:$0xff]  ;;  %v2136_v29 = vadd.f32 %v2100_v51, %v2064_v0  ;;  %v2134_v0 = vadd.f32 %v2098_v35, %v2062_v23  ;;  %v3197_v63 = vpop.permute.xlu2 %3196  ;;  %v3329_v45 = vld [vmem:[#allocation2 + $0x7d] sm:$0xff]  ;;  %v2345_v23 = vadd.f32 %v6823_v1, %v2129_v3  ;;  %v6824_v35 = vld [vmem:[#allocation69_spill] sm:$0xff] }
 0x3a2   : > { %v2347_v15 = vadd.f32 %v6810_v55, %v2131_v36  ;;  %v5832_v18 = vadd.f32 %v3177_v16, %v3135_v53  ;;  %v3145_v36 = vadd.f32 %v5610_v20, %v2929_v57  ;;  %v6820_v55 = vld [vmem:[#allocation95_spill] sm:$0xff]  ;;  %3410 = vrot.lane.b32.xlu1 %v3328_v52, %s4244_s29  ;;  %v2101_v57 = vld [vmem:[#allocation2 + $0x78] sm:$0xff]  ;;  %v6829_v3 = vld [vmem:[#allocation16_spill] sm:$0xff] }
 0x3a3   : > { %v2352_v17 = vadd.f32 %v6815_v4, %v2136_v29  ;;  %v2350_v61 = vadd.f32 %v6819_v12, %v2134_v0  ;;  %v3333_v53 = vld [vmem:[#allocation2 + $0x9d] sm:$0xff]  ;;  %v6825_v4 = vld [vmem:[#allocation40_spill] sm:$0xff]  ;;  %v3336_v12 = vld [vmem:[#allocation2 + $0xb5] sm:$0xff] }
 0x3a4   : > { %v2563_v50 = vadd.f32 %v6813_v21, %v2347_v15  ;;  %v2922_v15 = vadd.f32 %v6820_v55, %v2706_v46  ;;  %v6822_v20 = vld [vmem:[#allocation23_spill] sm:$0xff]  ;;  %v2096_v46 = vld [vmem:[#allocation2 + $0x50] sm:$0xff]  ;;  %v6830_v55 = vld [vmem:[#allocation34_spill] sm:$0xff] }
 0x3a5   : > { %v2568_v19 = vadd.f32 %v6818_v48, %v2352_v17  ;;  %v2566_v16 = vadd.f32 %v6824_v35, %v2350_v61  ;;  %v2561_v17 = vadd.f32 %v6825_v4, %v2345_v23  ;;  %v6828_v48 = vld [vmem:[#allocation56_spill] sm:$0xff]  ;;  %v6836_v4 = vld [vmem:[#allocation21_spill] sm:$0xff] }
 0x3a6   : > { %3414 = vrot.lane.b32.xlu0 %v3330_v30, %s4244_s29  ;;  %v2711_v51 = vadd.f32 %v6817_v10, %v2563_v50  ;;  %v2067_v30 = vld [vmem:[%s6666_s2 + $0x88] sm:$0xff]  ;;  %v3183_v50 = vpop.permute.xlu1 %3182 }
 0x3a7   : > { %v2716_v29 = vadd.f32 %v6822_v20, %v2568_v19  ;;  %3412 = vrot.lane.b32.xlu2 %v3329_v45, %s4244_s29  ;;  %v2139_v21 = vadd.f32 %v2103_v49, %v2067_v30  ;;  %v2709_v19 = vadd.f32 %v6828_v48, %v2561_v17  ;;  %v2714_v52 = vadd.f32 %v6829_v3, %v2566_v16  ;;  %v3331_v1 = vld [vmem:[#allocation2 + $0x8d] sm:$0xff]  ;;  %v3332_v16 = vld [vmem:[#allocation2 + $0x95] sm:$0xff] }
 0x3a8   : > { %v3187_v41 = vpop.permute.xlu0 %3186  ;;  %v2927_v44 = vadd.f32 %v6821_v26, %v2711_v51  ;;  %v6827_v51 = vld [vmem:[#allocation31_spill] sm:$0xff]  ;;  %v2137_v30 = vadd.f32 %v2101_v57, %v2065_v54  ;;  %v2132_v49 = vadd.f32 %v2096_v46, %v2060_v31  ;;  %v6833_v35 = vld [vmem:[#allocation20_spill] sm:$0xff] }
 0x3a9   : > { %v5834_v37 = vadd.f32 %v3187_v41, %v3140_v56  ;;  %v5847_v56 = vadd.f32 %v3197_v63, %v3145_v36  ;;  %v3138_v41 = vadd.f32 %v5618_v22, %v2922_v15  ;;  %v6826_v22 = vld [vmem:[#allocation97_spill] sm:$0xff]  ;;  %v2355_v36 = vadd.f32 %v6827_v51, %v2139_v21  ;;  %v3203_v61 = vpop.permute.xlu2 %3202  ;;  %v2070_v26 = vld [vmem:[%s6666_s2 + $0xa0] sm:$0xff]  ;;  %v6835_v54 = vld [vmem:[#allocation60_spill] sm:$0xff] }
 0x3aa   : > { %v3143_v7 = vadd.f32 %v5620_v5, %v2927_v44  ;;  %v2932_v0 = vadd.f32 %v6826_v22, %v2716_v29  ;;  %v2106_v44 = vld [vmem:[#allocation2 + $0xa0] sm:$0xff]  ;;  %3416 = vrot.lane.b32.xlu1 %v3331_v1, %s4244_s29  ;;  %v2348_v21 = vadd.f32 %v6835_v54, %v2132_v49  ;;  %v2063_v57 = vld [vmem:[%s6666_s2 + $0x68] sm:$0xff]  ;;  %v2068_v51 = vld [vmem:[%s6666_s2 + $0x90] sm:$0xff] }
 0x3ab   : > { %v5865_v5 = vadd.f32 %v3183_v50, %v3138_v41  ;;  %v2571_v15 = vadd.f32 %v6830_v55, %v2355_v36  ;;  %v6832_v29 = vld [vmem:[#allocation99_spill] sm:$0xff]  ;;  %v2142_v31 = vadd.f32 %v2106_v44, %v2070_v26  ;;  %v2104_v36 = vld [vmem:[#allocation2 + $0x90] sm:$0xff]  ;;  %v2073_v26 = vld [vmem:[%s6666_s2 + $0xb8] sm:$0xff] }
 0x3ac   : > { %v3148_v63 = vadd.f32 %v5622_v62, %v2932_v0  ;;  %v2930_v45 = vadd.f32 %v6832_v29, %v2714_v52  ;;  %v2353_v62 = vadd.f32 %v6833_v35, %v2137_v30  ;;  %v6834_v41 = vld [vmem:[#allocation43_spill] sm:$0xff]  ;;  %v6840_v49 = vld [vmem:[#allocation52_spill] sm:$0xff]  ;;  %v2109_v29 = vld [vmem:[#allocation2 + $0xb8] sm:$0xff] }
 0x3ad   : > { %v2099_v0 = vld [vmem:[#allocation2 + $0x68] sm:$0xff]  ;;  %v6843_v35 = vld [vmem:[#allocation101_spill] sm:$0xff] }
 0x3ae   : > { %3420 = vrot.lane.b32.xlu0 %v3333_v53, %s4244_s29  ;;  %v6831_v53 = vld [vmem:[#allocation98_spill] sm:$0xff]  ;;  %v5879_v23 = vadd.f32 %v3203_v61, %v3148_v63  ;;  %v2569_v17 = vadd.f32 %v6836_v4, %v2353_v62  ;;  %v3189_v46 = vpop.permute.xlu1 %3188  ;;  %v6839_v63 = vld [vmem:[#allocation33_spill] sm:$0xff]  ;;  %v2135_v44 = vadd.f32 %v2099_v0, %v2063_v57  ;;  %v6846_v57 = vld [vmem:[#allocation39_spill] sm:$0xff]  ;;  %v2145_v0 = vadd.f32 %v2109_v29, %v2073_v26 }
 0x3af   : > { %v2925_v20 = vadd.f32 %v6831_v53, %v2709_v19  ;;  %3418 = vrot.lane.b32.xlu2 %v3332_v16, %s4244_s29  ;;  %v6841_v61 = vld [vmem:[#allocation74_spill] sm:$0xff]  ;;  %v2140_v53 = vadd.f32 %v2104_v36, %v2068_v51  ;;  %v3339_v54 = vld [vmem:[#allocation2 + $0xcd] sm:$0xff] }
 0x3b0   : > { %v3193_v25 = vpop.permute.xlu0 %3192  ;;  %v2717_v30 = vadd.f32 %v6839_v63, %v2569_v17  ;;  %v6844_v16 = vld [vmem:[#allocation102_spill] sm:$0xff]  ;;  %v6848_v51 = vld [vmem:[#allocation12_spill] sm:$0xff]  ;;  %v6849_v63 = vld [vmem:[#allocation41_spill] sm:$0xff] }
 0x3b1   : > { %v5867_v10 = vadd.f32 %v3193_v25, %v3143_v7  ;;  %v2719_v7 = vadd.f32 %v6834_v41, %v2571_v15  ;;  %v3141_v50 = vadd.f32 %v5630_v40, %v2925_v20  ;;  %v3146_v25 = vadd.f32 %v5632_v2, %v2930_v45  ;;  %v6837_v40 = vld [vmem:[#allocation62_spill] sm:$0xff]  ;;  %v6838_v2 = vld [vmem:[#allocation100_spill] sm:$0xff]  ;;  %v3209_v20 = vpop.permute.xlu2 %3208  ;;  %v6842_v45 = vld [vmem:[#allocation55_spill] sm:$0xff] }
 0x3b2   : > { %v2564_v48 = vadd.f32 %v6837_v40, %v2348_v21  ;;  %v2933_v41 = vadd.f32 %v6844_v16, %v2717_v30  ;;  %v2356_v4 = vadd.f32 %v6846_v57, %v2140_v53  ;;  %v6847_v17 = vld [vmem:[#allocation70_spill] sm:$0xff]  ;;  %v2107_v26 = vld [vmem:[#allocation2 + $0xa8] sm:$0xff]  ;;  %v6856_v57 = vld [vmem:[#allocation105_spill] sm:$0xff] }
 0x3b3   : > { %v2935_v19 = vadd.f32 %v6838_v2, %v2719_v7  ;;  %v5898_v3 = vadd.f32 %v3189_v46, %v3141_v50  ;;  %v3334_v7 = vld [vmem:[#allocation2 + $0xa5] sm:$0xff]  ;;  %v3337_v16 = vld [vmem:[#allocation2 + $0xbd] sm:$0xff] }
 0x3b4   : > { %v2712_v55 = vadd.f32 %v6841_v61, %v2564_v48  ;;  %v6845_v50 = vld [vmem:[#allocation8_spill] sm:$0xff]  ;;  %3422 = vrot.lane.b32.xlu1 %v3334_v7, %s4244_s29  ;;  %v2066_v2 = vld [vmem:[%s6666_s2 + $0x80] sm:$0xff]  ;;  %v2572_v30 = vadd.f32 %v6849_v63, %v2356_v4 }
 0x3b5   : > { %v3151_v15 = vadd.f32 %v5634_v8, %v2935_v19  ;;  %v2351_v8 = vadd.f32 %v6845_v50, %v2135_v44  ;;  %v2102_v19 = vld [vmem:[#allocation2 + $0x80] sm:$0xff]  ;;  %v2076_v7 = vld [vmem:[%s6666_s2 + $0xd0] sm:$0xff] }
 0x3b6   : > { %3426 = vrot.lane.b32.xlu0 %v3336_v12, %s4244_s29  ;;  %v2358_v12 = vadd.f32 %v6840_v49, %v2142_v31  ;;  %v2928_v62 = vadd.f32 %v6843_v35, %v2712_v55  ;;  %v3195_v40 = vpop.permute.xlu1 %3194  ;;  %v6850_v49 = vld [vmem:[#allocation103_spill] sm:$0xff]  ;;  %v6852_v44 = vld [vmem:[#allocation22_spill] sm:$0xff] }
 0x3b7   : > { %v5912_v21 = vadd.f32 %v3209_v20, %v3151_v15  ;;  %v2567_v36 = vadd.f32 %v6848_v51, %v2351_v8  ;;  %v2071_v15 = vld [vmem:[%s6666_s2 + $0xa8] sm:$0xff]  ;;  %v6853_v20 = vld [vmem:[#allocation54_spill] sm:$0xff] }
 0x3b8   : > { %v3199_v22 = vpop.permute.xlu0 %3198  ;;  %v2574_v1 = vadd.f32 %v6842_v45, %v2358_v12  ;;  %v3144_v46 = vadd.f32 %v5642_v47, %v2928_v62  ;;  %v2720_v29 = vadd.f32 %v6853_v20, %v2572_v30  ;;  %v2138_v62 = vadd.f32 %v2102_v19, %v2066_v2  ;;  %v6855_v8 = vld [vmem:[#allocation104_spill] sm:$0xff]  ;;  %v2074_v19 = vld [vmem:[%s6666_s2 + $0xc0] sm:$0xff] }
 0x3b9   : > { %v5900_v52 = vadd.f32 %v3199_v22, %v3146_v25  ;;  %v3335_v25 = vld [vmem:[#allocation2 + $0xad] sm:$0xff]  ;;  %v3149_v22 = vadd.f32 %v5644_v34, %v2933_v41  ;;  %v6851_v34 = vld [vmem:[#allocation6_spill] sm:$0xff]  ;;  %v2715_v53 = vadd.f32 %v6852_v44, %v2567_v36  ;;  %v3215_v41 = vpop.permute.xlu2 %3214  ;;  %v2143_v50 = vadd.f32 %v2107_v26, %v2071_v15  ;;  %v6859_v36 = vld [vmem:[#allocation67_spill] sm:$0xff] }
 0x3ba   : > { %v2722_v31 = vadd.f32 %v6847_v17, %v2574_v1  ;;  %3424 = vrot.lane.b32.xlu2 %v3335_v25, %s4244_s29  ;;  %v5928_v61 = vadd.f32 %v3195_v40, %v3144_v46  ;;  %v2361_v55 = vadd.f32 %v6851_v34, %v2145_v0  ;;  %v6854_v1 = vld [vmem:[#allocation7_spill] sm:$0xff]  ;;  %v2936_v4 = vadd.f32 %v6856_v57, %v2720_v29  ;;  %v6857_v46 = vld [vmem:[#allocation29_spill] sm:$0xff]  ;;  %v6858_v0 = vld [vmem:[#allocation66_spill] sm:$0xff] }
 0x3bb   : > { %v2931_v25 = vadd.f32 %v6855_v8, %v2715_v53  ;;  %v3342_v17 = vld [vmem:[#allocation2 + $0xe5] sm:$0xff]  ;;  %v2359_v51 = vadd.f32 %v6858_v0, %v2143_v50  ;;  %v2069_v15 = vld [vmem:[%s6666_s2 + $0x98] sm:$0xff] }
 0x3bc   : > { %v2938_v12 = vadd.f32 %v6850_v49, %v2722_v31  ;;  %v2577_v35 = vadd.f32 %v6854_v1, %v2361_v55  ;;  %3428 = vrot.lane.b32.xlu1 %v3337_v16, %s4244_s29  ;;  %v3152_v2 = vadd.f32 %v5656_v59, %v2936_v4  ;;  %v6860_v30 = vld [vmem:[#allocation32_spill] sm:$0xff]  ;;  %v2110_v55 = vld [vmem:[#allocation2 + $0xc0] sm:$0xff]  ;;  %v2105_v26 = vld [vmem:[#allocation2 + $0x98] sm:$0xff] }
 0x3bd   : > { %v6862_v59 = vld [vmem:[#allocation106_spill] sm:$0xff]  ;;  %v2141_v50 = vadd.f32 %v2105_v26, %v2069_v15  ;;  %v6866_v57 = vld [vmem:[#allocation28_spill] sm:$0xff]  ;;  %v6873_v15 = vld [vmem:[#allocation19_spill] sm:$0xff] }
 0x3be   : > { %3432 = vrot.lane.b32.xlu0 %v3339_v54, %s4244_s29  ;;  %v3154_v45 = vadd.f32 %v5646_v11, %v2938_v12  ;;  %v2112_v54 = vld [vmem:[#allocation2 + $0xd0] sm:$0xff]  ;;  %v2354_v11 = vadd.f32 %v6857_v46, %v2138_v62  ;;  %v2725_v40 = vadd.f32 %v6859_v36, %v2577_v35  ;;  %v3201_v12 = vpop.permute.xlu1 %3200  ;;  %v6864_v35 = vld [vmem:[#allocation42_spill] sm:$0xff]  ;;  %v2115_v46 = vld [vmem:[#allocation2 + $0xe8] sm:$0xff] }
 0x3bf   : > { %v2148_v63 = vadd.f32 %v2112_v54, %v2076_v7  ;;  %v6865_v16 = vld [vmem:[#allocation78_spill] sm:$0xff]  ;;  %v2146_v54 = vadd.f32 %v2110_v55, %v2074_v19  ;;  %v6868_v0 = vld [vmem:[#allocation108_spill] sm:$0xff] }
 0x3c0   : > { %v3205_v48 = vpop.permute.xlu0 %3204  ;;  %v5945_v31 = vadd.f32 %v3215_v41, %v3154_v45  ;;  %v2570_v49 = vadd.f32 %v6860_v30, %v2354_v11  ;;  %v2941_v53 = vadd.f32 %v6862_v59, %v2725_v40  ;;  %v6863_v45 = vld [vmem:[#allocation25_spill] sm:$0xff]  ;;  %v3345_v8 = vld [vmem:[#allocation2 + $0xfd] sm:$0xff] }
 0x3c1   : > { %v5930_v47 = vadd.f32 %v3205_v48, %v3149_v22  ;;  %v3338_v22 = vld [vmem:[#allocation2 + $0xc5] sm:$0xff]  ;;  %v3147_v48 = vadd.f32 %v5654_v32, %v2931_v25  ;;  %v2364_v1 = vadd.f32 %v6863_v45, %v2148_v63  ;;  %v3221_v25 = vpop.permute.xlu2 %3220  ;;  %v3340_v36 = vld [vmem:[#allocation2 + $0xd5] sm:$0xff] }
 0x3c2   : > { %3430 = vrot.lane.b32.xlu2 %v3338_v22, %s4244_s29  ;;  %v6861_v32 = vld [vmem:[#allocation72_spill] sm:$0xff]  ;;  %v2718_v62 = vadd.f32 %v6864_v35, %v2570_v49  ;;  %v3157_v7 = vadd.f32 %v5658_v6, %v2941_v53  ;;  %v6867_v11 = vld [vmem:[#allocation107_spill] sm:$0xff]  ;;  %v6870_v19 = vld [vmem:[#allocation50_spill] sm:$0xff] }
 0x3c3   : > { %v2575_v44 = vadd.f32 %v6861_v32, %v2359_v51  ;;  %v5964_v20 = vadd.f32 %v3201_v12, %v3147_v48  ;;  %v2580_v4 = vadd.f32 %v6866_v57, %v2364_v1  ;;  %v6869_v48 = vld [vmem:[#allocation18_spill] sm:$0xff]  ;;  %v2357_v63 = vadd.f32 %v6870_v19, %v2141_v50  ;;  %v6871_v30 = vld [vmem:[#allocation79_spill] sm:$0xff]  ;;  %v6874_v35 = vld [vmem:[#allocation53_spill] sm:$0xff] }
 0x3c4   : > { %v2934_v22 = vadd.f32 %v6867_v11, %v2718_v62  ;;  %v5978_v40 = vadd.f32 %v3221_v25, %v3157_v7  ;;  %v2362_v6 = vadd.f32 %v6869_v48, %v2146_v54  ;;  %3434 = vrot.lane.b32.xlu1 %v3340_v36, %s4244_s29  ;;  %v2077_v45 = vld [vmem:[%s6666_s2 + $0xd8] sm:$0xff]  ;;  %v2108_v62 = vld [vmem:[#allocation2 + $0xb0] sm:$0xff]  ;;  %v2118_v19 = vld [vmem:[#allocation2 + $0x100] sm:$0xff] }
 0x3c5   : > { %v2723_v41 = vadd.f32 %v6865_v16, %v2575_v44  ;;  %v2728_v49 = vadd.f32 %v6871_v30, %v2580_v4  ;;  %v2072_v44 = vld [vmem:[%s6666_s2 + $0xb0] sm:$0xff]  ;;  %v2113_v1 = vld [vmem:[#allocation2 + $0xd8] sm:$0xff] }
 0x3c6   : > { %3438 = vrot.lane.b32.xlu0 %v3342_v17, %s4244_s29  ;;  %v2079_v17 = vld [vmem:[%s6666_s2 + $0xe8] sm:$0xff]  ;;  %v3150_v12 = vadd.f32 %v5666_v42, %v2934_v22  ;;  %v2578_v26 = vadd.f32 %v6873_v15, %v2362_v6  ;;  %v3207_v59 = vpop.permute.xlu1 %3206  ;;  %v2573_v42 = vadd.f32 %v6874_v35, %v2357_v63  ;;  %v6875_v16 = vld [vmem:[#allocation109_spill] sm:$0xff]  ;;  %v6876_v50 = vld [vmem:[#allocation46_spill] sm:$0xff]  ;;  %v2149_v22 = vadd.f32 %v2113_v1, %v2077_v45 }
 0x3c7   : > { %v2939_v51 = vadd.f32 %v6868_v0, %v2723_v41  ;;  %v2151_v32 = vadd.f32 %v2115_v46, %v2079_v17  ;;  %v2944_v41 = vadd.f32 %v6875_v16, %v2728_v49  ;;  %v6877_v25 = vld [vmem:[#allocation77_spill] sm:$0xff]  ;;  %v6879_v46 = vld [vmem:[#allocation122_spill] sm:$0xff]  ;;  %v2144_v0 = vadd.f32 %v2108_v62, %v2072_v44  ;;  %v6882_v49 = vld [vmem:[#allocation111_spill] sm:$0xff] }
 0x3c8   : > { %v3211_v34 = vpop.permute.xlu0 %3210  ;;  %v5997_v7 = vadd.f32 %v3207_v59, %v3150_v12  ;;  %v2721_v57 = vadd.f32 %v6877_v25, %v2573_v42  ;;  %v6878_v4 = vld [vmem:[#allocation81_spill] sm:$0xff]  ;;  %v6881_v63 = vld [vmem:[#allocation110_spill] sm:$0xff]  ;;  %v6883_v15 = vld [vmem:[#allocation36_spill] sm:$0xff] }
 0x3c9   : > { %v5966_v29 = vadd.f32 %v3211_v34, %v3152_v2  ;;  %v3341_v2 = vld [vmem:[#allocation2 + $0xdd] sm:$0xff]  ;;  %v6872_v34 = vld [vmem:[#allocation121_spill] sm:$0xff]  ;;  %v2726_v17 = vadd.f32 %v6878_v4, %v2578_v26  ;;  %v3160_v11 = vadd.f32 %v6879_v46, %v2944_v41  ;;  %v3227_v36 = vpop.permute.xlu2 %3226  ;;  %v2365_v26 = vadd.f32 %v6883_v15, %v2149_v22  ;;  %v6887_v42 = vld [vmem:[#allocation124_spill] sm:$0xff] }
 0x3ca   : > { %v3155_v55 = vadd.f32 %v6872_v34, %v2939_v51  ;;  %3436 = vrot.lane.b32.xlu2 %v3341_v2, %s4244_s29  ;;  %v3348_v51 = vld [vmem:[#allocation2 + $0x115] sm:$0xff]  ;;  %v2082_v2 = vld [vmem:[%s6666_s2 + $0x100] sm:$0xff]  ;;  %v2937_v30 = vadd.f32 %v6881_v63, %v2721_v57  ;;  %v3343_v34 = vld [vmem:[#allocation2 + $0xed] sm:$0xff] }
 0x3cb   : > { %v6880_v48 = vld [vmem:[#allocation49_spill] sm:$0xff]  ;;  %v2942_v12 = vadd.f32 %v6882_v49, %v2726_v17  ;;  %v6886_v1 = vld [vmem:[#allocation123_spill] sm:$0xff] }
 0x3cc   : > { %3440 = vrot.lane.b32.xlu1 %v3343_v34, %s4244_s29  ;;  %v6884_v44 = vld [vmem:[#allocation65_spill] sm:$0xff]  ;;  %v3153_v35 = vadd.f32 %v6886_v1, %v2937_v30  ;;  %v2075_v16 = vld [vmem:[%s6666_s2 + $0xc8] sm:$0xff] }
 0x3cd   : > { %v2360_v59 = vadd.f32 %v6884_v44, %v2144_v0  ;;  %v3158_v62 = vadd.f32 %v6887_v42, %v2942_v12  ;;  %v6888_v41 = vld [vmem:[#allocation37_spill] sm:$0xff]  ;;  %v2111_v4 = vld [vmem:[#allocation2 + $0xc8] sm:$0xff] }
 0x3ce   : > { %3444 = vrot.lane.b32.xlu0 %v3345_v8, %s4244_s29  ;;  %v2367_v8 = vadd.f32 %v6876_v50, %v2151_v32  ;;  %v3344_v32 = vld [vmem:[#allocation2 + $0xf5] sm:$0xff]  ;;  %v2581_v50 = vadd.f32 %v6888_v41, %v2365_v26  ;;  %v3213_v25 = vpop.permute.xlu1 %3212  ;;  %v6890_v0 = vld [vmem:[#allocation112_spill] sm:$0xff]  ;;  %v2147_v15 = vadd.f32 %v2111_v4, %v2075_v16 }
 0x3cf   : > { %v2080_v17 = vld [vmem:[%s6666_s2 + $0xf0] sm:$0xff]  ;;  %v3346_v42 = vld [vmem:[#allocation2 + $0x105] sm:$0xff] }
 0x3d0   : > { %v3217_v53 = vpop.permute.xlu0 %3216  ;;  %v2583_v6 = vadd.f32 %v6880_v48, %v2367_v8  ;;  %v2154_v8 = vadd.f32 %v2118_v19, %v2082_v2  ;;  %v2116_v46 = vld [vmem:[#allocation2 + $0xf0] sm:$0xff] }
 0x3d1   : > { %v5999_v54 = vadd.f32 %v3217_v53, %v3155_v55  ;;  %v6011_v55 = vadd.f32 %v3227_v36, %v3160_v11  ;;  %v6885_v53 = vld [vmem:[#allocation82_spill] sm:$0xff]  ;;  %v6889_v11 = vld [vmem:[#allocation68_spill] sm:$0xff]  ;;  %v6030_v36 = vadd.f32 %v3213_v25, %v3153_v35  ;;  %v6892_v30 = vld [vmem:[#allocation73_spill] sm:$0xff]  ;;  %v2152_v26 = vadd.f32 %v2116_v46, %v2080_v17 }
 0x3d2   : > { %v2731_v45 = vadd.f32 %v6885_v53, %v2583_v6  ;;  %3442 = vrot.lane.b32.xlu2 %v3344_v32, %s4244_s29  ;;  %v2576_v22 = vadd.f32 %v6889_v11, %v2360_v59  ;;  %v6891_v6 = vld [vmem:[#allocation71_spill] sm:$0xff]  ;;  %v2370_v2 = vadd.f32 %v6892_v30, %v2154_v8  ;;  %v6893_v19 = vld [vmem:[#allocation84_spill] sm:$0xff]  ;;  %v6894_v12 = vld [vmem:[#allocation125_spill] sm:$0xff]  ;;  %v3233_v32 = vpop.permute.xlu2 %3232 }
 0x3d3   : > { %v2729_v49 = vadd.f32 %v6893_v19, %v2581_v50  ;;  %v6895_v44 = vld [vmem:[#allocation76_spill] sm:$0xff]  ;;  %v6896_v59 = vld [vmem:[#allocation113_spill] sm:$0xff]  ;;  %v6901_v46 = vld [vmem:[#allocation126_spill] sm:$0xff] }
 0x3d4   : > { %v2724_v63 = vadd.f32 %v6891_v6, %v2576_v22  ;;  %v2586_v53 = vadd.f32 %v6895_v44, %v2370_v2  ;;  %v6898_v25 = vld [vmem:[#allocation24_spill] sm:$0xff]  ;;  %3446 = vrot.lane.b32.xlu1 %v3346_v42, %s4244_s29  ;;  %v6899_v16 = vld [vmem:[#allocation57_spill] sm:$0xff]  ;;  %v6902_v22 = vld [vmem:[#allocation127_spill] sm:$0xff] }
 0x3d5   : > { %v3347_v50 = vld [vmem:[#allocation2 + $0x10d] sm:$0xff]  ;;  %v2368_v8 = vadd.f32 %v6899_v16, %v2152_v26  ;;  %v2078_v44 = vld [vmem:[%s6666_s2 + $0xe0] sm:$0xff] }
 0x3d6   : > { %3450 = vrot.lane.b32.xlu0 %v3348_v51, %s4244_s29  ;;  %v2947_v51 = vadd.f32 %v6890_v0, %v2731_v45  ;;  %v2940_v1 = vadd.f32 %v6896_v59, %v2724_v63  ;;  %v6897_v45 = vld [vmem:[#allocation114_spill] sm:$0xff]  ;;  %v6900_v4 = vld [vmem:[#allocation85_spill] sm:$0xff]  ;;  %v3219_v63 = vpop.permute.xlu1 %3218  ;;  %v2083_v2 = vld [vmem:[%s6666_s2 + $0x108] sm:$0xff] }
 0x3d7   : > { %v2945_v35 = vadd.f32 %v6897_v45, %v2729_v49  ;;  %v2734_v17 = vadd.f32 %v6900_v4, %v2586_v53  ;;  %v2119_v19 = vld [vmem:[#allocation2 + $0x108] sm:$0xff]  ;;  %v2114_v53 = vld [vmem:[#allocation2 + $0xe0] sm:$0xff]  ;;  %v6910_v4 = vld [vmem:[#allocation117_spill] sm:$0xff] }
 0x3d8   : > { %v3223_v57 = vpop.permute.xlu0 %3222  ;;  %v3163_v34 = vadd.f32 %v6894_v12, %v2947_v51  ;;  %v3156_v11 = vadd.f32 %v6901_v46, %v2940_v1  ;;  %v6903_v51 = vld [vmem:[#allocation26_spill] sm:$0xff]  ;;  %v6904_v49 = vld [vmem:[#allocation59_spill] sm:$0xff]  ;;  %v6908_v42 = vld [vmem:[#allocation128_spill] sm:$0xff] }
 0x3d9   : > { %v6032_v48 = vadd.f32 %v3223_v57, %v3158_v62  ;;  %v3351_v62 = vld [vmem:[#allocation2 + $0x12d] sm:$0xff]  ;;  %v2363_v57 = vadd.f32 %v6898_v25, %v2147_v15  ;;  %v3161_v0 = vadd.f32 %v6902_v22, %v2945_v35  ;;  %v2584_v12 = vadd.f32 %v6904_v49, %v2368_v8  ;;  %v6906_v59 = vld [vmem:[#allocation86_spill] sm:$0xff]  ;;  %v6907_v45 = vld [vmem:[#allocation87_spill] sm:$0xff] }
 0x3da   : > { %v6041_v41 = vadd.f32 %v3233_v32, %v3163_v34  ;;  %3448 = vrot.lane.b32.xlu2 %v3347_v50, %s4244_s29  ;;  %v6905_v34 = vld [vmem:[#allocation115_spill] sm:$0xff]  ;;  %v6057_v26 = vadd.f32 %v3219_v63, %v3156_v11  ;;  %v2155_v25 = vadd.f32 %v2119_v19, %v2083_v2  ;;  %v2150_v50 = vadd.f32 %v2114_v53, %v2078_v44  ;;  %v6909_v16 = vld [vmem:[#allocation116_spill] sm:$0xff] }
 0x3db   : > { %v2579_v6 = vadd.f32 %v6903_v51, %v2363_v57  ;;  %v2950_v15 = vadd.f32 %v6905_v34, %v2734_v17  ;;  %v2732_v35 = vadd.f32 %v6907_v45, %v2584_v12  ;;  %v3239_v57 = vpop.permute.xlu2 %3238  ;;  %v3349_v46 = vld [vmem:[#allocation2 + $0x11d] sm:$0xff]  ;;  %v3534_v11 = vld [vmem:[#allocation2 + $0x26] sm:$0xff]  ;;  %v6913_v34 = vld [vmem:[#allocation13_spill] sm:$0xff] }
 0x3dc   : > { %3452 = vrot.lane.b32.xlu1 %v3349_v46, %s4244_s29  ;;  %v6911_v51 = vld [vmem:[#allocation10_spill] sm:$0xff]  ;;  %v6912_v63 = vld [vmem:[#allocation44_spill] sm:$0xff]  ;;  %v6914_v44 = vld [vmem:[#allocation47_spill] sm:$0xff] }
 0x3dd   : > { %v2727_v1 = vadd.f32 %v6906_v59, %v2579_v6  ;;  %v2948_v17 = vadd.f32 %v6910_v4, %v2732_v35  ;;  %v2371_v6 = vadd.f32 %v6911_v51, %v2155_v25  ;;  %v2081_v45 = vld [vmem:[%s6666_s2 + $0xf8] sm:$0xff]  ;;  %v6919_v51 = vld [vmem:[#allocation80_spill] sm:$0xff] }
 0x3de   : > { %3456 = vrot.lane.b32.xlu0 %v3351_v62, %s4244_s29  ;;  %v3166_v62 = vadd.f32 %v6908_v42, %v2950_v15  ;;  %v3225_v49 = vpop.permute.xlu1 %3224  ;;  %v2117_v35 = vld [vmem:[#allocation2 + $0xf8] sm:$0xff] }
 0x3df   : > { %v2943_v8 = vadd.f32 %v6909_v16, %v2727_v1  ;;  %v3164_v19 = vadd.f32 %v5713_v60, %v2948_v17  ;;  %v2587_v15 = vadd.f32 %v6913_v34, %v2371_v6  ;;  %v6916_v60 = vld [vmem:[#allocation89_spill] sm:$0xff]  ;;  %v2153_v16 = vadd.f32 %v2117_v35, %v2081_v45  ;;  %v6918_v17 = vld [vmem:[#allocation119_spill] sm:$0xff]  ;;  %v6922_v45 = vld [vmem:[#allocation120_spill] sm:$0xff] }
 0x3e0   : > { %v3229_v30 = vpop.permute.xlu0 %3228  ;;  %v6069_v22 = vadd.f32 %v3239_v57, %v3166_v62  ;;  %v3352_v25 = vld [vmem:[#allocation2 + $0x135] sm:$0xff] }
 0x3e1   : > { %v6059_v32 = vadd.f32 %v3229_v30, %v3161_v0  ;;  %v3350_v0 = vld [vmem:[#allocation2 + $0x125] sm:$0xff]  ;;  %v2366_v30 = vadd.f32 %v6912_v63, %v2150_v50  ;;  %v3159_v2 = vadd.f32 %v5711_v13, %v2943_v8  ;;  %v2735_v62 = vadd.f32 %v6916_v60, %v2587_v15  ;;  %v3353_v50 = vld [vmem:[#allocation2 + $0x13d] sm:$0xff] }
 0x3e2   : > { %3454 = vrot.lane.b32.xlu2 %v3350_v0, %s4244_s29  ;;  %v6915_v13 = vld [vmem:[#allocation88_spill] sm:$0xff]  ;;  %v6917_v8 = vld [vmem:[#allocation118_spill] sm:$0xff]  ;;  %v2369_v6 = vadd.f32 %v6919_v51, %v2153_v16 }
 0x3e3   : > { %v2582_v53 = vadd.f32 %v6914_v44, %v2366_v30  ;;  %v6080_v59 = vadd.f32 %v3225_v49, %v3159_v2  ;;  %v3245_v57 = vpop.permute.xlu2 %3244  ;;  %v2951_v46 = vadd.f32 %v6918_v17, %v2735_v62  ;;  %v6920_v49 = vld [vmem:[#allocation83_spill] sm:$0xff]  ;;  %v6921_v15 = vld [vmem:[#allocation90_spill] sm:$0xff] }
 0x3e4   : > { %v6092_v0 = vadd.f32 %v3245_v57, %v5720_v38  ;;  %3458 = vrot.lane.b32.xlu1 %v3352_v25, %s4244_s29 }
 0x3e5   : > { %v2730_v42 = vadd.f32 %v6915_v13, %v2582_v53  ;;  %v3167_v30 = vadd.f32 %v5734_v27, %v2951_v46  ;;  %v3535_v13 = vld [vmem:[#allocation2 + $0x2e] sm:$0xff]  ;;  %v3536_v27 = vld [vmem:[#allocation2 + $0x36] sm:$0xff] }
 0x3e6   : > { %3606 = vrot.lane.b32.xlu0 %v3534_v11, %s4245_s24  ;;  %v3537_v11 = vld [vmem:[#allocation2 + $0x3e] sm:$0xff]  ;;  %v3231_v2 = vpop.permute.xlu1 %3230 }
 0x3e7   : > { %v2946_v4 = vadd.f32 %v6917_v8, %v2730_v42  ;;  %v3540_v42 = vld [vmem:[#allocation2 + $0x56] sm:$0xff]  ;;  %v3538_v8 = vld [vmem:[#allocation2 + $0x46] sm:$0xff] }
 0x3e8   : > { %v3235_v12 = vpop.permute.xlu0 %3234 }
 0x3e9   : > { %v6082_v1 = vadd.f32 %v3235_v12, %v3164_v19  ;;  %v3162_v63 = vadd.f32 %v5732_v43, %v2946_v4  ;;  %v2585_v12 = vadd.f32 %v6920_v49, %v2369_v6  ;;  %v3541_v6 = vld [vmem:[#allocation2 + $0x5e] sm:$0xff] }
 0x3ea   : > { %3460 = vrot.lane.b32.xlu2 %v3353_v50, %s4244_s29  ;;  %s4129_s29 = smul.u32 288, %s6935_s21 }
 0x3eb   : > { %v6101_v34 = vadd.f32 %v3231_v2, %v3162_v63  ;;  %v2733_v44 = vadd.f32 %v6921_v15, %v2585_v12  ;;  %v3395_v53 = vpop.permute.xlu2 %3394  ;;  %v3546_v63 = vld [vmem:[#allocation2 + $0x86] sm:$0xff]  ;;  %v3544_v12 = vld [vmem:[#allocation2 + $0x76] sm:$0xff]  ;;  %v3549_v15 = vld [vmem:[#allocation2 + $0x9e] sm:$0xff] }
 0x3ec   : > { %v6108_v43 = vadd.f32 %v3395_v53, %v5753_v33  ;;  %3608 = vrot.lane.b32.xlu1 %v3535_v13, %s4245_s24  ;;  %v3543_v33 = vld [vmem:[#allocation2 + $0x6e] sm:$0xff]  ;;  %s6359_s28 = scalar_lea.vmem %s6669_s5, %s4129_s29 }
 0x3ed   : > { %v2949_v35 = vadd.f32 %v6922_v45, %v2733_v44  ;;  %v3545_v44 = vld [vmem:[#allocation2 + $0x7e] sm:$0xff]  ;;  %v3547_v13 = vld [vmem:[#allocation2 + $0x8e] sm:$0xff] }
 0x3ee   : > { %3612 = vrot.lane.b32.xlu0 %v3537_v11, %s4245_s24  ;;  %v3237_v62 = vpop.permute.xlu1 %3236 }
 0x3ef   : > { %v3165_v60 = vadd.f32 %v5760_v39, %v2949_v35  ;;  %v3539_v39 = vld [vmem:[#allocation2 + $0x4e] sm:$0xff] }
 0x3f0   : > { %v3241_v19 = vpop.permute.xlu0 %3240 }
 0x3f1   : > { %v6103_v38 = vadd.f32 %v3241_v19, %v3167_v30  ;;  %v6114_v57 = vadd.f32 %v3237_v62, %v3165_v60  ;;  %v3542_v30 = vld [vmem:[#allocation2 + $0x66] sm:$0xff] }
 0x3f2   : > { %3610 = vrot.lane.b32.xlu2 %v3536_v27, %s4245_s24  ;;  %v3548_v27 = vld [vmem:[#allocation2 + $0x96] sm:$0xff] }
 0x3f3   : > { %v3401_v16 = vpop.permute.xlu2 %3400 }
 0x3f4   : > { %v6120_v4 = vadd.f32 %v3401_v16, %v5781_v9  ;;  %3614 = vrot.lane.b32.xlu1 %v3538_v8, %s4245_s24  ;;  %v3550_v16 = vld [vmem:[#allocation2 + $0xa6] sm:$0xff]  ;;  %v3555_v8 = vld [vmem:[#allocation2 + $0xce] sm:$0xff] }
 0x3f6   : > { %3618 = vrot.lane.b32.xlu0 %v3540_v42, %s4245_s24  ;;  %v3243_v17 = vpop.permute.xlu1 %3242  ;;  %v3552_v42 = vld [vmem:[#allocation2 + $0xb6] sm:$0xff] }
 0x3f7   : > { %v6126_v11 = vadd.f32 %v3243_v17, %v5797_v24 }
 0x3f8   : > { %v3391_v25 = vpop.permute.xlu0 %3390 }
 0x3f9   : > { %v6117_v50 = vadd.f32 %v3391_v25, %v5768_v28 }
 0x3fa   : > { %3616 = vrot.lane.b32.xlu2 %v3539_v39, %s4245_s24 }
 0x3fb   : > { %v3407_v51 = vpop.permute.xlu2 %3406 }
 0x3fc   : > { %v6132_v9 = vadd.f32 %v3407_v51, %v5813_v58  ;;  %3620 = vrot.lane.b32.xlu1 %v3541_v6, %s4245_s24  ;;  %v3553_v51 = vld [vmem:[#allocation2 + $0xbe] sm:$0xff]  ;;  %v3558_v6 = vld [vmem:[#allocation2 + $0xe6] sm:$0xff] }
 0x3fe   : > { %3624 = vrot.lane.b32.xlu0 %v3543_v33, %s4245_s24  ;;  %v3393_v2 = vpop.permute.xlu1 %3392  ;;  %v3551_v33 = vld [vmem:[#allocation2 + $0xae] sm:$0xff] }
 0x3ff   : > { %v6138_v24 = vadd.f32 %v3393_v2, %v5832_v18 }
 0x400   : > { %v3397_v46 = vpop.permute.xlu0 %3396 }
 0x401   : > { %v6129_v28 = vadd.f32 %v3397_v46, %v5799_v14 }
 0x402   : > { %3622 = vrot.lane.b32.xlu2 %v3542_v30, %s4245_s24 }
 0x403   : > { %v3413_v49 = vpop.permute.xlu2 %3412 }
 0x404   : > { %v6144_v58 = vadd.f32 %v3413_v49, %v5847_v56  ;;  %3626 = vrot.lane.b32.xlu1 %v3544_v12, %s4245_s24  ;;  %v3556_v49 = vld [vmem:[#allocation2 + $0xd6] sm:$0xff]  ;;  %v3561_v12 = vld [vmem:[#allocation2 + $0xfe] sm:$0xff] }
 0x406   : > { %3630 = vrot.lane.b32.xlu0 %v3546_v63, %s4245_s24  ;;  %v3399_v53 = vpop.permute.xlu1 %3398  ;;  %v3554_v63 = vld [vmem:[#allocation2 + $0xc6] sm:$0xff] }
 0x407   : > { %v6150_v18 = vadd.f32 %v3399_v53, %v5865_v5 }
 0x408   : > { %v3403_v19 = vpop.permute.xlu0 %3402 }
 0x409   : > { %v6141_v14 = vadd.f32 %v3403_v19, %v5834_v37 }
 0x40a   : > { %3628 = vrot.lane.b32.xlu2 %v3545_v44, %s4245_s24 }
 0x40b   : > { %v3419_v35 = vpop.permute.xlu2 %3418 }
 0x40c   : > { %v6156_v56 = vadd.f32 %v3419_v35, %v5879_v23  ;;  %3632 = vrot.lane.b32.xlu1 %v3547_v13, %s4245_s24  ;;  %v3559_v35 = vld [vmem:[#allocation2 + $0xee] sm:$0xff]  ;;  %v3564_v13 = vld [vmem:[#allocation2 + $0x116] sm:$0xff] }
 0x40e   : > { %3636 = vrot.lane.b32.xlu0 %v3549_v15, %s4245_s24  ;;  %v3405_v60 = vpop.permute.xlu1 %3404  ;;  %v3557_v15 = vld [vmem:[#allocation2 + $0xde] sm:$0xff] }
 0x40f   : > { %v6162_v5 = vadd.f32 %v3405_v60, %v5898_v3 }
 0x410   : > { %v3409_v45 = vpop.permute.xlu0 %3408 }
 0x411   : > { %v6153_v37 = vadd.f32 %v3409_v45, %v5867_v10 }
 0x412   : > { %3634 = vrot.lane.b32.xlu2 %v3548_v27, %s4245_s24 }
 0x414   : > { %v3425_v25 = vpop.permute.xlu2 %3424  ;;  %3638 = vrot.lane.b32.xlu1 %v3550_v16, %s4245_s24  ;;  %v3567_v16 = vld [vmem:[#allocation2 + $0x12e] sm:$0xff] }
 0x415   : > { %v6168_v23 = vadd.f32 %v3425_v25, %v5912_v21  ;;  %v3562_v25 = vld [vmem:[#allocation2 + $0x106] sm:$0xff] }
 0x416   : > { %3642 = vrot.lane.b32.xlu0 %v3552_v42, %s4245_s24  ;;  %v3411_v39 = vpop.permute.xlu1 %3410  ;;  %v3560_v42 = vld [vmem:[#allocation2 + $0xf6] sm:$0xff] }
 0x417   : > { %v6174_v3 = vadd.f32 %v3411_v39, %v5928_v61 }
 0x418   : > { %v3415_v62 = vpop.permute.xlu0 %3414 }
 0x419   : > { %v6165_v10 = vadd.f32 %v3415_v62, %v5900_v52 }
 0x41a   : > { %3640 = vrot.lane.b32.xlu2 %v3551_v33, %s4245_s24 }
 0x41c   : > { %v3431_v46 = vpop.permute.xlu2 %3430  ;;  %3644 = vrot.lane.b32.xlu1 %v3553_v51, %s4245_s24  ;;  %v3565_v51 = vld [vmem:[#allocation2 + $0x11e] sm:$0xff] }
 0x41d   : > { %v6180_v21 = vadd.f32 %v3431_v46, %v5945_v31 }
 0x41e   : > { %3648 = vrot.lane.b32.xlu0 %v3555_v8, %s4245_s24  ;;  %v3417_v30 = vpop.permute.xlu1 %3416  ;;  %v3563_v8 = vld [vmem:[#allocation2 + $0x10e] sm:$0xff] }
 0x41f   : > { %v6186_v61 = vadd.f32 %v3417_v30, %v5964_v20 }
 0x420   : > { %v3421_v17 = vpop.permute.xlu0 %3420 }
 0x421   : > { %v6177_v52 = vadd.f32 %v3421_v17, %v5930_v47  ;;  %v4151_v17 = vld [vmem:[#allocation3] ss:$0 sm:$0xff] }
 0x422   : > { %3646 = vrot.lane.b32.xlu2 %v3554_v63, %s4245_s24 }
 0x424   : > { %v3437_v19 = vpop.permute.xlu2 %3436  ;;  %3650 = vrot.lane.b32.xlu1 %v3556_v49, %s4245_s24  ;;  %v3569_v49 = vld [vmem:[#allocation2 + $0x13e] sm:$0xff] }
 0x425   : > { %v6192_v31 = vadd.f32 %v3437_v19, %v5978_v40 }
 0x426   : > { %3654 = vrot.lane.b32.xlu0 %v3558_v6, %s4245_s24  ;;  %v3423_v44 = vpop.permute.xlu1 %3422  ;;  %v3566_v6 = vld [vmem:[#allocation2 + $0x126] sm:$0xff] }
 0x427   : > { %v6198_v20 = vadd.f32 %v3423_v44, %v5997_v7 }
 0x428   : > { %v3427_v2 = vpop.permute.xlu0 %3426 }
 0x429   : > { %v6189_v47 = vadd.f32 %v3427_v2, %v5966_v29  ;;  %v3568_v2 = vld [vmem:[#allocation2 + $0x136] sm:$0xff] }
 0x42a   : > { %3652 = vrot.lane.b32.xlu2 %v3557_v15, %s4245_s24 }
 0x42c   : > { %v3443_v45 = vpop.permute.xlu2 %3442  ;;  %3656 = vrot.lane.b32.xlu1 %v3559_v35, %s4245_s24 }
 0x42d   : > { %v6204_v40 = vadd.f32 %v3443_v45, %v6011_v55 }
 0x42e   : > { %3660 = vrot.lane.b32.xlu0 %v3561_v12, %s4245_s24  ;;  %v3429_v27 = vpop.permute.xlu1 %3428 }
 0x42f   : > { %v6210_v7 = vadd.f32 %v3429_v27, %v6030_v36 }
 0x430   : > { %v3433_v53 = vpop.permute.xlu0 %3432 }
 0x431   : > { %v6201_v29 = vadd.f32 %v3433_v53, %v5999_v54 }
 0x432   : > { %3658 = vrot.lane.b32.xlu2 %v3560_v42, %s4245_s24 }
 0x434   : > { %v3449_v62 = vpop.permute.xlu2 %3448  ;;  %3662 = vrot.lane.b32.xlu1 %v3562_v25, %s4245_s24 }
 0x435   : > { %v6216_v55 = vadd.f32 %v3449_v62, %v6041_v41 }
 0x436   : > { %3666 = vrot.lane.b32.xlu0 %v3564_v13, %s4245_s24  ;;  %v3435_v33 = vpop.permute.xlu1 %3434 }
 0x437   : > { %v6222_v36 = vadd.f32 %v3435_v33, %v6057_v26 }
 0x438   : > { %v3439_v60 = vpop.permute.xlu0 %3438 }
 0x439   : > { %v6213_v54 = vadd.f32 %v3439_v60, %v6032_v48 }
 0x43a   : > { %3664 = vrot.lane.b32.xlu2 %v3563_v8, %s4245_s24 }
 0x43c   : > { %v3455_v46 = vpop.permute.xlu2 %3454  ;;  %3668 = vrot.lane.b32.xlu1 %v3565_v51, %s4245_s24 }
 0x43d   : > { %v6228_v41 = vadd.f32 %v3455_v46, %v6069_v22 }
 0x43e   : > { %3672 = vrot.lane.b32.xlu0 %v3567_v16, %s4245_s24  ;;  %v3441_v63 = vpop.permute.xlu1 %3440 }
 0x43f   : > { %v6233_v26 = vadd.f32 %v3441_v63, %v6080_v59 }
 0x440   : > { %v3445_v39 = vpop.permute.xlu0 %3444 }
 0x441   : > { %v6225_v48 = vadd.f32 %v3445_v39, %v6059_v32 }
 0x442   : > { %3670 = vrot.lane.b32.xlu2 %v3566_v6, %s4245_s24 }
 0x444   : > { %v3461_v19 = vpop.permute.xlu2 %3460  ;;  %3674 = vrot.lane.b32.xlu1 %v3568_v2, %s4245_s24 }
 0x445   : > { %v6239_v22 = vadd.f32 %v3461_v19, %v6092_v0 }
 0x446   : > { %3793 = vperm.xlu0 %4148, %v4151_v17   ;;  %v3447_v12 = vpop.permute.xlu1 %3446 }
 0x447   : > { %6923 = vst [vmem:[#allocation27_spill] sm:$0xff] %v6239_v22  ;;  %v6244_v44 = vadd.f32 %v3447_v12, %v6101_v34 }
 0x448   : > { %v3451_v30 = vpop.permute.xlu0 %3450 }
 0x449   : > { %v6236_v32 = vadd.f32 %v3451_v30, %v6082_v1 }
 0x44a   : > { %3676 = vrot.lane.b32.xlu2 %v3569_v49, %s4245_s24 }
 0x44c   : > { %v3611_v35 = vpop.permute.xlu2 %3610 }
 0x44e   : > { %v3453_v1 = vpop.permute.xlu1 %3452 }
 0x44f   : > { %v6250_v45 = vadd.f32 %v3453_v1, %v6114_v57 }
 0x450   : > { %v3457_v15 = vpop.permute.xlu0 %3456 }
 0x451   : > { %v6247_v59 = vadd.f32 %v3457_v15, %v6103_v38 }
 0x453   : > { %6924 = vst [vmem:[#allocation58_spill] sm:$0xff] %v6247_v59 }
 0x454   : > { %v3617_v25 = vpop.permute.xlu2 %3616 }
 0x456   : > { %v3459_v13 = vpop.permute.xlu1 %3458 }
 0x457   : > { %v6256_v27 = vadd.f32 %v3459_v13, %v6126_v11  ;;  %v6292_v13 = vadd.f32 %v3617_v25, %v6120_v4 }
 0x458   : > { %v3607_v53 = vpop.permute.xlu0 %3606 }
 0x459   : > { %v6253_v0 = vadd.f32 %v3607_v53, %v6117_v50  ;;  %6925 = vst [vmem:[#allocation4_spill] sm:$0xff] %v6256_v27  ;;  %v6289_v53 = vadd.f32 %v3611_v35, %v6108_v43 }
 0x45b   : > { %4152 = vtanh.f32 %v6289_v53 }
 0x45c   : > { %v3623_v8 = vpop.permute.xlu2 %3622  ;;  %4154 = vtanh.f32 %v6253_v0 }
 0x45d   : > { %4156 = vtanh.f32 %v6292_v13 }
 0x45e   : > { %v3609_v60 = vpop.permute.xlu1 %3608 }
 0x45f   : > { %v3715_v27 = vadd.f32 %v3609_v60, %v6138_v24 }
 0x460   : > { %v3613_v42 = vpop.permute.xlu0 %3612 }
 0x461   : > { %v6259_v34 = vadd.f32 %v3613_v42, %v6129_v28  ;;  %v4153_v35 = vpop.eup %4152 }
 0x462   : > { %v4155_v24 = vpop.eup %4154 }
 0x463   : > { %4158 = vtanh.f32 %v6259_v34 }
 0x464   : > { %v3629_v17 = vpop.permute.xlu2 %3628 }
 0x465   : > { %v6313_v4 = vadd.f32 %v3629_v17, %v6144_v58 }
 0x466   : > { %v3615_v57 = vpop.permute.xlu1 %3614 }
 0x467   : > { %v6309_v43 = vadd.f32 %v3615_v57, %v6150_v18  ;;  %v4157_v18 = vpop.eup %4156 }
 0x468   : > { %v3619_v38 = vpop.permute.xlu0 %3618 }
 0x469   : > { %v6262_v62 = vadd.f32 %v3619_v38, %v6141_v14  ;;  %v4159_v58 = vpop.eup %4158 }
 0x46c   : > { %v3635_v51 = vpop.permute.xlu2 %3634 }
 0x46d   : > { %v6321_v60 = vadd.f32 %v3635_v51, %v6156_v56 }
 0x46e   : > { %v3621_v33 = vpop.permute.xlu1 %3620 }
 0x470   : > { %v3625_v16 = vpop.permute.xlu0 %3624 }
 0x471   : > { %v6265_v50 = vadd.f32 %v3625_v16, %v6153_v37 }
 0x474   : > { %v3641_v30 = vpop.permute.xlu2 %3640 }
 0x475   : > { %v6340_v51 = vadd.f32 %v3641_v30, %v6168_v23 }
 0x476   : > { %v3627_v28 = vpop.permute.xlu1 %3626 }
 0x477   : > { %v6328_v57 = vadd.f32 %v3627_v28, %v6174_v3 }
 0x478   : > { %v3631_v39 = vpop.permute.xlu0 %3630 }
 0x479   : > { %v6268_v11 = vadd.f32 %v3631_v39, %v6165_v10  ;;  %v6302_v39 = vadd.f32 %v3623_v8, %v6132_v9  ;;  %v6317_v9 = vadd.f32 %v3621_v33, %v6162_v5  ;;  %v6928_v5 = vlaneseq }
 0x47b   : > { %4160 = vtanh.f32 %v6302_v39  ;;  %v6333_v33 = vand.u32 127, %v6928_v5 }
 0x47c   : > { %v3647_v19 = vpop.permute.xlu2 %3646  ;;  %4162 = vtanh.f32 %v3715_v27 }
 0x47d   : > { %4164 = vtanh.f32 %v6262_v62  ;;  %vm3752_vm8 = vcmp.lt.s32.totalorder %v6333_v33, 4 }
 0x47e   : > { %v3633_v14 = vpop.permute.xlu1 %3632  ;;  %4166 = vtanh.f32 %v6309_v43 }
 0x47f   : > { %4168 = vtanh.f32 %v6313_v4  ;;  %v6344_v3 = vadd.f32 %v3633_v14, %v6186_v61 }
 0x480   : > { %v3637_v46 = vpop.permute.xlu0 %3636  ;;  %4170 = vtanh.f32 %v6265_v50 }
 0x481   : > { %v4161_v56 = vpop.eup %4160  ;;  %4172 = vtanh.f32 %v6317_v9  ;;  %v6352_v23 = vadd.f32 %v3637_v46, %v6177_v52 }
 0x482   : > { %v4163_v22 = vpop.eup %4162  ;;  %4174 = vtanh.f32 %v6321_v60 }
 0x483   : > { %v4165_v28 = vpop.eup %4164  ;;  %4176 = vtanh.f32 %v6268_v11 }
 0x484   : > { %v6282_v10 = vpop.permute.xlu2 %3652  ;;  %4178 = vtanh.f32 %v6328_v57 }
 0x485   : > { %4180 = vtanh.f32 %v6340_v51 }
 0x486   : > { %v6274_v2 = vpop.permute.xlu1 %3638  ;;  %4182 = vtanh.f32 %v6344_v3 }
 0x487   : > { %4184 = vtanh.f32 %v6352_v23 }
 0x488   : > { %v6270_v6 = vpop.permute.xlu0 %3642 }
 0x489   : > { %v6369_v46 = vadd.f32 %v6270_v6, %v6189_v47 }
 0x48c   : > { %v6294_v42 = vpop.permute.xlu2 %3658 }
 0x48e   : > { %v6278_v49 = vpop.permute.xlu1 %3644 }
 0x490   : > { %v6272_v63 = vpop.permute.xlu0 %3648 }
 0x494   : > { %v6324_v25 = vpop.permute.xlu2 %3664 }
 0x496   : > { %v6284_v15 = vpop.permute.xlu1 %3650 }
 0x498   : > { %v6276_v37 = vpop.permute.xlu0 %3654 }
 0x49e   : > { %v6296_v38 = vpop.permute.xlu1 %3656 }
 0x4a0   : > { %v6280_v12 = vpop.permute.xlu0 %3660 }
 0x4a6   : > { %v6330_v8 = vpop.permute.xlu1 %3662 }
 0x4a8   : > { %v6286_v1 = vpop.permute.xlu0 %3666 }
 0x4a9   : > { %6926 = vst [vmem:[#allocation30_spill] sm:$0xff] %v6286_v1  ;;  %v4167_v1 = vpop.eup %4166 }
 0x4aa   : > { %v4169_v14 = vpop.eup %4168 }
 0x4ab   : > { %v4171_v52 = vpop.eup %4170 }
 0x4b0   : > { %v6298_v16 = vpop.permute.xlu0 %3672 }
 0x4b1   : > { %6927 = vst [vmem:[#allocation61_spill] sm:$0xff] %v6298_v16 }
 0x4b8   : > { %v6335_v17 = vpop.permute.xlu0 %3793 }
 0x4b9   : > { %v3796_v5 = vmul.f32 %v4155_v24, %v6335_v17  ;;  %v3797_v16 = vmul.f32 %v4163_v22, %v6335_v17  ;;  %v3798_v59 = vmul.f32 %v4153_v35, %v6335_v17  ;;  %v3799_v61 = vmul.f32 %v4159_v58, %v6335_v17  ;;  %v4173_v58 = vpop.eup %4172 }
 0x4ba   : > { %v6363_v22 = vadd.f32 %v3647_v19, %v6180_v21  ;;  %v3800_v30 = vmul.f32 %v4167_v1, %v6335_v17  ;;  %v6373_v35 = vadd.f32 %v6274_v2, %v6198_v20  ;;  %v3801_v24 = vmul.f32 %v4157_v18, %v6335_v17  ;;  %v4175_v6 = vpop.eup %4174 }
 0x4bb   : > { %v3802_v21 = vmul.f32 %v4165_v28, %v6335_v17  ;;  %v3832_v19 = vsel %vm3752_vm8, %v6253_v0, %v3796_v5  ;;  %v3833_v1 = vsel %vm3752_vm8, %v3715_v27, %v3797_v16  ;;  %v3834_v47 = vsel %vm3752_vm8, %v6289_v53, %v3798_v59  ;;  %v4177_v27 = vpop.eup %4176  ;;  %v3671_v53 = vpop.permute.xlu2 %3670 }
 0x4bc   : > { %v6388_v20 = vadd.f32 %v6282_v10, %v6192_v31  ;;  %v3803_v2 = vmul.f32 %v4173_v58, %v6335_v17  ;;  %v3835_v0 = vsel %vm3752_vm8, %v6259_v34, %v3799_v61  ;;  %3869 = vst.msk [vmem:[%s6359_s28] sm:$0xff] %vm3868_vm9, %v3832_v19  ;;  %4186 = vtanh.f32 %v6363_v22  ;;  %v4179_v34 = vpop.eup %4178 }
 0x4bd   : > { %v6399_v59 = vadd.f32 %v6278_v49, %v6210_v7  ;;  %v3804_v31 = vmul.f32 %v4161_v56, %v6335_v17  ;;  %v3836_v10 = vsel %vm3752_vm8, %v6309_v43, %v3800_v30  ;;  %3870 = vst.msk [vmem:[%s6359_s28 + $0x8] sm:$0xff] %vm3868_vm9, %v3833_v1  ;;  %4188 = vtanh.f32 %v6373_v35  ;;  %v3669_v7 = vpop.permute.xlu1 %3668  ;;  %v4181_v43 = vpop.eup %4180 }
 0x4be   : > { %v6410_v16 = vadd.f32 %v6272_v63, %v6201_v29  ;;  %v3805_v49 = vmul.f32 %v4171_v52, %v6335_v17  ;;  %v3837_v18 = vsel %vm3752_vm8, %v6292_v13, %v3801_v24  ;;  %3871 = vst.msk [vmem:[%s6359_s28 + $0x10] sm:$0xff] %vm3868_vm9, %v3834_v47  ;;  %4190 = vtanh.f32 %v6369_v46  ;;  %v4183_v28 = vpop.eup %4182 }
 0x4bf   : > { %v6421_v56 = vadd.f32 %v6294_v42, %v6204_v40  ;;  %v3806_v29 = vmul.f32 %v4179_v34, %v6335_v17  ;;  %v3838_v63 = vsel %vm3752_vm8, %v6262_v62, %v3802_v21  ;;  %3872 = vst.msk [vmem:[%s6359_s28 + $0x18] sm:$0xff] %vm3868_vm9, %v3835_v0  ;;  %4192 = vtanh.f32 %v6388_v20  ;;  %v6931_v0 = vld [vmem:[#allocation61_spill] sm:$0xff] }
 0x4c0   : > { %v6432_v13 = vadd.f32 %v6284_v15, %v6222_v36  ;;  %v3807_v5 = vmul.f32 %v4169_v14, %v6335_v17  ;;  %v3839_v40 = vsel %vm3752_vm8, %v6317_v9, %v3803_v2  ;;  %3873 = vst.msk [vmem:[%s6359_s28 + $0x20] sm:$0xff] %vm3868_vm9, %v3836_v10  ;;  %4194 = vtanh.f32 %v6399_v59  ;;  %v4185_v15 = vpop.eup %4184  ;;  %v6930_v2 = vld [vmem:[#allocation58_spill] sm:$0xff] }
 0x4c1   : > { %v6443_v62 = vadd.f32 %v6276_v37, %v6213_v54  ;;  %v3808_v42 = vmul.f32 %v4177_v27, %v6335_v17  ;;  %v3840_v36 = vsel %vm3752_vm8, %v6302_v39, %v3804_v31  ;;  %3874 = vst.msk [vmem:[%s6359_s28 + $0x28] sm:$0xff] %vm3868_vm9, %v3837_v18  ;;  %4196 = vtanh.f32 %v6410_v16  ;;  %v6932_v31 = vld [vmem:[#allocation27_spill] sm:$0xff] }
 0x4c2   : > { %v6454_v9 = vadd.f32 %v6324_v25, %v6216_v55  ;;  %v3809_v61 = vmul.f32 %v4183_v28, %v6335_v17  ;;  %v3841_v54 = vsel %vm3752_vm8, %v6265_v50, %v3805_v49  ;;  %3875 = vst.msk [vmem:[%s6359_s28 + $0x30] sm:$0xff] %vm3868_vm9, %v3838_v63  ;;  %v4187_v37 = vpop.eup %4186  ;;  %4198 = vtanh.f32 %v6421_v56 }
 0x4c3   : > { %v6465_v39 = vadd.f32 %v6296_v38, %v6233_v26  ;;  %v3810_v14 = vmul.f32 %v4175_v6, %v6335_v17  ;;  %v3842_v55 = vsel %vm3752_vm8, %v6328_v57, %v3806_v29  ;;  %3876 = vst.msk [vmem:[%s6359_s28 + $0x38] sm:$0xff] %vm3868_vm9, %v3839_v40  ;;  %v4189_v25 = vpop.eup %4188  ;;  %4200 = vtanh.f32 %v6432_v13 }
 0x4c4   : > { %v6476_v50 = vadd.f32 %v6330_v8, %v6244_v44  ;;  %v3811_v30 = vmul.f32 %v4185_v15, %v6335_v17  ;;  %v3843_v26 = vsel %vm3752_vm8, %v6313_v4, %v3807_v5  ;;  %3877 = vst.msk [vmem:[%s6359_s28 + $0x40] sm:$0xff] %vm3868_vm9, %v3840_v36  ;;  %v4191_v38 = vpop.eup %4190  ;;  %4202 = vtanh.f32 %v6443_v62 }
 0x4c5   : > { %v6487_v57 = vadd.f32 %v6280_v12, %v6225_v48  ;;  %v3812_v52 = vmul.f32 %v4189_v25, %v6335_v17  ;;  %v3844_v44 = vsel %vm3752_vm8, %v6268_v11, %v3808_v42  ;;  %3878 = vst.msk [vmem:[%s6359_s28 + $0x48] sm:$0xff] %vm3868_vm9, %v3841_v54  ;;  %v4193_v8 = vpop.eup %4192  ;;  %4204 = vtanh.f32 %v6454_v9  ;;  %v3677_v11 = vpop.permute.xlu2 %3676 }
 0x4c6   : > { %v6497_v4 = vadd.f32 %v3671_v53, %v6228_v41  ;;  %v3813_v24 = vmul.f32 %v4181_v43, %v6335_v17  ;;  %v3845_v48 = vsel %vm3752_vm8, %v6344_v3, %v3809_v61  ;;  %3879 = vst.msk [vmem:[%s6359_s28 + $0x50] sm:$0xff] %vm3868_vm9, %v3842_v55  ;;  %v4195_v12 = vpop.eup %4194  ;;  %4206 = vtanh.f32 %v6465_v39  ;;  %v6929_v3 = vld [vmem:[#allocation30_spill] sm:$0xff]  ;;  %v3675_v6 = vpop.permute.xlu1 %3674  ;;  %v6933_v43 = vld [vmem:[#allocation4_spill] sm:$0xff] }
 0x4c7   : > { %v6507_v58 = vadd.f32 %v3669_v7, %v6250_v45  ;;  %v3814_v41 = vmul.f32 %v4191_v38, %v6335_v17  ;;  %v3846_v21 = vsel %vm3752_vm8, %v6321_v60, %v3810_v14  ;;  %3880 = vst.msk [vmem:[%s6359_s28 + $0x58] sm:$0xff] %vm3868_vm9, %v3843_v26  ;;  %v4197_v19 = vpop.eup %4196  ;;  %v6517_v1 = vadd.f32 %v6929_v3, %v6236_v32 }
 0x4c8   : > { %4208 = vtanh.f32 %v6476_v50  ;;  %v3815_v45 = vmul.f32 %v4195_v12, %v6335_v17  ;;  %v3847_v47 = vsel %vm3752_vm8, %v6352_v23, %v3811_v30  ;;  %3881 = vst.msk [vmem:[%s6359_s28 + $0x60] sm:$0xff] %vm3868_vm9, %v3844_v44  ;;  %v4199_v60 = vpop.eup %4198  ;;  %v6529_v32 = vadd.f32 %v6931_v0, %v6930_v2 }
 0x4c9   : > { %4210 = vtanh.f32 %v6487_v57  ;;  %v3816_v27 = vmul.f32 %v4187_v37, %v6335_v17  ;;  %v3848_v53 = vsel %vm3752_vm8, %v6373_v35, %v3812_v52  ;;  %3882 = vst.msk [vmem:[%s6359_s28 + $0x68] sm:$0xff] %vm3868_vm9, %v3845_v48  ;;  %v4201_v23 = vpop.eup %4200  ;;  %v6539_v10 = vadd.f32 %v3677_v11, %v6932_v31 }
 0x4ca   : > { %4212 = vtanh.f32 %v6497_v4  ;;  %v3817_v34 = vmul.f32 %v4197_v19, %v6335_v17  ;;  %v3849_v7 = vsel %vm3752_vm8, %v6340_v51, %v3813_v24  ;;  %3883 = vst.msk [vmem:[%s6359_s28 + $0x70] sm:$0xff] %vm3868_vm9, %v3846_v21  ;;  %v4203_v49 = vpop.eup %4202  ;;  %v3818_v35 = vmul.f32 %v4201_v23, %v6335_v17 }
 0x4cb   : > { %4214 = vtanh.f32 %v6507_v58  ;;  %v3850_v18 = vsel %vm3752_vm8, %v6369_v46, %v3814_v41  ;;  %3884 = vst.msk [vmem:[%s6359_s28 + $0x78] sm:$0xff] %vm3868_vm9, %v3847_v47  ;;  %v3748_v29 = vadd.f32 %v3675_v6, %v6933_v43  ;;  %v4205_v63 = vpop.eup %4204  ;;  %v3819_v51 = vmul.f32 %v4193_v8, %v6335_v17 }
 0x4cc   : > { %4216 = vtanh.f32 %v6517_v1  ;;  %v3851_v28 = vsel %vm3752_vm8, %v6399_v59, %v3815_v45  ;;  %3885 = vst.msk [vmem:[%s6359_s28 + $0x80] sm:$0xff] %vm3868_vm9, %v3848_v53  ;;  %v4207_v5 = vpop.eup %4206  ;;  %v3820_v46 = vmul.f32 %v4203_v49, %v6335_v17  ;;  %v3852_v40 = vsel %vm3752_vm8, %v6363_v22, %v3816_v27 }
 0x4cd   : > { %4218 = vtanh.f32 %v6529_v32  ;;  %3886 = vst.msk [vmem:[%s6359_s28 + $0x88] sm:$0xff] %vm3868_vm9, %v3849_v7  ;;  %v3821_v59 = vmul.f32 %v4207_v5, %v6335_v17  ;;  %v3853_v36 = vsel %vm3752_vm8, %v6410_v16, %v3817_v34  ;;  %v3822_v61 = vmul.f32 %v4199_v60, %v6335_v17 }
 0x4ce   : > { %v4209_v42 = vpop.eup %4208  ;;  %4220 = vtanh.f32 %v6539_v10  ;;  %3887 = vst.msk [vmem:[%s6359_s28 + $0x90] sm:$0xff] %vm3868_vm9, %v3850_v18  ;;  %v3854_v22 = vsel %vm3752_vm8, %v6432_v13, %v3818_v35  ;;  %v3855_v16 = vsel %vm3752_vm8, %v6388_v20, %v3819_v51  ;;  %v3856_v13 = vsel %vm3752_vm8, %v6443_v62, %v3820_v46 }
 0x4cf   : > { %v4211_v15 = vpop.eup %4210  ;;  %3888 = vst.msk [vmem:[%s6359_s28 + $0x98] sm:$0xff] %vm3868_vm9, %v3851_v28  ;;  %4222 = vtanh.f32 %v3748_v29  ;;  %v3824_v55 = vmul.f32 %v4209_v42, %v6335_v17  ;;  %v3825_v30 = vmul.f32 %v4205_v63, %v6335_v17  ;;  %v3857_v20 = vsel %vm3752_vm8, %v6465_v39, %v3821_v59 }
 0x4d0   : > { %v4213_v54 = vpop.eup %4212  ;;  %v3823_v37 = vmul.f32 %v4211_v15, %v6335_v17  ;;  %3889 = vst.msk [vmem:[%s6359_s28 + $0xa0] sm:$0xff] %vm3868_vm9, %v3852_v40  ;;  %v3858_v62 = vsel %vm3752_vm8, %v6421_v56, %v3822_v61 }
 0x4d1   : > { %v4215_v14 = vpop.eup %4214  ;;  %3890 = vst.msk [vmem:[%s6359_s28 + $0xa8] sm:$0xff] %vm3868_vm9, %v3853_v36  ;;  %v3828_v24 = vmul.f32 %v4213_v54, %v6335_v17  ;;  %v3860_v56 = vsel %vm3752_vm8, %v6476_v50, %v3824_v55 }
 0x4d2   : > { %v4217_v25 = vpop.eup %4216  ;;  %3891 = vst.msk [vmem:[%s6359_s28 + $0xb0] sm:$0xff] %vm3868_vm9, %v3854_v22  ;;  %v3827_v44 = vmul.f32 %v4215_v14, %v6335_v17  ;;  %v3859_v39 = vsel %vm3752_vm8, %v6487_v57, %v3823_v37  ;;  %v3861_v57 = vsel %vm3752_vm8, %v6454_v9, %v3825_v30 }
 0x4d3   : > { %v4219_v26 = vpop.eup %4218  ;;  %v3826_v38 = vmul.f32 %v4217_v25, %v6335_v17  ;;  %3892 = vst.msk [vmem:[%s6359_s28 + $0xb8] sm:$0xff] %vm3868_vm9, %v3855_v16  ;;  %v3864_v41 = vsel %vm3752_vm8, %v6497_v4, %v3828_v24 }
 0x4d4   : > { %v4221_v52 = vpop.eup %4220  ;;  %3893 = vst.msk [vmem:[%s6359_s28 + $0xc0] sm:$0xff] %vm3868_vm9, %v3856_v13  ;;  %v3829_v48 = vmul.f32 %v4219_v26, %v6335_v17  ;;  %v3863_v11 = vsel %vm3752_vm8, %v6507_v58, %v3827_v44 }
 0x4d5   : > { %v4223_v8 = vpop.eup %4222  ;;  %3894 = vst.msk [vmem:[%s6359_s28 + $0xc8] sm:$0xff] %vm3868_vm9, %v3857_v20  ;;  %v3831_v12 = vmul.f32 %v4221_v52, %v6335_v17  ;;  %v3862_v50 = vsel %vm3752_vm8, %v6517_v1, %v3826_v38 }
 0x4d6   : > { %3895 = vst.msk [vmem:[%s6359_s28 + $0xd0] sm:$0xff] %vm3868_vm9, %v3858_v62  ;;  %v3830_v9 = vmul.f32 %v4223_v8, %v6335_v17  ;;  %v3865_v21 = vsel %vm3752_vm8, %v6529_v32, %v3829_v48 }
 0x4d7   : > { %3896 = vst.msk [vmem:[%s6359_s28 + $0xd8] sm:$0xff] %vm3868_vm9, %v3859_v39  ;;  %v3867_v58 = vsel %vm3752_vm8, %v6539_v10, %v3831_v12 }
 0x4d8   : > { %3897 = vst.msk [vmem:[%s6359_s28 + $0xe0] sm:$0xff] %vm3868_vm9, %v3860_v56  ;;  %v3866_v17 = vsel %vm3752_vm8, %v3748_v29, %v3830_v9 }
 0x4d9   : > { %3898 = vst.msk [vmem:[%s6359_s28 + $0xe8] sm:$0xff] %vm3868_vm9, %v3861_v57 }
 0x4da   : > { %3899 = vst.msk [vmem:[%s6359_s28 + $0xf0] sm:$0xff] %vm3868_vm9, %v3862_v50 }
 0x4db   : > { %3900 = vst.msk [vmem:[%s6359_s28 + $0xf8] sm:$0xff] %vm3868_vm9, %v3863_v11 }
 0x4dc   : > { %3901 = vst.msk [vmem:[%s6359_s28 + $0x100] sm:$0xff] %vm3868_vm9, %v3864_v41 }
 0x4dd   : > { %3902 = vst.msk [vmem:[%s6359_s28 + $0x108] sm:$0xff] %vm3868_vm9, %v3865_v21 }
 0x4de   : > { %3904 = vst.msk [vmem:[%s6359_s28 + $0x118] sm:$0xff] %vm3868_vm9, %v3867_v58 }
 0x4df   : > { %3903 = vst.msk [vmem:[%s6359_s28 + $0x110] sm:$0xff] %vm3868_vm9, %v3866_v17 }
 0x4e0 PF: > { %s17_s20 = sadd.s32 1, %s4234_s20  }
 0x4e1   : > { %p14_p4 = scmp.ge.s32.totalorder %s17_s20, 4  }
 0x4e3   :  { %16 = sbr.rel (!%p14_p4) target bundleno = 3 (0x3), region = 70 }

</bundles_post_ra>
